<compile_context>
chip_gen: v7x
topology: tpu7x:2x2x1
jax: 0.10.0
libtpu: 0.0.40
codegen_flags: <defaults>
</compile_context>

<pallas_src>
import jax
import jax.numpy as jnp
from jax.experimental import pallas as pl
from jax.experimental.pallas import tpu as pltpu

CREPE_N_BINS = 360
CLS_PAD = 384                          # classifier lanes padded to a multiple of 128
BN_EPS = 0.0010000000474974513

K1, S1, PAD1 = 512, 4, 254             # layer-1 conv
K2, PAD_TOP, PAD_BOT = 64, 31, 32      # layers 2-6 conv
ACT_SLAB = 192                         # rows per batch in the padded-activation scratch


# ---------------------------------------------------------------------------
# Fused Pallas kernel: conv1..conv6 (+bias, ReLU, BN, pool) + classifier
# ---------------------------------------------------------------------------
def crepe_fused_kernel(patches_ref, w1_ref, p1_ref,
                       w2_ref, p2_ref, w3_ref, p3_ref,
                       w4_ref, p4_ref, w5_ref, p5_ref,
                       w6_ref, p6_ref, wc_ref, bc_ref,
                       out_ref, acc_ref, act_ref):
    B = out_ref.shape[0]
    H1 = patches_ref.shape[0] // B            # conv1 output rows per batch (256)
    C1 = w1_ref.shape[1]

    def bn_affine(gamma, beta, tot, totsq, count):
        # Training-mode batch stats (biased var), one-pass E[y], E[y^2].
        inv = 1.0 / count
        mean = tot * inv
        var = jnp.maximum(totsq * inv - mean * mean, 0.0)
        s = gamma * jax.lax.rsqrt(var + BN_EPS)
        return s, beta - mean * s

    # ---- layer 1: one bf16 MXU matmul on the pre-gathered patches -----------
    acc_ref[...] = jnp.dot(patches_ref[...], w1_ref[...],
                           preferred_element_type=jnp.float32)
    bias1 = p1_ref[0:1, :]
    gamma1 = p1_ref[1:2, :]
    beta1 = p1_ref[2:3, :]
    tot = jnp.zeros((1, C1), jnp.float32)
    totsq = jnp.zeros((1, C1), jnp.float32)
    CH = 128                                   # stats chunk (rows) -> small live set
    for c in range(B * H1 // CH):
        y = jnp.maximum(acc_ref[c * CH:(c + 1) * CH, :] + bias1, 0.0)
        tot = tot + jnp.sum(y, axis=0, keepdims=True)
        totsq = totsq + jnp.sum(y * y, axis=0, keepdims=True)
    s, t = bn_affine(gamma1, beta1, tot, totsq, float(B * H1))

    act_ref[...] = jnp.zeros_like(act_ref)     # one-time zero (pads + stale VMEM)
    hp = H1 // 2
    for b in range(B):
        even = jnp.maximum(acc_ref[pl.ds(b * H1, hp, 2), :] + bias1, 0.0) * s + t
        odd = jnp.maximum(acc_ref[pl.ds(b * H1 + 1, hp, 2), :] + bias1, 0.0) * s + t
        act_ref[b * ACT_SLAB + PAD_TOP:b * ACT_SLAB + PAD_TOP + hp, :] = \
            jnp.maximum(even, odd)
    h = hp                                     # activation rows per batch (128)

    # ---- layers 2..6: grouped-tap bf16 dots, vreg-carried accumulators ------
    conv_params = [(w2_ref, p2_ref), (w3_ref, p3_ref), (w4_ref, p4_ref),
                   (w5_ref, p5_ref), (w6_ref, p6_ref)]
    feat_base, hlast, cch = 0, 0, 0
    for li, (w_ref, p_ref) in enumerate(conv_params):
        n_groups, gk, cout = w_ref.shape
        G = K2 // n_groups                     # taps per group (layer 2: 2, else 1)
        cin = gk // G
        hout = h                               # stride 1, pad (31, 32), K=64
        bias = p_ref[0:1, :]
        gamma = p_ref[1:2, :]
        beta = p_ref[2:3, :]
        tot = jnp.zeros((1, cout), jnp.float32)
        totsq = jnp.zeros((1, cout), jnp.float32)

        for b in range(B):
            base = b * ACT_SLAB

            def tap_group(g, acc):
                pieces = [act_ref[pl.ds(base + g * G + j, hout), 0:cin]
                          for j in range(G)]
                win = pieces[0] if G == 1 else jnp.concatenate(pieces, axis=1)
                return acc + jnp.dot(win.astype(jnp.bfloat16), w_ref[g],
                                     preferred_element_type=jnp.float32)

            acc = jax.lax.fori_loop(0, n_groups, tap_group,
                                    jnp.zeros((hout, cout), jnp.float32))
            y = jnp.maximum(acc + bias, 0.0)                # bias + ReLU, once
            tot = tot + jnp.sum(y, axis=0, keepdims=True)
            totsq = totsq + jnp.sum(y * y, axis=0, keepdims=True)
            acc_ref[b * hout:(b + 1) * hout, 0:cout] = y    # single store / (b, layer)
        s, t = bn_affine(gamma, beta, tot, totsq, float(B * hout))

        hp = hout // 2
        is_last = li == len(conv_params) - 1
        for b in range(B):
            even = acc_ref[pl.ds(b * hout, hp, 2), 0:cout] * s + t
            odd = acc_ref[pl.ds(b * hout + 1, hp, 2), 0:cout] * s + t
            pooled = jnp.maximum(even, odd)                 # (hp, cout)
            if is_last:
                # park the (4, 64) pooled features above the layer-6 y rows
                feat_base, hlast, cch = B * hout, hp, cout
                acc_ref[feat_base + b * hp:feat_base + (b + 1) * hp, 0:cout] = pooled
            else:
                base = b * ACT_SLAB
                act_ref[base + PAD_TOP:base + PAD_TOP + hp, 0:cout] = pooled
                # zero only the 32-row stale band the next conv reads as bottom pad
                act_ref[base + PAD_TOP + hp:base + PAD_TOP + hp + PAD_BOT, :] = \
                    jnp.zeros((PAD_BOT, act_ref.shape[1]), act_ref.dtype)
        h = hp

    # ---- classifier: h-major flatten via 4 batched dots, then sigmoid -------
    logits = bc_ref[...]                        # (1, CLS_PAD); padded cols are zero
    for hh in range(hlast):
        ph = acc_ref[pl.ds(feat_base + hh, B, hlast), 0:cch]     # (B, 64)
        logits = logits + jnp.dot(ph, wc_ref[hh * cch:(hh + 1) * cch, :],
                                  preferred_element_type=jnp.float32)
    out_ref[...] = 1.0 / (1.0 + jnp.exp(-logits))


# ---------------------------------------------------------------------------
# Wrapper (glue: layer-1 im2col on the raw audio, weight re-layout, bf16 casts)
# ---------------------------------------------------------------------------
def _vmem():
    return pl.BlockSpec(memory_space=pltpu.MemorySpace.VMEM)


def _pack_bn(layer):
    # rows: [conv bias, BN gamma, BN beta]  -> (3, Cout), f32
    return jnp.stack([layer["b"], layer["gamma"], layer["beta"]],
                     axis=0).astype(jnp.float32)


def crepe_forward(x, params):
    """x: (B, 1024) audio frames -> (B, 360) sigmoid pitch activations."""
    B, n = x.shape
    x = x.astype(jnp.float32)

    # Layer-1 im2col in glue (tiny raw input); bf16 halves the only HBM DMA.
    xp = jnp.pad(x, ((0, 0), (PAD1, PAD1)))
    h1 = (n + 2 * PAD1 - K1) // S1 + 1
    assert h1 == 256, "CREPE expects 1024-sample frames"
    idx = jnp.arange(h1)[:, None] * S1 + jnp.arange(K1)[None, :]
    patches1 = xp[:, idx].reshape(B * h1, K1).astype(jnp.bfloat16)

    layers = params["layers"]
    c1 = layers[0]["w"].shape[0]
    # torch conv weight (Cout, Cin, K) -> (K, Cin, Cout); layer 1 flattened.
    w1 = jnp.transpose(layers[0]["w"], (2, 1, 0)).reshape(K1, c1).astype(jnp.bfloat16)
    inputs = [patches1, w1, _pack_bn(layers[0])]
    tap_groups = [2, 1, 1, 1, 1]    # layer 2 pairs taps (K=256); layers 3-6 per tap
    for i in range(1, 6):
        g = tap_groups[i - 1]
        wt = jnp.transpose(layers[i]["w"], (2, 1, 0))              # (64, Cin, Cout)
        cin, cout = wt.shape[1], wt.shape[2]
        inputs.append(wt.reshape(K2 // g, g * cin, cout).astype(jnp.bfloat16))
        inputs.append(_pack_bn(layers[i]))
    # classifier: weight (360, 256) -> lane-padded (256, 384), f32
    wc = jnp.zeros((params["in_features"], CLS_PAD), jnp.float32)
    wc = wc.at[:, :CREPE_N_BINS].set(jnp.transpose(params["cls_w"]))
    bc = jnp.zeros((1, CLS_PAD), jnp.float32).at[:, :CREPE_N_BINS].set(
        params["cls_b"][None, :])
    inputs += [wc, bc]

    out = pl.pallas_call(
        crepe_fused_kernel,
        out_shape=jax.ShapeDtypeStruct((B, CLS_PAD), jnp.float32),
        in_specs=[_vmem()] * len(inputs),
        out_specs=_vmem(),
        scratch_shapes=[
            pltpu.VMEM((B * h1, c1), jnp.float32),          # conv y / feature scratch
            pltpu.VMEM((B * ACT_SLAB, c1), jnp.float32),    # padded activation slabs
        ],
        # TODO(synk): v7x dual-TC and large B need a gridded variant (parallel frame
        # groups + two-pass/per-shard BN stats) and M-tiling of the patches input
        # for v5e's 16 MiB default scoped VMEM.
    )(*inputs)
    return out[:, :CREPE_N_BINS]


# ---------------------------------------------------------------------------
# Parameters (deterministic synthetic init — shapes follow Crepe.__init__)
# ---------------------------------------------------------------------------
def init_params(key, model="tiny"):
    if model != "tiny":
        raise ValueError("this fused kernel is specialized for the 'tiny' config")
    in_ch = [1, 128, 16, 16, 16, 32]
    out_ch = [128, 16, 16, 16, 32, 64]
    in_features = 256
    kernel_sizes = [512] + 5 * [64]

    layers = []
    keys = jax.random.split(key, 6 * 4 + 2)
    for i in range(6):
        k_w, k_b, k_g, k_beta = keys[4 * i: 4 * i + 4]
        fan_in = in_ch[i] * kernel_sizes[i]
        layers.append(dict(
            w=jax.random.normal(k_w, (out_ch[i], in_ch[i], kernel_sizes[i]),
                                jnp.float32) / jnp.sqrt(float(fan_in)),
            b=0.05 * jax.random.normal(k_b, (out_ch[i],), jnp.float32),
            gamma=1.0 + 0.1 * jax.random.normal(k_g, (out_ch[i],), jnp.float32),
            beta=0.1 * jax.random.normal(k_beta, (out_ch[i],), jnp.float32),
        ))
    cls_w = jax.random.normal(keys[-2], (CREPE_N_BINS, in_features),
                              jnp.float32) / jnp.sqrt(float(in_features))
    cls_b = 0.05 * jax.random.normal(keys[-1], (CREPE_N_BINS,), jnp.float32)
    return dict(layers=layers, cls_w=cls_w, cls_b=cls_b, in_features=in_features)


if __name__ == "__main__":
    key = jax.random.PRNGKey(0)
    pkey, xkey = jax.random.split(key)
    params = init_params(pkey, model="tiny")
    B = 2
    # CREPE frame length must be 1024 so the final feature map has H=4.
    x = jax.random.normal(xkey, (B, 1024), dtype=jnp.float32)
    out = jax.jit(lambda a: crepe_forward(a, params))(x)
    out = jax.block_until_ready(out)
    assert out.shape == (B, CREPE_N_BINS), out.shape
    assert bool(jnp.all(jnp.isfinite(out)))
    assert bool(jnp.all((out >= 0.0) & (out <= 1.0)))  # sigmoid range
    print("KERNEL_OK")
</pallas_src>

<mosaic_0001>
module attributes {stable_mosaic.version = 11 : i64} {
  func.func @crepe_fused_kernel(%arg0: memref<512x512xbf16, #tpu.memory_space<vmem>>, %arg1: memref<512x128xbf16, #tpu.memory_space<vmem>>, %arg2: memref<3x128xf32, #tpu.memory_space<vmem>>, %arg3: memref<32x256x16xbf16, #tpu.memory_space<vmem>>, %arg4: memref<3x16xf32, #tpu.memory_space<vmem>>, %arg5: memref<64x16x16xbf16, #tpu.memory_space<vmem>>, %arg6: memref<3x16xf32, #tpu.memory_space<vmem>>, %arg7: memref<64x16x16xbf16, #tpu.memory_space<vmem>>, %arg8: memref<3x16xf32, #tpu.memory_space<vmem>>, %arg9: memref<64x16x32xbf16, #tpu.memory_space<vmem>>, %arg10: memref<3x32xf32, #tpu.memory_space<vmem>>, %arg11: memref<64x32x64xbf16, #tpu.memory_space<vmem>>, %arg12: memref<3x64xf32, #tpu.memory_space<vmem>>, %arg13: memref<256x384xf32, #tpu.memory_space<vmem>>, %arg14: memref<1x384xf32, #tpu.memory_space<vmem>>, %arg15: memref<2x384xf32, #tpu.memory_space<vmem>>, %arg16: memref<512x128xf32, #tpu.memory_space<vmem>>, %arg17: memref<384x128xf32, #tpu.memory_space<vmem>>) attributes {dimension_semantics = [], scalar_prefetch = 0 : i64, scratch_operands = 2 : i64, tpu.core_type = #tpu.core_type<tc>} {
    %c0 = arith.constant 0 : index
    %c0_0 = arith.constant 0 : index
    %0 = vector.load %arg0[%c0, %c0_0] : memref<512x512xbf16, #tpu.memory_space<vmem>>, vector<512x512xbf16>
    %c0_1 = arith.constant 0 : index
    %c0_2 = arith.constant 0 : index
    %1 = vector.load %arg1[%c0_1, %c0_2] : memref<512x128xbf16, #tpu.memory_space<vmem>>, vector<512x128xbf16>
    %cst = arith.constant dense<0.000000e+00> : vector<512x128xf32>
    %2 = tpu.matmul %0, %1, %cst {dimension_numbers = #tpu.dot_dimension_numbers<[1], [0], [0], [1], [0, 0, 1, 1], [], []>} : vector<512x512xbf16>, vector<512x128xbf16>, vector<512x128xf32> -> vector<512x128xf32>
    %c0_3 = arith.constant 0 : index
    %c0_4 = arith.constant 0 : index
    %3 = vector.load %arg16[%c0_3, %c0_4] : memref<512x128xf32, #tpu.memory_space<vmem>>, vector<512x128xf32>
    tpu.vector_store %arg16[%c0_3, %c0_4], %2 {strides = array<i32>} : memref<512x128xf32, #tpu.memory_space<vmem>>, vector<512x128xf32>,
    %c0_5 = arith.constant 0 : index
    %c0_6 = arith.constant 0 : index
    %4 = vector.load %arg2[%c0_5, %c0_6] : memref<3x128xf32, #tpu.memory_space<vmem>>, vector<1x128xf32>
    %c1 = arith.constant 1 : index
    %c0_7 = arith.constant 0 : index
    %5 = vector.load %arg2[%c1, %c0_7] : memref<3x128xf32, #tpu.memory_space<vmem>>, vector<1x128xf32>
    %c2 = arith.constant 2 : index
    %c0_8 = arith.constant 0 : index
    %6 = vector.load %arg2[%c2, %c0_8] : memref<3x128xf32, #tpu.memory_space<vmem>>, vector<1x128xf32>
    %cst_9 = arith.constant 0.000000e+00 : f32
    %7 = vector.broadcast %cst_9 : f32 to vector<1x128xf32>
    %cst_10 = arith.constant 0.000000e+00 : f32
    %8 = vector.broadcast %cst_10 : f32 to vector<1x128xf32>
    %c0_11 = arith.constant 0 : index
    %c0_12 = arith.constant 0 : index
    %9 = vector.load %arg16[%c0_11, %c0_12] : memref<512x128xf32, #tpu.memory_space<vmem>>, vector<128x128xf32>
    %10 = vector.broadcast %4 : vector<1x128xf32> to vector<128x128xf32>
    %11 = arith.addf %9, %10 : vector<128x128xf32>
    %cst_13 = arith.constant 0.000000e+00 : f32
    %12 = vector.broadcast %cst_13 : f32 to vector<128x128xf32>
    %13 = arith.maximumf %11, %12 : vector<128x128xf32>
    %cst_14 = arith.constant dense<0.000000e+00> : vector<128xf32>
    %14 = vector.multi_reduction <add>, %13, %cst_14 [0] : vector<128x128xf32> to vector<128xf32>
    %15 = vector.shape_cast %14 : vector<128xf32> to vector<1x128xf32>
    %16 = arith.addf %7, %15 : vector<1x128xf32>
    %17 = arith.mulf %13, %13 : vector<128x128xf32>
    %cst_15 = arith.constant dense<0.000000e+00> : vector<128xf32>
    %18 = vector.multi_reduction <add>, %17, %cst_15 [0] : vector<128x128xf32> to vector<128xf32>
    %19 = vector.shape_cast %18 : vector<128xf32> to vector<1x128xf32>
    %20 = arith.addf %8, %19 : vector<1x128xf32>
    %c128 = arith.constant 128 : index
    %c0_16 = arith.constant 0 : index
    %21 = vector.load %arg16[%c128, %c0_16] : memref<512x128xf32, #tpu.memory_space<vmem>>, vector<128x128xf32>
    %22 = vector.broadcast %4 : vector<1x128xf32> to vector<128x128xf32>
    %23 = arith.addf %21, %22 : vector<128x128xf32>
    %cst_17 = arith.constant 0.000000e+00 : f32
    %24 = vector.broadcast %cst_17 : f32 to vector<128x128xf32>
    %25 = arith.maximumf %23, %24 : vector<128x128xf32>
    %cst_18 = arith.constant dense<0.000000e+00> : vector<128xf32>
    %26 = vector.multi_reduction <add>, %25, %cst_18 [0] : vector<128x128xf32> to vector<128xf32>
    %27 = vector.shape_cast %26 : vector<128xf32> to vector<1x128xf32>
    %28 = arith.addf %16, %27 : vector<1x128xf32>
    %29 = arith.mulf %25, %25 : vector<128x128xf32>
    %cst_19 = arith.constant dense<0.000000e+00> : vector<128xf32>
    %30 = vector.multi_reduction <add>, %29, %cst_19 [0] : vector<128x128xf32> to vector<128xf32>
    %31 = vector.shape_cast %30 : vector<128xf32> to vector<1x128xf32>
    %32 = arith.addf %20, %31 : vector<1x128xf32>
    %c256 = arith.constant 256 : index
    %c0_20 = arith.constant 0 : index
    %33 = vector.load %arg16[%c256, %c0_20] : memref<512x128xf32, #tpu.memory_space<vmem>>, vector<128x128xf32>
    %34 = vector.broadcast %4 : vector<1x128xf32> to vector<128x128xf32>
    %35 = arith.addf %33, %34 : vector<128x128xf32>
    %cst_21 = arith.constant 0.000000e+00 : f32
    %36 = vector.broadcast %cst_21 : f32 to vector<128x128xf32>
    %37 = arith.maximumf %35, %36 : vector<128x128xf32>
    %cst_22 = arith.constant dense<0.000000e+00> : vector<128xf32>
    %38 = vector.multi_reduction <add>, %37, %cst_22 [0] : vector<128x128xf32> to vector<128xf32>
    %39 = vector.shape_cast %38 : vector<128xf32> to vector<1x128xf32>
    %40 = arith.addf %28, %39 : vector<1x128xf32>
    %41 = arith.mulf %37, %37 : vector<128x128xf32>
    %cst_23 = arith.constant dense<0.000000e+00> : vector<128xf32>
    %42 = vector.multi_reduction <add>, %41, %cst_23 [0] : vector<128x128xf32> to vector<128xf32>
    %43 = vector.shape_cast %42 : vector<128xf32> to vector<1x128xf32>
    %44 = arith.addf %32, %43 : vector<1x128xf32>
    %c384 = arith.constant 384 : index
    %c0_24 = arith.constant 0 : index
    %45 = vector.load %arg16[%c384, %c0_24] : memref<512x128xf32, #tpu.memory_space<vmem>>, vector<128x128xf32>
    %46 = vector.broadcast %4 : vector<1x128xf32> to vector<128x128xf32>
    %47 = arith.addf %45, %46 : vector<128x128xf32>
    %cst_25 = arith.constant 0.000000e+00 : f32
    %48 = vector.broadcast %cst_25 : f32 to vector<128x128xf32>
    %49 = arith.maximumf %47, %48 : vector<128x128xf32>
    %cst_26 = arith.constant dense<0.000000e+00> : vector<128xf32>
    %50 = vector.multi_reduction <add>, %49, %cst_26 [0] : vector<128x128xf32> to vector<128xf32>
    %51 = vector.shape_cast %50 : vector<128xf32> to vector<1x128xf32>
    %52 = arith.addf %40, %51 : vector<1x128xf32>
    %53 = arith.mulf %49, %49 : vector<128x128xf32>
    %cst_27 = arith.constant dense<0.000000e+00> : vector<128xf32>
    %54 = vector.multi_reduction <add>, %53, %cst_27 [0] : vector<128x128xf32> to vector<128xf32>
    %55 = vector.shape_cast %54 : vector<128xf32> to vector<1x128xf32>
    %56 = arith.addf %44, %55 : vector<1x128xf32>
    %cst_28 = arith.constant 0.001953125 : f32
    %57 = vector.broadcast %cst_28 : f32 to vector<1x128xf32>
    %58 = arith.mulf %52, %57 : vector<1x128xf32>
    %cst_29 = arith.constant 0.001953125 : f32
    %59 = vector.broadcast %cst_29 : f32 to vector<1x128xf32>
    %60 = arith.mulf %56, %59 : vector<1x128xf32>
    %61 = arith.mulf %58, %58 : vector<1x128xf32>
    %62 = arith.subf %60, %61 : vector<1x128xf32>
    %cst_30 = arith.constant 0.000000e+00 : f32
    %63 = vector.broadcast %cst_30 : f32 to vector<1x128xf32>
    %64 = arith.maximumf %62, %63 : vector<1x128xf32>
    %cst_31 = arith.constant 1.000000e-03 : f32
    %65 = vector.broadcast %cst_31 : f32 to vector<1x128xf32>
    %66 = arith.addf %64, %65 : vector<1x128xf32>
    %67 = math.rsqrt %66 : vector<1x128xf32>
    %68 = arith.mulf %5, %67 : vector<1x128xf32>
    %69 = arith.mulf %58, %68 : vector<1x128xf32>
    %70 = arith.subf %6, %69 : vector<1x128xf32>
    %cst_32 = arith.constant 0.000000e+00 : f32
    %71 = vector.broadcast %cst_32 : f32 to vector<384x128xf32>
    %c0_33 = arith.constant 0 : index
    %c0_34 = arith.constant 0 : index
    %72 = vector.load %arg17[%c0_33, %c0_34] : memref<384x128xf32, #tpu.memory_space<vmem>>, vector<384x128xf32>
    tpu.vector_store %arg17[%c0_33, %c0_34], %71 {strides = array<i32>} : memref<384x128xf32, #tpu.memory_space<vmem>>, vector<384x128xf32>,
    %c0_35 = arith.constant 0 : index
    %c0_36 = arith.constant 0 : index
    %73 = tpu.strided_load %arg16[%c0_35, %c0_36] {strides = array<i32: 2, 1>} : memref<512x128xf32, #tpu.memory_space<vmem>>, vector<128x128xf32>
    %74 = vector.broadcast %4 : vector<1x128xf32> to vector<128x128xf32>
    %75 = arith.addf %73, %74 : vector<128x128xf32>
    %cst_37 = arith.constant 0.000000e+00 : f32
    %76 = vector.broadcast %cst_37 : f32 to vector<128x128xf32>
    %77 = arith.maximumf %75, %76 : vector<128x128xf32>
    %78 = vector.broadcast %68 : vector<1x128xf32> to vector<128x128xf32>
    %79 = arith.mulf %77, %78 : vector<128x128xf32>
    %80 = vector.broadcast %70 : vector<1x128xf32> to vector<128x128xf32>
    %81 = arith.addf %79, %80 : vector<128x128xf32>
    %c1_38 = arith.constant 1 : index
    %c0_39 = arith.constant 0 : index
    %82 = tpu.strided_load %arg16[%c1_38, %c0_39] {strides = array<i32: 2, 1>} : memref<512x128xf32, #tpu.memory_space<vmem>>, vector<128x128xf32>
    %83 = vector.broadcast %4 : vector<1x128xf32> to vector<128x128xf32>
    %84 = arith.addf %82, %83 : vector<128x128xf32>
    %cst_40 = arith.constant 0.000000e+00 : f32
    %85 = vector.broadcast %cst_40 : f32 to vector<128x128xf32>
    %86 = arith.maximumf %84, %85 : vector<128x128xf32>
    %87 = vector.broadcast %68 : vector<1x128xf32> to vector<128x128xf32>
    %88 = arith.mulf %86, %87 : vector<128x128xf32>
    %89 = vector.broadcast %70 : vector<1x128xf32> to vector<128x128xf32>
    %90 = arith.addf %88, %89 : vector<128x128xf32>
    %91 = arith.maximumf %81, %90 : vector<128x128xf32>
    %c31 = arith.constant 31 : index
    %c0_41 = arith.constant 0 : index
    %92 = vector.load %arg17[%c31, %c0_41] : memref<384x128xf32, #tpu.memory_space<vmem>>, vector<128x128xf32>
    tpu.vector_store %arg17[%c31, %c0_41], %91 {strides = array<i32>} : memref<384x128xf32, #tpu.memory_space<vmem>>, vector<128x128xf32>,
    %c256_42 = arith.constant 256 : index
    %c0_43 = arith.constant 0 : index
    %93 = tpu.strided_load %arg16[%c256_42, %c0_43] {strides = array<i32: 2, 1>} : memref<512x128xf32, #tpu.memory_space<vmem>>, vector<128x128xf32>
    %94 = vector.broadcast %4 : vector<1x128xf32> to vector<128x128xf32>
    %95 = arith.addf %93, %94 : vector<128x128xf32>
    %cst_44 = arith.constant 0.000000e+00 : f32
    %96 = vector.broadcast %cst_44 : f32 to vector<128x128xf32>
    %97 = arith.maximumf %95, %96 : vector<128x128xf32>
    %98 = vector.broadcast %68 : vector<1x128xf32> to vector<128x128xf32>
    %99 = arith.mulf %97, %98 : vector<128x128xf32>
    %100 = vector.broadcast %70 : vector<1x128xf32> to vector<128x128xf32>
    %101 = arith.addf %99, %100 : vector<128x128xf32>
    %c257 = arith.constant 257 : index
    %c0_45 = arith.constant 0 : index
    %102 = tpu.strided_load %arg16[%c257, %c0_45] {strides = array<i32: 2, 1>} : memref<512x128xf32, #tpu.memory_space<vmem>>, vector<128x128xf32>
    %103 = vector.broadcast %4 : vector<1x128xf32> to vector<128x128xf32>
    %104 = arith.addf %102, %103 : vector<128x128xf32>
    %cst_46 = arith.constant 0.000000e+00 : f32
    %105 = vector.broadcast %cst_46 : f32 to vector<128x128xf32>
    %106 = arith.maximumf %104, %105 : vector<128x128xf32>
    %107 = vector.broadcast %68 : vector<1x128xf32> to vector<128x128xf32>
    %108 = arith.mulf %106, %107 : vector<128x128xf32>
    %109 = vector.broadcast %70 : vector<1x128xf32> to vector<128x128xf32>
    %110 = arith.addf %108, %109 : vector<128x128xf32>
    %111 = arith.maximumf %101, %110 : vector<128x128xf32>
    %c223 = arith.constant 223 : index
    %c0_47 = arith.constant 0 : index
    %112 = vector.load %arg17[%c223, %c0_47] : memref<384x128xf32, #tpu.memory_space<vmem>>, vector<128x128xf32>
    tpu.vector_store %arg17[%c223, %c0_47], %111 {strides = array<i32>} : memref<384x128xf32, #tpu.memory_space<vmem>>, vector<128x128xf32>,
    %c0_48 = arith.constant 0 : index
    %c0_49 = arith.constant 0 : index
    %113 = vector.load %arg4[%c0_48, %c0_49] : memref<3x16xf32, #tpu.memory_space<vmem>>, vector<1x16xf32>
    %c1_50 = arith.constant 1 : index
    %c0_51 = arith.constant 0 : index
    %114 = vector.load %arg4[%c1_50, %c0_51] : memref<3x16xf32, #tpu.memory_space<vmem>>, vector<1x16xf32>
    %c2_52 = arith.constant 2 : index
    %c0_53 = arith.constant 0 : index
    %115 = vector.load %arg4[%c2_52, %c0_53] : memref<3x16xf32, #tpu.memory_space<vmem>>, vector<1x16xf32>
    %cst_54 = arith.constant 0.000000e+00 : f32
    %116 = vector.broadcast %cst_54 : f32 to vector<1x16xf32>
    %cst_55 = arith.constant 0.000000e+00 : f32
    %117 = vector.broadcast %cst_55 : f32 to vector<1x16xf32>
    %cst_56 = arith.constant 0.000000e+00 : f32
    %118 = vector.broadcast %cst_56 : f32 to vector<128x16xf32>
    %c0_i32 = arith.constant 0 : i32
    %c32_i32 = arith.constant 32 : i32
    %119 = arith.addi %c0_i32, %c32_i32 : i32
    %c1_i32 = arith.constant 1 : i32
    %120 = scf.for %arg18 = %c0_i32 to %119 step %c1_i32 iter_args(%arg19 = %118) -> (vector<128x16xf32>)  : i32 {
      %c2_i32 = arith.constant 2 : i32
      %520 = arith.muli %arg18, %c2_i32 : i32
      %c0_i32_294 = arith.constant 0 : i32
      %521 = arith.addi %c0_i32_294, %520 : i32
      %c0_i32_295 = arith.constant 0 : i32
      %522 = arith.addi %521, %c0_i32_295 : i32
      %523 = arith.index_cast %522 : i32 to index
      %c0_296 = arith.constant 0 : index
      %524 = vector.load %arg17[%523, %c0_296] : memref<384x128xf32, #tpu.memory_space<vmem>>, vector<128x128xf32>
      %c2_i32_297 = arith.constant 2 : i32
      %525 = arith.muli %arg18, %c2_i32_297 : i32
      %c0_i32_298 = arith.constant 0 : i32
      %526 = arith.addi %c0_i32_298, %525 : i32
      %c1_i32_299 = arith.constant 1 : i32
      %527 = arith.addi %526, %c1_i32_299 : i32
      %528 = arith.index_cast %527 : i32 to index
      %c0_300 = arith.constant 0 : index
      %529 = vector.load %arg17[%528, %c0_300] : memref<384x128xf32, #tpu.memory_space<vmem>>, vector<128x128xf32>
      %530 = tpu.concatenate %524, %529 in 1 : vector<128x128xf32>, vector<128x128xf32> -> vector<128x256xf32>
      %531 = arith.truncf %530 : vector<128x256xf32> to vector<128x256xbf16>
      %532 = arith.index_cast %arg18 : i32 to index
      %c0_301 = arith.constant 0 : index
      %c0_302 = arith.constant 0 : index
      %533 = vector.load %arg3[%532, %c0_301, %c0_302] : memref<32x256x16xbf16, #tpu.memory_space<vmem>>, vector<1x256x16xbf16>
      %534 = vector.shape_cast %533 : vector<1x256x16xbf16> to vector<256x16xbf16>
      %cst_303 = arith.constant dense<0.000000e+00> : vector<128x16xf32>
      %535 = tpu.matmul %531, %534, %cst_303 {dimension_numbers = #tpu.dot_dimension_numbers<[1], [0], [0], [1], [0, 0, 1, 1], [], []>} : vector<128x256xbf16>, vector<256x16xbf16>, vector<128x16xf32> -> vector<128x16xf32>
      %536 = arith.addf %arg19, %535 : vector<128x16xf32>
      scf.yield %536 : vector<128x16xf32>
    }
    %c32_i32_57 = arith.constant 32 : i32
    %121 = vector.broadcast %113 : vector<1x16xf32> to vector<128x16xf32>
    %122 = arith.addf %120, %121 : vector<128x16xf32>
    %cst_58 = arith.constant 0.000000e+00 : f32
    %123 = vector.broadcast %cst_58 : f32 to vector<128x16xf32>
    %124 = arith.maximumf %122, %123 : vector<128x16xf32>
    %cst_59 = arith.constant dense<0.000000e+00> : vector<16xf32>
    %125 = vector.multi_reduction <add>, %124, %cst_59 [0] : vector<128x16xf32> to vector<16xf32>
    %126 = vector.shape_cast %125 : vector<16xf32> to vector<1x16xf32>
    %127 = arith.addf %116, %126 : vector<1x16xf32>
    %128 = arith.mulf %124, %124 : vector<128x16xf32>
    %cst_60 = arith.constant dense<0.000000e+00> : vector<16xf32>
    %129 = vector.multi_reduction <add>, %128, %cst_60 [0] : vector<128x16xf32> to vector<16xf32>
    %130 = vector.shape_cast %129 : vector<16xf32> to vector<1x16xf32>
    %131 = arith.addf %117, %130 : vector<1x16xf32>
    %c0_61 = arith.constant 0 : index
    %c0_62 = arith.constant 0 : index
    %132 = vector.load %arg16[%c0_61, %c0_62] : memref<512x128xf32, #tpu.memory_space<vmem>>, vector<128x16xf32>
    tpu.vector_store %arg16[%c0_61, %c0_62], %124 {strides = array<i32>} : memref<512x128xf32, #tpu.memory_space<vmem>>, vector<128x16xf32>,
    %cst_63 = arith.constant 0.000000e+00 : f32
    %133 = vector.broadcast %cst_63 : f32 to vector<128x16xf32>
    %c0_i32_64 = arith.constant 0 : i32
    %c32_i32_65 = arith.constant 32 : i32
    %134 = arith.addi %c0_i32_64, %c32_i32_65 : i32
    %c1_i32_66 = arith.constant 1 : i32
    %135 = scf.for %arg18 = %c0_i32_64 to %134 step %c1_i32_66 iter_args(%arg19 = %133) -> (vector<128x16xf32>)  : i32 {
      %c2_i32 = arith.constant 2 : i32
      %520 = arith.muli %arg18, %c2_i32 : i32
      %c192_i32 = arith.constant 192 : i32
      %521 = arith.addi %c192_i32, %520 : i32
      %c0_i32_294 = arith.constant 0 : i32
      %522 = arith.addi %521, %c0_i32_294 : i32
      %523 = arith.index_cast %522 : i32 to index
      %c0_295 = arith.constant 0 : index
      %524 = vector.load %arg17[%523, %c0_295] : memref<384x128xf32, #tpu.memory_space<vmem>>, vector<128x128xf32>
      %c2_i32_296 = arith.constant 2 : i32
      %525 = arith.muli %arg18, %c2_i32_296 : i32
      %c192_i32_297 = arith.constant 192 : i32
      %526 = arith.addi %c192_i32_297, %525 : i32
      %c1_i32_298 = arith.constant 1 : i32
      %527 = arith.addi %526, %c1_i32_298 : i32
      %528 = arith.index_cast %527 : i32 to index
      %c0_299 = arith.constant 0 : index
      %529 = vector.load %arg17[%528, %c0_299] : memref<384x128xf32, #tpu.memory_space<vmem>>, vector<128x128xf32>
      %530 = tpu.concatenate %524, %529 in 1 : vector<128x128xf32>, vector<128x128xf32> -> vector<128x256xf32>
      %531 = arith.truncf %530 : vector<128x256xf32> to vector<128x256xbf16>
      %532 = arith.index_cast %arg18 : i32 to index
      %c0_300 = arith.constant 0 : index
      %c0_301 = arith.constant 0 : index
      %533 = vector.load %arg3[%532, %c0_300, %c0_301] : memref<32x256x16xbf16, #tpu.memory_space<vmem>>, vector<1x256x16xbf16>
      %534 = vector.shape_cast %533 : vector<1x256x16xbf16> to vector<256x16xbf16>
      %cst_302 = arith.constant dense<0.000000e+00> : vector<128x16xf32>
      %535 = tpu.matmul %531, %534, %cst_302 {dimension_numbers = #tpu.dot_dimension_numbers<[1], [0], [0], [1], [0, 0, 1, 1], [], []>} : vector<128x256xbf16>, vector<256x16xbf16>, vector<128x16xf32> -> vector<128x16xf32>
      %536 = arith.addf %arg19, %535 : vector<128x16xf32>
      scf.yield %536 : vector<128x16xf32>
    }
    %c32_i32_67 = arith.constant 32 : i32
    %136 = vector.broadcast %113 : vector<1x16xf32> to vector<128x16xf32>
    %137 = arith.addf %135, %136 : vector<128x16xf32>
    %cst_68 = arith.constant 0.000000e+00 : f32
    %138 = vector.broadcast %cst_68 : f32 to vector<128x16xf32>
    %139 = arith.maximumf %137, %138 : vector<128x16xf32>
    %cst_69 = arith.constant dense<0.000000e+00> : vector<16xf32>
    %140 = vector.multi_reduction <add>, %139, %cst_69 [0] : vector<128x16xf32> to vector<16xf32>
    %141 = vector.shape_cast %140 : vector<16xf32> to vector<1x16xf32>
    %142 = arith.addf %127, %141 : vector<1x16xf32>
    %143 = arith.mulf %139, %139 : vector<128x16xf32>
    %cst_70 = arith.constant dense<0.000000e+00> : vector<16xf32>
    %144 = vector.multi_reduction <add>, %143, %cst_70 [0] : vector<128x16xf32> to vector<16xf32>
    %145 = vector.shape_cast %144 : vector<16xf32> to vector<1x16xf32>
    %146 = arith.addf %131, %145 : vector<1x16xf32>
    %c128_71 = arith.constant 128 : index
    %c0_72 = arith.constant 0 : index
    %147 = vector.load %arg16[%c128_71, %c0_72] : memref<512x128xf32, #tpu.memory_space<vmem>>, vector<128x16xf32>
    tpu.vector_store %arg16[%c128_71, %c0_72], %139 {strides = array<i32>} : memref<512x128xf32, #tpu.memory_space<vmem>>, vector<128x16xf32>,
    %cst_73 = arith.constant 3.906250e-03 : f32
    %148 = vector.broadcast %cst_73 : f32 to vector<1x16xf32>
    %149 = arith.mulf %142, %148 : vector<1x16xf32>
    %cst_74 = arith.constant 3.906250e-03 : f32
    %150 = vector.broadcast %cst_74 : f32 to vector<1x16xf32>
    %151 = arith.mulf %146, %150 : vector<1x16xf32>
    %152 = arith.mulf %149, %149 : vector<1x16xf32>
    %153 = arith.subf %151, %152 : vector<1x16xf32>
    %cst_75 = arith.constant 0.000000e+00 : f32
    %154 = vector.broadcast %cst_75 : f32 to vector<1x16xf32>
    %155 = arith.maximumf %153, %154 : vector<1x16xf32>
    %cst_76 = arith.constant 1.000000e-03 : f32
    %156 = vector.broadcast %cst_76 : f32 to vector<1x16xf32>
    %157 = arith.addf %155, %156 : vector<1x16xf32>
    %158 = math.rsqrt %157 : vector<1x16xf32>
    %159 = arith.mulf %114, %158 : vector<1x16xf32>
    %160 = arith.mulf %149, %159 : vector<1x16xf32>
    %161 = arith.subf %115, %160 : vector<1x16xf32>
    %c0_77 = arith.constant 0 : index
    %c0_78 = arith.constant 0 : index
    %162 = tpu.strided_load %arg16[%c0_77, %c0_78] {strides = array<i32: 2, 1>} : memref<512x128xf32, #tpu.memory_space<vmem>>, vector<64x16xf32>
    %163 = vector.broadcast %159 : vector<1x16xf32> to vector<64x16xf32>
    %164 = arith.mulf %162, %163 : vector<64x16xf32>
    %165 = vector.broadcast %161 : vector<1x16xf32> to vector<64x16xf32>
    %166 = arith.addf %164, %165 : vector<64x16xf32>
    %c1_79 = arith.constant 1 : index
    %c0_80 = arith.constant 0 : index
    %167 = tpu.strided_load %arg16[%c1_79, %c0_80] {strides = array<i32: 2, 1>} : memref<512x128xf32, #tpu.memory_space<vmem>>, vector<64x16xf32>
    %168 = vector.broadcast %159 : vector<1x16xf32> to vector<64x16xf32>
    %169 = arith.mulf %167, %168 : vector<64x16xf32>
    %170 = vector.broadcast %161 : vector<1x16xf32> to vector<64x16xf32>
    %171 = arith.addf %169, %170 : vector<64x16xf32>
    %172 = arith.maximumf %166, %171 : vector<64x16xf32>
    %c31_81 = arith.constant 31 : index
    %c0_82 = arith.constant 0 : index
    %173 = vector.load %arg17[%c31_81, %c0_82] : memref<384x128xf32, #tpu.memory_space<vmem>>, vector<64x16xf32>
    tpu.vector_store %arg17[%c31_81, %c0_82], %172 {strides = array<i32>} : memref<384x128xf32, #tpu.memory_space<vmem>>, vector<64x16xf32>,
    %cst_83 = arith.constant 0.000000e+00 : f32
    %174 = vector.broadcast %cst_83 : f32 to vector<32x128xf32>
    %c95 = arith.constant 95 : index
    %c0_84 = arith.constant 0 : index
    %175 = vector.load %arg17[%c95, %c0_84] : memref<384x128xf32, #tpu.memory_space<vmem>>, vector<32x128xf32>
    tpu.vector_store %arg17[%c95, %c0_84], %174 {strides = array<i32>} : memref<384x128xf32, #tpu.memory_space<vmem>>, vector<32x128xf32>,
    %c128_85 = arith.constant 128 : index
    %c0_86 = arith.constant 0 : index
    %176 = tpu.strided_load %arg16[%c128_85, %c0_86] {strides = array<i32: 2, 1>} : memref<512x128xf32, #tpu.memory_space<vmem>>, vector<64x16xf32>
    %177 = vector.broadcast %159 : vector<1x16xf32> to vector<64x16xf32>
    %178 = arith.mulf %176, %177 : vector<64x16xf32>
    %179 = vector.broadcast %161 : vector<1x16xf32> to vector<64x16xf32>
    %180 = arith.addf %178, %179 : vector<64x16xf32>
    %c129 = arith.constant 129 : index
    %c0_87 = arith.constant 0 : index
    %181 = tpu.strided_load %arg16[%c129, %c0_87] {strides = array<i32: 2, 1>} : memref<512x128xf32, #tpu.memory_space<vmem>>, vector<64x16xf32>
    %182 = vector.broadcast %159 : vector<1x16xf32> to vector<64x16xf32>
    %183 = arith.mulf %181, %182 : vector<64x16xf32>
    %184 = vector.broadcast %161 : vector<1x16xf32> to vector<64x16xf32>
    %185 = arith.addf %183, %184 : vector<64x16xf32>
    %186 = arith.maximumf %180, %185 : vector<64x16xf32>
    %c223_88 = arith.constant 223 : index
    %c0_89 = arith.constant 0 : index
    %187 = vector.load %arg17[%c223_88, %c0_89] : memref<384x128xf32, #tpu.memory_space<vmem>>, vector<64x16xf32>
    tpu.vector_store %arg17[%c223_88, %c0_89], %186 {strides = array<i32>} : memref<384x128xf32, #tpu.memory_space<vmem>>, vector<64x16xf32>,
    %cst_90 = arith.constant 0.000000e+00 : f32
    %188 = vector.broadcast %cst_90 : f32 to vector<32x128xf32>
    %c287 = arith.constant 287 : index
    %c0_91 = arith.constant 0 : index
    %189 = vector.load %arg17[%c287, %c0_91] : memref<384x128xf32, #tpu.memory_space<vmem>>, vector<32x128xf32>
    tpu.vector_store %arg17[%c287, %c0_91], %188 {strides = array<i32>} : memref<384x128xf32, #tpu.memory_space<vmem>>, vector<32x128xf32>,
    %c0_92 = arith.constant 0 : index
    %c0_93 = arith.constant 0 : index
    %190 = vector.load %arg6[%c0_92, %c0_93] : memref<3x16xf32, #tpu.memory_space<vmem>>, vector<1x16xf32>
    %c1_94 = arith.constant 1 : index
    %c0_95 = arith.constant 0 : index
    %191 = vector.load %arg6[%c1_94, %c0_95] : memref<3x16xf32, #tpu.memory_space<vmem>>, vector<1x16xf32>
    %c2_96 = arith.constant 2 : index
    %c0_97 = arith.constant 0 : index
    %192 = vector.load %arg6[%c2_96, %c0_97] : memref<3x16xf32, #tpu.memory_space<vmem>>, vector<1x16xf32>
    %cst_98 = arith.constant 0.000000e+00 : f32
    %193 = vector.broadcast %cst_98 : f32 to vector<1x16xf32>
    %cst_99 = arith.constant 0.000000e+00 : f32
    %194 = vector.broadcast %cst_99 : f32 to vector<1x16xf32>
    %cst_100 = arith.constant 0.000000e+00 : f32
    %195 = vector.broadcast %cst_100 : f32 to vector<64x16xf32>
    %c0_i32_101 = arith.constant 0 : i32
    %c64_i32 = arith.constant 64 : i32
    %196 = arith.addi %c0_i32_101, %c64_i32 : i32
    %c1_i32_102 = arith.constant 1 : i32
    %197 = scf.for %arg18 = %c0_i32_101 to %196 step %c1_i32_102 iter_args(%arg19 = %195) -> (vector<64x16xf32>)  : i32 {
      %c1_i32_294 = arith.constant 1 : i32
      %520 = arith.muli %arg18, %c1_i32_294 : i32
      %c0_i32_295 = arith.constant 0 : i32
      %521 = arith.addi %c0_i32_295, %520 : i32
      %c0_i32_296 = arith.constant 0 : i32
      %522 = arith.addi %521, %c0_i32_296 : i32
      %523 = arith.index_cast %522 : i32 to index
      %c0_297 = arith.constant 0 : index
      %524 = vector.load %arg17[%523, %c0_297] : memref<384x128xf32, #tpu.memory_space<vmem>>, vector<64x16xf32>
      %525 = arith.truncf %524 : vector<64x16xf32> to vector<64x16xbf16>
      %526 = arith.index_cast %arg18 : i32 to index
      %c0_298 = arith.constant 0 : index
      %c0_299 = arith.constant 0 : index
      %527 = vector.load %arg5[%526, %c0_298, %c0_299] : memref<64x16x16xbf16, #tpu.memory_space<vmem>>, vector<1x16x16xbf16>
      %528 = vector.shape_cast %527 : vector<1x16x16xbf16> to vector<16x16xbf16>
      %cst_300 = arith.constant dense<0.000000e+00> : vector<64x16xf32>
      %529 = tpu.matmul %525, %528, %cst_300 {dimension_numbers = #tpu.dot_dimension_numbers<[1], [0], [0], [1], [0, 0, 1, 1], [], []>} : vector<64x16xbf16>, vector<16x16xbf16>, vector<64x16xf32> -> vector<64x16xf32>
      %530 = arith.addf %arg19, %529 : vector<64x16xf32>
      scf.yield %530 : vector<64x16xf32>
    }
    %c64_i32_103 = arith.constant 64 : i32
    %198 = vector.broadcast %190 : vector<1x16xf32> to vector<64x16xf32>
    %199 = arith.addf %197, %198 : vector<64x16xf32>
    %cst_104 = arith.constant 0.000000e+00 : f32
    %200 = vector.broadcast %cst_104 : f32 to vector<64x16xf32>
    %201 = arith.maximumf %199, %200 : vector<64x16xf32>
    %cst_105 = arith.constant dense<0.000000e+00> : vector<16xf32>
    %202 = vector.multi_reduction <add>, %201, %cst_105 [0] : vector<64x16xf32> to vector<16xf32>
    %203 = vector.shape_cast %202 : vector<16xf32> to vector<1x16xf32>
    %204 = arith.addf %193, %203 : vector<1x16xf32>
    %205 = arith.mulf %201, %201 : vector<64x16xf32>
    %cst_106 = arith.constant dense<0.000000e+00> : vector<16xf32>
    %206 = vector.multi_reduction <add>, %205, %cst_106 [0] : vector<64x16xf32> to vector<16xf32>
    %207 = vector.shape_cast %206 : vector<16xf32> to vector<1x16xf32>
    %208 = arith.addf %194, %207 : vector<1x16xf32>
    %c0_107 = arith.constant 0 : index
    %c0_108 = arith.constant 0 : index
    %209 = vector.load %arg16[%c0_107, %c0_108] : memref<512x128xf32, #tpu.memory_space<vmem>>, vector<64x16xf32>
    tpu.vector_store %arg16[%c0_107, %c0_108], %201 {strides = array<i32>} : memref<512x128xf32, #tpu.memory_space<vmem>>, vector<64x16xf32>,
    %cst_109 = arith.constant 0.000000e+00 : f32
    %210 = vector.broadcast %cst_109 : f32 to vector<64x16xf32>
    %c0_i32_110 = arith.constant 0 : i32
    %c64_i32_111 = arith.constant 64 : i32
    %211 = arith.addi %c0_i32_110, %c64_i32_111 : i32
    %c1_i32_112 = arith.constant 1 : i32
    %212 = scf.for %arg18 = %c0_i32_110 to %211 step %c1_i32_112 iter_args(%arg19 = %210) -> (vector<64x16xf32>)  : i32 {
      %c1_i32_294 = arith.constant 1 : i32
      %520 = arith.muli %arg18, %c1_i32_294 : i32
      %c192_i32 = arith.constant 192 : i32
      %521 = arith.addi %c192_i32, %520 : i32
      %c0_i32_295 = arith.constant 0 : i32
      %522 = arith.addi %521, %c0_i32_295 : i32
      %523 = arith.index_cast %522 : i32 to index
      %c0_296 = arith.constant 0 : index
      %524 = vector.load %arg17[%523, %c0_296] : memref<384x128xf32, #tpu.memory_space<vmem>>, vector<64x16xf32>
      %525 = arith.truncf %524 : vector<64x16xf32> to vector<64x16xbf16>
      %526 = arith.index_cast %arg18 : i32 to index
      %c0_297 = arith.constant 0 : index
      %c0_298 = arith.constant 0 : index
      %527 = vector.load %arg5[%526, %c0_297, %c0_298] : memref<64x16x16xbf16, #tpu.memory_space<vmem>>, vector<1x16x16xbf16>
      %528 = vector.shape_cast %527 : vector<1x16x16xbf16> to vector<16x16xbf16>
      %cst_299 = arith.constant dense<0.000000e+00> : vector<64x16xf32>
      %529 = tpu.matmul %525, %528, %cst_299 {dimension_numbers = #tpu.dot_dimension_numbers<[1], [0], [0], [1], [0, 0, 1, 1], [], []>} : vector<64x16xbf16>, vector<16x16xbf16>, vector<64x16xf32> -> vector<64x16xf32>
      %530 = arith.addf %arg19, %529 : vector<64x16xf32>
      scf.yield %530 : vector<64x16xf32>
    }
    %c64_i32_113 = arith.constant 64 : i32
    %213 = vector.broadcast %190 : vector<1x16xf32> to vector<64x16xf32>
    %214 = arith.addf %212, %213 : vector<64x16xf32>
    %cst_114 = arith.constant 0.000000e+00 : f32
    %215 = vector.broadcast %cst_114 : f32 to vector<64x16xf32>
    %216 = arith.maximumf %214, %215 : vector<64x16xf32>
    %cst_115 = arith.constant dense<0.000000e+00> : vector<16xf32>
    %217 = vector.multi_reduction <add>, %216, %cst_115 [0] : vector<64x16xf32> to vector<16xf32>
    %218 = vector.shape_cast %217 : vector<16xf32> to vector<1x16xf32>
    %219 = arith.addf %204, %218 : vector<1x16xf32>
    %220 = arith.mulf %216, %216 : vector<64x16xf32>
    %cst_116 = arith.constant dense<0.000000e+00> : vector<16xf32>
    %221 = vector.multi_reduction <add>, %220, %cst_116 [0] : vector<64x16xf32> to vector<16xf32>
    %222 = vector.shape_cast %221 : vector<16xf32> to vector<1x16xf32>
    %223 = arith.addf %208, %222 : vector<1x16xf32>
    %c64 = arith.constant 64 : index
    %c0_117 = arith.constant 0 : index
    %224 = vector.load %arg16[%c64, %c0_117] : memref<512x128xf32, #tpu.memory_space<vmem>>, vector<64x16xf32>
    tpu.vector_store %arg16[%c64, %c0_117], %216 {strides = array<i32>} : memref<512x128xf32, #tpu.memory_space<vmem>>, vector<64x16xf32>,
    %cst_118 = arith.constant 7.812500e-03 : f32
    %225 = vector.broadcast %cst_118 : f32 to vector<1x16xf32>
    %226 = arith.mulf %219, %225 : vector<1x16xf32>
    %cst_119 = arith.constant 7.812500e-03 : f32
    %227 = vector.broadcast %cst_119 : f32 to vector<1x16xf32>
    %228 = arith.mulf %223, %227 : vector<1x16xf32>
    %229 = arith.mulf %226, %226 : vector<1x16xf32>
    %230 = arith.subf %228, %229 : vector<1x16xf32>
    %cst_120 = arith.constant 0.000000e+00 : f32
    %231 = vector.broadcast %cst_120 : f32 to vector<1x16xf32>
    %232 = arith.maximumf %230, %231 : vector<1x16xf32>
    %cst_121 = arith.constant 1.000000e-03 : f32
    %233 = vector.broadcast %cst_121 : f32 to vector<1x16xf32>
    %234 = arith.addf %232, %233 : vector<1x16xf32>
    %235 = math.rsqrt %234 : vector<1x16xf32>
    %236 = arith.mulf %191, %235 : vector<1x16xf32>
    %237 = arith.mulf %226, %236 : vector<1x16xf32>
    %238 = arith.subf %192, %237 : vector<1x16xf32>
    %c0_122 = arith.constant 0 : index
    %c0_123 = arith.constant 0 : index
    %239 = tpu.strided_load %arg16[%c0_122, %c0_123] {strides = array<i32: 2, 1>} : memref<512x128xf32, #tpu.memory_space<vmem>>, vector<32x16xf32>
    %240 = vector.broadcast %236 : vector<1x16xf32> to vector<32x16xf32>
    %241 = arith.mulf %239, %240 : vector<32x16xf32>
    %242 = vector.broadcast %238 : vector<1x16xf32> to vector<32x16xf32>
    %243 = arith.addf %241, %242 : vector<32x16xf32>
    %c1_124 = arith.constant 1 : index
    %c0_125 = arith.constant 0 : index
    %244 = tpu.strided_load %arg16[%c1_124, %c0_125] {strides = array<i32: 2, 1>} : memref<512x128xf32, #tpu.memory_space<vmem>>, vector<32x16xf32>
    %245 = vector.broadcast %236 : vector<1x16xf32> to vector<32x16xf32>
    %246 = arith.mulf %244, %245 : vector<32x16xf32>
    %247 = vector.broadcast %238 : vector<1x16xf32> to vector<32x16xf32>
    %248 = arith.addf %246, %247 : vector<32x16xf32>
    %249 = arith.maximumf %243, %248 : vector<32x16xf32>
    %c31_126 = arith.constant 31 : index
    %c0_127 = arith.constant 0 : index
    %250 = vector.load %arg17[%c31_126, %c0_127] : memref<384x128xf32, #tpu.memory_space<vmem>>, vector<32x16xf32>
    tpu.vector_store %arg17[%c31_126, %c0_127], %249 {strides = array<i32>} : memref<384x128xf32, #tpu.memory_space<vmem>>, vector<32x16xf32>,
    %cst_128 = arith.constant 0.000000e+00 : f32
    %251 = vector.broadcast %cst_128 : f32 to vector<32x128xf32>
    %c63 = arith.constant 63 : index
    %c0_129 = arith.constant 0 : index
    %252 = vector.load %arg17[%c63, %c0_129] : memref<384x128xf32, #tpu.memory_space<vmem>>, vector<32x128xf32>
    tpu.vector_store %arg17[%c63, %c0_129], %251 {strides = array<i32>} : memref<384x128xf32, #tpu.memory_space<vmem>>, vector<32x128xf32>,
    %c64_130 = arith.constant 64 : index
    %c0_131 = arith.constant 0 : index
    %253 = tpu.strided_load %arg16[%c64_130, %c0_131] {strides = array<i32: 2, 1>} : memref<512x128xf32, #tpu.memory_space<vmem>>, vector<32x16xf32>
    %254 = vector.broadcast %236 : vector<1x16xf32> to vector<32x16xf32>
    %255 = arith.mulf %253, %254 : vector<32x16xf32>
    %256 = vector.broadcast %238 : vector<1x16xf32> to vector<32x16xf32>
    %257 = arith.addf %255, %256 : vector<32x16xf32>
    %c65 = arith.constant 65 : index
    %c0_132 = arith.constant 0 : index
    %258 = tpu.strided_load %arg16[%c65, %c0_132] {strides = array<i32: 2, 1>} : memref<512x128xf32, #tpu.memory_space<vmem>>, vector<32x16xf32>
    %259 = vector.broadcast %236 : vector<1x16xf32> to vector<32x16xf32>
    %260 = arith.mulf %258, %259 : vector<32x16xf32>
    %261 = vector.broadcast %238 : vector<1x16xf32> to vector<32x16xf32>
    %262 = arith.addf %260, %261 : vector<32x16xf32>
    %263 = arith.maximumf %257, %262 : vector<32x16xf32>
    %c223_133 = arith.constant 223 : index
    %c0_134 = arith.constant 0 : index
    %264 = vector.load %arg17[%c223_133, %c0_134] : memref<384x128xf32, #tpu.memory_space<vmem>>, vector<32x16xf32>
    tpu.vector_store %arg17[%c223_133, %c0_134], %263 {strides = array<i32>} : memref<384x128xf32, #tpu.memory_space<vmem>>, vector<32x16xf32>,
    %cst_135 = arith.constant 0.000000e+00 : f32
    %265 = vector.broadcast %cst_135 : f32 to vector<32x128xf32>
    %c255 = arith.constant 255 : index
    %c0_136 = arith.constant 0 : index
    %266 = vector.load %arg17[%c255, %c0_136] : memref<384x128xf32, #tpu.memory_space<vmem>>, vector<32x128xf32>
    tpu.vector_store %arg17[%c255, %c0_136], %265 {strides = array<i32>} : memref<384x128xf32, #tpu.memory_space<vmem>>, vector<32x128xf32>,
    %c0_137 = arith.constant 0 : index
    %c0_138 = arith.constant 0 : index
    %267 = vector.load %arg8[%c0_137, %c0_138] : memref<3x16xf32, #tpu.memory_space<vmem>>, vector<1x16xf32>
    %c1_139 = arith.constant 1 : index
    %c0_140 = arith.constant 0 : index
    %268 = vector.load %arg8[%c1_139, %c0_140] : memref<3x16xf32, #tpu.memory_space<vmem>>, vector<1x16xf32>
    %c2_141 = arith.constant 2 : index
    %c0_142 = arith.constant 0 : index
    %269 = vector.load %arg8[%c2_141, %c0_142] : memref<3x16xf32, #tpu.memory_space<vmem>>, vector<1x16xf32>
    %cst_143 = arith.constant 0.000000e+00 : f32
    %270 = vector.broadcast %cst_143 : f32 to vector<1x16xf32>
    %cst_144 = arith.constant 0.000000e+00 : f32
    %271 = vector.broadcast %cst_144 : f32 to vector<1x16xf32>
    %cst_145 = arith.constant 0.000000e+00 : f32
    %272 = vector.broadcast %cst_145 : f32 to vector<32x16xf32>
    %c0_i32_146 = arith.constant 0 : i32
    %c64_i32_147 = arith.constant 64 : i32
    %273 = arith.addi %c0_i32_146, %c64_i32_147 : i32
    %c1_i32_148 = arith.constant 1 : i32
    %274 = scf.for %arg18 = %c0_i32_146 to %273 step %c1_i32_148 iter_args(%arg19 = %272) -> (vector<32x16xf32>)  : i32 {
      %c1_i32_294 = arith.constant 1 : i32
      %520 = arith.muli %arg18, %c1_i32_294 : i32
      %c0_i32_295 = arith.constant 0 : i32
      %521 = arith.addi %c0_i32_295, %520 : i32
      %c0_i32_296 = arith.constant 0 : i32
      %522 = arith.addi %521, %c0_i32_296 : i32
      %523 = arith.index_cast %522 : i32 to index
      %c0_297 = arith.constant 0 : index
      %524 = vector.load %arg17[%523, %c0_297] : memref<384x128xf32, #tpu.memory_space<vmem>>, vector<32x16xf32>
      %525 = arith.truncf %524 : vector<32x16xf32> to vector<32x16xbf16>
      %526 = arith.index_cast %arg18 : i32 to index
      %c0_298 = arith.constant 0 : index
      %c0_299 = arith.constant 0 : index
      %527 = vector.load %arg7[%526, %c0_298, %c0_299] : memref<64x16x16xbf16, #tpu.memory_space<vmem>>, vector<1x16x16xbf16>
      %528 = vector.shape_cast %527 : vector<1x16x16xbf16> to vector<16x16xbf16>
      %cst_300 = arith.constant dense<0.000000e+00> : vector<32x16xf32>
      %529 = tpu.matmul %525, %528, %cst_300 {dimension_numbers = #tpu.dot_dimension_numbers<[1], [0], [0], [1], [0, 0, 1, 1], [], []>} : vector<32x16xbf16>, vector<16x16xbf16>, vector<32x16xf32> -> vector<32x16xf32>
      %530 = arith.addf %arg19, %529 : vector<32x16xf32>
      scf.yield %530 : vector<32x16xf32>
    }
    %c64_i32_149 = arith.constant 64 : i32
    %275 = vector.broadcast %267 : vector<1x16xf32> to vector<32x16xf32>
    %276 = arith.addf %274, %275 : vector<32x16xf32>
    %cst_150 = arith.constant 0.000000e+00 : f32
    %277 = vector.broadcast %cst_150 : f32 to vector<32x16xf32>
    %278 = arith.maximumf %276, %277 : vector<32x16xf32>
    %cst_151 = arith.constant dense<0.000000e+00> : vector<16xf32>
    %279 = vector.multi_reduction <add>, %278, %cst_151 [0] : vector<32x16xf32> to vector<16xf32>
    %280 = vector.shape_cast %279 : vector<16xf32> to vector<1x16xf32>
    %281 = arith.addf %270, %280 : vector<1x16xf32>
    %282 = arith.mulf %278, %278 : vector<32x16xf32>
    %cst_152 = arith.constant dense<0.000000e+00> : vector<16xf32>
    %283 = vector.multi_reduction <add>, %282, %cst_152 [0] : vector<32x16xf32> to vector<16xf32>
    %284 = vector.shape_cast %283 : vector<16xf32> to vector<1x16xf32>
    %285 = arith.addf %271, %284 : vector<1x16xf32>
    %c0_153 = arith.constant 0 : index
    %c0_154 = arith.constant 0 : index
    %286 = vector.load %arg16[%c0_153, %c0_154] : memref<512x128xf32, #tpu.memory_space<vmem>>, vector<32x16xf32>
    tpu.vector_store %arg16[%c0_153, %c0_154], %278 {strides = array<i32>} : memref<512x128xf32, #tpu.memory_space<vmem>>, vector<32x16xf32>,
    %cst_155 = arith.constant 0.000000e+00 : f32
    %287 = vector.broadcast %cst_155 : f32 to vector<32x16xf32>
    %c0_i32_156 = arith.constant 0 : i32
    %c64_i32_157 = arith.constant 64 : i32
    %288 = arith.addi %c0_i32_156, %c64_i32_157 : i32
    %c1_i32_158 = arith.constant 1 : i32
    %289 = scf.for %arg18 = %c0_i32_156 to %288 step %c1_i32_158 iter_args(%arg19 = %287) -> (vector<32x16xf32>)  : i32 {
      %c1_i32_294 = arith.constant 1 : i32
      %520 = arith.muli %arg18, %c1_i32_294 : i32
      %c192_i32 = arith.constant 192 : i32
      %521 = arith.addi %c192_i32, %520 : i32
      %c0_i32_295 = arith.constant 0 : i32
      %522 = arith.addi %521, %c0_i32_295 : i32
      %523 = arith.index_cast %522 : i32 to index
      %c0_296 = arith.constant 0 : index
      %524 = vector.load %arg17[%523, %c0_296] : memref<384x128xf32, #tpu.memory_space<vmem>>, vector<32x16xf32>
      %525 = arith.truncf %524 : vector<32x16xf32> to vector<32x16xbf16>
      %526 = arith.index_cast %arg18 : i32 to index
      %c0_297 = arith.constant 0 : index
      %c0_298 = arith.constant 0 : index
      %527 = vector.load %arg7[%526, %c0_297, %c0_298] : memref<64x16x16xbf16, #tpu.memory_space<vmem>>, vector<1x16x16xbf16>
      %528 = vector.shape_cast %527 : vector<1x16x16xbf16> to vector<16x16xbf16>
      %cst_299 = arith.constant dense<0.000000e+00> : vector<32x16xf32>
      %529 = tpu.matmul %525, %528, %cst_299 {dimension_numbers = #tpu.dot_dimension_numbers<[1], [0], [0], [1], [0, 0, 1, 1], [], []>} : vector<32x16xbf16>, vector<16x16xbf16>, vector<32x16xf32> -> vector<32x16xf32>
      %530 = arith.addf %arg19, %529 : vector<32x16xf32>
      scf.yield %530 : vector<32x16xf32>
    }
    %c64_i32_159 = arith.constant 64 : i32
    %290 = vector.broadcast %267 : vector<1x16xf32> to vector<32x16xf32>
    %291 = arith.addf %289, %290 : vector<32x16xf32>
    %cst_160 = arith.constant 0.000000e+00 : f32
    %292 = vector.broadcast %cst_160 : f32 to vector<32x16xf32>
    %293 = arith.maximumf %291, %292 : vector<32x16xf32>
    %cst_161 = arith.constant dense<0.000000e+00> : vector<16xf32>
    %294 = vector.multi_reduction <add>, %293, %cst_161 [0] : vector<32x16xf32> to vector<16xf32>
    %295 = vector.shape_cast %294 : vector<16xf32> to vector<1x16xf32>
    %296 = arith.addf %281, %295 : vector<1x16xf32>
    %297 = arith.mulf %293, %293 : vector<32x16xf32>
    %cst_162 = arith.constant dense<0.000000e+00> : vector<16xf32>
    %298 = vector.multi_reduction <add>, %297, %cst_162 [0] : vector<32x16xf32> to vector<16xf32>
    %299 = vector.shape_cast %298 : vector<16xf32> to vector<1x16xf32>
    %300 = arith.addf %285, %299 : vector<1x16xf32>
    %c32 = arith.constant 32 : index
    %c0_163 = arith.constant 0 : index
    %301 = vector.load %arg16[%c32, %c0_163] : memref<512x128xf32, #tpu.memory_space<vmem>>, vector<32x16xf32>
    tpu.vector_store %arg16[%c32, %c0_163], %293 {strides = array<i32>} : memref<512x128xf32, #tpu.memory_space<vmem>>, vector<32x16xf32>,
    %cst_164 = arith.constant 1.562500e-02 : f32
    %302 = vector.broadcast %cst_164 : f32 to vector<1x16xf32>
    %303 = arith.mulf %296, %302 : vector<1x16xf32>
    %cst_165 = arith.constant 1.562500e-02 : f32
    %304 = vector.broadcast %cst_165 : f32 to vector<1x16xf32>
    %305 = arith.mulf %300, %304 : vector<1x16xf32>
    %306 = arith.mulf %303, %303 : vector<1x16xf32>
    %307 = arith.subf %305, %306 : vector<1x16xf32>
    %cst_166 = arith.constant 0.000000e+00 : f32
    %308 = vector.broadcast %cst_166 : f32 to vector<1x16xf32>
    %309 = arith.maximumf %307, %308 : vector<1x16xf32>
    %cst_167 = arith.constant 1.000000e-03 : f32
    %310 = vector.broadcast %cst_167 : f32 to vector<1x16xf32>
    %311 = arith.addf %309, %310 : vector<1x16xf32>
    %312 = math.rsqrt %311 : vector<1x16xf32>
    %313 = arith.mulf %268, %312 : vector<1x16xf32>
    %314 = arith.mulf %303, %313 : vector<1x16xf32>
    %315 = arith.subf %269, %314 : vector<1x16xf32>
    %c0_168 = arith.constant 0 : index
    %c0_169 = arith.constant 0 : index
    %316 = tpu.strided_load %arg16[%c0_168, %c0_169] {strides = array<i32: 2, 1>} : memref<512x128xf32, #tpu.memory_space<vmem>>, vector<16x16xf32>
    %317 = vector.broadcast %313 : vector<1x16xf32> to vector<16x16xf32>
    %318 = arith.mulf %316, %317 : vector<16x16xf32>
    %319 = vector.broadcast %315 : vector<1x16xf32> to vector<16x16xf32>
    %320 = arith.addf %318, %319 : vector<16x16xf32>
    %c1_170 = arith.constant 1 : index
    %c0_171 = arith.constant 0 : index
    %321 = tpu.strided_load %arg16[%c1_170, %c0_171] {strides = array<i32: 2, 1>} : memref<512x128xf32, #tpu.memory_space<vmem>>, vector<16x16xf32>
    %322 = vector.broadcast %313 : vector<1x16xf32> to vector<16x16xf32>
    %323 = arith.mulf %321, %322 : vector<16x16xf32>
    %324 = vector.broadcast %315 : vector<1x16xf32> to vector<16x16xf32>
    %325 = arith.addf %323, %324 : vector<16x16xf32>
    %326 = arith.maximumf %320, %325 : vector<16x16xf32>
    %c31_172 = arith.constant 31 : index
    %c0_173 = arith.constant 0 : index
    %327 = vector.load %arg17[%c31_172, %c0_173] : memref<384x128xf32, #tpu.memory_space<vmem>>, vector<16x16xf32>
    tpu.vector_store %arg17[%c31_172, %c0_173], %326 {strides = array<i32>} : memref<384x128xf32, #tpu.memory_space<vmem>>, vector<16x16xf32>,
    %cst_174 = arith.constant 0.000000e+00 : f32
    %328 = vector.broadcast %cst_174 : f32 to vector<32x128xf32>
    %c47 = arith.constant 47 : index
    %c0_175 = arith.constant 0 : index
    %329 = vector.load %arg17[%c47, %c0_175] : memref<384x128xf32, #tpu.memory_space<vmem>>, vector<32x128xf32>
    tpu.vector_store %arg17[%c47, %c0_175], %328 {strides = array<i32>} : memref<384x128xf32, #tpu.memory_space<vmem>>, vector<32x128xf32>,
    %c32_176 = arith.constant 32 : index
    %c0_177 = arith.constant 0 : index
    %330 = tpu.strided_load %arg16[%c32_176, %c0_177] {strides = array<i32: 2, 1>} : memref<512x128xf32, #tpu.memory_space<vmem>>, vector<16x16xf32>
    %331 = vector.broadcast %313 : vector<1x16xf32> to vector<16x16xf32>
    %332 = arith.mulf %330, %331 : vector<16x16xf32>
    %333 = vector.broadcast %315 : vector<1x16xf32> to vector<16x16xf32>
    %334 = arith.addf %332, %333 : vector<16x16xf32>
    %c33 = arith.constant 33 : index
    %c0_178 = arith.constant 0 : index
    %335 = tpu.strided_load %arg16[%c33, %c0_178] {strides = array<i32: 2, 1>} : memref<512x128xf32, #tpu.memory_space<vmem>>, vector<16x16xf32>
    %336 = vector.broadcast %313 : vector<1x16xf32> to vector<16x16xf32>
    %337 = arith.mulf %335, %336 : vector<16x16xf32>
    %338 = vector.broadcast %315 : vector<1x16xf32> to vector<16x16xf32>
    %339 = arith.addf %337, %338 : vector<16x16xf32>
    %340 = arith.maximumf %334, %339 : vector<16x16xf32>
    %c223_179 = arith.constant 223 : index
    %c0_180 = arith.constant 0 : index
    %341 = vector.load %arg17[%c223_179, %c0_180] : memref<384x128xf32, #tpu.memory_space<vmem>>, vector<16x16xf32>
    tpu.vector_store %arg17[%c223_179, %c0_180], %340 {strides = array<i32>} : memref<384x128xf32, #tpu.memory_space<vmem>>, vector<16x16xf32>,
    %cst_181 = arith.constant 0.000000e+00 : f32
    %342 = vector.broadcast %cst_181 : f32 to vector<32x128xf32>
    %c239 = arith.constant 239 : index
    %c0_182 = arith.constant 0 : index
    %343 = vector.load %arg17[%c239, %c0_182] : memref<384x128xf32, #tpu.memory_space<vmem>>, vector<32x128xf32>
    tpu.vector_store %arg17[%c239, %c0_182], %342 {strides = array<i32>} : memref<384x128xf32, #tpu.memory_space<vmem>>, vector<32x128xf32>,
    %c0_183 = arith.constant 0 : index
    %c0_184 = arith.constant 0 : index
    %344 = vector.load %arg10[%c0_183, %c0_184] : memref<3x32xf32, #tpu.memory_space<vmem>>, vector<1x32xf32>
    %c1_185 = arith.constant 1 : index
    %c0_186 = arith.constant 0 : index
    %345 = vector.load %arg10[%c1_185, %c0_186] : memref<3x32xf32, #tpu.memory_space<vmem>>, vector<1x32xf32>
    %c2_187 = arith.constant 2 : index
    %c0_188 = arith.constant 0 : index
    %346 = vector.load %arg10[%c2_187, %c0_188] : memref<3x32xf32, #tpu.memory_space<vmem>>, vector<1x32xf32>
    %cst_189 = arith.constant 0.000000e+00 : f32
    %347 = vector.broadcast %cst_189 : f32 to vector<1x32xf32>
    %cst_190 = arith.constant 0.000000e+00 : f32
    %348 = vector.broadcast %cst_190 : f32 to vector<1x32xf32>
    %cst_191 = arith.constant 0.000000e+00 : f32
    %349 = vector.broadcast %cst_191 : f32 to vector<16x32xf32>
    %c0_i32_192 = arith.constant 0 : i32
    %c64_i32_193 = arith.constant 64 : i32
    %350 = arith.addi %c0_i32_192, %c64_i32_193 : i32
    %c1_i32_194 = arith.constant 1 : i32
    %351 = scf.for %arg18 = %c0_i32_192 to %350 step %c1_i32_194 iter_args(%arg19 = %349) -> (vector<16x32xf32>)  : i32 {
      %c1_i32_294 = arith.constant 1 : i32
      %520 = arith.muli %arg18, %c1_i32_294 : i32
      %c0_i32_295 = arith.constant 0 : i32
      %521 = arith.addi %c0_i32_295, %520 : i32
      %c0_i32_296 = arith.constant 0 : i32
      %522 = arith.addi %521, %c0_i32_296 : i32
      %523 = arith.index_cast %522 : i32 to index
      %c0_297 = arith.constant 0 : index
      %524 = vector.load %arg17[%523, %c0_297] : memref<384x128xf32, #tpu.memory_space<vmem>>, vector<16x16xf32>
      %525 = arith.truncf %524 : vector<16x16xf32> to vector<16x16xbf16>
      %526 = arith.index_cast %arg18 : i32 to index
      %c0_298 = arith.constant 0 : index
      %c0_299 = arith.constant 0 : index
      %527 = vector.load %arg9[%526, %c0_298, %c0_299] : memref<64x16x32xbf16, #tpu.memory_space<vmem>>, vector<1x16x32xbf16>
      %528 = vector.shape_cast %527 : vector<1x16x32xbf16> to vector<16x32xbf16>
      %cst_300 = arith.constant dense<0.000000e+00> : vector<16x32xf32>
      %529 = tpu.matmul %525, %528, %cst_300 {dimension_numbers = #tpu.dot_dimension_numbers<[1], [0], [0], [1], [0, 0, 1, 1], [], []>} : vector<16x16xbf16>, vector<16x32xbf16>, vector<16x32xf32> -> vector<16x32xf32>
      %530 = arith.addf %arg19, %529 : vector<16x32xf32>
      scf.yield %530 : vector<16x32xf32>
    }
    %c64_i32_195 = arith.constant 64 : i32
    %352 = vector.broadcast %344 : vector<1x32xf32> to vector<16x32xf32>
    %353 = arith.addf %351, %352 : vector<16x32xf32>
    %cst_196 = arith.constant 0.000000e+00 : f32
    %354 = vector.broadcast %cst_196 : f32 to vector<16x32xf32>
    %355 = arith.maximumf %353, %354 : vector<16x32xf32>
    %cst_197 = arith.constant dense<0.000000e+00> : vector<32xf32>
    %356 = vector.multi_reduction <add>, %355, %cst_197 [0] : vector<16x32xf32> to vector<32xf32>
    %357 = vector.shape_cast %356 : vector<32xf32> to vector<1x32xf32>
    %358 = arith.addf %347, %357 : vector<1x32xf32>
    %359 = arith.mulf %355, %355 : vector<16x32xf32>
    %cst_198 = arith.constant dense<0.000000e+00> : vector<32xf32>
    %360 = vector.multi_reduction <add>, %359, %cst_198 [0] : vector<16x32xf32> to vector<32xf32>
    %361 = vector.shape_cast %360 : vector<32xf32> to vector<1x32xf32>
    %362 = arith.addf %348, %361 : vector<1x32xf32>
    %c0_199 = arith.constant 0 : index
    %c0_200 = arith.constant 0 : index
    %363 = vector.load %arg16[%c0_199, %c0_200] : memref<512x128xf32, #tpu.memory_space<vmem>>, vector<16x32xf32>
    tpu.vector_store %arg16[%c0_199, %c0_200], %355 {strides = array<i32>} : memref<512x128xf32, #tpu.memory_space<vmem>>, vector<16x32xf32>,
    %cst_201 = arith.constant 0.000000e+00 : f32
    %364 = vector.broadcast %cst_201 : f32 to vector<16x32xf32>
    %c0_i32_202 = arith.constant 0 : i32
    %c64_i32_203 = arith.constant 64 : i32
    %365 = arith.addi %c0_i32_202, %c64_i32_203 : i32
    %c1_i32_204 = arith.constant 1 : i32
    %366 = scf.for %arg18 = %c0_i32_202 to %365 step %c1_i32_204 iter_args(%arg19 = %364) -> (vector<16x32xf32>)  : i32 {
      %c1_i32_294 = arith.constant 1 : i32
      %520 = arith.muli %arg18, %c1_i32_294 : i32
      %c192_i32 = arith.constant 192 : i32
      %521 = arith.addi %c192_i32, %520 : i32
      %c0_i32_295 = arith.constant 0 : i32
      %522 = arith.addi %521, %c0_i32_295 : i32
      %523 = arith.index_cast %522 : i32 to index
      %c0_296 = arith.constant 0 : index
      %524 = vector.load %arg17[%523, %c0_296] : memref<384x128xf32, #tpu.memory_space<vmem>>, vector<16x16xf32>
      %525 = arith.truncf %524 : vector<16x16xf32> to vector<16x16xbf16>
      %526 = arith.index_cast %arg18 : i32 to index
      %c0_297 = arith.constant 0 : index
      %c0_298 = arith.constant 0 : index
      %527 = vector.load %arg9[%526, %c0_297, %c0_298] : memref<64x16x32xbf16, #tpu.memory_space<vmem>>, vector<1x16x32xbf16>
      %528 = vector.shape_cast %527 : vector<1x16x32xbf16> to vector<16x32xbf16>
      %cst_299 = arith.constant dense<0.000000e+00> : vector<16x32xf32>
      %529 = tpu.matmul %525, %528, %cst_299 {dimension_numbers = #tpu.dot_dimension_numbers<[1], [0], [0], [1], [0, 0, 1, 1], [], []>} : vector<16x16xbf16>, vector<16x32xbf16>, vector<16x32xf32> -> vector<16x32xf32>
      %530 = arith.addf %arg19, %529 : vector<16x32xf32>
      scf.yield %530 : vector<16x32xf32>
    }
    %c64_i32_205 = arith.constant 64 : i32
    %367 = vector.broadcast %344 : vector<1x32xf32> to vector<16x32xf32>
    %368 = arith.addf %366, %367 : vector<16x32xf32>
    %cst_206 = arith.constant 0.000000e+00 : f32
    %369 = vector.broadcast %cst_206 : f32 to vector<16x32xf32>
    %370 = arith.maximumf %368, %369 : vector<16x32xf32>
    %cst_207 = arith.constant dense<0.000000e+00> : vector<32xf32>
    %371 = vector.multi_reduction <add>, %370, %cst_207 [0] : vector<16x32xf32> to vector<32xf32>
    %372 = vector.shape_cast %371 : vector<32xf32> to vector<1x32xf32>
    %373 = arith.addf %358, %372 : vector<1x32xf32>
    %374 = arith.mulf %370, %370 : vector<16x32xf32>
    %cst_208 = arith.constant dense<0.000000e+00> : vector<32xf32>
    %375 = vector.multi_reduction <add>, %374, %cst_208 [0] : vector<16x32xf32> to vector<32xf32>
    %376 = vector.shape_cast %375 : vector<32xf32> to vector<1x32xf32>
    %377 = arith.addf %362, %376 : vector<1x32xf32>
    %c16 = arith.constant 16 : index
    %c0_209 = arith.constant 0 : index
    %378 = vector.load %arg16[%c16, %c0_209] : memref<512x128xf32, #tpu.memory_space<vmem>>, vector<16x32xf32>
    tpu.vector_store %arg16[%c16, %c0_209], %370 {strides = array<i32>} : memref<512x128xf32, #tpu.memory_space<vmem>>, vector<16x32xf32>,
    %cst_210 = arith.constant 3.125000e-02 : f32
    %379 = vector.broadcast %cst_210 : f32 to vector<1x32xf32>
    %380 = arith.mulf %373, %379 : vector<1x32xf32>
    %cst_211 = arith.constant 3.125000e-02 : f32
    %381 = vector.broadcast %cst_211 : f32 to vector<1x32xf32>
    %382 = arith.mulf %377, %381 : vector<1x32xf32>
    %383 = arith.mulf %380, %380 : vector<1x32xf32>
    %384 = arith.subf %382, %383 : vector<1x32xf32>
    %cst_212 = arith.constant 0.000000e+00 : f32
    %385 = vector.broadcast %cst_212 : f32 to vector<1x32xf32>
    %386 = arith.maximumf %384, %385 : vector<1x32xf32>
    %cst_213 = arith.constant 1.000000e-03 : f32
    %387 = vector.broadcast %cst_213 : f32 to vector<1x32xf32>
    %388 = arith.addf %386, %387 : vector<1x32xf32>
    %389 = math.rsqrt %388 : vector<1x32xf32>
    %390 = arith.mulf %345, %389 : vector<1x32xf32>
    %391 = arith.mulf %380, %390 : vector<1x32xf32>
    %392 = arith.subf %346, %391 : vector<1x32xf32>
    %c0_214 = arith.constant 0 : index
    %c0_215 = arith.constant 0 : index
    %393 = tpu.strided_load %arg16[%c0_214, %c0_215] {strides = array<i32: 2, 1>} : memref<512x128xf32, #tpu.memory_space<vmem>>, vector<8x32xf32>
    %394 = vector.broadcast %390 : vector<1x32xf32> to vector<8x32xf32>
    %395 = arith.mulf %393, %394 : vector<8x32xf32>
    %396 = vector.broadcast %392 : vector<1x32xf32> to vector<8x32xf32>
    %397 = arith.addf %395, %396 : vector<8x32xf32>
    %c1_216 = arith.constant 1 : index
    %c0_217 = arith.constant 0 : index
    %398 = tpu.strided_load %arg16[%c1_216, %c0_217] {strides = array<i32: 2, 1>} : memref<512x128xf32, #tpu.memory_space<vmem>>, vector<8x32xf32>
    %399 = vector.broadcast %390 : vector<1x32xf32> to vector<8x32xf32>
    %400 = arith.mulf %398, %399 : vector<8x32xf32>
    %401 = vector.broadcast %392 : vector<1x32xf32> to vector<8x32xf32>
    %402 = arith.addf %400, %401 : vector<8x32xf32>
    %403 = arith.maximumf %397, %402 : vector<8x32xf32>
    %c31_218 = arith.constant 31 : index
    %c0_219 = arith.constant 0 : index
    %404 = vector.load %arg17[%c31_218, %c0_219] : memref<384x128xf32, #tpu.memory_space<vmem>>, vector<8x32xf32>
    tpu.vector_store %arg17[%c31_218, %c0_219], %403 {strides = array<i32>} : memref<384x128xf32, #tpu.memory_space<vmem>>, vector<8x32xf32>,
    %cst_220 = arith.constant 0.000000e+00 : f32
    %405 = vector.broadcast %cst_220 : f32 to vector<32x128xf32>
    %c39 = arith.constant 39 : index
    %c0_221 = arith.constant 0 : index
    %406 = vector.load %arg17[%c39, %c0_221] : memref<384x128xf32, #tpu.memory_space<vmem>>, vector<32x128xf32>
    tpu.vector_store %arg17[%c39, %c0_221], %405 {strides = array<i32>} : memref<384x128xf32, #tpu.memory_space<vmem>>, vector<32x128xf32>,
    %c16_222 = arith.constant 16 : index
    %c0_223 = arith.constant 0 : index
    %407 = tpu.strided_load %arg16[%c16_222, %c0_223] {strides = array<i32: 2, 1>} : memref<512x128xf32, #tpu.memory_space<vmem>>, vector<8x32xf32>
    %408 = vector.broadcast %390 : vector<1x32xf32> to vector<8x32xf32>
    %409 = arith.mulf %407, %408 : vector<8x32xf32>
    %410 = vector.broadcast %392 : vector<1x32xf32> to vector<8x32xf32>
    %411 = arith.addf %409, %410 : vector<8x32xf32>
    %c17 = arith.constant 17 : index
    %c0_224 = arith.constant 0 : index
    %412 = tpu.strided_load %arg16[%c17, %c0_224] {strides = array<i32: 2, 1>} : memref<512x128xf32, #tpu.memory_space<vmem>>, vector<8x32xf32>
    %413 = vector.broadcast %390 : vector<1x32xf32> to vector<8x32xf32>
    %414 = arith.mulf %412, %413 : vector<8x32xf32>
    %415 = vector.broadcast %392 : vector<1x32xf32> to vector<8x32xf32>
    %416 = arith.addf %414, %415 : vector<8x32xf32>
    %417 = arith.maximumf %411, %416 : vector<8x32xf32>
    %c223_225 = arith.constant 223 : index
    %c0_226 = arith.constant 0 : index
    %418 = vector.load %arg17[%c223_225, %c0_226] : memref<384x128xf32, #tpu.memory_space<vmem>>, vector<8x32xf32>
    tpu.vector_store %arg17[%c223_225, %c0_226], %417 {strides = array<i32>} : memref<384x128xf32, #tpu.memory_space<vmem>>, vector<8x32xf32>,
    %cst_227 = arith.constant 0.000000e+00 : f32
    %419 = vector.broadcast %cst_227 : f32 to vector<32x128xf32>
    %c231 = arith.constant 231 : index
    %c0_228 = arith.constant 0 : index
    %420 = vector.load %arg17[%c231, %c0_228] : memref<384x128xf32, #tpu.memory_space<vmem>>, vector<32x128xf32>
    tpu.vector_store %arg17[%c231, %c0_228], %419 {strides = array<i32>} : memref<384x128xf32, #tpu.memory_space<vmem>>, vector<32x128xf32>,
    %c0_229 = arith.constant 0 : index
    %c0_230 = arith.constant 0 : index
    %421 = vector.load %arg12[%c0_229, %c0_230] : memref<3x64xf32, #tpu.memory_space<vmem>>, vector<1x64xf32>
    %c1_231 = arith.constant 1 : index
    %c0_232 = arith.constant 0 : index
    %422 = vector.load %arg12[%c1_231, %c0_232] : memref<3x64xf32, #tpu.memory_space<vmem>>, vector<1x64xf32>
    %c2_233 = arith.constant 2 : index
    %c0_234 = arith.constant 0 : index
    %423 = vector.load %arg12[%c2_233, %c0_234] : memref<3x64xf32, #tpu.memory_space<vmem>>, vector<1x64xf32>
    %cst_235 = arith.constant 0.000000e+00 : f32
    %424 = vector.broadcast %cst_235 : f32 to vector<1x64xf32>
    %cst_236 = arith.constant 0.000000e+00 : f32
    %425 = vector.broadcast %cst_236 : f32 to vector<1x64xf32>
    %cst_237 = arith.constant 0.000000e+00 : f32
    %426 = vector.broadcast %cst_237 : f32 to vector<8x64xf32>
    %c0_i32_238 = arith.constant 0 : i32
    %c64_i32_239 = arith.constant 64 : i32
    %427 = arith.addi %c0_i32_238, %c64_i32_239 : i32
    %c1_i32_240 = arith.constant 1 : i32
    %428 = scf.for %arg18 = %c0_i32_238 to %427 step %c1_i32_240 iter_args(%arg19 = %426) -> (vector<8x64xf32>)  : i32 {
      %c1_i32_294 = arith.constant 1 : i32
      %520 = arith.muli %arg18, %c1_i32_294 : i32
      %c0_i32_295 = arith.constant 0 : i32
      %521 = arith.addi %c0_i32_295, %520 : i32
      %c0_i32_296 = arith.constant 0 : i32
      %522 = arith.addi %521, %c0_i32_296 : i32
      %523 = arith.index_cast %522 : i32 to index
      %c0_297 = arith.constant 0 : index
      %524 = vector.load %arg17[%523, %c0_297] : memref<384x128xf32, #tpu.memory_space<vmem>>, vector<8x32xf32>
      %525 = arith.truncf %524 : vector<8x32xf32> to vector<8x32xbf16>
      %526 = arith.index_cast %arg18 : i32 to index
      %c0_298 = arith.constant 0 : index
      %c0_299 = arith.constant 0 : index
      %527 = vector.load %arg11[%526, %c0_298, %c0_299] : memref<64x32x64xbf16, #tpu.memory_space<vmem>>, vector<1x32x64xbf16>
      %528 = vector.shape_cast %527 : vector<1x32x64xbf16> to vector<32x64xbf16>
      %cst_300 = arith.constant dense<0.000000e+00> : vector<8x64xf32>
      %529 = tpu.matmul %525, %528, %cst_300 {dimension_numbers = #tpu.dot_dimension_numbers<[1], [0], [0], [1], [0, 0, 1, 1], [], []>} : vector<8x32xbf16>, vector<32x64xbf16>, vector<8x64xf32> -> vector<8x64xf32>
      %530 = arith.addf %arg19, %529 : vector<8x64xf32>
      scf.yield %530 : vector<8x64xf32>
    }
    %c64_i32_241 = arith.constant 64 : i32
    %429 = vector.broadcast %421 : vector<1x64xf32> to vector<8x64xf32>
    %430 = arith.addf %428, %429 : vector<8x64xf32>
    %cst_242 = arith.constant 0.000000e+00 : f32
    %431 = vector.broadcast %cst_242 : f32 to vector<8x64xf32>
    %432 = arith.maximumf %430, %431 : vector<8x64xf32>
    %cst_243 = arith.constant dense<0.000000e+00> : vector<64xf32>
    %433 = vector.multi_reduction <add>, %432, %cst_243 [0] : vector<8x64xf32> to vector<64xf32>
    %434 = vector.shape_cast %433 : vector<64xf32> to vector<1x64xf32>
    %435 = arith.addf %424, %434 : vector<1x64xf32>
    %436 = arith.mulf %432, %432 : vector<8x64xf32>
    %cst_244 = arith.constant dense<0.000000e+00> : vector<64xf32>
    %437 = vector.multi_reduction <add>, %436, %cst_244 [0] : vector<8x64xf32> to vector<64xf32>
    %438 = vector.shape_cast %437 : vector<64xf32> to vector<1x64xf32>
    %439 = arith.addf %425, %438 : vector<1x64xf32>
    %c0_245 = arith.constant 0 : index
    %c0_246 = arith.constant 0 : index
    %440 = vector.load %arg16[%c0_245, %c0_246] : memref<512x128xf32, #tpu.memory_space<vmem>>, vector<8x64xf32>
    tpu.vector_store %arg16[%c0_245, %c0_246], %432 {strides = array<i32>} : memref<512x128xf32, #tpu.memory_space<vmem>>, vector<8x64xf32>,
    %cst_247 = arith.constant 0.000000e+00 : f32
    %441 = vector.broadcast %cst_247 : f32 to vector<8x64xf32>
    %c0_i32_248 = arith.constant 0 : i32
    %c64_i32_249 = arith.constant 64 : i32
    %442 = arith.addi %c0_i32_248, %c64_i32_249 : i32
    %c1_i32_250 = arith.constant 1 : i32
    %443 = scf.for %arg18 = %c0_i32_248 to %442 step %c1_i32_250 iter_args(%arg19 = %441) -> (vector<8x64xf32>)  : i32 {
      %c1_i32_294 = arith.constant 1 : i32
      %520 = arith.muli %arg18, %c1_i32_294 : i32
      %c192_i32 = arith.constant 192 : i32
      %521 = arith.addi %c192_i32, %520 : i32
      %c0_i32_295 = arith.constant 0 : i32
      %522 = arith.addi %521, %c0_i32_295 : i32
      %523 = arith.index_cast %522 : i32 to index
      %c0_296 = arith.constant 0 : index
      %524 = vector.load %arg17[%523, %c0_296] : memref<384x128xf32, #tpu.memory_space<vmem>>, vector<8x32xf32>
      %525 = arith.truncf %524 : vector<8x32xf32> to vector<8x32xbf16>
      %526 = arith.index_cast %arg18 : i32 to index
      %c0_297 = arith.constant 0 : index
      %c0_298 = arith.constant 0 : index
      %527 = vector.load %arg11[%526, %c0_297, %c0_298] : memref<64x32x64xbf16, #tpu.memory_space<vmem>>, vector<1x32x64xbf16>
      %528 = vector.shape_cast %527 : vector<1x32x64xbf16> to vector<32x64xbf16>
      %cst_299 = arith.constant dense<0.000000e+00> : vector<8x64xf32>
      %529 = tpu.matmul %525, %528, %cst_299 {dimension_numbers = #tpu.dot_dimension_numbers<[1], [0], [0], [1], [0, 0, 1, 1], [], []>} : vector<8x32xbf16>, vector<32x64xbf16>, vector<8x64xf32> -> vector<8x64xf32>
      %530 = arith.addf %arg19, %529 : vector<8x64xf32>
      scf.yield %530 : vector<8x64xf32>
    }
    %c64_i32_251 = arith.constant 64 : i32
    %444 = vector.broadcast %421 : vector<1x64xf32> to vector<8x64xf32>
    %445 = arith.addf %443, %444 : vector<8x64xf32>
    %cst_252 = arith.constant 0.000000e+00 : f32
    %446 = vector.broadcast %cst_252 : f32 to vector<8x64xf32>
    %447 = arith.maximumf %445, %446 : vector<8x64xf32>
    %cst_253 = arith.constant dense<0.000000e+00> : vector<64xf32>
    %448 = vector.multi_reduction <add>, %447, %cst_253 [0] : vector<8x64xf32> to vector<64xf32>
    %449 = vector.shape_cast %448 : vector<64xf32> to vector<1x64xf32>
    %450 = arith.addf %435, %449 : vector<1x64xf32>
    %451 = arith.mulf %447, %447 : vector<8x64xf32>
    %cst_254 = arith.constant dense<0.000000e+00> : vector<64xf32>
    %452 = vector.multi_reduction <add>, %451, %cst_254 [0] : vector<8x64xf32> to vector<64xf32>
    %453 = vector.shape_cast %452 : vector<64xf32> to vector<1x64xf32>
    %454 = arith.addf %439, %453 : vector<1x64xf32>
    %c8 = arith.constant 8 : index
    %c0_255 = arith.constant 0 : index
    %455 = vector.load %arg16[%c8, %c0_255] : memref<512x128xf32, #tpu.memory_space<vmem>>, vector<8x64xf32>
    tpu.vector_store %arg16[%c8, %c0_255], %447 {strides = array<i32>} : memref<512x128xf32, #tpu.memory_space<vmem>>, vector<8x64xf32>,
    %cst_256 = arith.constant 6.250000e-02 : f32
    %456 = vector.broadcast %cst_256 : f32 to vector<1x64xf32>
    %457 = arith.mulf %450, %456 : vector<1x64xf32>
    %cst_257 = arith.constant 6.250000e-02 : f32
    %458 = vector.broadcast %cst_257 : f32 to vector<1x64xf32>
    %459 = arith.mulf %454, %458 : vector<1x64xf32>
    %460 = arith.mulf %457, %457 : vector<1x64xf32>
    %461 = arith.subf %459, %460 : vector<1x64xf32>
    %cst_258 = arith.constant 0.000000e+00 : f32
    %462 = vector.broadcast %cst_258 : f32 to vector<1x64xf32>
    %463 = arith.maximumf %461, %462 : vector<1x64xf32>
    %cst_259 = arith.constant 1.000000e-03 : f32
    %464 = vector.broadcast %cst_259 : f32 to vector<1x64xf32>
    %465 = arith.addf %463, %464 : vector<1x64xf32>
    %466 = math.rsqrt %465 : vector<1x64xf32>
    %467 = arith.mulf %422, %466 : vector<1x64xf32>
    %468 = arith.mulf %457, %467 : vector<1x64xf32>
    %469 = arith.subf %423, %468 : vector<1x64xf32>
    %c0_260 = arith.constant 0 : index
    %c0_261 = arith.constant 0 : index
    %470 = tpu.strided_load %arg16[%c0_260, %c0_261] {strides = array<i32: 2, 1>} : memref<512x128xf32, #tpu.memory_space<vmem>>, vector<4x64xf32>
    %471 = vector.broadcast %467 : vector<1x64xf32> to vector<4x64xf32>
    %472 = arith.mulf %470, %471 : vector<4x64xf32>
    %473 = vector.broadcast %469 : vector<1x64xf32> to vector<4x64xf32>
    %474 = arith.addf %472, %473 : vector<4x64xf32>
    %c1_262 = arith.constant 1 : index
    %c0_263 = arith.constant 0 : index
    %475 = tpu.strided_load %arg16[%c1_262, %c0_263] {strides = array<i32: 2, 1>} : memref<512x128xf32, #tpu.memory_space<vmem>>, vector<4x64xf32>
    %476 = vector.broadcast %467 : vector<1x64xf32> to vector<4x64xf32>
    %477 = arith.mulf %475, %476 : vector<4x64xf32>
    %478 = vector.broadcast %469 : vector<1x64xf32> to vector<4x64xf32>
    %479 = arith.addf %477, %478 : vector<4x64xf32>
    %480 = arith.maximumf %474, %479 : vector<4x64xf32>
    %c16_264 = arith.constant 16 : index
    %c0_265 = arith.constant 0 : index
    %481 = vector.load %arg16[%c16_264, %c0_265] : memref<512x128xf32, #tpu.memory_space<vmem>>, vector<4x64xf32>
    tpu.vector_store %arg16[%c16_264, %c0_265], %480 {strides = array<i32>} : memref<512x128xf32, #tpu.memory_space<vmem>>, vector<4x64xf32>,
    %c8_266 = arith.constant 8 : index
    %c0_267 = arith.constant 0 : index
    %482 = tpu.strided_load %arg16[%c8_266, %c0_267] {strides = array<i32: 2, 1>} : memref<512x128xf32, #tpu.memory_space<vmem>>, vector<4x64xf32>
    %483 = vector.broadcast %467 : vector<1x64xf32> to vector<4x64xf32>
    %484 = arith.mulf %482, %483 : vector<4x64xf32>
    %485 = vector.broadcast %469 : vector<1x64xf32> to vector<4x64xf32>
    %486 = arith.addf %484, %485 : vector<4x64xf32>
    %c9 = arith.constant 9 : index
    %c0_268 = arith.constant 0 : index
    %487 = tpu.strided_load %arg16[%c9, %c0_268] {strides = array<i32: 2, 1>} : memref<512x128xf32, #tpu.memory_space<vmem>>, vector<4x64xf32>
    %488 = vector.broadcast %467 : vector<1x64xf32> to vector<4x64xf32>
    %489 = arith.mulf %487, %488 : vector<4x64xf32>
    %490 = vector.broadcast %469 : vector<1x64xf32> to vector<4x64xf32>
    %491 = arith.addf %489, %490 : vector<4x64xf32>
    %492 = arith.maximumf %486, %491 : vector<4x64xf32>
    %c20 = arith.constant 20 : index
    %c0_269 = arith.constant 0 : index
    %493 = vector.load %arg16[%c20, %c0_269] : memref<512x128xf32, #tpu.memory_space<vmem>>, vector<4x64xf32>
    tpu.vector_store %arg16[%c20, %c0_269], %492 {strides = array<i32>} : memref<512x128xf32, #tpu.memory_space<vmem>>, vector<4x64xf32>,
    %c0_270 = arith.constant 0 : index
    %c0_271 = arith.constant 0 : index
    %494 = vector.load %arg14[%c0_270, %c0_271] : memref<1x384xf32, #tpu.memory_space<vmem>>, vector<1x384xf32>
    %c16_272 = arith.constant 16 : index
    %c0_273 = arith.constant 0 : index
    %495 = tpu.strided_load %arg16[%c16_272, %c0_273] {strides = array<i32: 4, 1>} : memref<512x128xf32, #tpu.memory_space<vmem>>, vector<2x64xf32>
    %c0_274 = arith.constant 0 : index
    %c0_275 = arith.constant 0 : index
    %496 = vector.load %arg13[%c0_274, %c0_275] : memref<256x384xf32, #tpu.memory_space<vmem>>, vector<64x384xf32>
    %cst_276 = arith.constant dense<0.000000e+00> : vector<2x384xf32>
    %497 = tpu.matmul %495, %496, %cst_276 {dimension_numbers = #tpu.dot_dimension_numbers<[1], [0], [0], [1], [0, 0, 1, 1], [], []>} : vector<2x64xf32>, vector<64x384xf32>, vector<2x384xf32> -> vector<2x384xf32>
    %498 = vector.broadcast %494 : vector<1x384xf32> to vector<2x384xf32>
    %499 = arith.addf %498, %497 : vector<2x384xf32>
    %c17_277 = arith.constant 17 : index
    %c0_278 = arith.constant 0 : index
    %500 = tpu.strided_load %arg16[%c17_277, %c0_278] {strides = array<i32: 4, 1>} : memref<512x128xf32, #tpu.memory_space<vmem>>, vector<2x64xf32>
    %c64_279 = arith.constant 64 : index
    %c0_280 = arith.constant 0 : index
    %501 = vector.load %arg13[%c64_279, %c0_280] : memref<256x384xf32, #tpu.memory_space<vmem>>, vector<64x384xf32>
    %cst_281 = arith.constant dense<0.000000e+00> : vector<2x384xf32>
    %502 = tpu.matmul %500, %501, %cst_281 {dimension_numbers = #tpu.dot_dimension_numbers<[1], [0], [0], [1], [0, 0, 1, 1], [], []>} : vector<2x64xf32>, vector<64x384xf32>, vector<2x384xf32> -> vector<2x384xf32>
    %503 = arith.addf %499, %502 : vector<2x384xf32>
    %c18 = arith.constant 18 : index
    %c0_282 = arith.constant 0 : index
    %504 = tpu.strided_load %arg16[%c18, %c0_282] {strides = array<i32: 4, 1>} : memref<512x128xf32, #tpu.memory_space<vmem>>, vector<2x64xf32>
    %c128_283 = arith.constant 128 : index
    %c0_284 = arith.constant 0 : index
    %505 = vector.load %arg13[%c128_283, %c0_284] : memref<256x384xf32, #tpu.memory_space<vmem>>, vector<64x384xf32>
    %cst_285 = arith.constant dense<0.000000e+00> : vector<2x384xf32>
    %506 = tpu.matmul %504, %505, %cst_285 {dimension_numbers = #tpu.dot_dimension_numbers<[1], [0], [0], [1], [0, 0, 1, 1], [], []>} : vector<2x64xf32>, vector<64x384xf32>, vector<2x384xf32> -> vector<2x384xf32>
    %507 = arith.addf %503, %506 : vector<2x384xf32>
    %c19 = arith.constant 19 : index
    %c0_286 = arith.constant 0 : index
    %508 = tpu.strided_load %arg16[%c19, %c0_286] {strides = array<i32: 4, 1>} : memref<512x128xf32, #tpu.memory_space<vmem>>, vector<2x64xf32>
    %c192 = arith.constant 192 : index
    %c0_287 = arith.constant 0 : index
    %509 = vector.load %arg13[%c192, %c0_287] : memref<256x384xf32, #tpu.memory_space<vmem>>, vector<64x384xf32>
    %cst_288 = arith.constant dense<0.000000e+00> : vector<2x384xf32>
    %510 = tpu.matmul %508, %509, %cst_288 {dimension_numbers = #tpu.dot_dimension_numbers<[1], [0], [0], [1], [0, 0, 1, 1], [], []>} : vector<2x64xf32>, vector<64x384xf32>, vector<2x384xf32> -> vector<2x384xf32>
    %511 = arith.addf %507, %510 : vector<2x384xf32>
    %cst_289 = arith.constant 0.000000e+00 : f32
    %512 = vector.broadcast %cst_289 : f32 to vector<2x384xf32>
    %513 = arith.subf %512, %511 : vector<2x384xf32>
    %514 = math.exp %513 : vector<2x384xf32>
    %cst_290 = arith.constant 1.000000e+00 : f32
    %515 = vector.broadcast %cst_290 : f32 to vector<2x384xf32>
    %516 = arith.addf %515, %514 : vector<2x384xf32>
    %cst_291 = arith.constant 1.000000e+00 : f32
    %517 = vector.broadcast %cst_291 : f32 to vector<2x384xf32>
    %518 = arith.divf %517, %516 : vector<2x384xf32>
    %c0_292 = arith.constant 0 : index
    %c0_293 = arith.constant 0 : index
    %519 = vector.load %arg15[%c0_292, %c0_293] : memref<2x384xf32, #tpu.memory_space<vmem>>, vector<2x384xf32>
    tpu.vector_store %arg15[%c0_292, %c0_293], %518 {strides = array<i32>} : memref<2x384xf32, #tpu.memory_space<vmem>>, vector<2x384xf32>,
    return
  }
}

</mosaic_0001>

<bundles_post_ra>
// kernel: _lambda_.1
= control target key start
LH: loop header
LB: loop body
LE: loop exit
PB: predicated region body
PF: predicated region fallthrough
CT: control target
= control target key end

     0   :  { %20 = vsyncpa [#allocation5], 0  ;;  %v8452_v1 = vmov 0   ;;  %s11269_s0 = inlined_call_operand.vmem [shape: bf16[512,512], index: 0, kind: input, shape index: {}]   ;;  %s11270_s1 = inlined_call_operand.vmem [shape: bf16[512,128], index: 1, kind: input, shape index: {}]   ;;  %s11271_s2 = inlined_call_operand.vmem [shape: f32[3,128], index: 2, kind: input, shape index: {}]   ;;  %s11272_s3 = inlined_call_operand.vmem [shape: bf16[32,256,16], index: 3, kind: input, shape index: {}]   ;;  %s11273_s4 = inlined_call_operand.vmem [shape: f32[3,16], index: 4, kind: input, shape index: {}]   ;;  %s11274_s5 = inlined_call_operand.vmem [shape: bf16[64,16,16], index: 5, kind: input, shape index: {}]   ;;  %s11275_s6 = inlined_call_operand.vmem [shape: f32[3,16], index: 6, kind: input, shape index: {}]   ;;  %s11276_s7 = inlined_call_operand.vmem [shape: bf16[64,16,16], index: 7, kind: input, shape index: {}]   ;;  %s11277_s8 = inlined_call_operand.vmem [shape: f32[3,16], index: 8, kind: input, shape index: {}]   ;;  %s11278_s9 = inlined_call_operand.vmem [shape: bf16[64,16,32], index: 9, kind: input, shape index: {}]   ;;  %s11279_s10 = inlined_call_operand.vmem [shape: f32[3,32], index: 10, kind: input, shape index: {}]   ;;  %s11280_s11 = inlined_call_operand.vmem [shape: bf16[64,32,64], index: 11, kind: input, shape index: {}]   ;;  %s11281_s12 = inlined_call_operand.vmem [shape: f32[3,64], index: 12, kind: input, shape index: {}]   ;;  %s11282_s13 = inlined_call_operand.vmem [shape: f32[256,384], index: 13, kind: input, shape index: {}]   ;;  %s11283_s14 = inlined_call_operand.vmem [shape: f32[1,384], index: 14, kind: input, shape index: {}]   ;;  %s11284_s15 = inlined_call_operand.hbm [shape: f32[2,384], index: 15, kind: output, shape index: {}]  }
   0x1   :  { %v7561_v0 = vld [vmem:[%s11270_s1] sm:$0xff]   ;;  %1076 = vmatprep.subr.bf16.mxu1 %v8452_v1  ;;  %1365 = vmatprep.subr.bf16.mxu0 %v8452_v1  ;;  %v7563_v3 = vld [vmem:[%s11270_s1 + $0x8] sm:$0xff]   ;;  %v7565_v5 = vld [vmem:[%s11270_s1 + $0x10] sm:$0xff]  }
   0x2   :  { %1077 = vmatpush1.bf16.msra.mxu1 %v7561_v0  ;;  %v7562_v2 = vld [vmem:[%s11270_s1 + $0x80] sm:$0xff]   ;;  %v7564_v4 = vld [vmem:[%s11270_s1 + $0x88] sm:$0xff]   ;;  %v7566_v6 = vld [vmem:[%s11270_s1 + $0x90] sm:$0xff]  }
   0x3   :  { %1078 = vmatprep.subr.bf16.mxu1 %v8452_v1  ;;  %1366 = vmatpush1.bf16.msra.mxu0 %v7562_v2  ;;  %v7567_v7 = vld [vmem:[%s11270_s1 + $0x18] sm:$0xff]   ;;  %v7569_v9 = vld [vmem:[%s11270_s1 + $0x20] sm:$0xff]   ;;  %v7571_v11 = vld [vmem:[%s11270_s1 + $0x28] sm:$0xff]  }
   0x4   :  { %1367 = vmatprep.subr.bf16.mxu0 %v8452_v1  ;;  %v7568_v8 = vld [vmem:[%s11270_s1 + $0x98] sm:$0xff]   ;;  %v7570_v10 = vld [vmem:[%s11270_s1 + $0xa0] sm:$0xff]   ;;  %v7572_v12 = vld [vmem:[%s11270_s1 + $0xa8] sm:$0xff]  }
   0x5   :  { %v7573_v13 = vld [vmem:[%s11270_s1 + $0x30] sm:$0xff]   ;;  %v7575_v15 = vld [vmem:[%s11270_s1 + $0x38] sm:$0xff]   ;;  %v7577_v17 = vld [vmem:[%s11270_s1 + $0x40] sm:$0xff]  }
   0x6   :  { %1079 = vmatpush1.bf16.msra.mxu1 %v7563_v3  ;;  %v7574_v14 = vld [vmem:[%s11270_s1 + $0xb0] sm:$0xff]   ;;  %v7576_v16 = vld [vmem:[%s11270_s1 + $0xb8] sm:$0xff]   ;;  %v7578_v18 = vld [vmem:[%s11270_s1 + $0xc0] sm:$0xff]  }
   0x7   :  { %1080 = vmatprep.subr.bf16.mxu1 %v8452_v1  ;;  %1368 = vmatpush1.bf16.msra.mxu0 %v7564_v4  ;;  %v7595_v19 = vld [vmem:[%s11269_s0 + $0x4] ss:$16 sps:$4 sm:$0xff]   ;;  %v7579_v20 = vld [vmem:[%s11270_s1 + $0x48] sm:$0xff]   ;;  %v7583_v25 = vld [vmem:[%s11270_s1 + $0x58] sm:$0xff]  }
   0x8   :  { %1369 = vmatprep.subr.bf16.mxu0 %v8452_v1  ;;  %v7598_v21 = vld [vmem:[%s11269_s0 + $0xc] ss:$16 sps:$4 sm:$0xff]   ;;  %1108 = vmatprep.mubr.bf16.mxu1 %v7595_v19  ;;  %v7581_v23 = vld [vmem:[%s11270_s1 + $0x50] sm:$0xff]   ;;  %v7585_v27 = vld [vmem:[%s11270_s1 + $0x60] sm:$0xff]  }
   0x9   :  { %v7580_v22 = vld [vmem:[%s11270_s1 + $0xc8] sm:$0xff]   ;;  %1397 = vmatprep.mubr.bf16.mxu0 %v7598_v21  ;;  %v7582_v24 = vld [vmem:[%s11270_s1 + $0xd0] sm:$0xff]   ;;  %v7584_v26 = vld [vmem:[%s11270_s1 + $0xd8] sm:$0xff]  }
   0xa   :  { %1081 = vmatpush1.bf16.msra.mxu1 %v7565_v5  ;;  %v7586_v28 = vld [vmem:[%s11270_s1 + $0xe0] sm:$0xff]   ;;  %v7587_v29 = vld [vmem:[%s11270_s1 + $0x68] sm:$0xff]   ;;  %v7589_v31 = vld [vmem:[%s11270_s1 + $0x70] sm:$0xff]  }
   0xb   :  { %1082 = vmatprep.subr.bf16.mxu1 %v8452_v1  ;;  %1370 = vmatpush1.bf16.msra.mxu0 %v7566_v6  ;;  %v7588_v30 = vld [vmem:[%s11270_s1 + $0xe8] sm:$0xff]   ;;  %v7590_v32 = vld [vmem:[%s11270_s1 + $0xf0] sm:$0xff]   ;;  %v7591_v33 = vld [vmem:[%s11270_s1 + $0x78] sm:$0xff]  }
   0xc   :  { %1371 = vmatprep.subr.bf16.mxu0 %v8452_v1  ;;  %v7592_v34 = vld [vmem:[%s11270_s1 + $0xf8] sm:$0xff]   ;;  %v7593_v35 = vld [vmem:[%s11269_s0] ss:$16 sps:$4 sm:$0xff]   ;;  %v7599_v36 = vld [vmem:[%s11269_s0 + $0x24] ss:$16 sps:$4 sm:$0xff]  }
   0xd   :  { %v7596_v37 = vld [vmem:[%s11269_s0 + $0x8] ss:$16 sps:$4 sm:$0xff]   ;;  %v7601_v38 = vld [vmem:[%s11269_s0 + $0x2c] ss:$16 sps:$4 sm:$0xff]   ;;  %v7603_v39 = vld [vmem:[%s11269_s0 + $0x20] ss:$16 sps:$4 sm:$0xff]  }
   0xe   :  { %1083 = vmatpush1.bf16.msra.mxu1 %v7567_v7  ;;  %v7605_v40 = vld [vmem:[%s11269_s0 + $0x44] ss:$16 sps:$4 sm:$0xff]   ;;  %v7604_v41 = vld [vmem:[%s11269_s0 + $0x28] ss:$16 sps:$4 sm:$0xff]   ;;  %v7607_v42 = vld [vmem:[%s11269_s0 + $0x4c] ss:$16 sps:$4 sm:$0xff]  }
   0xf   :  { %1084 = vmatprep.subr.bf16.mxu1 %v8452_v1  ;;  %1372 = vmatpush1.bf16.msra.mxu0 %v7568_v8  ;;  %v7609_v43 = vld [vmem:[%s11269_s0 + $0x40] ss:$16 sps:$4 sm:$0xff]   ;;  %v7611_v44 = vld [vmem:[%s11269_s0 + $0x64] ss:$16 sps:$4 sm:$0xff]   ;;  %v7610_v45 = vld [vmem:[%s11269_s0 + $0x48] ss:$16 sps:$4 sm:$0xff]  }
  0x10   :  { %1373 = vmatprep.subr.bf16.mxu0 %v8452_v1  ;;  %v7613_v46 = vld [vmem:[%s11269_s0 + $0x6c] ss:$16 sps:$4 sm:$0xff]   ;;  %v7615_v47 = vld [vmem:[%s11269_s0 + $0x60] ss:$16 sps:$4 sm:$0xff]   ;;  %v7616_v48 = vld [vmem:[%s11269_s0 + $0x68] ss:$16 sps:$4 sm:$0xff]  }
  0x11   :  { %v7617_v49 = vld [vmem:[%s11269_s0 + $0x84] ss:$16 sps:$4 sm:$0xff]   ;;  %v7619_v50 = vld [vmem:[%s11269_s0 + $0x8c] ss:$16 sps:$4 sm:$0xff]   ;;  %v7621_v51 = vld [vmem:[%s11269_s0 + $0x80] ss:$16 sps:$4 sm:$0xff]  }
  0x12   :  { %1085 = vmatpush1.bf16.msra.mxu1 %v7569_v9  ;;  %v7623_v52 = vld [vmem:[%s11269_s0 + $0xa4] ss:$16 sps:$4 sm:$0xff]   ;;  %v7622_v53 = vld [vmem:[%s11269_s0 + $0x88] ss:$16 sps:$4 sm:$0xff]   ;;  %v7625_v54 = vld [vmem:[%s11269_s0 + $0xac] ss:$16 sps:$4 sm:$0xff]  }
  0x13   :  { %1086 = vmatprep.subr.bf16.mxu1 %v8452_v1  ;;  %1374 = vmatpush1.bf16.msra.mxu0 %v7570_v10  ;;  %v7627_v55 = vld [vmem:[%s11269_s0 + $0xa0] ss:$16 sps:$4 sm:$0xff]   ;;  %v7629_v56 = vld [vmem:[%s11269_s0 + $0xc4] ss:$16 sps:$4 sm:$0xff]   ;;  %v7628_v57 = vld [vmem:[%s11269_s0 + $0xa8] ss:$16 sps:$4 sm:$0xff]  }
  0x14   :  { %1375 = vmatprep.subr.bf16.mxu0 %v8452_v1  ;;  %v7631_v58 = vld [vmem:[%s11269_s0 + $0xcc] ss:$16 sps:$4 sm:$0xff]   ;;  %v7633_v59 = vld [vmem:[%s11269_s0 + $0xc0] ss:$16 sps:$4 sm:$0xff]   ;;  %v7635_v60 = vld [vmem:[%s11269_s0 + $0xe4] ss:$16 sps:$4 sm:$0xff]  }
  0x15   :  { %v7634_v61 = vld [vmem:[%s11269_s0 + $0xc8] ss:$16 sps:$4 sm:$0xff]   ;;  %v7637_v62 = vld [vmem:[%s11269_s0 + $0xec] ss:$16 sps:$4 sm:$0xff]   ;;  %v7639_v63 = vld [vmem:[%s11269_s0 + $0xe0] ss:$16 sps:$4 sm:$0xff]  }
  0x16   :  { %1087 = vmatpush1.bf16.msra.mxu1 %v7571_v11  ;;  %v7641_v0 = vld [vmem:[%s11269_s0 + $0x104] ss:$16 sps:$4 sm:$0xff]   ;;  %v7643_v2 = vld [vmem:[%s11269_s0 + $0x10c] ss:$16 sps:$4 sm:$0xff]   ;;  %v7645_v3 = vld [vmem:[%s11269_s0 + $0x100] ss:$16 sps:$4 sm:$0xff]  }
  0x17   :  { %1088 = vmatprep.subr.bf16.mxu1 %v8452_v1  ;;  %1376 = vmatpush1.bf16.msra.mxu0 %v7572_v12  ;;  %v7647_v4 = vld [vmem:[%s11269_s0 + $0x124] ss:$16 sps:$4 sm:$0xff]   ;;  %v7646_v5 = vld [vmem:[%s11269_s0 + $0x108] ss:$16 sps:$4 sm:$0xff]   ;;  %v7649_v6 = vld [vmem:[%s11269_s0 + $0x12c] ss:$16 sps:$4 sm:$0xff]  }
  0x18   :  { %1377 = vmatprep.subr.bf16.mxu0 %v8452_v1  ;;  %v7651_v7 = vld [vmem:[%s11269_s0 + $0x120] ss:$16 sps:$4 sm:$0xff]   ;;  %v7653_v8 = vld [vmem:[%s11269_s0 + $0x144] ss:$16 sps:$4 sm:$0xff]   ;;  %v7652_v9 = vld [vmem:[%s11269_s0 + $0x128] ss:$16 sps:$4 sm:$0xff]  }
  0x19   :  { %v7655_v10 = vld [vmem:[%s11269_s0 + $0x14c] ss:$16 sps:$4 sm:$0xff]   ;;  %v7657_v11 = vld [vmem:[%s11269_s0 + $0x140] ss:$16 sps:$4 sm:$0xff]   ;;  %v7659_v12 = vld [vmem:[%s11269_s0 + $0x164] ss:$16 sps:$4 sm:$0xff]  }
  0x1a   :  { %1089 = vmatpush1.bf16.msra.mxu1 %v7573_v13  ;;  %v7658_v13 = vld [vmem:[%s11269_s0 + $0x148] ss:$16 sps:$4 sm:$0xff]   ;;  %v7669_v19 = vld [vmem:[%s11269_s0 + $0x180] ss:$16 sps:$4 sm:$0xff]  }
  0x1b   :  { %1090 = vmatprep.subr.bf16.mxu1 %v8452_v1  ;;  %1378 = vmatpush1.bf16.msra.mxu0 %v7574_v14  ;;  %v7661_v14 = vld [vmem:[%s11269_s0 + $0x16c] ss:$16 sps:$4 sm:$0xff]   ;;  %v7670_v21 = vld [vmem:[%s11269_s0 + $0x188] ss:$16 sps:$4 sm:$0xff]  }
  0x1c   :  { %1379 = vmatprep.subr.bf16.mxu0 %v8452_v1 }
  0x1e   :  { %1091 = vmatpush1.bf16.msra.mxu1 %v7575_v15  ;;  %v7663_v15 = vld [vmem:[%s11269_s0 + $0x160] ss:$16 sps:$4 sm:$0xff]  }
  0x1f   :  { %1092 = vmatprep.subr.bf16.mxu1 %v8452_v1  ;;  %1380 = vmatpush1.bf16.msra.mxu0 %v7576_v16  ;;  %v7665_v16 = vld [vmem:[%s11269_s0 + $0x184] ss:$16 sps:$4 sm:$0xff]  }
  0x20   :  { %1381 = vmatprep.subr.bf16.mxu0 %v8452_v1 }
  0x22   :  { %1093 = vmatpush1.bf16.msra.mxu1 %v7577_v17  ;;  %v7664_v17 = vld [vmem:[%s11269_s0 + $0x168] ss:$16 sps:$4 sm:$0xff]  }
  0x23   :  { %1094 = vmatprep.subr.bf16.mxu1 %v8452_v1  ;;  %1382 = vmatpush1.bf16.msra.mxu0 %v7578_v18  ;;  %v7667_v18 = vld [vmem:[%s11269_s0 + $0x18c] ss:$16 sps:$4 sm:$0xff]  }
  0x24   :  { %1383 = vmatprep.subr.bf16.mxu0 %v8452_v1 }
  0x26   :  { %1095 = vmatpush1.bf16.msra.mxu1 %v7579_v20  ;;  %v7671_v20 = vld [vmem:[%s11269_s0 + $0x1a4] ss:$16 sps:$4 sm:$0xff]  }
  0x27   :  { %1096 = vmatprep.subr.bf16.mxu1 %v8452_v1  ;;  %1384 = vmatpush1.bf16.msra.mxu0 %v7580_v22  ;;  %v7673_v22 = vld [vmem:[%s11269_s0 + $0x1ac] ss:$16 sps:$4 sm:$0xff]  }
  0x28   :  { %1385 = vmatprep.subr.bf16.mxu0 %v8452_v1 }
  0x2a   :  { %1097 = vmatpush1.bf16.msra.mxu1 %v7581_v23  ;;  %v7675_v23 = vld [vmem:[%s11269_s0 + $0x1a0] ss:$16 sps:$4 sm:$0xff]  }
  0x2b   :  { %1098 = vmatprep.subr.bf16.mxu1 %v8452_v1  ;;  %1386 = vmatpush1.bf16.msra.mxu0 %v7582_v24  ;;  %v7677_v24 = vld [vmem:[%s11269_s0 + $0x1c4] ss:$16 sps:$4 sm:$0xff]  }
  0x2c   :  { %1387 = vmatprep.subr.bf16.mxu0 %v8452_v1 }
  0x2e   :  { %1099 = vmatpush1.bf16.msra.mxu1 %v7583_v25  ;;  %v7676_v25 = vld [vmem:[%s11269_s0 + $0x1a8] ss:$16 sps:$4 sm:$0xff]  }
  0x2f   :  { %1100 = vmatprep.subr.bf16.mxu1 %v8452_v1  ;;  %1388 = vmatpush1.bf16.msra.mxu0 %v7584_v26  ;;  %v7679_v26 = vld [vmem:[%s11269_s0 + $0x1cc] ss:$16 sps:$4 sm:$0xff]  }
  0x30   :  { %1389 = vmatprep.subr.bf16.mxu0 %v8452_v1 }
  0x32   :  { %1101 = vmatpush1.bf16.msra.mxu1 %v7585_v27  ;;  %v7681_v27 = vld [vmem:[%s11269_s0 + $0x1c0] ss:$16 sps:$4 sm:$0xff]  }
  0x33   :  { %1102 = vmatprep.subr.bf16.mxu1 %v8452_v1  ;;  %1390 = vmatpush1.bf16.msra.mxu0 %v7586_v28  ;;  %v7683_v28 = vld [vmem:[%s11269_s0 + $0x1e4] ss:$16 sps:$4 sm:$0xff]  }
  0x34   :  { %1391 = vmatprep.subr.bf16.mxu0 %v8452_v1 }
  0x36   :  { %1103 = vmatpush1.bf16.msra.mxu1 %v7587_v29  ;;  %v7682_v29 = vld [vmem:[%s11269_s0 + $0x1c8] ss:$16 sps:$4 sm:$0xff]  }
  0x37   :  { %1104 = vmatprep.subr.bf16.mxu1 %v8452_v1  ;;  %1392 = vmatpush1.bf16.msra.mxu0 %v7588_v30  ;;  %v7685_v30 = vld [vmem:[%s11269_s0 + $0x1ec] ss:$16 sps:$4 sm:$0xff]  }
  0x38   :  { %1393 = vmatprep.subr.bf16.mxu0 %v8452_v1 }
  0x3a   :  { %1105 = vmatpush1.bf16.msra.mxu1 %v7589_v31  ;;  %v7687_v31 = vld [vmem:[%s11269_s0 + $0x1e0] ss:$16 sps:$4 sm:$0xff]  }
  0x3b   :  { %1106 = vmatprep.subr.bf16.mxu1 %v8452_v1  ;;  %1394 = vmatpush1.bf16.msra.mxu0 %v7590_v32  ;;  %v7689_v32 = vld [vmem:[%s11269_s0 + $0x204] ss:$16 sps:$4 sm:$0xff]  }
  0x3c   :  { %1395 = vmatprep.subr.bf16.mxu0 %v8452_v1  ;;  %v7640_v1 = vld [vmem:[%s11269_s0 + $0xe8] ss:$16 sps:$4 sm:$0xff]  }
  0x3e   :  { %1107 = vmatpush1.bf16.msra.mxu1 %v7591_v33  ;;  %v7688_v33 = vld [vmem:[%s11269_s0 + $0x1e8] ss:$16 sps:$4 sm:$0xff]  }
  0x3f   :  { %1396 = vmatpush1.bf16.msra.mxu0 %v7592_v34  ;;  %v7691_v34 = vld [vmem:[%s11269_s0 + $0x20c] ss:$16 sps:$4 sm:$0xff]  }
  0x41   :  { %1109 = vmatmul.mubr.bf16.vlgmr.msra.gmra.mrb[0].mxu1 %v7593_v35  ;;  %v7693_v35 = vld [vmem:[%s11269_s0 + $0x200] ss:$16 sps:$4 sm:$0xff]  }
  0x42   :  { %1116 = vmatprep.mubr.bf16.mxu1 %v7599_v36  ;;  %1398 = vmatmul.mubr.bf16.vlgmr.msra.gmra.mrb[0].mxu0 %v7596_v37  ;;  %v7695_v36 = vld [vmem:[%s11269_s0 + $0x224] ss:$16 sps:$4 sm:$0xff]   ;;  %v7694_v37 = vld [vmem:[%s11269_s0 + $0x208] ss:$16 sps:$4 sm:$0xff]  }
  0x43   :  { %1405 = vmatprep.mubr.bf16.mxu0 %v7601_v38  ;;  %v7697_v38 = vld [vmem:[%s11269_s0 + $0x22c] ss:$16 sps:$4 sm:$0xff]  }
  0x49   :  { %1117 = vmatmul.mubr.bf16.gmra.mrb[4].mxu1 %v7603_v39  ;;  %v7699_v39 = vld [vmem:[%s11269_s0 + $0x220] ss:$16 sps:$4 sm:$0xff]  }
  0x4a   :  { %1124 = vmatprep.mubr.bf16.mxu1 %v7605_v40  ;;  %1406 = vmatmul.mubr.bf16.gmra.mrb[4].mxu0 %v7604_v41  ;;  %v7701_v40 = vld [vmem:[%s11269_s0 + $0x244] ss:$16 sps:$4 sm:$0xff]   ;;  %v7700_v41 = vld [vmem:[%s11269_s0 + $0x228] ss:$16 sps:$4 sm:$0xff]  }
  0x4b   :  { %1413 = vmatprep.mubr.bf16.mxu0 %v7607_v42  ;;  %v7703_v42 = vld [vmem:[%s11269_s0 + $0x24c] ss:$16 sps:$4 sm:$0xff]  }
  0x51   :  { %1125 = vmatmul.mubr.bf16.gmra.mrb[8].mxu1 %v7609_v43  ;;  %v7705_v43 = vld [vmem:[%s11269_s0 + $0x240] ss:$16 sps:$4 sm:$0xff]  }
  0x52   :  { %1132 = vmatprep.mubr.bf16.mxu1 %v7611_v44  ;;  %1414 = vmatmul.mubr.bf16.gmra.mrb[8].mxu0 %v7610_v45  ;;  %v7707_v44 = vld [vmem:[%s11269_s0 + $0x264] ss:$16 sps:$4 sm:$0xff]   ;;  %v7706_v45 = vld [vmem:[%s11269_s0 + $0x248] ss:$16 sps:$4 sm:$0xff]  }
  0x53   :  { %1421 = vmatprep.mubr.bf16.mxu0 %v7613_v46  ;;  %v7709_v46 = vld [vmem:[%s11269_s0 + $0x26c] ss:$16 sps:$4 sm:$0xff]  }
  0x59   :  { %1133 = vmatmul.mubr.bf16.gmra.mrb[12].mxu1 %v7615_v47  ;;  %v7711_v47 = vld [vmem:[%s11269_s0 + $0x260] ss:$16 sps:$4 sm:$0xff]  }
  0x5a   :  { %1140 = vmatprep.mubr.bf16.mxu1 %v7617_v49  ;;  %1422 = vmatmul.mubr.bf16.gmra.mrb[12].mxu0 %v7616_v48  ;;  %v7713_v48 = vld [vmem:[%s11269_s0 + $0x284] ss:$16 sps:$4 sm:$0xff]   ;;  %v7712_v49 = vld [vmem:[%s11269_s0 + $0x268] ss:$16 sps:$4 sm:$0xff]  }
  0x5b   :  { %1429 = vmatprep.mubr.bf16.mxu0 %v7619_v50  ;;  %v7715_v50 = vld [vmem:[%s11269_s0 + $0x28c] ss:$16 sps:$4 sm:$0xff]  }
  0x61   :  { %1141 = vmatmul.mubr.bf16.gmra.mrb[16].mxu1 %v7621_v51  ;;  %v7717_v51 = vld [vmem:[%s11269_s0 + $0x280] ss:$16 sps:$4 sm:$0xff]  }
  0x62   :  { %1148 = vmatprep.mubr.bf16.mxu1 %v7623_v52  ;;  %1430 = vmatmul.mubr.bf16.gmra.mrb[16].mxu0 %v7622_v53  ;;  %v7719_v52 = vld [vmem:[%s11269_s0 + $0x2a4] ss:$16 sps:$4 sm:$0xff]   ;;  %v7718_v53 = vld [vmem:[%s11269_s0 + $0x288] ss:$16 sps:$4 sm:$0xff]  }
  0x63   :  { %1437 = vmatprep.mubr.bf16.mxu0 %v7625_v54  ;;  %v7721_v54 = vld [vmem:[%s11269_s0 + $0x2ac] ss:$16 sps:$4 sm:$0xff]  }
  0x69   :  { %1149 = vmatmul.mubr.bf16.gmra.mrb[20].mxu1 %v7627_v55  ;;  %v7723_v55 = vld [vmem:[%s11269_s0 + $0x2a0] ss:$16 sps:$4 sm:$0xff]  }
  0x6a   :  { %1156 = vmatprep.mubr.bf16.mxu1 %v7629_v56  ;;  %1438 = vmatmul.mubr.bf16.gmra.mrb[20].mxu0 %v7628_v57  ;;  %v7725_v56 = vld [vmem:[%s11269_s0 + $0x2c4] ss:$16 sps:$4 sm:$0xff]   ;;  %v7724_v57 = vld [vmem:[%s11269_s0 + $0x2a8] ss:$16 sps:$4 sm:$0xff]  }
  0x6b   :  { %1445 = vmatprep.mubr.bf16.mxu0 %v7631_v58  ;;  %v7727_v58 = vld [vmem:[%s11269_s0 + $0x2cc] ss:$16 sps:$4 sm:$0xff]  }
  0x71   :  { %1157 = vmatmul.mubr.bf16.gmra.mrb[24].mxu1 %v7633_v59  ;;  %v7729_v59 = vld [vmem:[%s11269_s0 + $0x2c0] ss:$16 sps:$4 sm:$0xff]  }
  0x72   :  { %1164 = vmatprep.mubr.bf16.mxu1 %v7635_v60  ;;  %1446 = vmatmul.mubr.bf16.gmra.mrb[24].mxu0 %v7634_v61  ;;  %v7731_v60 = vld [vmem:[%s11269_s0 + $0x2e4] ss:$16 sps:$4 sm:$0xff]   ;;  %v7730_v61 = vld [vmem:[%s11269_s0 + $0x2c8] ss:$16 sps:$4 sm:$0xff]  }
  0x73   :  { %1453 = vmatprep.mubr.bf16.mxu0 %v7637_v62  ;;  %v7733_v62 = vld [vmem:[%s11269_s0 + $0x2ec] ss:$16 sps:$4 sm:$0xff]  }
  0x79   :  { %1165 = vmatmul.mubr.bf16.gmra.mrb[28].mxu1 %v7639_v63  ;;  %v7735_v63 = vld [vmem:[%s11269_s0 + $0x2e0] ss:$16 sps:$4 sm:$0xff]  }
  0x7a   :  { %1172 = vmatprep.mubr.bf16.mxu1 %v7641_v0  ;;  %1454 = vmatmul.mubr.bf16.gmra.mrb[28].mxu0 %v7640_v1  ;;  %v7737_v0 = vld [vmem:[%s11269_s0 + $0x304] ss:$16 sps:$4 sm:$0xff]   ;;  %v7736_v1 = vld [vmem:[%s11269_s0 + $0x2e8] ss:$16 sps:$4 sm:$0xff]  }
  0x7b   :  { %1461 = vmatprep.mubr.bf16.mxu0 %v7643_v2  ;;  %v7739_v2 = vld [vmem:[%s11269_s0 + $0x30c] ss:$16 sps:$4 sm:$0xff]  }
  0x81   :  { %1173 = vmatmul.mubr.bf16.gmra.mrb[32].mxu1 %v7645_v3  ;;  %v7741_v3 = vld [vmem:[%s11269_s0 + $0x300] ss:$16 sps:$4 sm:$0xff]  }
  0x82   :  { %1180 = vmatprep.mubr.bf16.mxu1 %v7647_v4  ;;  %1462 = vmatmul.mubr.bf16.gmra.mrb[32].mxu0 %v7646_v5  ;;  %v7743_v4 = vld [vmem:[%s11269_s0 + $0x324] ss:$16 sps:$4 sm:$0xff]   ;;  %v7742_v5 = vld [vmem:[%s11269_s0 + $0x308] ss:$16 sps:$4 sm:$0xff]  }
  0x83   :  { %1469 = vmatprep.mubr.bf16.mxu0 %v7649_v6  ;;  %v7745_v6 = vld [vmem:[%s11269_s0 + $0x32c] ss:$16 sps:$4 sm:$0xff]  }
  0x89   :  { %1181 = vmatmul.mubr.bf16.gmra.mrb[36].mxu1 %v7651_v7  ;;  %v7747_v7 = vld [vmem:[%s11269_s0 + $0x320] ss:$16 sps:$4 sm:$0xff]  }
  0x8a   :  { %1188 = vmatprep.mubr.bf16.mxu1 %v7653_v8  ;;  %1470 = vmatmul.mubr.bf16.gmra.mrb[36].mxu0 %v7652_v9  ;;  %v7749_v8 = vld [vmem:[%s11269_s0 + $0x344] ss:$16 sps:$4 sm:$0xff]   ;;  %v7748_v9 = vld [vmem:[%s11269_s0 + $0x328] ss:$16 sps:$4 sm:$0xff]  }
  0x8b   :  { %1477 = vmatprep.mubr.bf16.mxu0 %v7655_v10  ;;  %v7751_v10 = vld [vmem:[%s11269_s0 + $0x34c] ss:$16 sps:$4 sm:$0xff]  }
  0x91   :  { %1189 = vmatmul.mubr.bf16.gmra.mrb[40].mxu1 %v7657_v11  ;;  %v7753_v11 = vld [vmem:[%s11269_s0 + $0x340] ss:$16 sps:$4 sm:$0xff]  }
  0x92   :  { %1196 = vmatprep.mubr.bf16.mxu1 %v7659_v12  ;;  %1478 = vmatmul.mubr.bf16.gmra.mrb[40].mxu0 %v7658_v13  ;;  %v7755_v12 = vld [vmem:[%s11269_s0 + $0x364] ss:$16 sps:$4 sm:$0xff]   ;;  %v7754_v13 = vld [vmem:[%s11269_s0 + $0x348] ss:$16 sps:$4 sm:$0xff]  }
  0x93   :  { %1485 = vmatprep.mubr.bf16.mxu0 %v7661_v14  ;;  %v7757_v14 = vld [vmem:[%s11269_s0 + $0x36c] ss:$16 sps:$4 sm:$0xff]  }
  0x99   :  { %1197 = vmatmul.mubr.bf16.gmra.mrb[44].mxu1 %v7663_v15 }
  0x9a   :  { %1204 = vmatprep.mubr.bf16.mxu1 %v7665_v16  ;;  %1486 = vmatmul.mubr.bf16.gmra.mrb[44].mxu0 %v7664_v17  ;;  %v7759_v17 = vld [vmem:[%s11269_s0 + $0x360] ss:$16 sps:$4 sm:$0xff]  }
  0x9b   :  { %1493 = vmatprep.mubr.bf16.mxu0 %v7667_v18 }
  0xa1   :  { %1205 = vmatmul.mubr.bf16.gmra.mrb[48].mxu1 %v7669_v19  ;;  %v9010_v19 = vld [vmem:[%s11271_s2] ss:$0 sm:$0xff] }
  0xa2   :  { %1212 = vmatprep.mubr.bf16.mxu1 %v7671_v20  ;;  %1494 = vmatmul.mubr.bf16.gmra.mrb[48].mxu0 %v7670_v21  ;;  %v7761_v21 = vld [vmem:[%s11269_s0 + $0x384] ss:$16 sps:$4 sm:$0xff]  }
  0xa3   :  { %1501 = vmatprep.mubr.bf16.mxu0 %v7673_v22 }
  0xa9   :  { %1213 = vmatmul.mubr.bf16.gmra.mrb[52].mxu1 %v7675_v23 }
  0xaa   :  { %1220 = vmatprep.mubr.bf16.mxu1 %v7677_v24  ;;  %1502 = vmatmul.mubr.bf16.gmra.mrb[52].mxu0 %v7676_v25  ;;  %v7760_v25 = vld [vmem:[%s11269_s0 + $0x368] ss:$16 sps:$4 sm:$0xff]  }
  0xab   :  { %1509 = vmatprep.mubr.bf16.mxu0 %v7679_v26 }
  0xb1   :  { %1221 = vmatmul.mubr.bf16.gmra.mrb[56].mxu1 %v7681_v27  ;;  %v7763_v27 = vld [vmem:[%s11269_s0 + $0x38c] ss:$16 sps:$4 sm:$0xff]  }
  0xb2   :  { %1228 = vmatprep.mubr.bf16.mxu1 %v7683_v28  ;;  %1510 = vmatmul.mubr.bf16.gmra.mrb[56].mxu0 %v7682_v29 }
  0xb3   :  { %1517 = vmatprep.mubr.bf16.mxu0 %v7685_v30 }
  0xb9   :  { %1229 = vmatmul.mubr.bf16.gmra.mrb[60].mxu1 %v7687_v31 }
  0xba   :  { %1236 = vmatprep.mubr.bf16.mxu1 %v7689_v32  ;;  %1518 = vmatmul.mubr.bf16.gmra.mrb[60].mxu0 %v7688_v33 }
  0xbb   :  { %1525 = vmatprep.mubr.bf16.mxu0 %v7691_v34 }
  0xc1   :  { %1237 = vmatmul.mubr.bf16.gmra.mrb[64].mxu1 %v7693_v35 }
  0xc2   :  { %1244 = vmatprep.mubr.bf16.mxu1 %v7695_v36  ;;  %1526 = vmatmul.mubr.bf16.gmra.mrb[64].mxu0 %v7694_v37  ;;  %v7765_v36 = vld [vmem:[%s11269_s0 + $0x380] ss:$16 sps:$4 sm:$0xff]  }
  0xc3   :  { %1533 = vmatprep.mubr.bf16.mxu0 %v7697_v38 }
  0xc9   :  { %1245 = vmatmul.mubr.bf16.gmra.mrb[68].mxu1 %v7699_v39  ;;  %v7767_v39 = vld [vmem:[%s11269_s0 + $0x3a4] ss:$16 sps:$4 sm:$0xff]  }
  0xca   :  { %1252 = vmatprep.mubr.bf16.mxu1 %v7701_v40  ;;  %1534 = vmatmul.mubr.bf16.gmra.mrb[68].mxu0 %v7700_v41 }
  0xcb   :  { %1541 = vmatprep.mubr.bf16.mxu0 %v7703_v42 }
  0xd1   :  { %1253 = vmatmul.mubr.bf16.gmra.mrb[72].mxu1 %v7705_v43 }
  0xd2   :  { %1260 = vmatprep.mubr.bf16.mxu1 %v7707_v44  ;;  %1542 = vmatmul.mubr.bf16.gmra.mrb[72].mxu0 %v7706_v45 }
  0xd3   :  { %1549 = vmatprep.mubr.bf16.mxu0 %v7709_v46  ;;  %v7766_v46 = vld [vmem:[%s11269_s0 + $0x388] ss:$16 sps:$4 sm:$0xff]  }
  0xd9   :  { %1261 = vmatmul.mubr.bf16.gmra.mrb[76].mxu1 %v7711_v47 }
  0xda   :  { %1268 = vmatprep.mubr.bf16.mxu1 %v7713_v48  ;;  %1550 = vmatmul.mubr.bf16.gmra.mrb[76].mxu0 %v7712_v49  ;;  %v7769_v48 = vld [vmem:[%s11269_s0 + $0x3ac] ss:$16 sps:$4 sm:$0xff]  }
  0xdb   :  { %1557 = vmatprep.mubr.bf16.mxu0 %v7715_v50 }
  0xe1   :  { %1269 = vmatmul.mubr.bf16.gmra.mrb[80].mxu1 %v7717_v51 }
  0xe2   :  { %1276 = vmatprep.mubr.bf16.mxu1 %v7719_v52  ;;  %1558 = vmatmul.mubr.bf16.gmra.mrb[80].mxu0 %v7718_v53 }
  0xe3   :  { %1565 = vmatprep.mubr.bf16.mxu0 %v7721_v54 }
  0xe9   :  { %1277 = vmatmul.mubr.bf16.gmra.mrb[84].mxu1 %v7723_v55 }
  0xea   :  { %1284 = vmatprep.mubr.bf16.mxu1 %v7725_v56  ;;  %1566 = vmatmul.mubr.bf16.gmra.mrb[84].mxu0 %v7724_v57 }
  0xeb   :  { %1573 = vmatprep.mubr.bf16.mxu0 %v7727_v58 }
  0xf1   :  { %1285 = vmatmul.mubr.bf16.gmra.mrb[88].mxu1 %v7729_v59  ;;  %v7771_v59 = vld [vmem:[%s11269_s0 + $0x3a0] ss:$16 sps:$4 sm:$0xff]  }
  0xf2   :  { %1292 = vmatprep.mubr.bf16.mxu1 %v7731_v60  ;;  %1574 = vmatmul.mubr.bf16.gmra.mrb[88].mxu0 %v7730_v61 }
  0xf3   :  { %1581 = vmatprep.mubr.bf16.mxu0 %v7733_v62 }
  0xf9   :  { %1293 = vmatmul.mubr.bf16.gmra.mrb[92].mxu1 %v7735_v63  ;;  %v7773_v63 = vld [vmem:[%s11269_s0 + $0x3c4] ss:$16 sps:$4 sm:$0xff]  }
  0xfa   :  { %1300 = vmatprep.mubr.bf16.mxu1 %v7737_v0  ;;  %1582 = vmatmul.mubr.bf16.gmra.mrb[92].mxu0 %v7736_v1 }
  0xfb   :  { %1589 = vmatprep.mubr.bf16.mxu0 %v7739_v2 }
 0x101   :  { %1301 = vmatmul.mubr.bf16.gmra.mrb[96].mxu1 %v7741_v3 }
 0x102   :  { %1308 = vmatprep.mubr.bf16.mxu1 %v7743_v4  ;;  %1590 = vmatmul.mubr.bf16.gmra.mrb[96].mxu0 %v7742_v5  ;;  %v7772_v4 = vld [vmem:[%s11269_s0 + $0x3a8] ss:$16 sps:$4 sm:$0xff]  }
 0x103   :  { %1597 = vmatprep.mubr.bf16.mxu0 %v7745_v6 }
 0x109   :  { %1309 = vmatmul.mubr.bf16.gmra.mrb[100].mxu1 %v7747_v7 }
 0x10a   :  { %1316 = vmatprep.mubr.bf16.mxu1 %v7749_v8  ;;  %1598 = vmatmul.mubr.bf16.gmra.mrb[100].mxu0 %v7748_v9  ;;  %v7775_v8 = vld [vmem:[%s11269_s0 + $0x3cc] ss:$16 sps:$4 sm:$0xff]  }
 0x10b   :  { %1605 = vmatprep.mubr.bf16.mxu0 %v7751_v10 }
 0x111   :  { %1317 = vmatmul.mubr.bf16.gmra.mrb[104].mxu1 %v7753_v11 }
 0x112   :  { %1324 = vmatprep.mubr.bf16.mxu1 %v7755_v12  ;;  %1606 = vmatmul.mubr.bf16.gmra.mrb[104].mxu0 %v7754_v13 }
 0x113   :  { %1613 = vmatprep.mubr.bf16.mxu0 %v7757_v14 }
 0x114   :  { %v1110_v15 = vpop.f32.mrb[0].mxu1 }
 0x115   :  { %v1112_v16 = vpop.f32.mrb[1].mxu1  ;;  %v1399_v18 = vpop.f32.mrb[0].mxu0 }
 0x116   :  { %v1113_v20 = vpop.f32.mrb[2].mxu1  ;;  %v1400_v22 = vadd.f32 %v1399_v18, %v1110_v15  ;;  %v1401_v23 = vpop.f32.mrb[1].mxu0 }
 0x117   :  { %v1115_v24 = vpop.f32.mrb[3].mxu1  ;;  %v1402_v26 = vpop.f32.mrb[2].mxu0 }
 0x118   :  { %1654 = vst [vmem:[#allocation2] sm:$0xff] %v1400_v22  ;;  %v1741_v28 = vadd.f32 %v9010_v19, %v1400_v22  ;;  %v1403_v29 = vadd.f32 %v1402_v26, %v1113_v20  ;;  %v1404_v30 = vpop.f32.mrb[3].mxu0  ;;  %v7777_v20 = vld [vmem:[%s11269_s0 + $0x3c0] ss:$16 sps:$4 sm:$0xff]   ;;  %v7779_v24 = vld [vmem:[%s11269_s0 + $0x3e4] ss:$16 sps:$4 sm:$0xff]  }
 0x119   :  { %1325 = vmatmul.mubr.bf16.gmra.mrb[108].mxu1 %v7759_v17 }
 0x11a   :  { %1332 = vmatprep.mubr.bf16.mxu1 %v7761_v21  ;;  %v1757_v31 = vmax.f32 %v1741_v28, 0.0  ;;  %1655 = vst [vmem:[#allocation2 + $0x8] sm:$0xff] %v1403_v29  ;;  %v1742_v32 = vadd.f32 %v9010_v19, %v1403_v29  ;;  %1614 = vmatmul.mubr.bf16.gmra.mrb[108].mxu0 %v7760_v25  ;;  %v7778_v29 = vld [vmem:[%s11269_s0 + $0x3c8] ss:$16 sps:$4 sm:$0xff]  }
 0x11b   :  { %1621 = vmatprep.mubr.bf16.mxu0 %v7763_v27 }
 0x11c   :  { %v1118_v33 = vpop.f32.mrb[4].mxu1  ;;  %v1758_v34 = vmax.f32 %v1742_v32, 0.0  ;;  %v1795_v40 = vmul.f32 %v1757_v31, %v1757_v31 }
 0x11d   :  { %v1120_v35 = vpop.f32.mrb[5].mxu1  ;;  %v1407_v37 = vpop.f32.mrb[4].mxu0 }
 0x11e   :  { %v1121_v38 = vpop.f32.mrb[6].mxu1  ;;  %v1773_v41 = vadd.f32 %v1758_v34, %v1757_v31  ;;  %v1796_v42 = vmul.f32 %v1758_v34, %v1758_v34  ;;  %v1408_v43 = vadd.f32 %v1407_v37, %v1118_v33  ;;  %v1409_v44 = vpop.f32.mrb[5].mxu0  ;;  %v7781_v33 = vld [vmem:[%s11269_s0 + $0x3ec] ss:$16 sps:$4 sm:$0xff]  }
 0x11f   :  { %v1123_v45 = vpop.f32.mrb[7].mxu1  ;;  %v1410_v47 = vpop.f32.mrb[6].mxu0  ;;  %v7783_v44 = vld [vmem:[%s11269_s0 + $0x3e0] ss:$16 sps:$4 sm:$0xff]  }
 0x120   :  { %v1811_v49 = vadd.f32 %v1796_v42, %v1795_v40  ;;  %1656 = vst [vmem:[#allocation2 + $0x10] sm:$0xff] %v1408_v43  ;;  %v1743_v50 = vadd.f32 %v9010_v19, %v1408_v43  ;;  %v1411_v51 = vadd.f32 %v1410_v47, %v1121_v38  ;;  %v1412_v52 = vpop.f32.mrb[7].mxu0 }
 0x121   :  { %1333 = vmatmul.mubr.bf16.gmra.mrb[112].mxu1 %v7765_v36  ;;  %v7784_v52 = vld [vmem:[%s11269_s0 + $0x3e8] ss:$16 sps:$4 sm:$0xff]  }
 0x122   :  { %1340 = vmatprep.mubr.bf16.mxu1 %v7767_v39  ;;  %v1759_v53 = vmax.f32 %v1743_v50, 0.0  ;;  %1657 = vst [vmem:[#allocation2 + $0x18] sm:$0xff] %v1411_v51  ;;  %v1744_v54 = vadd.f32 %v9010_v19, %v1411_v51  ;;  %1622 = vmatmul.mubr.bf16.gmra.mrb[112].mxu0 %v7766_v46 }
 0x123   :  { %1629 = vmatprep.mubr.bf16.mxu0 %v7769_v48 }
 0x124   :  { %v1126_v55 = vpop.f32.mrb[8].mxu1  ;;  %v1774_v56 = vadd.f32 %v1773_v41, %v1759_v53  ;;  %v1797_v57 = vmul.f32 %v1759_v53, %v1759_v53  ;;  %v1760_v60 = vmax.f32 %v1744_v54, 0.0 }
 0x125   :  { %v1128_v58 = vpop.f32.mrb[9].mxu1  ;;  %v1415_v61 = vpop.f32.mrb[8].mxu0 }
 0x126   :  { %v1129_v62 = vpop.f32.mrb[10].mxu1  ;;  %v1812_v0 = vadd.f32 %v1811_v49, %v1797_v57  ;;  %v1416_v1 = vadd.f32 %v1415_v61, %v1126_v55  ;;  %v1417_v2 = vpop.f32.mrb[9].mxu0  ;;  %v1775_v5 = vadd.f32 %v1774_v56, %v1760_v60  ;;  %v1798_v6 = vmul.f32 %v1760_v60, %v1760_v60 }
 0x127   :  { %v1131_v3 = vpop.f32.mrb[11].mxu1  ;;  %v1418_v7 = vpop.f32.mrb[10].mxu0 }
 0x128   :  { %1658 = vst [vmem:[#allocation2 + $0x20] sm:$0xff] %v1416_v1  ;;  %v1745_v9 = vadd.f32 %v9010_v19, %v1416_v1  ;;  %v1419_v10 = vadd.f32 %v1418_v7, %v1129_v62  ;;  %v1420_v11 = vpop.f32.mrb[11].mxu0  ;;  %v1813_v12 = vadd.f32 %v1812_v0, %v1798_v6 }
 0x129   :  { %1341 = vmatmul.mubr.bf16.gmra.mrb[116].mxu1 %v7771_v59 }
 0x12a   :  { %1348 = vmatprep.mubr.bf16.mxu1 %v7773_v63  ;;  %v1761_v13 = vmax.f32 %v1745_v9, 0.0  ;;  %1659 = vst [vmem:[#allocation2 + $0x28] sm:$0xff] %v1419_v10  ;;  %v1746_v14 = vadd.f32 %v9010_v19, %v1419_v10  ;;  %1630 = vmatmul.mubr.bf16.gmra.mrb[116].mxu0 %v7772_v4 }
 0x12b   :  { %1637 = vmatprep.mubr.bf16.mxu0 %v7775_v8 }
 0x12c   :  { %v1134_v15 = vpop.f32.mrb[12].mxu1  ;;  %v1776_v16 = vadd.f32 %v1775_v5, %v1761_v13  ;;  %v1799_v17 = vmul.f32 %v1761_v13, %v1761_v13  ;;  %v1762_v21 = vmax.f32 %v1746_v14, 0.0 }
 0x12d   :  { %v1136_v18 = vpop.f32.mrb[13].mxu1  ;;  %v1423_v22 = vpop.f32.mrb[12].mxu0 }
 0x12e   :  { %v1137_v23 = vpop.f32.mrb[14].mxu1  ;;  %v1814_v25 = vadd.f32 %v1813_v12, %v1799_v17  ;;  %v1424_v26 = vadd.f32 %v1423_v22, %v1134_v15  ;;  %v1425_v27 = vpop.f32.mrb[13].mxu0  ;;  %v1777_v30 = vadd.f32 %v1776_v16, %v1762_v21  ;;  %v1800_v31 = vmul.f32 %v1762_v21, %v1762_v21 }
 0x12f   :  { %v1139_v28 = vpop.f32.mrb[15].mxu1  ;;  %v1426_v32 = vpop.f32.mrb[14].mxu0 }
 0x130   :  { %1660 = vst [vmem:[#allocation2 + $0x30] sm:$0xff] %v1424_v26  ;;  %v1747_v34 = vadd.f32 %v9010_v19, %v1424_v26  ;;  %v1427_v35 = vadd.f32 %v1426_v32, %v1137_v23  ;;  %v1428_v36 = vpop.f32.mrb[15].mxu0  ;;  %v1815_v37 = vadd.f32 %v1814_v25, %v1800_v31 }
 0x131   :  { %1349 = vmatmul.mubr.bf16.gmra.mrb[120].mxu1 %v7777_v20 }
 0x132   :  { %1356 = vmatprep.mubr.bf16.mxu1 %v7779_v24  ;;  %v1763_v38 = vmax.f32 %v1747_v34, 0.0  ;;  %1661 = vst [vmem:[#allocation2 + $0x38] sm:$0xff] %v1427_v35  ;;  %v1748_v39 = vadd.f32 %v9010_v19, %v1427_v35  ;;  %1638 = vmatmul.mubr.bf16.gmra.mrb[120].mxu0 %v7778_v29 }
 0x133   :  { %1645 = vmatprep.mubr.bf16.mxu0 %v7781_v33 }
 0x134   :  { %v1142_v40 = vpop.f32.mrb[16].mxu1  ;;  %v1778_v41 = vadd.f32 %v1777_v30, %v1763_v38  ;;  %v1801_v42 = vmul.f32 %v1763_v38, %v1763_v38  ;;  %v1764_v45 = vmax.f32 %v1748_v39, 0.0 }
 0x135   :  { %v1144_v43 = vpop.f32.mrb[17].mxu1  ;;  %v1431_v46 = vpop.f32.mrb[16].mxu0 }
 0x136   :  { %v1145_v47 = vpop.f32.mrb[18].mxu1  ;;  %v1816_v48 = vadd.f32 %v1815_v37, %v1801_v42  ;;  %v1432_v49 = vadd.f32 %v1431_v46, %v1142_v40  ;;  %v1433_v50 = vpop.f32.mrb[17].mxu0  ;;  %v1779_v53 = vadd.f32 %v1778_v41, %v1764_v45  ;;  %v1802_v54 = vmul.f32 %v1764_v45, %v1764_v45 }
 0x137   :  { %v1147_v51 = vpop.f32.mrb[19].mxu1  ;;  %v1434_v55 = vpop.f32.mrb[18].mxu0 }
 0x138   :  { %1662 = vst [vmem:[#allocation2 + $0x40] sm:$0xff] %v1432_v49  ;;  %v1749_v56 = vadd.f32 %v9010_v19, %v1432_v49  ;;  %v1435_v57 = vadd.f32 %v1434_v55, %v1145_v47  ;;  %v1436_v58 = vpop.f32.mrb[19].mxu0  ;;  %v1817_v59 = vadd.f32 %v1816_v48, %v1802_v54 }
 0x139   :  { %1357 = vmatmul.mubr.bf16.gmra.mrb[124].mxu1 %v7783_v44 }
 0x13a   :  { %v1765_v60 = vmax.f32 %v1749_v56, 0.0  ;;  %1663 = vst [vmem:[#allocation2 + $0x48] sm:$0xff] %v1435_v57  ;;  %v1750_v61 = vadd.f32 %v9010_v19, %v1435_v57  ;;  %1646 = vmatmul.mubr.bf16.gmra.mrb[124].mxu0 %v7784_v52 }
 0x13c   :  { %v1150_v62 = vpop.f32.mrb[20].mxu1  ;;  %v1780_v63 = vadd.f32 %v1779_v53, %v1765_v60  ;;  %v1803_v0 = vmul.f32 %v1765_v60, %v1765_v60  ;;  %v1766_v2 = vmax.f32 %v1750_v61, 0.0 }
 0x13d   :  { %v1152_v1 = vpop.f32.mrb[21].mxu1  ;;  %v1439_v3 = vpop.f32.mrb[20].mxu0 }
 0x13e   :  { %v1153_v4 = vpop.f32.mrb[22].mxu1  ;;  %v1818_v5 = vadd.f32 %v1817_v59, %v1803_v0  ;;  %v1440_v6 = vadd.f32 %v1439_v3, %v1150_v62  ;;  %v1441_v7 = vpop.f32.mrb[21].mxu0  ;;  %v1781_v9 = vadd.f32 %v1780_v63, %v1766_v2  ;;  %v1804_v10 = vmul.f32 %v1766_v2, %v1766_v2 }
 0x13f   :  { %v1155_v8 = vpop.f32.mrb[23].mxu1  ;;  %v1442_v11 = vpop.f32.mrb[22].mxu0 }
 0x140   :  { %1664 = vst [vmem:[#allocation2 + $0x50] sm:$0xff] %v1440_v6  ;;  %v1751_v12 = vadd.f32 %v9010_v19, %v1440_v6  ;;  %v1443_v13 = vadd.f32 %v1442_v11, %v1153_v4  ;;  %v1444_v14 = vpop.f32.mrb[23].mxu0  ;;  %v1819_v15 = vadd.f32 %v1818_v5, %v1804_v10 }
 0x142   :  { %v1767_v16 = vmax.f32 %v1751_v12, 0.0  ;;  %1665 = vst [vmem:[#allocation2 + $0x58] sm:$0xff] %v1443_v13  ;;  %v1752_v17 = vadd.f32 %v9010_v19, %v1443_v13 }
 0x144   :  { %v1158_v18 = vpop.f32.mrb[24].mxu1  ;;  %v1782_v20 = vadd.f32 %v1781_v9, %v1767_v16  ;;  %v1805_v21 = vmul.f32 %v1767_v16, %v1767_v16  ;;  %v1768_v23 = vmax.f32 %v1752_v17, 0.0 }
 0x145   :  { %v1160_v22 = vpop.f32.mrb[25].mxu1  ;;  %v1447_v24 = vpop.f32.mrb[24].mxu0 }
 0x146   :  { %v1161_v25 = vpop.f32.mrb[26].mxu1  ;;  %v1820_v26 = vadd.f32 %v1819_v15, %v1805_v21  ;;  %v1448_v27 = vadd.f32 %v1447_v24, %v1158_v18  ;;  %v1449_v28 = vpop.f32.mrb[25].mxu0  ;;  %v1783_v30 = vadd.f32 %v1782_v20, %v1768_v23  ;;  %v1806_v31 = vmul.f32 %v1768_v23, %v1768_v23 }
 0x147   :  { %v1163_v29 = vpop.f32.mrb[27].mxu1  ;;  %v1450_v32 = vpop.f32.mrb[26].mxu0 }
 0x148   :  { %1666 = vst [vmem:[#allocation2 + $0x60] sm:$0xff] %v1448_v27  ;;  %v1753_v33 = vadd.f32 %v9010_v19, %v1448_v27  ;;  %v1451_v34 = vadd.f32 %v1450_v32, %v1161_v25  ;;  %v1452_v35 = vpop.f32.mrb[27].mxu0  ;;  %v1821_v36 = vadd.f32 %v1820_v26, %v1806_v31 }
 0x14a   :  { %v1769_v37 = vmax.f32 %v1753_v33, 0.0  ;;  %1667 = vst [vmem:[#allocation2 + $0x68] sm:$0xff] %v1451_v34  ;;  %v1754_v38 = vadd.f32 %v9010_v19, %v1451_v34 }
 0x14c   :  { %v1166_v39 = vpop.f32.mrb[28].mxu1  ;;  %v1784_v40 = vadd.f32 %v1783_v30, %v1769_v37  ;;  %v1807_v41 = vmul.f32 %v1769_v37, %v1769_v37  ;;  %v1770_v43 = vmax.f32 %v1754_v38, 0.0 }
 0x14d   :  { %v1168_v42 = vpop.f32.mrb[29].mxu1  ;;  %v1455_v44 = vpop.f32.mrb[28].mxu0 }
 0x14e   :  { %v1169_v45 = vpop.f32.mrb[30].mxu1  ;;  %v1822_v46 = vadd.f32 %v1821_v36, %v1807_v41  ;;  %v1456_v47 = vadd.f32 %v1455_v44, %v1166_v39  ;;  %v1457_v48 = vpop.f32.mrb[29].mxu0  ;;  %v1785_v50 = vadd.f32 %v1784_v40, %v1770_v43  ;;  %v1808_v51 = vmul.f32 %v1770_v43, %v1770_v43 }
 0x14f   :  { %v1171_v49 = vpop.f32.mrb[31].mxu1  ;;  %v1458_v52 = vpop.f32.mrb[30].mxu0 }
 0x150   :  { %1668 = vst [vmem:[#allocation2 + $0x70] sm:$0xff] %v1456_v47  ;;  %v1755_v53 = vadd.f32 %v9010_v19, %v1456_v47  ;;  %v1459_v54 = vadd.f32 %v1458_v52, %v1169_v45  ;;  %v1460_v55 = vpop.f32.mrb[31].mxu0  ;;  %v1823_v56 = vadd.f32 %v1822_v46, %v1808_v51 }
 0x152   :  { %v1771_v57 = vmax.f32 %v1755_v53, 0.0  ;;  %1669 = vst [vmem:[#allocation2 + $0x78] sm:$0xff] %v1459_v54  ;;  %v1756_v58 = vadd.f32 %v9010_v19, %v1459_v54 }
 0x154   :  { %v1174_v59 = vpop.f32.mrb[32].mxu1  ;;  %v1786_v60 = vadd.f32 %v1785_v50, %v1771_v57  ;;  %v1809_v61 = vmul.f32 %v1771_v57, %v1771_v57  ;;  %v1772_v63 = vmax.f32 %v1756_v58, 0.0 }
 0x155   :  { %v1176_v62 = vpop.f32.mrb[33].mxu1  ;;  %v1463_v0 = vpop.f32.mrb[32].mxu0 }
 0x156   :  { %v1177_v1 = vpop.f32.mrb[34].mxu1  ;;  %v1824_v2 = vadd.f32 %v1823_v56, %v1809_v61  ;;  %v1464_v3 = vadd.f32 %v1463_v0, %v1174_v59  ;;  %v1465_v4 = vpop.f32.mrb[33].mxu0  ;;  %v9079_v6 = vadd.f32 %v1786_v60, %v1772_v63  ;;  %v1810_v7 = vmul.f32 %v1772_v63, %v1772_v63 }
 0x157   :  { %v1179_v5 = vpop.f32.mrb[35].mxu1  ;;  %v1466_v8 = vpop.f32.mrb[34].mxu0 }
 0x158   :  { %1670 = vst [vmem:[#allocation2 + $0x80] sm:$0xff] %v1464_v3  ;;  %v1849_v9 = vadd.f32 %v9010_v19, %v1464_v3  ;;  %v1467_v10 = vadd.f32 %v1466_v8, %v1177_v1  ;;  %v1468_v11 = vpop.f32.mrb[35].mxu0  ;;  %v9082_v12 = vadd.f32 %v1824_v2, %v1810_v7 }
 0x15a   :  { %v1865_v13 = vmax.f32 %v1849_v9, 0.0  ;;  %1671 = vst [vmem:[#allocation2 + $0x88] sm:$0xff] %v1467_v10  ;;  %v1850_v14 = vadd.f32 %v9010_v19, %v1467_v10 }
 0x15c   :  { %v1182_v15 = vpop.f32.mrb[36].mxu1  ;;  %v1866_v16 = vmax.f32 %v1850_v14, 0.0  ;;  %v1903_v21 = vmul.f32 %v1865_v13, %v1865_v13 }
 0x15d   :  { %v1184_v17 = vpop.f32.mrb[37].mxu1  ;;  %v1471_v18 = vpop.f32.mrb[36].mxu0 }
 0x15e   :  { %v1185_v20 = vpop.f32.mrb[38].mxu1  ;;  %v1881_v22 = vadd.f32 %v1866_v16, %v1865_v13  ;;  %v1904_v23 = vmul.f32 %v1866_v16, %v1866_v16  ;;  %v1472_v24 = vadd.f32 %v1471_v18, %v1182_v15  ;;  %v1473_v25 = vpop.f32.mrb[37].mxu0 }
 0x15f   :  { %v1187_v26 = vpop.f32.mrb[39].mxu1  ;;  %v1474_v27 = vpop.f32.mrb[38].mxu0 }
 0x160   :  { %v1919_v28 = vadd.f32 %v1904_v23, %v1903_v21  ;;  %1672 = vst [vmem:[#allocation2 + $0x90] sm:$0xff] %v1472_v24  ;;  %v1851_v29 = vadd.f32 %v9010_v19, %v1472_v24  ;;  %v1475_v30 = vadd.f32 %v1474_v27, %v1185_v20  ;;  %v1476_v31 = vpop.f32.mrb[39].mxu0 }
 0x162   :  { %v1867_v32 = vmax.f32 %v1851_v29, 0.0  ;;  %1673 = vst [vmem:[#allocation2 + $0x98] sm:$0xff] %v1475_v30  ;;  %v1852_v33 = vadd.f32 %v9010_v19, %v1475_v30 }
 0x164   :  { %v1190_v34 = vpop.f32.mrb[40].mxu1  ;;  %v1882_v35 = vadd.f32 %v1881_v22, %v1867_v32  ;;  %v1905_v36 = vmul.f32 %v1867_v32, %v1867_v32  ;;  %v1868_v38 = vmax.f32 %v1852_v33, 0.0 }
 0x165   :  { %v1192_v37 = vpop.f32.mrb[41].mxu1  ;;  %v1479_v39 = vpop.f32.mrb[40].mxu0 }
 0x166   :  { %v1193_v40 = vpop.f32.mrb[42].mxu1  ;;  %v1920_v41 = vadd.f32 %v1919_v28, %v1905_v36  ;;  %v1480_v42 = vadd.f32 %v1479_v39, %v1190_v34  ;;  %v1481_v43 = vpop.f32.mrb[41].mxu0  ;;  %v1883_v45 = vadd.f32 %v1882_v35, %v1868_v38  ;;  %v1906_v46 = vmul.f32 %v1868_v38, %v1868_v38 }
 0x167   :  { %v1195_v44 = vpop.f32.mrb[43].mxu1  ;;  %v1482_v47 = vpop.f32.mrb[42].mxu0 }
 0x168   :  { %1674 = vst [vmem:[#allocation2 + $0xa0] sm:$0xff] %v1480_v42  ;;  %v1853_v48 = vadd.f32 %v9010_v19, %v1480_v42  ;;  %v1483_v49 = vadd.f32 %v1482_v47, %v1193_v40  ;;  %v1484_v50 = vpop.f32.mrb[43].mxu0  ;;  %v1921_v51 = vadd.f32 %v1920_v41, %v1906_v46 }
 0x16a   :  { %v1869_v52 = vmax.f32 %v1853_v48, 0.0  ;;  %1675 = vst [vmem:[#allocation2 + $0xa8] sm:$0xff] %v1483_v49  ;;  %v1854_v53 = vadd.f32 %v9010_v19, %v1483_v49 }
 0x16c   :  { %v1198_v54 = vpop.f32.mrb[44].mxu1  ;;  %v1884_v55 = vadd.f32 %v1883_v45, %v1869_v52  ;;  %v1907_v56 = vmul.f32 %v1869_v52, %v1869_v52  ;;  %v1870_v58 = vmax.f32 %v1854_v53, 0.0 }
 0x16d   :  { %v1200_v57 = vpop.f32.mrb[45].mxu1  ;;  %v1487_v59 = vpop.f32.mrb[44].mxu0 }
 0x16e   :  { %v1201_v60 = vpop.f32.mrb[46].mxu1  ;;  %v1922_v61 = vadd.f32 %v1921_v51, %v1907_v56  ;;  %v1488_v62 = vadd.f32 %v1487_v59, %v1198_v54  ;;  %v1489_v63 = vpop.f32.mrb[45].mxu0  ;;  %v1885_v1 = vadd.f32 %v1884_v55, %v1870_v58  ;;  %v1908_v2 = vmul.f32 %v1870_v58, %v1870_v58 }
 0x16f   :  { %v1203_v0 = vpop.f32.mrb[47].mxu1  ;;  %v1490_v3 = vpop.f32.mrb[46].mxu0 }
 0x170   :  { %1676 = vst [vmem:[#allocation2 + $0xb0] sm:$0xff] %v1488_v62  ;;  %v1855_v4 = vadd.f32 %v9010_v19, %v1488_v62  ;;  %v1491_v5 = vadd.f32 %v1490_v3, %v1201_v60  ;;  %v1492_v7 = vpop.f32.mrb[47].mxu0  ;;  %v1923_v8 = vadd.f32 %v1922_v61, %v1908_v2 }
 0x172   :  { %v1871_v9 = vmax.f32 %v1855_v4, 0.0  ;;  %1677 = vst [vmem:[#allocation2 + $0xb8] sm:$0xff] %v1491_v5  ;;  %v1856_v10 = vadd.f32 %v9010_v19, %v1491_v5 }
 0x174   :  { %v1206_v11 = vpop.f32.mrb[48].mxu1  ;;  %v1886_v13 = vadd.f32 %v1885_v1, %v1871_v9  ;;  %v1909_v14 = vmul.f32 %v1871_v9, %v1871_v9  ;;  %v1872_v16 = vmax.f32 %v1856_v10, 0.0 }
 0x175   :  { %v1208_v15 = vpop.f32.mrb[49].mxu1  ;;  %v1495_v17 = vpop.f32.mrb[48].mxu0 }
 0x176   :  { %v1209_v18 = vpop.f32.mrb[50].mxu1  ;;  %v1924_v20 = vadd.f32 %v1923_v8, %v1909_v14  ;;  %v1496_v21 = vadd.f32 %v1495_v17, %v1206_v11  ;;  %v1497_v22 = vpop.f32.mrb[49].mxu0  ;;  %v1887_v24 = vadd.f32 %v1886_v13, %v1872_v16  ;;  %v1910_v25 = vmul.f32 %v1872_v16, %v1872_v16 }
 0x177   :  { %v1211_v23 = vpop.f32.mrb[51].mxu1  ;;  %v1498_v26 = vpop.f32.mrb[50].mxu0 }
 0x178   :  { %1678 = vst [vmem:[#allocation2 + $0xc0] sm:$0xff] %v1496_v21  ;;  %v1857_v27 = vadd.f32 %v9010_v19, %v1496_v21  ;;  %v1499_v28 = vadd.f32 %v1498_v26, %v1209_v18  ;;  %v1500_v29 = vpop.f32.mrb[51].mxu0  ;;  %v1925_v30 = vadd.f32 %v1924_v20, %v1910_v25  ;;  %v1788_v23 = vrot.slane %v9079_v6, 4 }
 0x17a   :  { %v1873_v31 = vmax.f32 %v1857_v27, 0.0  ;;  %1679 = vst [vmem:[#allocation2 + $0xc8] sm:$0xff] %v1499_v28  ;;  %v1858_v32 = vadd.f32 %v9010_v19, %v1499_v28 }
 0x17c   :  { %v1214_v33 = vpop.f32.mrb[52].mxu1  ;;  %v1888_v34 = vadd.f32 %v1887_v24, %v1873_v31  ;;  %v1911_v35 = vmul.f32 %v1873_v31, %v1873_v31  ;;  %v1874_v37 = vmax.f32 %v1858_v32, 0.0 }
 0x17d   :  { %v1216_v36 = vpop.f32.mrb[53].mxu1  ;;  %v1503_v38 = vpop.f32.mrb[52].mxu0 }
 0x17e   :  { %v1217_v39 = vpop.f32.mrb[54].mxu1  ;;  %v1926_v40 = vadd.f32 %v1925_v30, %v1911_v35  ;;  %v1504_v41 = vadd.f32 %v1503_v38, %v1214_v33  ;;  %v1505_v42 = vpop.f32.mrb[53].mxu0  ;;  %v1889_v44 = vadd.f32 %v1888_v34, %v1874_v37  ;;  %v1912_v45 = vmul.f32 %v1874_v37, %v1874_v37 }
 0x17f   :  { %v1219_v43 = vpop.f32.mrb[55].mxu1  ;;  %v1506_v46 = vpop.f32.mrb[54].mxu0  ;;  %v1826_v30 = vrot.slane %v9082_v12, 4  ;;  %v1789_v34 = vadd.f32 %v1788_v23, %v9079_v6 }
 0x180   :  { %1680 = vst [vmem:[#allocation2 + $0xd0] sm:$0xff] %v1504_v41  ;;  %v1859_v47 = vadd.f32 %v9010_v19, %v1504_v41  ;;  %v1507_v48 = vadd.f32 %v1506_v46, %v1217_v39  ;;  %v1508_v49 = vpop.f32.mrb[55].mxu0  ;;  %v1927_v50 = vadd.f32 %v1926_v40, %v1912_v45 }
 0x181   :  { %v1827_v39 = vadd.f32 %v1826_v30, %v9082_v12 }
 0x182   :  { %v1875_v51 = vmax.f32 %v1859_v47, 0.0  ;;  %1681 = vst [vmem:[#allocation2 + $0xd8] sm:$0xff] %v1507_v48  ;;  %v1860_v52 = vadd.f32 %v9010_v19, %v1507_v48  ;;  %v1790_v47 = vrot.slane %v1789_v34, 2 }
 0x184   :  { %v1222_v53 = vpop.f32.mrb[56].mxu1  ;;  %v1890_v54 = vadd.f32 %v1889_v44, %v1875_v51  ;;  %v1913_v55 = vmul.f32 %v1875_v51, %v1875_v51  ;;  %v1876_v57 = vmax.f32 %v1860_v52, 0.0 }
 0x185   :  { %v1224_v56 = vpop.f32.mrb[57].mxu1  ;;  %v1511_v58 = vpop.f32.mrb[56].mxu0 }
 0x186   :  { %v1225_v59 = vpop.f32.mrb[58].mxu1  ;;  %v1928_v60 = vadd.f32 %v1927_v50, %v1913_v55  ;;  %v1512_v61 = vadd.f32 %v1511_v58, %v1222_v53  ;;  %v1513_v62 = vpop.f32.mrb[57].mxu0  ;;  %v1891_v0 = vadd.f32 %v1890_v54, %v1876_v57  ;;  %v1914_v1 = vmul.f32 %v1876_v57, %v1876_v57 }
 0x187   :  { %v1227_v63 = vpop.f32.mrb[59].mxu1  ;;  %v1514_v2 = vpop.f32.mrb[58].mxu0  ;;  %v1828_v53 = vrot.slane %v1827_v39, 2  ;;  %v1791_v57 = vadd.f32 %v1790_v47, %v1789_v34 }
 0x188   :  { %1682 = vst [vmem:[#allocation2 + $0xe0] sm:$0xff] %v1512_v61  ;;  %v1861_v3 = vadd.f32 %v9010_v19, %v1512_v61  ;;  %v1515_v4 = vadd.f32 %v1514_v2, %v1225_v59  ;;  %v1516_v5 = vpop.f32.mrb[59].mxu0  ;;  %v1929_v7 = vadd.f32 %v1928_v60, %v1914_v1 }
 0x189   :  { %v1829_v63 = vadd.f32 %v1828_v53, %v1827_v39 }
 0x18a   :  { %v1877_v8 = vmax.f32 %v1861_v3, 0.0  ;;  %1683 = vst [vmem:[#allocation2 + $0xe8] sm:$0xff] %v1515_v4  ;;  %v1862_v9 = vadd.f32 %v9010_v19, %v1515_v4 }
 0x18c   :  { %v1230_v10 = vpop.f32.mrb[60].mxu1  ;;  %v1892_v11 = vadd.f32 %v1891_v0, %v1877_v8  ;;  %v1915_v13 = vmul.f32 %v1877_v8, %v1877_v8  ;;  %v1878_v15 = vmax.f32 %v1862_v9, 0.0 }
 0x18d   :  { %v1232_v14 = vpop.f32.mrb[61].mxu1  ;;  %v1519_v16 = vpop.f32.mrb[60].mxu0 }
 0x18e   :  { %v1233_v17 = vpop.f32.mrb[62].mxu1  ;;  %v1930_v18 = vadd.f32 %v1929_v7, %v1915_v13  ;;  %v1520_v20 = vadd.f32 %v1519_v16, %v1230_v10  ;;  %v1521_v21 = vpop.f32.mrb[61].mxu0  ;;  %v1893_v24 = vadd.f32 %v1892_v11, %v1878_v15  ;;  %v1916_v25 = vmul.f32 %v1878_v15, %v1878_v15 }
 0x18f   :  { %v1235_v22 = vpop.f32.mrb[63].mxu1  ;;  %v1522_v26 = vpop.f32.mrb[62].mxu0  ;;  %v1792_v11 = vrot.slane %v1791_v57, 1  ;;  %v1830_v21 = vrot.slane %v1829_v63, 1 }
 0x190   :  { %1684 = vst [vmem:[#allocation2 + $0xf0] sm:$0xff] %v1520_v20  ;;  %v1863_v27 = vadd.f32 %v9010_v19, %v1520_v20  ;;  %v1523_v28 = vadd.f32 %v1522_v26, %v1233_v17  ;;  %v1524_v29 = vpop.f32.mrb[63].mxu0  ;;  %v1931_v31 = vadd.f32 %v1930_v18, %v1916_v25 }
 0x191   :  { %v1793_v26 = vadd.f32 %v1792_v11, %v1791_v57 }
 0x192   :  { %v1879_v32 = vmax.f32 %v1863_v27, 0.0  ;;  %1685 = vst [vmem:[#allocation2 + $0xf8] sm:$0xff] %v1523_v28  ;;  %v1864_v33 = vadd.f32 %v9010_v19, %v1523_v28 }
 0x194   :  { %v1238_v35 = vpop.f32.mrb[64].mxu1  ;;  %v1894_v36 = vadd.f32 %v1893_v24, %v1879_v32  ;;  %v1917_v37 = vmul.f32 %v1879_v32, %v1879_v32  ;;  %v1880_v40 = vmax.f32 %v1864_v33, 0.0  ;;  %v1831_v33 = vadd.f32 %v1830_v21, %v1829_v63 }
 0x195   :  { %v1240_v38 = vpop.f32.mrb[65].mxu1  ;;  %v1527_v41 = vpop.f32.mrb[64].mxu0 }
 0x196   :  { %v1241_v42 = vpop.f32.mrb[66].mxu1  ;;  %v1932_v43 = vadd.f32 %v1931_v31, %v1917_v37  ;;  %v1528_v44 = vadd.f32 %v1527_v41, %v1238_v35  ;;  %v1529_v45 = vpop.f32.mrb[65].mxu0  ;;  %v1895_v48 = vadd.f32 %v1894_v36, %v1880_v40  ;;  %v1918_v49 = vmul.f32 %v1880_v40, %v1880_v40 }
 0x197   :  { %v1243_v46 = vpop.f32.mrb[67].mxu1  ;;  %v1530_v50 = vpop.f32.mrb[66].mxu0 }
 0x198   :  { %1686 = vst [vmem:[#allocation2 + $0x100] sm:$0xff] %v1528_v44  ;;  %v1957_v6 = vadd.f32 %v9010_v19, %v1528_v44  ;;  %v1531_v51 = vadd.f32 %v1530_v50, %v1241_v42  ;;  %v1532_v52 = vpop.f32.mrb[67].mxu0  ;;  %v1896_v54 = vrot.slane %v1895_v48, 4  ;;  %v1933_v55 = vadd.f32 %v1932_v43, %v1918_v49 }
 0x19a   :  { %v1973_v12 = vmax.f32 %v1957_v6, 0.0  ;;  %1687 = vst [vmem:[#allocation2 + $0x108] sm:$0xff] %v1531_v51  ;;  %v1958_v56 = vadd.f32 %v9010_v19, %v1531_v51  ;;  %v1897_v58 = vadd.f32 %v1896_v54, %v1895_v48  ;;  %v1934_v59 = vrot.slane %v1933_v55, 4 }
 0x19c   :  { %v1246_v60 = vpop.f32.mrb[68].mxu1  ;;  %v1974_v61 = vmax.f32 %v1958_v56, 0.0  ;;  %v1898_v0 = vrot.slane %v1897_v58, 2  ;;  %v1935_v1 = vadd.f32 %v1934_v59, %v1933_v55  ;;  %v2011_v4 = vmul.f32 %v1973_v12, %v1973_v12 }
 0x19d   :  { %v1248_v62 = vpop.f32.mrb[69].mxu1  ;;  %v1535_v2 = vpop.f32.mrb[68].mxu0 }
 0x19e   :  { %v1249_v3 = vpop.f32.mrb[70].mxu1  ;;  %v1989_v5 = vadd.f32 %v1974_v61, %v1973_v12  ;;  %v2012_v7 = vmul.f32 %v1974_v61, %v1974_v61  ;;  %v1536_v8 = vadd.f32 %v1535_v2, %v1246_v60  ;;  %v1537_v9 = vpop.f32.mrb[69].mxu0  ;;  %v1899_v13 = vadd.f32 %v1898_v0, %v1897_v58 }
 0x19f   :  { %v1251_v10 = vpop.f32.mrb[71].mxu1  ;;  %v1936_v14 = vrot.slane %v1935_v1, 2  ;;  %v1538_v15 = vpop.f32.mrb[70].mxu0 }
 0x1a0   :  { %v2027_v16 = vadd.f32 %v2012_v7, %v2011_v4  ;;  %1688 = vst [vmem:[#allocation2 + $0x110] sm:$0xff] %v1536_v8  ;;  %v1959_v17 = vadd.f32 %v9010_v19, %v1536_v8  ;;  %v1539_v18 = vadd.f32 %v1538_v15, %v1249_v3  ;;  %v1540_v20 = vpop.f32.mrb[71].mxu0  ;;  %v1900_v22 = vrot.slane %v1899_v13, 1 }
 0x1a1   :  { %v1937_v23 = vadd.f32 %v1936_v14, %v1935_v1 }
 0x1a2   :  { %v1975_v24 = vmax.f32 %v1959_v17, 0.0  ;;  %1689 = vst [vmem:[#allocation2 + $0x118] sm:$0xff] %v1539_v18  ;;  %v1960_v25 = vadd.f32 %v9010_v19, %v1539_v18  ;;  %v1901_v27 = vadd.f32 %v1900_v22, %v1899_v13 }
 0x1a3   :  { %v1938_v28 = vrot.slane %v1937_v23, 1 }
 0x1a4   :  { %v1254_v29 = vpop.f32.mrb[72].mxu1  ;;  %v1990_v30 = vadd.f32 %v1989_v5, %v1975_v24  ;;  %v2013_v31 = vmul.f32 %v1975_v24, %v1975_v24  ;;  %v9107_v34 = vadd.f32 %v1901_v27, %v1793_v26  ;;  %v1976_v36 = vmax.f32 %v1960_v25, 0.0 }
 0x1a5   :  { %v1256_v32 = vpop.f32.mrb[73].mxu1  ;;  %v1939_v35 = vadd.f32 %v1938_v28, %v1937_v23  ;;  %v1543_v37 = vpop.f32.mrb[72].mxu0 }
 0x1a6   :  { %v1257_v38 = vpop.f32.mrb[74].mxu1  ;;  %v2028_v39 = vadd.f32 %v2027_v16, %v2013_v31  ;;  %v1544_v40 = vadd.f32 %v1543_v37, %v1254_v29  ;;  %v1545_v41 = vpop.f32.mrb[73].mxu0  ;;  %v1991_v44 = vadd.f32 %v1990_v30, %v1976_v36  ;;  %v2014_v45 = vmul.f32 %v1976_v36, %v1976_v36 }
 0x1a7   :  { %v1259_v42 = vpop.f32.mrb[75].mxu1  ;;  %v9109_v43 = vadd.f32 %v1939_v35, %v1831_v33  ;;  %v1546_v46 = vpop.f32.mrb[74].mxu0 }
 0x1a8   :  { %1690 = vst [vmem:[#allocation2 + $0x120] sm:$0xff] %v1544_v40  ;;  %v1961_v47 = vadd.f32 %v9010_v19, %v1544_v40  ;;  %v1547_v48 = vadd.f32 %v1546_v46, %v1257_v38  ;;  %v1548_v49 = vpop.f32.mrb[75].mxu0  ;;  %v2029_v50 = vadd.f32 %v2028_v39, %v2014_v45  ;;  %v9120_v46 = vld [vmem:[%s11271_s2] ss:$0 sm:$0xff] }
 0x1aa   :  { %v1977_v6 = vmax.f32 %v1961_v47, 0.0  ;;  %1691 = vst [vmem:[#allocation2 + $0x128] sm:$0xff] %v1547_v48  ;;  %v1962_v51 = vadd.f32 %v9010_v19, %v1547_v48 }
 0x1ac   :  { %v1262_v52 = vpop.f32.mrb[76].mxu1  ;;  %v1992_v53 = vadd.f32 %v1991_v44, %v1977_v6  ;;  %v2015_v54 = vmul.f32 %v1977_v6, %v1977_v6  ;;  %v1978_v12 = vmax.f32 %v1962_v51, 0.0 }
 0x1ad   :  { %v1264_v55 = vpop.f32.mrb[77].mxu1  ;;  %v1551_v56 = vpop.f32.mrb[76].mxu0 }
 0x1ae   :  { %v1265_v57 = vpop.f32.mrb[78].mxu1  ;;  %v2030_v58 = vadd.f32 %v2029_v50, %v2015_v54  ;;  %v1552_v59 = vadd.f32 %v1551_v56, %v1262_v52  ;;  %v1553_v60 = vpop.f32.mrb[77].mxu0  ;;  %v1993_v62 = vadd.f32 %v1992_v53, %v1978_v12  ;;  %v2016_v63 = vmul.f32 %v1978_v12, %v1978_v12 }
 0x1af   :  { %v1267_v61 = vpop.f32.mrb[79].mxu1  ;;  %v1554_v0 = vpop.f32.mrb[78].mxu0  ;;  %v11285_v50 = vmov 0.0  }
 0x1b0   :  { %1692 = vst [vmem:[#allocation2 + $0x130] sm:$0xff] %v1552_v59  ;;  %v1963_v1 = vadd.f32 %v9010_v19, %v1552_v59  ;;  %v1555_v2 = vadd.f32 %v1554_v0, %v1265_v57  ;;  %v1556_v3 = vpop.f32.mrb[79].mxu0  ;;  %v2031_v4 = vadd.f32 %v2030_v58, %v2016_v63  ;;  %2167 = vst [vmem:[#allocation3] sm:$0xff] %v11285_v50 }
 0x1b1   :  { %2168 = vst [vmem:[#allocation3 + $0x8] sm:$0xff] %v11285_v50  ;;  %2169 = vst [vmem:[#allocation3 + $0x10] sm:$0xff] %v11285_v50 }
 0x1b2   :  { %v1979_v5 = vmax.f32 %v1963_v1, 0.0  ;;  %1693 = vst [vmem:[#allocation2 + $0x138] sm:$0xff] %v1555_v2  ;;  %v1964_v7 = vadd.f32 %v9010_v19, %v1555_v2  ;;  %2170 = vst [vmem:[#allocation3 + $0x18] sm:$0xff] %v11285_v50 }
 0x1b3   :  { %2171 = vst [vmem:[#allocation3 + $0x20] sm:$0xff] %v11285_v50  ;;  %2172 = vst [vmem:[#allocation3 + $0x28] sm:$0xff] %v11285_v50 }
 0x1b4   :  { %v1270_v8 = vpop.f32.mrb[80].mxu1  ;;  %v1994_v9 = vadd.f32 %v1993_v62, %v1979_v5  ;;  %v2017_v10 = vmul.f32 %v1979_v5, %v1979_v5  ;;  %v1980_v13 = vmax.f32 %v1964_v7, 0.0  ;;  %2173 = vst [vmem:[#allocation3 + $0x30] sm:$0xff] %v11285_v50  ;;  %2174 = vst [vmem:[#allocation3 + $0x38] sm:$0xff] %v11285_v50 }
 0x1b5   :  { %v1272_v11 = vpop.f32.mrb[81].mxu1  ;;  %v1559_v14 = vpop.f32.mrb[80].mxu0  ;;  %2175 = vst [vmem:[#allocation3 + $0x40] sm:$0xff] %v11285_v50  ;;  %2176 = vst [vmem:[#allocation3 + $0x48] sm:$0xff] %v11285_v50 }
 0x1b6   :  { %v1273_v15 = vpop.f32.mrb[82].mxu1  ;;  %v2032_v16 = vadd.f32 %v2031_v4, %v2017_v10  ;;  %v1560_v17 = vadd.f32 %v1559_v14, %v1270_v8  ;;  %v1561_v18 = vpop.f32.mrb[81].mxu0  ;;  %v1995_v21 = vadd.f32 %v1994_v9, %v1980_v13  ;;  %v2018_v22 = vmul.f32 %v1980_v13, %v1980_v13  ;;  %2177 = vst [vmem:[#allocation3 + $0x50] sm:$0xff] %v11285_v50 }
 0x1b7   :  { %v1275_v20 = vpop.f32.mrb[83].mxu1  ;;  %v1562_v23 = vpop.f32.mrb[82].mxu0  ;;  %2178 = vst [vmem:[#allocation3 + $0x58] sm:$0xff] %v11285_v50  ;;  %2179 = vst [vmem:[#allocation3 + $0x60] sm:$0xff] %v11285_v50 }
 0x1b8   :  { %1694 = vst [vmem:[#allocation2 + $0x140] sm:$0xff] %v1560_v17  ;;  %v1965_v24 = vadd.f32 %v9010_v19, %v1560_v17  ;;  %v1563_v25 = vadd.f32 %v1562_v23, %v1273_v15  ;;  %v1564_v26 = vpop.f32.mrb[83].mxu0  ;;  %v2033_v27 = vadd.f32 %v2032_v16, %v2018_v22  ;;  %2180 = vst [vmem:[#allocation3 + $0x68] sm:$0xff] %v11285_v50 }
 0x1b9   :  { %2181 = vst [vmem:[#allocation3 + $0x70] sm:$0xff] %v11285_v50  ;;  %2182 = vst [vmem:[#allocation3 + $0x78] sm:$0xff] %v11285_v50 }
 0x1ba   :  { %v1981_v28 = vmax.f32 %v1965_v24, 0.0  ;;  %1695 = vst [vmem:[#allocation2 + $0x148] sm:$0xff] %v1563_v25  ;;  %v1966_v29 = vadd.f32 %v9010_v19, %v1563_v25  ;;  %2183 = vst [vmem:[#allocation3 + $0x80] sm:$0xff] %v11285_v50 }
 0x1bb   :  { %2184 = vst [vmem:[#allocation3 + $0x88] sm:$0xff] %v11285_v50  ;;  %2185 = vst [vmem:[#allocation3 + $0x90] sm:$0xff] %v11285_v50 }
 0x1bc   :  { %v1278_v30 = vpop.f32.mrb[84].mxu1  ;;  %v1996_v31 = vadd.f32 %v1995_v21, %v1981_v28  ;;  %v2019_v32 = vmul.f32 %v1981_v28, %v1981_v28  ;;  %v1982_v35 = vmax.f32 %v1966_v29, 0.0  ;;  %2186 = vst [vmem:[#allocation3 + $0x98] sm:$0xff] %v11285_v50  ;;  %2187 = vst [vmem:[#allocation3 + $0xa0] sm:$0xff] %v11285_v50 }
 0x1bd   :  { %v1280_v33 = vpop.f32.mrb[85].mxu1  ;;  %v1567_v36 = vpop.f32.mrb[84].mxu0  ;;  %2188 = vst [vmem:[#allocation3 + $0xa8] sm:$0xff] %v11285_v50  ;;  %2189 = vst [vmem:[#allocation3 + $0xb0] sm:$0xff] %v11285_v50 }
 0x1be   :  { %v1281_v37 = vpop.f32.mrb[86].mxu1  ;;  %v2034_v38 = vadd.f32 %v2033_v27, %v2019_v32  ;;  %v1568_v39 = vadd.f32 %v1567_v36, %v1278_v30  ;;  %v1569_v40 = vpop.f32.mrb[85].mxu0  ;;  %v1997_v42 = vadd.f32 %v1996_v31, %v1982_v35  ;;  %v2020_v44 = vmul.f32 %v1982_v35, %v1982_v35  ;;  %2190 = vst [vmem:[#allocation3 + $0xb8] sm:$0xff] %v11285_v50 }
 0x1bf   :  { %v1283_v41 = vpop.f32.mrb[87].mxu1  ;;  %v1570_v45 = vpop.f32.mrb[86].mxu0  ;;  %2191 = vst [vmem:[#allocation3 + $0xc0] sm:$0xff] %v11285_v50  ;;  %2192 = vst [vmem:[#allocation3 + $0xc8] sm:$0xff] %v11285_v50 }
 0x1c0   :  { %1696 = vst [vmem:[#allocation2 + $0x150] sm:$0xff] %v1568_v39  ;;  %v1967_v19 = vadd.f32 %v9120_v46, %v1568_v39  ;;  %v1571_v47 = vadd.f32 %v1570_v45, %v1281_v37  ;;  %v1572_v48 = vpop.f32.mrb[87].mxu0  ;;  %v2035_v49 = vadd.f32 %v2034_v38, %v2020_v44  ;;  %2193 = vst [vmem:[#allocation3 + $0xd0] sm:$0xff] %v11285_v50 }
 0x1c1   :  { %2194 = vst [vmem:[#allocation3 + $0xd8] sm:$0xff] %v11285_v50  ;;  %2195 = vst [vmem:[#allocation3 + $0xe0] sm:$0xff] %v11285_v50 }
 0x1c2   :  { %2196 = vst [vmem:[#allocation3 + $0xe8] sm:$0xff] %v11285_v50  ;;  %2197 = vst [vmem:[#allocation3 + $0xf0] sm:$0xff] %v11285_v50  ;;  %v1983_v6 = vmax.f32 %v1967_v19, 0.0  ;;  %v1968_v51 = vadd.f32 %v9120_v46, %v1571_v47 }
 0x1c3   :  { %2198 = vst [vmem:[#allocation3 + $0xf8] sm:$0xff] %v11285_v50  ;;  %2199 = vst [vmem:[#allocation3 + $0x100] sm:$0xff] %v11285_v50 }
 0x1c4   :  { %2200 = vst [vmem:[#allocation3 + $0x108] sm:$0xff] %v11285_v50  ;;  %2201 = vst [vmem:[#allocation3 + $0x110] sm:$0xff] %v11285_v50  ;;  %v1286_v52 = vpop.f32.mrb[88].mxu1  ;;  %v1998_v53 = vadd.f32 %v1997_v42, %v1983_v6  ;;  %v2021_v54 = vmul.f32 %v1983_v6, %v1983_v6  ;;  %v1984_v12 = vmax.f32 %v1968_v51, 0.0 }
 0x1c5   :  { %2202 = vst [vmem:[#allocation3 + $0x118] sm:$0xff] %v11285_v50  ;;  %2203 = vst [vmem:[#allocation3 + $0x120] sm:$0xff] %v11285_v50  ;;  %v1288_v55 = vpop.f32.mrb[89].mxu1  ;;  %v1575_v56 = vpop.f32.mrb[88].mxu0 }
 0x1c6   :  { %2204 = vst [vmem:[#allocation3 + $0x128] sm:$0xff] %v11285_v50  ;;  %2205 = vst [vmem:[#allocation3 + $0x130] sm:$0xff] %v11285_v50  ;;  %v1289_v57 = vpop.f32.mrb[90].mxu1  ;;  %v2036_v58 = vadd.f32 %v2035_v49, %v2021_v54  ;;  %v1576_v59 = vadd.f32 %v1575_v56, %v1286_v52  ;;  %v1577_v60 = vpop.f32.mrb[89].mxu0  ;;  %v1999_v62 = vadd.f32 %v1998_v53, %v1984_v12 }
 0x1c7   :  { %2206 = vst [vmem:[#allocation3 + $0x138] sm:$0xff] %v11285_v50  ;;  %2207 = vst [vmem:[#allocation3 + $0x140] sm:$0xff] %v11285_v50  ;;  %v1291_v61 = vpop.f32.mrb[91].mxu1  ;;  %v2022_v63 = vmul.f32 %v1984_v12, %v1984_v12  ;;  %v1578_v0 = vpop.f32.mrb[90].mxu0 }
 0x1c8   :  { %2208 = vst [vmem:[#allocation3 + $0x148] sm:$0xff] %v11285_v50  ;;  %2209 = vst [vmem:[#allocation3 + $0x150] sm:$0xff] %v11285_v50  ;;  %v1969_v1 = vadd.f32 %v9120_v46, %v1576_v59  ;;  %v1579_v2 = vadd.f32 %v1578_v0, %v1289_v57  ;;  %v1580_v3 = vpop.f32.mrb[91].mxu0 }
 0x1c9   :  { %2210 = vst [vmem:[#allocation3 + $0x158] sm:$0xff] %v11285_v50  ;;  %2211 = vst [vmem:[#allocation3 + $0x160] sm:$0xff] %v11285_v50  ;;  %v2037_v4 = vadd.f32 %v2036_v58, %v2022_v63 }
 0x1ca   :  { %2212 = vst [vmem:[#allocation3 + $0x168] sm:$0xff] %v11285_v50  ;;  %2213 = vst [vmem:[#allocation3 + $0x170] sm:$0xff] %v11285_v50  ;;  %v1985_v5 = vmax.f32 %v1969_v1, 0.0  ;;  %v1970_v7 = vadd.f32 %v9120_v46, %v1579_v2 }
 0x1cb   :  { %2214 = vst [vmem:[#allocation3 + $0x178] sm:$0xff] %v11285_v50  ;;  %1697 = vst [vmem:[#allocation2 + $0x158] sm:$0xff] %v1571_v47  ;;  %v2243_v50 = vld [vmem:[#allocation2 + $0xe0] ss:$2 sm:$0xff] }
 0x1cc   :  { %1698 = vst [vmem:[#allocation2 + $0x160] sm:$0xff] %v1576_v59  ;;  %1699 = vst [vmem:[#allocation2 + $0x168] sm:$0xff] %v1579_v2  ;;  %v1294_v8 = vpop.f32.mrb[92].mxu1  ;;  %v2000_v9 = vadd.f32 %v1999_v62, %v1985_v5  ;;  %v2023_v10 = vmul.f32 %v1985_v5, %v1985_v5  ;;  %v1986_v13 = vmax.f32 %v1970_v7, 0.0 }
 0x1cd   :  { %v1296_v11 = vpop.f32.mrb[93].mxu1  ;;  %v1583_v14 = vpop.f32.mrb[92].mxu0 }
 0x1ce   :  { %v1297_v15 = vpop.f32.mrb[94].mxu1  ;;  %v2038_v16 = vadd.f32 %v2037_v4, %v2023_v10  ;;  %v1584_v17 = vadd.f32 %v1583_v14, %v1294_v8  ;;  %v1585_v18 = vpop.f32.mrb[93].mxu0  ;;  %v2001_v21 = vadd.f32 %v2000_v9, %v1986_v13  ;;  %v2024_v22 = vmul.f32 %v1986_v13, %v1986_v13 }
 0x1cf   :  { %v1299_v20 = vpop.f32.mrb[95].mxu1  ;;  %v1586_v23 = vpop.f32.mrb[94].mxu0 }
 0x1d0   :  { %1700 = vst [vmem:[#allocation2 + $0x170] sm:$0xff] %v1584_v17  ;;  %v1971_v24 = vadd.f32 %v9120_v46, %v1584_v17  ;;  %v1587_v25 = vadd.f32 %v1586_v23, %v1297_v15  ;;  %v1588_v26 = vpop.f32.mrb[95].mxu0  ;;  %v2039_v27 = vadd.f32 %v2038_v16, %v2024_v22 }
 0x1d2   :  { %v1987_v28 = vmax.f32 %v1971_v24, 0.0  ;;  %1701 = vst [vmem:[#allocation2 + $0x178] sm:$0xff] %v1587_v25  ;;  %v1972_v29 = vadd.f32 %v9120_v46, %v1587_v25 }
 0x1d4   :  { %v1302_v30 = vpop.f32.mrb[96].mxu1  ;;  %v2002_v31 = vadd.f32 %v2001_v21, %v1987_v28  ;;  %v2025_v32 = vmul.f32 %v1987_v28, %v1987_v28  ;;  %v1988_v35 = vmax.f32 %v1972_v29, 0.0 }
 0x1d5   :  { %v1304_v33 = vpop.f32.mrb[97].mxu1  ;;  %v1591_v36 = vpop.f32.mrb[96].mxu0 }
 0x1d6   :  { %v1305_v37 = vpop.f32.mrb[98].mxu1  ;;  %v2040_v38 = vadd.f32 %v2039_v27, %v2025_v32  ;;  %v1592_v39 = vadd.f32 %v1591_v36, %v1302_v30  ;;  %v1593_v40 = vpop.f32.mrb[97].mxu0  ;;  %v2003_v42 = vadd.f32 %v2002_v31, %v1988_v35  ;;  %v2026_v44 = vmul.f32 %v1988_v35, %v1988_v35 }
 0x1d7   :  { %v1307_v41 = vpop.f32.mrb[99].mxu1  ;;  %v1594_v45 = vpop.f32.mrb[98].mxu0 }
 0x1d8   :  { %1702 = vst [vmem:[#allocation2 + $0x180] sm:$0xff] %v1592_v39  ;;  %v2065_v19 = vadd.f32 %v9120_v46, %v1592_v39  ;;  %v1595_v47 = vadd.f32 %v1594_v45, %v1305_v37  ;;  %v1596_v48 = vpop.f32.mrb[99].mxu0  ;;  %v2004_v49 = vrot.slane %v2003_v42, 4  ;;  %v2041_v6 = vadd.f32 %v2040_v38, %v2026_v44  ;;  %v9201_v45 = vld [vmem:[%s11273_s4 + $0x2] sm:$0x1] }
 0x1d9   :  { %11321 = vst [vmem:[#allocation9_spill] sm:$0xff] %v9201_v45 }
 0x1da   :  { %v2081_v51 = vmax.f32 %v2065_v19, 0.0  ;;  %1703 = vst [vmem:[#allocation2 + $0x188] sm:$0xff] %v1595_v47  ;;  %v2066_v52 = vadd.f32 %v9120_v46, %v1595_v47  ;;  %v2005_v53 = vadd.f32 %v2004_v49, %v2003_v42  ;;  %v2042_v54 = vrot.slane %v2041_v6, 4  ;;  %v9191_v42 = vld [vmem:[%s11273_s4] ss:$0 sm:$0xff] }
 0x1db   :  { %11319 = vst [vmem:[#allocation7_spill] sm:$0xff] %v9191_v42 }
 0x1dc   :  { %v1310_v55 = vpop.f32.mrb[100].mxu1  ;;  %v2082_v12 = vmax.f32 %v2066_v52, 0.0  ;;  %v2006_v57 = vrot.slane %v2005_v53, 2  ;;  %v2043_v58 = vadd.f32 %v2042_v54, %v2041_v6  ;;  %v2119_v61 = vmul.f32 %v2081_v51, %v2081_v51 }
 0x1dd   :  { %v1312_v56 = vpop.f32.mrb[101].mxu1  ;;  %v1599_v59 = vpop.f32.mrb[100].mxu0 }
 0x1de   :  { %v1313_v60 = vpop.f32.mrb[102].mxu1  ;;  %v2097_v62 = vadd.f32 %v2082_v12, %v2081_v51  ;;  %v2120_v63 = vmul.f32 %v2082_v12, %v2082_v12  ;;  %v1600_v0 = vadd.f32 %v1599_v59, %v1310_v55  ;;  %v1601_v1 = vpop.f32.mrb[101].mxu0  ;;  %v2007_v3 = vadd.f32 %v2006_v57, %v2005_v53 }
 0x1df   :  { %v1315_v2 = vpop.f32.mrb[103].mxu1  ;;  %v2044_v4 = vrot.slane %v2043_v58, 2  ;;  %v1602_v5 = vpop.f32.mrb[102].mxu0 }
 0x1e0   :  { %v2135_v7 = vadd.f32 %v2120_v63, %v2119_v61  ;;  %1704 = vst [vmem:[#allocation2 + $0x190] sm:$0xff] %v1600_v0  ;;  %v2067_v8 = vadd.f32 %v9120_v46, %v1600_v0  ;;  %v1603_v9 = vadd.f32 %v1602_v5, %v1313_v60  ;;  %v1604_v10 = vpop.f32.mrb[103].mxu0  ;;  %v2008_v11 = vrot.slane %v2007_v3, 1 }
 0x1e1   :  { %v2045_v13 = vadd.f32 %v2044_v4, %v2043_v58 }
 0x1e2   :  { %v2083_v14 = vmax.f32 %v2067_v8, 0.0  ;;  %1705 = vst [vmem:[#allocation2 + $0x198] sm:$0xff] %v1603_v9  ;;  %v2068_v15 = vadd.f32 %v9120_v46, %v1603_v9  ;;  %v2009_v16 = vadd.f32 %v2008_v11, %v2007_v3 }
 0x1e3   :  { %v2046_v17 = vrot.slane %v2045_v13, 1 }
 0x1e4   :  { %v1318_v18 = vpop.f32.mrb[104].mxu1  ;;  %v2098_v20 = vadd.f32 %v2097_v62, %v2083_v14  ;;  %v2121_v21 = vmul.f32 %v2083_v14, %v2083_v14  ;;  %v9181_v23 = vadd.f32 %v2009_v16, %v9107_v34  ;;  %v2084_v25 = vmax.f32 %v2068_v15, 0.0 }
 0x1e5   :  { %v1320_v22 = vpop.f32.mrb[105].mxu1  ;;  %v2047_v24 = vadd.f32 %v2046_v17, %v2045_v13  ;;  %v1607_v26 = vpop.f32.mrb[104].mxu0 }
 0x1e6   :  { %v1321_v27 = vpop.f32.mrb[106].mxu1  ;;  %v2136_v28 = vadd.f32 %v2135_v7, %v2121_v21  ;;  %v1608_v29 = vadd.f32 %v1607_v26, %v1318_v18  ;;  %v1609_v30 = vpop.f32.mrb[105].mxu0  ;;  %v2099_v33 = vadd.f32 %v2098_v20, %v2084_v25  ;;  %v2122_v35 = vmul.f32 %v2084_v25, %v2084_v25 }
 0x1e7   :  { %v1323_v31 = vpop.f32.mrb[107].mxu1  ;;  %v9184_v32 = vadd.f32 %v2047_v24, %v9109_v43  ;;  %v1610_v36 = vpop.f32.mrb[106].mxu0  ;;  %v9196_v43 = vld [vmem:[%s11273_s4 + $0x1] sm:$0x1] }
 0x1e8   :  { %1706 = vst [vmem:[#allocation2 + $0x1a0] sm:$0xff] %v1608_v29  ;;  %v2069_v37 = vadd.f32 %v9120_v46, %v1608_v29  ;;  %v1611_v38 = vadd.f32 %v1610_v36, %v1321_v27  ;;  %v1612_v34 = vpop.f32.mrb[107].mxu0  ;;  %v2137_v39 = vadd.f32 %v2136_v28, %v2122_v35  ;;  %11320 = vst [vmem:[#allocation8_spill] sm:$0xff] %v9196_v43  ;;  %v2559_v43 = vld [vmem:[#allocation2 + $0x181] ss:$2 sm:$0xff] }
 0x1ea   :  { %v2085_v40 = vmax.f32 %v2069_v37, 0.0  ;;  %1707 = vst [vmem:[#allocation2 + $0x1a8] sm:$0xff] %v1611_v38  ;;  %v2070_v41 = vadd.f32 %v9120_v46, %v1611_v38 }
 0x1ec   :  { %v1326_v44 = vpop.f32.mrb[108].mxu1  ;;  %v2100_v19 = vadd.f32 %v2099_v33, %v2085_v40  ;;  %v2123_v47 = vmul.f32 %v2085_v40, %v2085_v40  ;;  %v2086_v49 = vmax.f32 %v2070_v41, 0.0 }
 0x1ed   :  { %v1328_v48 = vpop.f32.mrb[109].mxu1  ;;  %v1615_v6 = vpop.f32.mrb[108].mxu0 }
 0x1ee   :  { %v1329_v51 = vpop.f32.mrb[110].mxu1  ;;  %v2138_v52 = vadd.f32 %v2137_v39, %v2123_v47  ;;  %v1616_v53 = vadd.f32 %v1615_v6, %v1326_v44  ;;  %v1617_v54 = vpop.f32.mrb[109].mxu0  ;;  %v2101_v12 = vadd.f32 %v2100_v19, %v2086_v49  ;;  %v2124_v56 = vmul.f32 %v2086_v49, %v2086_v49 }
 0x1ef   :  { %v1331_v55 = vpop.f32.mrb[111].mxu1  ;;  %v1618_v57 = vpop.f32.mrb[110].mxu0 }
 0x1f0   :  { %1708 = vst [vmem:[#allocation2 + $0x1b0] sm:$0xff] %v1616_v53  ;;  %v2071_v58 = vadd.f32 %v9120_v46, %v1616_v53  ;;  %v1619_v59 = vadd.f32 %v1618_v57, %v1329_v51  ;;  %v1620_v60 = vpop.f32.mrb[111].mxu0  ;;  %v2139_v61 = vadd.f32 %v2138_v52, %v2124_v56  ;;  %v2215_v55 = vld [vmem:[#allocation2] ss:$2 sm:$0xff] }
 0x1f1   :  { %v2467_v42 = vld [vmem:[#allocation2 + $0x1a0] ss:$2 sm:$0xff] }
 0x1f2   :  { %v2087_v62 = vmax.f32 %v2071_v58, 0.0  ;;  %1709 = vst [vmem:[#allocation2 + $0x1b8] sm:$0xff] %v1619_v59  ;;  %v2072_v63 = vadd.f32 %v9120_v46, %v1619_v59  ;;  %v2319_v59 = vld [vmem:[#allocation2 + $0x1] ss:$2 sm:$0xff] }
 0x1f4   :  { %v1334_v0 = vpop.f32.mrb[112].mxu1  ;;  %v2102_v1 = vadd.f32 %v2101_v12, %v2087_v62  ;;  %v2125_v2 = vmul.f32 %v2087_v62, %v2087_v62  ;;  %v2088_v4 = vmax.f32 %v2072_v63, 0.0  ;;  %v2217_v63 = vld [vmem:[#allocation2 + $0x10] ss:$2 sm:$0xff] }
 0x1f5   :  { %v1336_v3 = vpop.f32.mrb[113].mxu1  ;;  %v1623_v5 = vpop.f32.mrb[112].mxu0 }
 0x1f6   :  { %v1337_v7 = vpop.f32.mrb[114].mxu1  ;;  %v2140_v8 = vadd.f32 %v2139_v61, %v2125_v2  ;;  %v1624_v9 = vadd.f32 %v1623_v5, %v1334_v0  ;;  %v1625_v10 = vpop.f32.mrb[113].mxu0  ;;  %v2103_v13 = vadd.f32 %v2102_v1, %v2088_v4  ;;  %v2126_v14 = vmul.f32 %v2088_v4, %v2088_v4  ;;  %v2321_v0 = vld [vmem:[#allocation2 + $0x11] ss:$2 sm:$0xff]  ;;  %v2219_v5 = vld [vmem:[#allocation2 + $0x20] ss:$2 sm:$0xff] }
 0x1f7   :  { %v1339_v11 = vpop.f32.mrb[115].mxu1  ;;  %v1626_v15 = vpop.f32.mrb[114].mxu0  ;;  %v9211_v4 = vadd.f32 %v9120_v46, %v2215_v55  ;;  %v2221_v10 = vld [vmem:[#allocation2 + $0x30] ss:$2 sm:$0xff]  ;;  %v2543_v55 = vld [vmem:[#allocation2 + $0x101] ss:$2 sm:$0xff] }
 0x1f8   :  { %1710 = vst [vmem:[#allocation2 + $0x1c0] sm:$0xff] %v1624_v9  ;;  %v2073_v16 = vadd.f32 %v9120_v46, %v1624_v9  ;;  %v1627_v17 = vadd.f32 %v1626_v15, %v1337_v7  ;;  %v1628_v18 = vpop.f32.mrb[115].mxu0  ;;  %v2141_v20 = vadd.f32 %v2140_v8, %v2126_v14  ;;  %v2323_v7 = vld [vmem:[#allocation2 + $0x21] ss:$2 sm:$0xff]  ;;  %v9214_v9 = vadd.f32 %v9120_v46, %v2319_v59  ;;  %v2325_v11 = vld [vmem:[#allocation2 + $0x31] ss:$2 sm:$0xff] }
 0x1f9   :  { %v9218_v15 = vadd.f32 %v9120_v46, %v2217_v63  ;;  %v2227_v59 = vld [vmem:[#allocation2 + $0x60] ss:$2 sm:$0xff]  ;;  %v2331_v63 = vld [vmem:[#allocation2 + $0x61] ss:$2 sm:$0xff] }
 0x1fa   :  { %v2089_v21 = vmax.f32 %v2073_v16, 0.0  ;;  %1711 = vst [vmem:[#allocation2 + $0x1c8] sm:$0xff] %v1627_v17  ;;  %v2074_v22 = vadd.f32 %v9120_v46, %v1627_v17  ;;  %v9221_v16 = vadd.f32 %v9120_v46, %v2321_v0  ;;  %v2223_v17 = vld [vmem:[#allocation2 + $0x40] ss:$2 sm:$0xff]  ;;  %v2229_v0 = vld [vmem:[#allocation2 + $0x70] ss:$2 sm:$0xff] }
 0x1fc   :  { %v1342_v24 = vpop.f32.mrb[116].mxu1  ;;  %v2104_v25 = vadd.f32 %v2103_v13, %v2089_v21  ;;  %v2127_v26 = vmul.f32 %v2089_v21, %v2089_v21  ;;  %v2090_v28 = vmax.f32 %v2074_v22, 0.0  ;;  %v9227_v21 = vadd.f32 %v9120_v46, %v2323_v7 }
 0x1fd   :  { %v1344_v27 = vpop.f32.mrb[117].mxu1  ;;  %v1631_v29 = vpop.f32.mrb[116].mxu0 }
 0x1fe   :  { %v1345_v30 = vpop.f32.mrb[118].mxu1  ;;  %v2142_v31 = vadd.f32 %v2141_v20, %v2127_v26  ;;  %v1632_v33 = vadd.f32 %v1631_v29, %v1342_v24  ;;  %v1633_v35 = vpop.f32.mrb[117].mxu0  ;;  %v2105_v37 = vadd.f32 %v2104_v25, %v2090_v28  ;;  %v2128_v38 = vmul.f32 %v2090_v28, %v2090_v28 }
 0x1ff   :  { %v1347_v36 = vpop.f32.mrb[119].mxu1  ;;  %v1634_v34 = vpop.f32.mrb[118].mxu0  ;;  %v9224_v20 = vadd.f32 %v9120_v46, %v2219_v5  ;;  %v9231_v27 = vadd.f32 %v9120_v46, %v2221_v10  ;;  %v9234_v28 = vadd.f32 %v9120_v46, %v2325_v11  ;;  %v9238_v35 = vadd.f32 %v9120_v46, %v2223_v17  ;;  %v2233_v5 = vld [vmem:[#allocation2 + $0x90] ss:$2 sm:$0xff]  ;;  %v2235_v17 = vld [vmem:[#allocation2 + $0xa0] ss:$2 sm:$0xff] }
 0x200   :  { %1712 = vst [vmem:[#allocation2 + $0x1d0] sm:$0xff] %v1632_v33  ;;  %v2075_v39 = vadd.f32 %v9120_v46, %v1632_v33  ;;  %v1635_v40 = vadd.f32 %v1634_v34, %v1345_v30  ;;  %v1636_v41 = vpop.f32.mrb[119].mxu0  ;;  %v2143_v44 = vadd.f32 %v2142_v31, %v2128_v38  ;;  %v2327_v36 = vld [vmem:[#allocation2 + $0x41] ss:$2 sm:$0xff]  ;;  %v2545_v33 = vld [vmem:[#allocation2 + $0x111] ss:$2 sm:$0xff]  ;;  %v9322_v10 = vadd.f32 %v9120_v46, %v2243_v50 }
 0x202   :  { %v2091_v19 = vmax.f32 %v2075_v39, 0.0  ;;  %1713 = vst [vmem:[#allocation2 + $0x1d8] sm:$0xff] %v1635_v40  ;;  %v2076_v47 = vadd.f32 %v9120_v46, %v1635_v40 }
 0x204   :  { %v1350_v48 = vpop.f32.mrb[120].mxu1  ;;  %v2106_v49 = vadd.f32 %v2105_v37, %v2091_v19  ;;  %v2129_v6 = vmul.f32 %v2091_v19, %v2091_v19  ;;  %v2092_v52 = vmax.f32 %v2076_v47, 0.0 }
 0x205   :  { %v1352_v51 = vpop.f32.mrb[121].mxu1  ;;  %v1639_v53 = vpop.f32.mrb[120].mxu0 }
 0x206   :  { %v1353_v54 = vpop.f32.mrb[122].mxu1  ;;  %v2144_v12 = vadd.f32 %v2143_v44, %v2129_v6  ;;  %v1640_v56 = vadd.f32 %v1639_v53, %v1350_v48  ;;  %v1641_v57 = vpop.f32.mrb[121].mxu0  ;;  %v2107_v60 = vadd.f32 %v2106_v49, %v2092_v52  ;;  %v2130_v61 = vmul.f32 %v2092_v52, %v2092_v52  ;;  %v2225_v6 = vld [vmem:[#allocation2 + $0x50] ss:$2 sm:$0xff]  ;;  %v2463_v48 = vld [vmem:[#allocation2 + $0x180] ss:$2 sm:$0xff] }
 0x207   :  { %v1355_v58 = vpop.f32.mrb[123].mxu1  ;;  %v1642_v62 = vpop.f32.mrb[122].mxu0 }
 0x208   :  { %1714 = vst [vmem:[#allocation2 + $0x1e0] sm:$0xff] %v1640_v56  ;;  %v2077_v1 = vadd.f32 %v9120_v46, %v1640_v56  ;;  %v1643_v2 = vadd.f32 %v1642_v62, %v1353_v54  ;;  %v1644_v3 = vpop.f32.mrb[123].mxu0  ;;  %v2145_v8 = vadd.f32 %v2144_v12, %v2130_v61  ;;  %v9248_v12 = vadd.f32 %v9120_v46, %v2327_v36  ;;  %v2329_v58 = vld [vmem:[#allocation2 + $0x51] ss:$2 sm:$0xff] }
 0x209   :  { %v9253_v62 = vadd.f32 %v9120_v46, %v2225_v6  ;;  %v2335_v3 = vld [vmem:[#allocation2 + $0x81] ss:$2 sm:$0xff]  ;;  %v9257_v11 = vadd.f32 %v9120_v46, %v2329_v58  ;;  %v2349_v6 = vld [vmem:[#allocation2 + $0xf1] ss:$2 sm:$0xff] }
 0x20a   :  { %v2093_v13 = vmax.f32 %v2077_v1, 0.0  ;;  %1715 = vst [vmem:[#allocation2 + $0x1e8] sm:$0xff] %v1643_v2  ;;  %v2078_v14 = vadd.f32 %v9120_v46, %v1643_v2  ;;  %v2333_v1 = vld [vmem:[#allocation2 + $0x71] ss:$2 sm:$0xff]  ;;  %v2231_v2 = vld [vmem:[#allocation2 + $0x80] ss:$2 sm:$0xff] }
 0x20b   :  { %v9273_v36 = vadd.f32 %v9120_v46, %v2231_v2  ;;  %v2347_v58 = vld [vmem:[#allocation2 + $0xe1] ss:$2 sm:$0xff]  ;;  %v2557_v54 = vld [vmem:[#allocation2 + $0x171] ss:$2 sm:$0xff] }
 0x20c   :  { %v1358_v18 = vpop.f32.mrb[124].mxu1  ;;  %v2108_v22 = vadd.f32 %v2107_v60, %v2093_v13  ;;  %v2131_v24 = vmul.f32 %v2093_v13, %v2093_v13  ;;  %v2094_v29 = vmax.f32 %v2078_v14, 0.0  ;;  %v9260_v13 = vadd.f32 %v9120_v46, %v2227_v59  ;;  %v2337_v14 = vld [vmem:[#allocation2 + $0x91] ss:$2 sm:$0xff] }
 0x20d   :  { %v1360_v25 = vpop.f32.mrb[125].mxu1  ;;  %v1647_v30 = vpop.f32.mrb[124].mxu0 }
 0x20e   :  { %v1361_v31 = vpop.f32.mrb[126].mxu1  ;;  %v2146_v37 = vadd.f32 %v2145_v8, %v2131_v24  ;;  %v1648_v38 = vadd.f32 %v1647_v30, %v1358_v18  ;;  %v1649_v34 = vpop.f32.mrb[125].mxu0  ;;  %v2109_v44 = vadd.f32 %v2108_v22, %v2094_v29  ;;  %v2132_v19 = vmul.f32 %v2094_v29, %v2094_v29  ;;  %v2339_v29 = vld [vmem:[#allocation2 + $0xa1] ss:$2 sm:$0xff] }
 0x20f   :  { %v1363_v39 = vpop.f32.mrb[127].mxu1  ;;  %v1650_v47 = vpop.f32.mrb[126].mxu0  ;;  %v9263_v22 = vadd.f32 %v9120_v46, %v2331_v63  ;;  %v9266_v24 = vadd.f32 %v9120_v46, %v2229_v0  ;;  %v9269_v25 = vadd.f32 %v9120_v46, %v2333_v1  ;;  %v9276_v34 = vadd.f32 %v9120_v46, %v2335_v3 }
 0x210   :  { %1716 = vst [vmem:[#allocation2 + $0x1f0] sm:$0xff] %v1648_v38  ;;  %v2079_v51 = vadd.f32 %v9120_v46, %v1648_v38  ;;  %v1651_v52 = vadd.f32 %v1650_v47, %v1361_v31  ;;  %v1652_v53 = vpop.f32.mrb[127].mxu0  ;;  %v2147_v56 = vadd.f32 %v2146_v37, %v2132_v19  ;;  %v9279_v39 = vadd.f32 %v9120_v46, %v2233_v5  ;;  %v2237_v47 = vld [vmem:[#allocation2 + $0xb0] ss:$2 sm:$0xff]  ;;  %v2455_v5 = vld [vmem:[#allocation2 + $0x140] ss:$2 sm:$0xff] }
 0x211   :  { %v9285_v19 = vadd.f32 %v9120_v46, %v2235_v17  ;;  %v9297_v0 = vadd.f32 %v9120_v46, %v2237_v47  ;;  %v2241_v47 = vld [vmem:[#allocation2 + $0xd0] ss:$2 sm:$0xff]  ;;  %v9376_v40 = vadd.f32 %v9120_v46, %v2455_v5 }
 0x212   :  { %v2095_v60 = vmax.f32 %v2079_v51, 0.0  ;;  %1717 = vst [vmem:[#allocation2 + $0x1f8] sm:$0xff] %v1651_v52  ;;  %v2080_v61 = vadd.f32 %v9120_v46, %v1651_v52  ;;  %v9289_v51 = vadd.f32 %v9120_v46, %v2339_v29  ;;  %v9316_v41 = vadd.f32 %v9120_v46, %v2241_v47  ;;  %v2461_v31 = vld [vmem:[#allocation2 + $0x170] ss:$2 sm:$0xff] }
 0x213   :  { %11326 = vst [vmem:[#allocation14_spill] sm:$0xff] %v9376_v40 }
 0x214   :  { %v2110_v7 = vadd.f32 %v2109_v44, %v2095_v60  ;;  %v2133_v8 = vmul.f32 %v2095_v60, %v2095_v60  ;;  %v2096_v18 = vmax.f32 %v2080_v61, 0.0  ;;  %v9282_v44 = vadd.f32 %v9120_v46, %v2337_v14  ;;  %v2341_v61 = vld [vmem:[#allocation2 + $0xb1] ss:$2 sm:$0xff]  ;;  %v2447_v14 = vld [vmem:[#allocation2 + $0x100] ss:$2 sm:$0xff] }
 0x215   :  { %v9305_v17 = vadd.f32 %v9120_v46, %v2341_v61  ;;  %v9334_v47 = vadd.f32 %v9120_v46, %v2447_v14 }
 0x216   :  { %v2148_v30 = vadd.f32 %v2147_v56, %v2133_v8  ;;  %v2111_v37 = vadd.f32 %v2110_v7, %v2096_v18  ;;  %v2134_v38 = vmul.f32 %v2096_v18, %v2096_v18  ;;  %v2245_v7 = vld [vmem:[#allocation2 + $0xf0] ss:$2 sm:$0xff]  ;;  %v2459_v56 = vld [vmem:[#allocation2 + $0x160] ss:$2 sm:$0xff] }
 0x218   :  { %v2112_v52 = vrot.slane %v2111_v37, 4  ;;  %v2149_v53 = vadd.f32 %v2148_v30, %v2134_v38  ;;  %v2239_v30 = vld [vmem:[#allocation2 + $0xc0] ss:$2 sm:$0xff]  ;;  %v2343_v38 = vld [vmem:[#allocation2 + $0xc1] ss:$2 sm:$0xff] }
 0x21a   :  { %v2113_v1 = vadd.f32 %v2112_v52, %v2111_v37  ;;  %v2150_v2 = vrot.slane %v2149_v53, 4  ;;  %v2345_v52 = vld [vmem:[#allocation2 + $0xd1] ss:$2 sm:$0xff]  ;;  %v9325_v37 = vadd.f32 %v9120_v46, %v2347_v58  ;;  %v9343_v58 = vadd.f32 %v9120_v46, %v2545_v33 }
 0x21b   :  { %v2278_v33 = vlaneseq }
 0x21c   :  { %v2114_v18 = vrot.slane %v2113_v1, 2  ;;  %v2151_v29 = vadd.f32 %v2150_v2, %v2149_v53  ;;  %v9310_v53 = vadd.f32 %v9120_v46, %v2239_v30  ;;  %v9313_v2 = vadd.f32 %v9120_v46, %v2343_v38  ;;  %11323 = vst [vmem:[#allocation11_spill] sm:$0xff] %v9343_v58  ;;  %v2573_v58 = vld [vmem:[#allocation2 + $0x1f1] ss:$2 sm:$0xff] }
 0x21d   :  { %v9328_v30 = vadd.f32 %v9120_v46, %v2245_v7  ;;  %v9331_v38 = vadd.f32 %v9120_v46, %v2349_v6  ;;  %v2457_v7 = vld [vmem:[#allocation2 + $0x150] ss:$2 sm:$0xff]  ;;  %v2555_v6 = vld [vmem:[#allocation2 + $0x161] ss:$2 sm:$0xff] }
 0x21e   :  { %v2115_v3 = vadd.f32 %v2114_v18, %v2113_v1  ;;  %v2152_v60 = vrot.slane %v2151_v29, 2  ;;  %v9319_v1 = vadd.f32 %v9120_v46, %v2345_v52  ;;  %v2449_v18 = vld [vmem:[#allocation2 + $0x110] ss:$2 sm:$0xff]  ;;  %v9337_v52 = vadd.f32 %v9120_v46, %v2543_v55  ;;  %v2547_v55 = vld [vmem:[#allocation2 + $0x121] ss:$2 sm:$0xff] }
 0x21f   :  { %v9340_v50 = vadd.f32 %v9120_v46, %v2449_v18  ;;  %v9367_v14 = vadd.f32 %v9120_v46, %v2547_v55  ;;  %v9384_v55 = vshrl.u32 %v2278_v33, 7  ;;  %v9394_v5 = vadd.f32 %v9120_v46, %v2555_v6  ;;  %v2561_v6 = vld [vmem:[#allocation2 + $0x191] ss:$2 sm:$0xff] }
 0x220   :  { %v2116_v61 = vrot.slane %v2115_v3, 1  ;;  %v2153_v49 = vadd.f32 %v2152_v60, %v2151_v29  ;;  %11322 = vst [vmem:[#allocation10_spill] sm:$0xff] %v9337_v52  ;;  %v9403_v33 = vadd.f32 %v9120_v46, %v2463_v48  ;;  %v2565_v48 = vld [vmem:[#allocation2 + $0x1b1] ss:$2 sm:$0xff] }
 0x221   :  { %11324 = vst [vmem:[#allocation12_spill] sm:$0xff] %v9367_v14  ;;  %11329 = vst [vmem:[#allocation17_spill] sm:$0xff] %v9384_v55  ;;  %v9412_v45 = vsub.s32 0, %v9384_v55  ;;  %v9421_v55 = vadd.f32 %v9120_v46, %v2559_v43  ;;  %v2571_v43 = vld [vmem:[#allocation2 + $0x1e1] ss:$2 sm:$0xff]  ;;  %v9439_v52 = vadd.f32 %v9120_v46, %v2565_v48 }
 0x222   :  { %v2117_v60 = vadd.f32 %v2116_v61, %v2115_v3  ;;  %v2154_v29 = vrot.slane %v2153_v49, 1  ;;  %11332 = vst [vmem:[#allocation20_spill] sm:$0xff] %v9394_v5  ;;  %11335 = vst [vmem:[#allocation23_spill] sm:$0xff] %v9403_v33  ;;  %v2569_v5 = vld [vmem:[#allocation2 + $0x1d1] ss:$2 sm:$0xff] }
 0x223   :  { %11336 = vst [vmem:[#allocation24_spill] sm:$0xff] %v9412_v45  ;;  %11337 = vst [vmem:[#allocation25_spill] sm:$0xff] %v9421_v55  ;;  %v2477_v14 = vld [vmem:[#allocation2 + $0x1f0] ss:$2 sm:$0xff]  ;;  %v9456_v48 = vadd.f32 %v9120_v46, %v2569_v5  ;;  %v11346_v5 = vmax.f32 %v9238_v35, 0.0  ;;  %v11351_v35 = vmax.f32 %v9279_v39, 0.0 }
 0x224   :  { %v2118_v3 = vadd.f32 %v2117_v60, %v9181_v23  ;;  %v2155_v61 = vadd.f32 %v2154_v29, %v2153_v49  ;;  %v2451_v29 = vld [vmem:[#allocation2 + $0x120] ss:$2 sm:$0xff]  ;;  %v2551_v49 = vld [vmem:[#allocation2 + $0x141] ss:$2 sm:$0xff]  ;;  %v2553_v60 = vld [vmem:[#allocation2 + $0x151] ss:$2 sm:$0xff] }
 0x225   :  { %v9364_v23 = vadd.f32 %v9120_v46, %v2451_v29  ;;  %v9388_v26 = vadd.f32 %v9120_v46, %v2553_v60  ;;  %v2473_v60 = vld [vmem:[#allocation2 + $0x1d0] ss:$2 sm:$0xff]  ;;  %11339 = vst [vmem:[#allocation27_spill] sm:$0xff] %v9456_v48  ;;  %v11356_v39 = vmax.f32 %v9322_v10, 0.0  ;;  %v11360_v10 = vmax.f32 %v9227_v21, 0.0 }
 0x226   :  { %v2156_v18 = vadd.f32 %v2155_v61, %v9184_v32  ;;  %v9353_v63 = vmul.f32 0.001953125, %v2118_v3  ;;  %v2453_v3 = vld [vmem:[#allocation2 + $0x130] ss:$2 sm:$0xff]  ;;  %v2549_v61 = vld [vmem:[#allocation2 + $0x131] ss:$2 sm:$0xff] }
 0x227   :  { %v9373_v57 = vadd.f32 %v9120_v46, %v2549_v61  ;;  %11330 = vst [vmem:[#allocation18_spill] sm:$0xff] %v9388_v26  ;;  %v9391_v61 = vadd.f32 %v9120_v46, %v2459_v56  ;;  %v2471_v26 = vld [vmem:[#allocation2 + $0x1c0] ss:$2 sm:$0xff] }
 0x228   :  { %v2158_v8 = vmul.f32 0.001953125, %v2156_v18  ;;  %v2159_v32 = vmul.f32 %v9353_v63, %v9353_v63  ;;  %v9370_v18 = vadd.f32 %v9120_v46, %v2453_v3  ;;  %v2465_v3 = vld [vmem:[#allocation2 + $0x190] ss:$2 sm:$0xff]  ;;  %v2475_v56 = vld [vmem:[#allocation2 + $0x1e0] ss:$2 sm:$0xff]  ;;  %v9442_v33 = vadd.f32 %v9120_v46, %v2471_v26 }
 0x229   :  { %11325 = vst [vmem:[#allocation13_spill] sm:$0xff] %v9373_v57  ;;  %11331 = vst [vmem:[#allocation19_spill] sm:$0xff] %v9391_v61  ;;  %v2567_v57 = vld [vmem:[#allocation2 + $0x1c1] ss:$2 sm:$0xff]  ;;  %v9459_v26 = vadd.f32 %v9120_v46, %v2475_v56 }
 0x22a   :  { %v2160_v59 = vsub.f32 %v2158_v8, %v2159_v32  ;;  %v9379_v8 = vadd.f32 %v9120_v46, %v2551_v49  ;;  %v9382_v32 = vadd.f32 %v9120_v46, %v2457_v7  ;;  %v9397_v49 = vadd.f32 %v9120_v46, %v2461_v31  ;;  %v2563_v31 = vld [vmem:[#allocation2 + $0x1a1] ss:$2 sm:$0xff] }
 0x22b   :  { %v9400_v7 = vadd.f32 %v9120_v46, %v2557_v54  ;;  %v9424_v54 = vadd.f32 %v9120_v46, %v2465_v3 }
 0x22c   :  { %v2161_v29 = vmax.f32 %v2160_v59, 0.0  ;;  %11327 = vst [vmem:[#allocation15_spill] sm:$0xff] %v9379_v8  ;;  %11328 = vst [vmem:[#allocation16_spill] sm:$0xff] %v9382_v32  ;;  %v2469_v8 = vld [vmem:[#allocation2 + $0x1b0] ss:$2 sm:$0xff]  ;;  %v9465_v32 = vadd.f32 %v9120_v46, %v2477_v14  ;;  %v11343_v14 = vmax.f32 %v9218_v15, 0.0 }
 0x22d   :  { %11333 = vst [vmem:[#allocation21_spill] sm:$0xff] %v9397_v49  ;;  %11334 = vst [vmem:[#allocation22_spill] sm:$0xff] %v9400_v7  ;;  %v9433_v7 = vadd.f32 %v9120_v46, %v2563_v31  ;;  %v9436_v3 = vadd.f32 %v9120_v46, %v2469_v8  ;;  %v9453_v8 = vadd.f32 %v9120_v46, %v2473_v60  ;;  %v11348_v15 = vmax.f32 %v9260_v13, 0.0 }
 0x22e   :  { %v2162_v59 = vadd.f32 0.001, %v2161_v29  ;;  %11338 = vst [vmem:[#allocation26_spill] sm:$0xff] %v9424_v54  ;;  %v9430_v29 = vadd.f32 %v9120_v46, %v2467_v42  ;;  %v1719_v42 = vld [vmem:[%s11271_s2 + $0x1] sm:$0x1]  ;;  %v9468_v31 = vadd.f32 %v9120_v46, %v2573_v58  ;;  %v11342_v54 = vmax.f32 %v9211_v4, 0.0 }
 0x22f   :  { %v11347_v4 = vmax.f32 %v9253_v62, 0.0  ;;  %v11352_v62 = vmax.f32 %v9285_v19, 0.0  ;;  %v11353_v13 = vmax.f32 %v9297_v0, 0.0  ;;  %v11357_v19 = vmax.f32 %v9328_v30, 0.0 }
 0x230   :  { %7785 = vrsqrt.f32 %v2162_v59  ;;  %v9427_v59 = vadd.f32 %v9120_v46, %v2561_v6  ;;  %v9445_v6 = vadd.f32 %v9120_v46, %v2567_v57  ;;  %v9462_v57 = vadd.f32 %v9120_v46, %v2571_v43  ;;  %11341 = vst [vmem:[#allocation29_spill] sm:$0xff] %v9468_v31  ;;  %v1720_v46 = vld [vmem:[%s11271_s2 + $0x2] sm:$0x1]  ;;  %s9817_s2 = smov 0  }
 0x231   :  { %v11361_v30 = vmax.f32 %v9234_v28, 0.0 }
 0x232   :  { %11340 = vst [vmem:[#allocation28_spill] sm:$0xff] %v9462_v57 }
 0x23a   :  { %v7786_v61 = vpop.eup %7785 }
 0x23b   :  { %v2164_v55 = vmul.f32 %v7786_v61, %v1719_v42  ;;  %v11345_v42 = vmax.f32 %v9231_v27, 0.0  ;;  %v11350_v27 = vmax.f32 %v9273_v36, 0.0  ;;  %v11355_v36 = vmax.f32 %v9316_v41, 0.0 }
 0x23c   :  { %v11359_v41 = vmax.f32 %v9221_v16, 0.0 }
 0x23d   :  { %v2165_v49 = vmul.f32 %v2164_v55, %v9353_v63  ;;  %v9484_v61 = vrot.slane %v2164_v55, %v9412_v45  ;;  %v11344_v55 = vmax.f32 %v9224_v20, 0.0  ;;  %v11349_v20 = vmax.f32 %v9266_v24, 0.0 }
 0x23e   :  { %v11354_v24 = vmax.f32 %v9310_v53, 0.0  ;;  %v11358_v53 = vmax.f32 %v9214_v9, 0.0  ;;  %v11363_v9 = vmax.f32 %v9257_v11, 0.0 }
 0x23f   :  { %v2166_v43 = vsub.f32 %v1720_v46, %v2165_v49  ;;  %v2282_v58 = vmul.f32 %v9484_v61, %v11342_v54  ;;  %v2283_v63 = vmul.f32 %v9484_v61, %v11343_v14  ;;  %v2284_v60 = vmul.f32 %v9484_v61, %v11344_v55 }
 0x240   :  { %v2285_v56 = vmul.f32 %v9484_v61, %v11345_v42  ;;  %v2286_v49 = vmul.f32 %v9484_v61, %v11346_v5  ;;  %v2287_v54 = vmul.f32 %v9484_v61, %v11347_v4  ;;  %v2288_v46 = vmul.f32 %v9484_v61, %v11348_v15 }
 0x241   :  { %v2289_v14 = vmul.f32 %v9484_v61, %v11349_v20  ;;  %v2290_v42 = vmul.f32 %v9484_v61, %v11350_v27  ;;  %v2291_v5 = vmul.f32 %v9484_v61, %v11351_v35  ;;  %v2292_v55 = vmul.f32 %v9484_v61, %v11352_v62 }
 0x242   :  { %v2293_v4 = vmul.f32 %v9484_v61, %v11353_v13  ;;  %v2294_v15 = vmul.f32 %v9484_v61, %v11354_v24  ;;  %v2295_v20 = vmul.f32 %v9484_v61, %v11355_v36  ;;  %v2296_v27 = vmul.f32 %v9484_v61, %v11356_v39 }
 0x243   :  { %v2297_v35 = vmul.f32 %v9484_v61, %v11357_v19  ;;  %v9539_v0 = vrot.slane %v2166_v43, %v9412_v45  ;;  %v2382_v62 = vmul.f32 %v11358_v53, %v9484_v61  ;;  %v2383_v13 = vmul.f32 %v11359_v41, %v9484_v61 }
 0x244   :  { %v2384_v24 = vmul.f32 %v11360_v10, %v9484_v61  ;;  %v2385_v36 = vmul.f32 %v11361_v30, %v9484_v61  ;;  %v11362_v43 = vmax.f32 %v9248_v12, 0.0  ;;  %v2387_v19 = vmul.f32 %v11363_v9, %v9484_v61 }
 0x245   :  { %v2302_v53 = vadd.f32 %v9539_v0, %v2282_v58  ;;  %v2303_v16 = vadd.f32 %v9539_v0, %v2283_v63  ;;  %v2304_v41 = vadd.f32 %v9539_v0, %v2284_v60  ;;  %v2305_v21 = vadd.f32 %v9539_v0, %v2285_v56 }
 0x246   :  { %v2386_v39 = vmul.f32 %v11362_v43, %v9484_v61  ;;  %v2306_v10 = vadd.f32 %v9539_v0, %v2286_v49  ;;  %v2307_v28 = vadd.f32 %v9539_v0, %v2287_v54  ;;  %v2308_v30 = vadd.f32 %v9539_v0, %v2288_v46 }
 0x247   :  { %v2309_v12 = vadd.f32 %v9539_v0, %v2289_v14  ;;  %v2310_v43 = vadd.f32 %v9539_v0, %v2290_v42  ;;  %v2311_v11 = vadd.f32 %v9539_v0, %v2291_v5  ;;  %v2312_v58 = vadd.f32 %v9539_v0, %v2292_v55 }
 0x248   :  { %v2313_v63 = vadd.f32 %v9539_v0, %v2293_v4  ;;  %v2314_v60 = vadd.f32 %v9539_v0, %v2294_v15  ;;  %v2315_v56 = vadd.f32 %v9539_v0, %v2295_v20  ;;  %v9574_v49 = vadd.f32 %v9539_v0, %v2296_v27 }
 0x249   :  { %v9577_v54 = vadd.f32 %v9539_v0, %v2297_v35  ;;  %v11364_v46 = vmax.f32 %v9263_v22, 0.0  ;;  %v11365_v42 = vmax.f32 %v9269_v25, 0.0  ;;  %v11366_v55 = vmax.f32 %v9276_v34, 0.0 }
 0x24a   :  { %v11367_v15 = vmax.f32 %v9282_v44, 0.0  ;;  %v11368_v27 = vmax.f32 %v9289_v51, 0.0  ;;  %v11369_v22 = vmax.f32 %v9305_v17, 0.0  ;;  %v11370_v25 = vmax.f32 %v9313_v2, 0.0 }
 0x24b   :  { %v2388_v14 = vmul.f32 %v11364_v46, %v9484_v61  ;;  %v2389_v5 = vmul.f32 %v11365_v42, %v9484_v61  ;;  %v2390_v4 = vmul.f32 %v11366_v55, %v9484_v61  ;;  %v11371_v34 = vmax.f32 %v9319_v1, 0.0 }
 0x24c   :  { %v2391_v20 = vmul.f32 %v11367_v15, %v9484_v61  ;;  %v2392_v35 = vmul.f32 %v11368_v27, %v9484_v61  ;;  %v2393_v9 = vmul.f32 %v11369_v22, %v9484_v61  ;;  %v2394_v46 = vmul.f32 %v11370_v25, %v9484_v61 }
 0x24d   :  { %v2395_v42 = vmul.f32 %v11371_v34, %v9484_v61  ;;  %v11372_v44 = vmax.f32 %v9325_v37, 0.0  ;;  %v11373_v51 = vmax.f32 %v9331_v38, 0.0  ;;  %v2398_v27 = vadd.f32 %v2382_v62, %v9539_v0 }
 0x24e   :  { %v2399_v17 = vadd.f32 %v2383_v13, %v9539_v0  ;;  %v2400_v22 = vadd.f32 %v2384_v24, %v9539_v0  ;;  %v2401_v2 = vadd.f32 %v2385_v36, %v9539_v0  ;;  %v2402_v25 = vadd.f32 %v2386_v39, %v9539_v0 }
 0x24f   :  { %v2396_v55 = vmul.f32 %v11372_v44, %v9484_v61  ;;  %v2397_v15 = vmul.f32 %v11373_v51, %v9484_v61  ;;  %v2403_v1 = vadd.f32 %v2387_v19, %v9539_v0  ;;  %v2404_v34 = vadd.f32 %v2388_v14, %v9539_v0 }
 0x250   :  { %v2405_v37 = vadd.f32 %v2389_v5, %v9539_v0  ;;  %v2406_v44 = vadd.f32 %v2390_v4, %v9539_v0  ;;  %v2407_v38 = vadd.f32 %v2391_v20, %v9539_v0  ;;  %v2408_v62 = vadd.f32 %v2392_v35, %v9539_v0 }
 0x251   :  { %v2409_v13 = vadd.f32 %v2393_v9, %v9539_v0  ;;  %v2410_v24 = vadd.f32 %v2394_v46, %v9539_v0  ;;  %v2411_v36 = vadd.f32 %v2395_v42, %v9539_v0  ;;  %v2412_v39 = vadd.f32 %v2396_v55, %v9539_v0  ;;  %v11388_v55 = vld [vmem:[#allocation26_spill] sm:$0xff] }
 0x252   :  { %v2413_v19 = vadd.f32 %v2397_v15, %v9539_v0  ;;  %v2414_v51 = vmax.f32 %v2302_v53, %v2398_v27  ;;  %v2415_v14 = vmax.f32 %v2303_v16, %v2399_v17  ;;  %v2416_v40 = vmax.f32 %v2304_v41, %v2400_v22 }
 0x253   :  { %v2417_v5 = vmax.f32 %v2305_v21, %v2401_v2  ;;  %v2418_v45 = vmax.f32 %v2306_v10, %v2402_v25  ;;  %v2419_v4 = vmax.f32 %v2307_v28, %v2403_v1  ;;  %v2420_v31 = vmax.f32 %v2308_v30, %v2404_v34  ;;  %v11378_v30 = vld [vmem:[#allocation14_spill] sm:$0xff] }
 0x254   :  { %v2421_v20 = vmax.f32 %v2309_v12, %v2405_v37  ;;  %v2422_v57 = vmax.f32 %v2310_v43, %v2406_v44  ;;  %v2423_v35 = vmax.f32 %v2311_v11, %v2407_v38  ;;  %2430 = vst [vmem:[#allocation3 + $0x1f] sm:$0xff] %v2414_v51  ;;  %2431 = vst [vmem:[#allocation3 + $0x27] sm:$0xff] %v2415_v14  ;;  %v11374_v41 = vmax.f32 %v9334_v47, 0.0  ;;  %v11380_v43 = vld [vmem:[#allocation16_spill] sm:$0xff] }
 0x255   :  { %v2424_v9 = vmax.f32 %v2312_v58, %v2408_v62  ;;  %v2425_v46 = vmax.f32 %v2313_v63, %v2409_v13  ;;  %v2426_v48 = vmax.f32 %v2314_v60, %v2410_v24  ;;  %v2427_v42 = vmax.f32 %v2315_v56, %v2411_v36  ;;  %2432 = vst [vmem:[#allocation3 + $0x2f] sm:$0xff] %v2416_v40 }
 0x256   :  { %2433 = vst [vmem:[#allocation3 + $0x37] sm:$0xff] %v2417_v5  ;;  %2434 = vst [vmem:[#allocation3 + $0x3f] sm:$0xff] %v2418_v45  ;;  %v2428_v53 = vmax.f32 %v9574_v49, %v2412_v39  ;;  %v2429_v16 = vmax.f32 %v9577_v54, %v2413_v19  ;;  %v2510_v21 = vmul.f32 %v11374_v41, %v9484_v61  ;;  %v11375_v10 = vmax.f32 %v9340_v50, 0.0 }
 0x257   :  { %2435 = vst [vmem:[#allocation3 + $0x47] sm:$0xff] %v2419_v4  ;;  %2436 = vst [vmem:[#allocation3 + $0x4f] sm:$0xff] %v2420_v31  ;;  %v11376_v45 = vmax.f32 %v9364_v23, 0.0  ;;  %v11377_v31 = vmax.f32 %v9370_v18, 0.0  ;;  %v11379_v47 = vmax.f32 %v11378_v30, 0.0  ;;  %v11381_v50 = vmax.f32 %v11380_v43, 0.0 }
 0x258   :  { %2437 = vst [vmem:[#allocation3 + $0x57] sm:$0xff] %v2421_v20  ;;  %2438 = vst [vmem:[#allocation3 + $0x5f] sm:$0xff] %v2422_v57  ;;  %v2511_v28 = vmul.f32 %v11375_v10, %v9484_v61  ;;  %v11384_v23 = vld [vmem:[#allocation21_spill] sm:$0xff]  ;;  %v11386_v18 = vld [vmem:[#allocation23_spill] sm:$0xff]  ;;  %v11389_v15 = vmax.f32 %v11388_v55, 0.0  ;;  %v11390_v17 = vmax.f32 %v9430_v29, 0.0  ;;  %v2526_v24 = vadd.f32 %v2510_v21, %v9539_v0 }
 0x259   :  { %2439 = vst [vmem:[#allocation3 + $0x67] sm:$0xff] %v2423_v35  ;;  %2440 = vst [vmem:[#allocation3 + $0x6f] sm:$0xff] %v2424_v9  ;;  %v2512_v40 = vmul.f32 %v11376_v45, %v9484_v61  ;;  %v2513_v57 = vmul.f32 %v11377_v31, %v9484_v61  ;;  %v2514_v12 = vmul.f32 %v11379_v47, %v9484_v61  ;;  %v11385_v60 = vmax.f32 %v11384_v23, 0.0  ;;  %v11400_v10 = vld [vmem:[#allocation12_spill] sm:$0xff]  ;;  %v11404_v30 = vld [vmem:[#allocation15_spill] sm:$0xff] }
 0x25a   :  { %2441 = vst [vmem:[#allocation3 + $0x77] sm:$0xff] %v2425_v46  ;;  %2442 = vst [vmem:[#allocation3 + $0x7f] sm:$0xff] %v2426_v48  ;;  %v2515_v11 = vmul.f32 %v11381_v50, %v9484_v61  ;;  %v11382_v48 = vld [vmem:[#allocation19_spill] sm:$0xff]  ;;  %v11387_v49 = vmax.f32 %v11386_v18, 0.0  ;;  %v2519_v27 = vmul.f32 %v11389_v15, %v9484_v61  ;;  %v2520_v22 = vmul.f32 %v11390_v17, %v9484_v61  ;;  %v11396_v46 = vld [vmem:[#allocation10_spill] sm:$0xff] }
 0x25b   :  { %2443 = vst [vmem:[#allocation3 + $0x87] sm:$0xff] %v2427_v42  ;;  %2444 = vst [vmem:[#allocation3 + $0x8f] sm:$0xff] %v2428_v53  ;;  %v11383_v58 = vmax.f32 %v11382_v48, 0.0  ;;  %v2517_v56 = vmul.f32 %v11385_v60, %v9484_v61  ;;  %v11391_v2 = vmax.f32 %v9436_v3, 0.0  ;;  %v11392_v1 = vmax.f32 %v9442_v33, 0.0  ;;  %v11406_v43 = vld [vmem:[#allocation18_spill] sm:$0xff] }
 0x25c   :  { %2445 = vst [vmem:[#allocation3 + $0x97] sm:$0xff] %v2429_v16  ;;  %v2518_v54 = vmul.f32 %v11387_v49, %v9484_v61  ;;  %v11393_v37 = vmax.f32 %v9453_v8, 0.0  ;;  %v11394_v38 = vmax.f32 %v9459_v26, 0.0  ;;  %v11395_v29 = vmax.f32 %v9465_v32, 0.0  ;;  %v11398_v16 = vld [vmem:[#allocation11_spill] sm:$0xff]  ;;  %v11408_v48 = vld [vmem:[#allocation20_spill] sm:$0xff] }
 0x25d   :  { %v2516_v63 = vmul.f32 %v11383_v58, %v9484_v61  ;;  %v2521_v25 = vmul.f32 %v11391_v2, %v9484_v61  ;;  %v2522_v34 = vmul.f32 %v11392_v1, %v9484_v61  ;;  %v2527_v3 = vadd.f32 %v2511_v28, %v9539_v0  ;;  %v11410_v23 = vld [vmem:[#allocation22_spill] sm:$0xff]  ;;  %v11412_v18 = vld [vmem:[#allocation25_spill] sm:$0xff] }
 0x25e   :  { %v2523_v44 = vmul.f32 %v11393_v37, %v9484_v61  ;;  %v2524_v62 = vmul.f32 %v11394_v38, %v9484_v61  ;;  %v2525_v13 = vmul.f32 %v11395_v29, %v9484_v61  ;;  %v2528_v36 = vadd.f32 %v2512_v40, %v9539_v0  ;;  %v11402_v40 = vld [vmem:[#allocation13_spill] sm:$0xff]  ;;  %v11420_v38 = vld [vmem:[#allocation28_spill] sm:$0xff] }
 0x25f   :  { %v2529_v33 = vadd.f32 %v2513_v57, %v9539_v0  ;;  %v2530_v39 = vadd.f32 %v2514_v12, %v9539_v0  ;;  %v2531_v8 = vadd.f32 %v2515_v11, %v9539_v0  ;;  %v9682_v19 = vadd.f32 %v2516_v63, %v9539_v0  ;;  %v11422_v29 = vld [vmem:[#allocation29_spill] sm:$0xff] }
 0x260   :  { %v9685_v26 = vadd.f32 %v2517_v56, %v9539_v0  ;;  %v9688_v32 = vadd.f32 %v2518_v54, %v9539_v0  ;;  %v9691_v51 = vadd.f32 %v2519_v27, %v9539_v0  ;;  %v9694_v14 = vadd.f32 %v2520_v22, %v9539_v0 }
 0x261   :  { %v9697_v5 = vadd.f32 %v2521_v25, %v9539_v0  ;;  %v9700_v4 = vadd.f32 %v2522_v34, %v9539_v0  ;;  %v9703_v20 = vadd.f32 %v2523_v44, %v9539_v0  ;;  %v9706_v35 = vadd.f32 %v2524_v62, %v9539_v0  ;;  %v11418_v34 = vld [vmem:[#allocation27_spill] sm:$0xff] }
 0x262   :  { %v9709_v9 = vadd.f32 %v2525_v13, %v9539_v0  ;;  %v11397_v42 = vmax.f32 %v11396_v46, 0.0  ;;  %v11399_v41 = vmax.f32 %v11398_v16, 0.0  ;;  %v11401_v28 = vmax.f32 %v11400_v10, 0.0 }
 0x263   :  { %v11403_v31 = vmax.f32 %v11402_v40, 0.0  ;;  %v11405_v47 = vmax.f32 %v11404_v30, 0.0  ;;  %v11407_v50 = vmax.f32 %v11406_v43, 0.0  ;;  %v11409_v58 = vmax.f32 %v11408_v48, 0.0 }
 0x264   :  { %v2606_v53 = vmul.f32 %v11397_v42, %v9484_v61  ;;  %v2607_v21 = vmul.f32 %v11399_v41, %v9484_v61  ;;  %v2608_v45 = vmul.f32 %v11401_v28, %v9484_v61  ;;  %v11411_v60 = vmax.f32 %v11410_v23, 0.0 }
 0x265   :  { %v2609_v57 = vmul.f32 %v11403_v31, %v9484_v61  ;;  %v2610_v12 = vmul.f32 %v11405_v47, %v9484_v61  ;;  %v2611_v11 = vmul.f32 %v11407_v50, %v9484_v61  ;;  %v2612_v63 = vmul.f32 %v11409_v58, %v9484_v61 }
 0x266   :  { %v2613_v56 = vmul.f32 %v11411_v60, %v9484_v61  ;;  %v11413_v49 = vmax.f32 %v11412_v18, 0.0  ;;  %v11414_v55 = vmax.f32 %v9427_v59, 0.0  ;;  %v11415_v27 = vmax.f32 %v9433_v7, 0.0 }
 0x267   :  { %v11416_v22 = vmax.f32 %v9439_v52, 0.0  ;;  %v11417_v25 = vmax.f32 %v9445_v6, 0.0  ;;  %v11419_v37 = vmax.f32 %v11418_v34, 0.0  ;;  %v11421_v59 = vmax.f32 %v11420_v38, 0.0 }
 0x268   :  { %v2614_v54 = vmul.f32 %v11413_v49, %v9484_v61  ;;  %v2615_v15 = vmul.f32 %v11414_v55, %v9484_v61  ;;  %v2616_v17 = vmul.f32 %v11415_v27, %v9484_v61  ;;  %v11423_v7 = vmax.f32 %v11422_v29, 0.0 }
 0x269   :  { %v2617_v2 = vmul.f32 %v11416_v22, %v9484_v61  ;;  %v2618_v1 = vmul.f32 %v11417_v25, %v9484_v61  ;;  %v2619_v44 = vmul.f32 %v11419_v37, %v9484_v61  ;;  %v2620_v62 = vmul.f32 %v11421_v59, %v9484_v61 }
 0x26a   :  { %v2621_v13 = vmul.f32 %v11423_v7, %v9484_v61  ;;  %v2622_v46 = vadd.f32 %v2606_v53, %v9539_v0  ;;  %v2623_v52 = vadd.f32 %v2607_v21, %v9539_v0  ;;  %v2624_v42 = vadd.f32 %v2608_v45, %v9539_v0 }
 0x26b   :  { %v2625_v6 = vadd.f32 %v2609_v57, %v9539_v0  ;;  %v2626_v16 = vadd.f32 %v2610_v12, %v9539_v0  ;;  %v2627_v41 = vadd.f32 %v2611_v11, %v9539_v0  ;;  %v2628_v10 = vadd.f32 %v2612_v63, %v9539_v0 }
 0x26c   :  { %v2629_v28 = vadd.f32 %v2613_v56, %v9539_v0  ;;  %v2630_v40 = vadd.f32 %v2614_v54, %v9539_v0  ;;  %v2631_v61 = vadd.f32 %v2615_v15, %v9539_v0  ;;  %v2632_v53 = vadd.f32 %v2616_v17, %v9539_v0 }
 0x26d   :  { %v2633_v21 = vadd.f32 %v2617_v2, %v9539_v0  ;;  %v2634_v45 = vadd.f32 %v2618_v1, %v9539_v0  ;;  %v2635_v31 = vadd.f32 %v2619_v44, %v9539_v0  ;;  %v2636_v57 = vadd.f32 %v2620_v62, %v9539_v0 }
 0x26e   :  { %v2637_v30 = vadd.f32 %v2621_v13, %v9539_v0  ;;  %v2638_v47 = vmax.f32 %v2526_v24, %v2622_v46  ;;  %v2639_v12 = vmax.f32 %v2527_v3, %v2623_v52  ;;  %v2640_v43 = vmax.f32 %v2528_v36, %v2624_v42 }
 0x26f   :  { %v2641_v50 = vmax.f32 %v2529_v33, %v2625_v6  ;;  %v2642_v11 = vmax.f32 %v2530_v39, %v2626_v16  ;;  %v2643_v48 = vmax.f32 %v2531_v8, %v2627_v41  ;;  %v2644_v58 = vmax.f32 %v9682_v19, %v2628_v10 }
 0x270   :  { %v2645_v63 = vmax.f32 %v9685_v26, %v2629_v28  ;;  %v2646_v23 = vmax.f32 %v9688_v32, %v2630_v40  ;;  %v2647_v60 = vmax.f32 %v9691_v51, %v2631_v61  ;;  %2654 = vst [vmem:[#allocation3 + $0xdf] sm:$0xff] %v2638_v47  ;;  %2655 = vst [vmem:[#allocation3 + $0xe7] sm:$0xff] %v2639_v12  ;;  %v9785_v39 = vmov 0.0  }
 0x271   :  { %v2648_v56 = vmax.f32 %v9694_v14, %v2632_v53  ;;  %v2649_v0 = vmax.f32 %v9697_v5, %v2633_v21  ;;  %v2650_v24 = vmax.f32 %v9700_v4, %v2634_v45  ;;  %v2651_v3 = vmax.f32 %v9703_v20, %v2635_v31  ;;  %2656 = vst [vmem:[#allocation3 + $0xef] sm:$0xff] %v2640_v43 }
 0x272   :  { %2657 = vst [vmem:[#allocation3 + $0xf7] sm:$0xff] %v2641_v50  ;;  %2658 = vst [vmem:[#allocation3 + $0xff] sm:$0xff] %v2642_v11  ;;  %v2652_v36 = vmax.f32 %v9706_v35, %v2636_v57  ;;  %v2653_v33 = vmax.f32 %v9709_v9, %v2637_v30  ;;  %v9787_v8 = vmov 0.0   ;;  %v9789_v19 = vmov 0.0  }
 0x273   :  { %2659 = vst [vmem:[#allocation3 + $0x107] sm:$0xff] %v2643_v48  ;;  %2660 = vst [vmem:[#allocation3 + $0x10f] sm:$0xff] %v2644_v58  ;;  %v9791_v26 = vmov 0.0   ;;  %v9793_v32 = vmov 0.0   ;;  %v9795_v51 = vmov 0.0   ;;  %v9797_v14 = vmov 0.0  }
 0x274   :  { %2661 = vst [vmem:[#allocation3 + $0x117] sm:$0xff] %v2645_v63  ;;  %2662 = vst [vmem:[#allocation3 + $0x11f] sm:$0xff] %v2646_v23  ;;  %v9799_v5 = vmov 0.0   ;;  %v9801_v4 = vmov 0.0   ;;  %v9803_v20 = vmov 0.0   ;;  %v9805_v35 = vmov 0.0  }
 0x275   :  { %2663 = vst [vmem:[#allocation3 + $0x127] sm:$0xff] %v2647_v60  ;;  %2664 = vst [vmem:[#allocation3 + $0x12f] sm:$0xff] %v2648_v56  ;;  %v9807_v9 = vmov 0.0   ;;  %v9809_v18 = vmov 0.0   ;;  %v9811_v49 = vmov 0.0   ;;  %v9813_v54 = vmov 0.0  }
 0x276   :  { %2665 = vst [vmem:[#allocation3 + $0x137] sm:$0xff] %v2649_v0  ;;  %2666 = vst [vmem:[#allocation3 + $0x13f] sm:$0xff] %v2650_v24  ;;  %v9815_v55 = vmov 0.0  }
 0x277   :  { %2667 = vst [vmem:[#allocation3 + $0x147] sm:$0xff] %v2651_v3  ;;  %2668 = vst [vmem:[#allocation3 + $0x14f] sm:$0xff] %v2652_v36 }
 0x278   :  { %2669 = vst [vmem:[#allocation3 + $0x157] sm:$0xff] %v2653_v33 }
 0x279 LB: > { %s6408_s1 = sshll.u32 %s8230_s2, 7  ;;  %s6250_s22 = sshll.u32 %s8230_s2, 1  ;;  %s8230_s2 = sphi %s9817_s2, %s2678_s2   ;;  %v8226_v55 = vphi %v9815_v55, %v11450_v55   ;;  %v8222_v54 = vphi %v9813_v54, %v11449_v54   ;;  %v8218_v49 = vphi %v9811_v49, %v11448_v49   ;;  %v8214_v18 = vphi %v9809_v18, %v11447_v18   ;;  %v8210_v9 = vphi %v9807_v9, %v11446_v9   ;;  %v8206_v35 = vphi %v9805_v35, %v11445_v35   ;;  %v8202_v20 = vphi %v9803_v20, %v11444_v20   ;;  %v8198_v4 = vphi %v9801_v4, %v11443_v4   ;;  %v8194_v5 = vphi %v9799_v5, %v11442_v5   ;;  %v8190_v14 = vphi %v9797_v14, %v11441_v14   ;;  %v8186_v51 = vphi %v9795_v51, %v11440_v51   ;;  %v8182_v32 = vphi %v9793_v32, %v11439_v32   ;;  %v8178_v26 = vphi %v9791_v26, %v11438_v26   ;;  %v8174_v19 = vphi %v9789_v19, %v11437_v19   ;;  %v8170_v8 = vphi %v9787_v8, %v11436_v8   ;;  %v8166_v39 = vphi %v9785_v39, %v11435_v39  }
 0x27a   : > { %s9874_s21 = scalar_lea.vmem %s11272_s3, %s6408_s1  ;;  %s9888_s23 = scalar_lea.vmem [#allocation3], %s6250_s22 }
 0x27b   : > { %v7788_v15 = vld [vmem:[%s9874_s21 + $0x40] sm:$0xff]   ;;  %v7790_v17 = vld [vmem:[%s9874_s21 + $0x48] sm:$0xff]   ;;  %v7792_v2 = vld [vmem:[%s9874_s21 + $0x50] sm:$0xff]   ;;  %s2678_s2 = sadd.s32 1, %s8230_s2  }
 0x27c   : > { %v7789_v27 = vld [vmem:[%s9874_s21] sm:$0xff]   ;;  %6418 = vmatprep.subr.bf16.mxu0 %v7788_v15  ;;  %6920 = vmatprep.subr.bf16.mxu1 %v7788_v15  ;;  %v7791_v22 = vld [vmem:[%s9874_s21 + $0x8] sm:$0xff]   ;;  %v7793_v25 = vld [vmem:[%s9874_s21 + $0x10] sm:$0xff]   ;;  %p9964_p0 = scmp.ge.s32.totalorder %s2678_s2, 32  }
 0x27d   : > { %6419 = vmatpush3.bf16.msra.mxu0 %v7789_v27  ;;  %6928 = vmatpush3.bf16.msra.mxu1 %v7789_v27  ;;  %v7794_v1 = vld [vmem:[%s9874_s21 + $0x58] sm:$0xff]   ;;  %v7796_v37 = vld [vmem:[%s9874_s21 + $0x60] sm:$0xff]   ;;  %v7798_v38 = vld [vmem:[%s9874_s21 + $0x68] sm:$0xff]   ;;  %vm3027_vm0 = vcmask (%p9964_p0), 130048   ;;  %s10124_s24 = smov (%p9964_p0), 0  }
 0x27e   : > { %6420 = vmatprep.subr.bf16.mxu0 %v7790_v17  ;;  %6921 = vmatprep.subr.bf16.mxu1 %v7790_v17  ;;  %v7795_v34 = vld [vmem:[%s9874_s21 + $0x18] sm:$0xff]   ;;  %v7797_v44 = vld [vmem:[%s9874_s21 + $0x20] sm:$0xff]   ;;  %v7799_v52 = vld [vmem:[%s9874_s21 + $0x28] sm:$0xff]  }
 0x27f   : > { %v6252_v59 = vld [vmem:[%s9888_s23 + $0x1] sm:$0xff]  ;;  %v6253_v62 = vld [vmem:[%s9888_s23 + $0x9] sm:$0xff]  ;;  %v7802_v16 = vld [vmem:[%s9874_s21 + $0x78] sm:$0xff]  }
 0x280   : > { %v6260_v29 = vld [vmem:[%s9888_s23 + $0x41] sm:$0xff]  ;;  %v2732_v7 = vpack.c.bf16 %v6253_v62, %v6252_v59  ;;  %v6261_v13 = vld [vmem:[%s9888_s23 + $0x49] sm:$0xff]  ;;  %v7803_v41 = vld [vmem:[%s9874_s21 + $0x38] sm:$0xff]  }
 0x281   : > { %6421 = vmatpush3.bf16.msra.mxu0 %v7791_v22  ;;  %6929 = vmatpush3.bf16.msra.mxu1 %v7791_v22  ;;  %v2740_v46 = vpack.c.bf16 %v6261_v13, %v6260_v29  ;;  %v7800_v42 = vld [vmem:[%s9874_s21 + $0x70] sm:$0xff]   ;;  %v2697_v10 = vld [vmem:[%s9888_s23] sm:$0xff]  ;;  %v2698_v28 = vld [vmem:[%s9888_s23 + $0x8] sm:$0xff] }
 0x282   : > { %6422 = vmatprep.subr.bf16.mxu0 %v7792_v2  ;;  %6922 = vmatprep.subr.bf16.mxu1 %v7792_v2  ;;  %v7801_v6 = vld [vmem:[%s9874_s21 + $0x30] sm:$0xff]   ;;  %v2705_v40 = vld [vmem:[%s9888_s23 + $0x40] sm:$0xff]  ;;  %v2706_v61 = vld [vmem:[%s9888_s23 + $0x48] sm:$0xff]  ;;  %v2731_v57 = vpack.c.bf16 %v2698_v28, %v2697_v10 }
 0x283   : > { %2910 = vmatprep.mubr.bf16.mxu0 %v2732_v7  ;;  %2942 = vmatprep.mubr.bf16.mxu1 %v2740_v46  ;;  %v6254_v53 = vld [vmem:[%s9888_s23 + $0x11] sm:$0xff]  ;;  %v6255_v21 = vld [vmem:[%s9888_s23 + $0x19] sm:$0xff]  ;;  %v2739_v30 = vpack.c.bf16 %v2706_v61, %v2705_v40  ;;  %v6256_v58 = vld [vmem:[%s9888_s23 + $0x21] sm:$0xff] }
 0x284   : > { %v6262_v45 = vld [vmem:[%s9888_s23 + $0x51] sm:$0xff]  ;;  %v6263_v31 = vld [vmem:[%s9888_s23 + $0x59] sm:$0xff]  ;;  %v2734_v47 = vpack.c.bf16 %v6255_v21, %v6254_v53  ;;  %v6257_v63 = vld [vmem:[%s9888_s23 + $0x29] sm:$0xff] }
 0x285   : > { %6423 = vmatpush3.bf16.msra.mxu0 %v7793_v25  ;;  %6930 = vmatpush3.bf16.msra.mxu1 %v7793_v25  ;;  %v2742_v12 = vpack.c.bf16 %v6263_v31, %v6262_v45  ;;  %v2699_v43 = vld [vmem:[%s9888_s23 + $0x10] sm:$0xff]  ;;  %v2700_v50 = vld [vmem:[%s9888_s23 + $0x18] sm:$0xff]  ;;  %v6264_v23 = vld [vmem:[%s9888_s23 + $0x61] sm:$0xff]  ;;  %v2736_v24 = vpack.c.bf16 %v6257_v63, %v6256_v58 }
 0x286   : > { %6424 = vmatprep.subr.bf16.mxu0 %v7794_v1  ;;  %6923 = vmatprep.subr.bf16.mxu1 %v7794_v1  ;;  %v2707_v11 = vld [vmem:[%s9888_s23 + $0x50] sm:$0xff]  ;;  %v2708_v48 = vld [vmem:[%s9888_s23 + $0x58] sm:$0xff]  ;;  %v2733_v56 = vpack.c.bf16 %v2700_v50, %v2699_v43  ;;  %v2701_v36 = vld [vmem:[%s9888_s23 + $0x20] sm:$0xff] }
 0x287   : > { %v6265_v60 = vld [vmem:[%s9888_s23 + $0x69] sm:$0xff]  ;;  %v2741_v0 = vpack.c.bf16 %v2708_v48, %v2707_v11  ;;  %v2709_v15 = vld [vmem:[%s9888_s23 + $0x60] sm:$0xff]  ;;  %v6258_v17 = vld [vmem:[%s9888_s23 + $0x31] sm:$0xff] }
 0x288   : > { %v2744_v3 = vpack.c.bf16 %v6265_v60, %v6264_v23  ;;  %v2702_v33 = vld [vmem:[%s9888_s23 + $0x28] sm:$0xff]  ;;  %v6259_v22 = vld [vmem:[%s9888_s23 + $0x39] sm:$0xff]  ;;  %v6266_v2 = vld [vmem:[%s9888_s23 + $0x71] sm:$0xff] }
 0x289   : > { %6425 = vmatpush3.bf16.msra.mxu0 %v7795_v34  ;;  %6931 = vmatpush3.bf16.msra.mxu1 %v7795_v34  ;;  %v2710_v27 = vld [vmem:[%s9888_s23 + $0x68] sm:$0xff]  ;;  %v6267_v25 = vld [vmem:[%s9888_s23 + $0x79] sm:$0xff]  ;;  %v2735_v1 = vpack.c.bf16 %v2702_v33, %v2701_v36  ;;  %v2711_v62 = vld [vmem:[%s9888_s23 + $0x70] sm:$0xff] }
 0x28a   : > { %6426 = vmatprep.subr.bf16.mxu0 %v7796_v37  ;;  %6924 = vmatprep.subr.bf16.mxu1 %v7796_v37  ;;  %v2743_v34 = vpack.c.bf16 %v2710_v27, %v2709_v15  ;;  %v2738_v37 = vpack.c.bf16 %v6259_v22, %v6258_v17  ;;  %v2704_v59 = vld [vmem:[%s9888_s23 + $0x38] sm:$0xff] }
 0x28b   : > { %v2712_v29 = vld [vmem:[%s9888_s23 + $0x78] sm:$0xff] }
 0x28c   : > { %v2745_v13 = vpack.c.bf16 %v2712_v29, %v2711_v62 }
 0x28d   : > { %6427 = vmatpush3.bf16.msra.mxu0 %v7797_v44  ;;  %6932 = vmatpush3.bf16.msra.mxu1 %v7797_v44  ;;  %v2746_v44 = vpack.c.bf16 %v6267_v25, %v6266_v2 }
 0x28e   : > { %6428 = vmatprep.subr.bf16.mxu0 %v7798_v38  ;;  %6925 = vmatprep.subr.bf16.mxu1 %v7798_v38  ;;  %v2703_v38 = vld [vmem:[%s9888_s23 + $0x30] sm:$0xff] }
 0x28f   : > { %v2737_v7 = vpack.c.bf16 %v2704_v59, %v2703_v38 }
 0x291   : > { %6429 = vmatpush3.bf16.msra.mxu0 %v7799_v52  ;;  %6933 = vmatpush3.bf16.msra.mxu1 %v7799_v52 }
 0x292   : > { %6430 = vmatprep.subr.bf16.mxu0 %v7800_v42  ;;  %6926 = vmatprep.subr.bf16.mxu1 %v7800_v42 }
 0x295   : > { %6431 = vmatpush3.bf16.msra.mxu0 %v7801_v6  ;;  %6934 = vmatpush3.bf16.msra.mxu1 %v7801_v6 }
 0x296   : > { %6432 = vmatprep.subr.bf16.mxu0 %v7802_v16  ;;  %6927 = vmatprep.subr.bf16.mxu1 %v7802_v16 }
 0x299   : > { %6433 = vmatpush3.bf16.msra.mxu0 %v7803_v41  ;;  %6935 = vmatpush3.bf16.msra.mxu1 %v7803_v41 }
 0x29c   : > { %2911 = vmatmul.mubr.bf16.vlgmr.msra.gmra.mrb[0].mxu0 %v2731_v57  ;;  %2943 = vmatmul.mubr.bf16.vlgmr.msra.gmra.mrb[0].mxu1 %v2739_v30 }
 0x29d   : > { %2918 = vmatprep.mubr.bf16.mxu0 %v2734_v47  ;;  %2950 = vmatprep.mubr.bf16.mxu1 %v2742_v12 }
 0x2a4   : > { %2919 = vmatmul.mubr.bf16.gmra.mrb[4].mxu0 %v2733_v56  ;;  %2951 = vmatmul.mubr.bf16.gmra.mrb[4].mxu1 %v2741_v0 }
 0x2a5   : > { %2926 = vmatprep.mubr.bf16.mxu0 %v2736_v24  ;;  %2958 = vmatprep.mubr.bf16.mxu1 %v2744_v3 }
 0x2ac   : > { %2927 = vmatmul.mubr.bf16.gmra.mrb[8].mxu0 %v2735_v1  ;;  %2959 = vmatmul.mubr.bf16.gmra.mrb[8].mxu1 %v2743_v34 }
 0x2ad   : > { %2934 = vmatprep.mubr.bf16.mxu0 %v2738_v37  ;;  %2966 = vmatprep.mubr.bf16.mxu1 %v2746_v44 }
 0x2b4   : > { %2935 = vmatmul.mubr.bf16.gmra.mrb[12].mxu0 %v2737_v7  ;;  %2967 = vmatmul.mubr.bf16.gmra.mrb[12].mxu1 %v2745_v13 }
 0x36f   : > { %v6434_v46 = vpop.f32.mrb[0].mxu0  ;;  %v6458_v52 = vpop.f32.mrb[0].mxu1 }
 0x370   : > { %v6435_v42 = vpop.f32.mrb[1].mxu0  ;;  %v6459_v6 = vpop.f32.mrb[1].mxu1 }
 0x371   : > { %v6436_v16 = vadd.f32 %v6435_v42, %v6434_v46  ;;  %v6460_v41 = vadd.f32 %v6459_v6, %v6458_v52  ;;  %v6437_v10 = vpop.f32.mrb[2].mxu0  ;;  %v6461_v28 = vpop.f32.mrb[2].mxu1 }
 0x372   : > { %v6438_v40 = vpop.f32.mrb[3].mxu0  ;;  %v6462_v61 = vpop.f32.mrb[3].mxu1 }
 0x373   : > { %v9928_v55 = vadd.f32 %v8226_v55, %v6436_v16   ;;  %v9931_v5 = vadd.f32 %v8194_v5, %v6460_v41   ;;  %v6439_v45 = vadd.f32 %v6438_v40, %v6437_v10  ;;  %v6463_v31 = vadd.f32 %v6462_v61, %v6461_v28  ;;  %v11451_v41 = vld [vmem:[#allocation7_spill] sm:$0xff] (%p9964_p0) }
 0x375   : > { %v11424_v53 = vmov %v9928_v55  ;;  %v11425_v21 = vmov %v9931_v5  ;;  %v9934_v54 = vadd.f32 %v8222_v54, %v6439_v45   ;;  %v9937_v14 = vadd.f32 %v8190_v14, %v6463_v31  }
 0x376   :  { %v2995_v10 = vadd.f32 (%p9964_p0), %v11451_v41, %v11424_v53 }
 0x377   : > { %v11426_v57 = vmov %v9934_v54  ;;  %v11427_v30 = vmov %v9937_v14  ;;  %v6440_v47 = vpop.f32.mrb[4].mxu0  ;;  %v6464_v12 = vpop.f32.mrb[4].mxu1 }
 0x378   : > { %v6441_v43 = vpop.f32.mrb[5].mxu0  ;;  %v6465_v50 = vpop.f32.mrb[5].mxu1  ;;  %v2996_v28 = vadd.f32 (%p9964_p0), %v11451_v41, %v11426_v57 }
 0x379   : > { %v6442_v11 = vadd.f32 %v6441_v43, %v6440_v47  ;;  %v6466_v48 = vadd.f32 %v6465_v50, %v6464_v12  ;;  %v6443_v58 = vpop.f32.mrb[6].mxu0  ;;  %v6467_v63 = vpop.f32.mrb[6].mxu1  ;;  %v3011_v12 = vmax.f32 (%p9964_p0), %v2995_v10, 0.0 }
 0x37a   : > { %v6444_v55 = vpop.f32.mrb[7].mxu0  ;;  %v6468_v23 = vpop.f32.mrb[7].mxu1  ;;  %v3012_v43 = vmax.f32 (%p9964_p0), %v2996_v28, 0.0 }
 0x37b   : > { %v2977_v60 = vadd.f32 %v8218_v49, %v6442_v11   ;;  %v9941_v51 = vadd.f32 %v8186_v51, %v6466_v48   ;;  %v6445_v5 = vadd.f32 %v6444_v55, %v6443_v58  ;;  %v6469_v54 = vadd.f32 %v6468_v23, %v6467_v63  ;;  %3120 = vst.msk [vmem:[#allocation2] sm:$0xff] (%p9964_p0), %vm3027_vm0, %v3011_v12 }
 0x37c   : > { %v11450_v55 = vmov %v11424_v53  ;;  %v3066_v53 = vmul.f32 (%p9964_p0), %v3011_v12, %v3011_v12  ;;  %v3067_v11 = vmul.f32 (%p9964_p0), %v3012_v43, %v3012_v43  ;;  %3121 = vst.msk [vmem:[#allocation2 + $0x8] sm:$0xff] (%p9964_p0), %vm3027_vm0, %v3012_v43 }
 0x37d   : > { %v11428_v56 = vmov %v9941_v51  ;;  %v2978_v0 = vadd.f32 %v8214_v18, %v6445_v5   ;;  %v9945_v32 = vadd.f32 %v8182_v32, %v6469_v54   ;;  %v11442_v5 = vmov %v11425_v21 }
 0x37e   : > { %v11449_v54 = vmov %v11426_v57  ;;  %v2997_v40 = vadd.f32 (%p9964_p0), %v11451_v41, %v2977_v60  ;;  %v3029_v57 = vsel (%p9964_p0), %vm3027_vm0, %v3012_v43, 0.0  ;;  %v3082_v23 = vsel (%p9964_p0), %vm3027_vm0, %v3066_v53, 0.0 }
 0x37f   : > { %v11429_v24 = vmov %v9945_v32  ;;  %v6446_v14 = vpop.f32.mrb[8].mxu0  ;;  %v6470_v3 = vpop.f32.mrb[8].mxu1  ;;  %v2998_v61 = vadd.f32 (%p9964_p0), %v11451_v41, %v2978_v0 }
 0x380   : > { %v6447_v36 = vpop.f32.mrb[9].mxu0  ;;  %v6471_v33 = vpop.f32.mrb[9].mxu1  ;;  %v3013_v50 = vmax.f32 (%p9964_p0), %v2997_v40, 0.0 }
 0x381   : > { %v6448_v15 = vadd.f32 %v6447_v36, %v6446_v14  ;;  %v6472_v27 = vadd.f32 %v6471_v33, %v6470_v3  ;;  %v6449_v17 = vpop.f32.mrb[10].mxu0  ;;  %v6473_v22 = vpop.f32.mrb[10].mxu1  ;;  %v11441_v14 = vmov %v11427_v30 }
 0x382   : > { %v6450_v2 = vpop.f32.mrb[11].mxu0  ;;  %v6474_v49 = vpop.f32.mrb[11].mxu1  ;;  %3122 = vst.msk [vmem:[#allocation2 + $0x10] sm:$0xff] (%p9964_p0), %vm3027_vm0, %v3013_v50  ;;  %v3031_v58 = vsel (%p9964_p0), %vm3027_vm0, %v3013_v50, 0.0  ;;  %v3068_v63 = vmul.f32 (%p9964_p0), %v3013_v50, %v3013_v50 }
 0x383   : > { %v2979_v25 = vadd.f32 %v8210_v9, %v6448_v15   ;;  %v9949_v26 = vadd.f32 %v8178_v26, %v6472_v27   ;;  %v6451_v51 = vadd.f32 %v6450_v2, %v6449_v17  ;;  %v6475_v18 = vadd.f32 %v6474_v49, %v6473_v22 }
 0x384   : > { %v11448_v49 = vmov %v2977_v60  ;;  %v3083_v60 = vsel (%p9964_p0), %vm3027_vm0, %v3067_v11, 0.0  ;;  %v3085_v3 = vsel (%p9964_p0), %vm3027_vm0, %v3068_v63, 0.0 }
 0x385   : > { %v11430_v1 = vmov %v9949_v26  ;;  %v2980_v34 = vadd.f32 %v8206_v35, %v6451_v51   ;;  %v9953_v19 = vadd.f32 %v8174_v19, %v6475_v18   ;;  %v11440_v51 = vmov %v11428_v56 }
 0x386   : > { %v11447_v18 = vmov %v2978_v0  ;;  %v2999_v45 = vadd.f32 (%p9964_p0), %v11451_v41, %v2979_v25  ;;  %v3084_v0 = vadd.f32 (%p9964_p0), %v3083_v60, %v3082_v23 }
 0x387   : > { %v11431_v37 = vmov %v9953_v19  ;;  %v6452_v32 = vpop.f32.mrb[12].mxu0  ;;  %v6476_v44 = vpop.f32.mrb[12].mxu1  ;;  %v3000_v31 = vadd.f32 (%p9964_p0), %v11451_v41, %v2980_v34  ;;  %v3003_v18 = vadd.f32 (%p9964_p0), %v11451_v41, %v11425_v21 }
 0x388   : > { %v6453_v38 = vpop.f32.mrb[13].mxu0  ;;  %v6477_v59 = vpop.f32.mrb[13].mxu1  ;;  %v11437_v19 = vmov %v11431_v37  ;;  %v3086_v17 = vadd.f32 (%p9964_p0), %v3085_v3, %v3084_v0 }
 0x389   : > { %v6454_v62 = vadd.f32 %v6453_v38, %v6452_v32  ;;  %v6478_v29 = vadd.f32 %v6477_v59, %v6476_v44  ;;  %v6455_v7 = vpop.f32.mrb[14].mxu0  ;;  %v6479_v13 = vpop.f32.mrb[14].mxu1  ;;  %v11439_v32 = vmov %v11429_v24  ;;  %v3016_v19 = vmax.f32 (%p9964_p0), %v3000_v31, 0.0 }
 0x38a   : > { %v6456_v46 = vpop.f32.mrb[15].mxu0  ;;  %v6480_v9 = vpop.f32.mrb[15].mxu1  ;;  %2677 = sbr.rel (!%p9964_p0) target bundleno = 633 (0x279), region = 239  ;;  %v3005_v59 = vadd.f32 (%p9964_p0), %v11451_v41, %v11428_v56 }
 0x38b   : > { %v2981_v52 = vadd.f32 %v8202_v20, %v6454_v62   ;;  %v9957_v8 = vadd.f32 %v8170_v8, %v6478_v29   ;;  %v6457_v26 = vadd.f32 %v6456_v46, %v6455_v7  ;;  %v6481_v35 = vadd.f32 %v6480_v9, %v6479_v13  ;;  %3125 = vst.msk [vmem:[#allocation2 + $0x28] sm:$0xff] (%p9964_p0), %vm3027_vm0, %v3016_v19 }
 0x38c   : > { %v11446_v9 = vmov %v2979_v25  ;;  %v3071_v27 = vmul.f32 (%p9964_p0), %v3016_v19, %v3016_v19  ;;  %v3037_v49 = vsel (%p9964_p0), %vm3027_vm0, %v3016_v19, 0.0  ;;  %v3019_v7 = vmax.f32 (%p9964_p0), %v3003_v18, 0.0 }
 0x38d   : > { %v11432_v42 = vmov %v9957_v8  ;;  %v2982_v6 = vadd.f32 %v8198_v4, %v6457_v26   ;;  %v9961_v39 = vadd.f32 %v8166_v39, %v6481_v35   ;;  %v11438_v26 = vmov %v11430_v1 }
 0x38e   : > { %v11436_v8 = vmov %v11432_v42  ;;  %v11444_v20 = vmov %v2981_v52  ;;  %v11445_v35 = vmov %v2980_v34  ;;  %v3001_v47 = vadd.f32 (%p9964_p0), %v11451_v41, %v2981_v52  ;;  %3128 = vst.msk [vmem:[#allocation2 + $0x40] sm:$0xff] (%p9964_p0), %vm3027_vm0, %v3019_v7 }
 0x38f   : > { %v11433_v16 = vmov %v9961_v39  ;;  %v11443_v4 = vmov %v2982_v6  ;;  %v3015_v8 = vmax.f32 (%p9964_p0), %v2999_v45, 0.0  ;;  %v3028_v20 = vsel (%p9964_p0), %vm3027_vm0, %v3011_v12, 0.0 }
 0x390   : > { %v11435_v39 = vmov %v11433_v16  ;;  %v3017_v4 = vmax.f32 (%p9964_p0), %v3001_v47, 0.0  ;;  %v3030_v48 = vadd.f32 (%p9964_p0), %v3029_v57, %v3028_v20  ;;  %v3002_v55 = vadd.f32 (%p9964_p0), %v11451_v41, %v2982_v6 }
 0x391   :  { %v3014_v39 = vmax.f32 %v2998_v61, 0.0  ;;  %3124 = vst.msk [vmem:[#allocation2 + $0x20] sm:$0xff] %vm3027_vm0, %v3015_v8  ;;  %v3070_v36 = vmul.f32 %v3015_v8, %v3015_v8  ;;  %v3035_v15 = vsel %vm3027_vm0, %v3015_v8, 0.0  ;;  %v3004_v34 = vadd.f32 %v11451_v41, %v11427_v30 }
 0x392   :  { %3126 = vst.msk [vmem:[#allocation2 + $0x30] sm:$0xff] %vm3027_vm0, %v3017_v4  ;;  %v3032_v14 = vadd.f32 %v3031_v58, %v3030_v48  ;;  %v3072_v25 = vmul.f32 %v3017_v4, %v3017_v4  ;;  %v3018_v51 = vmax.f32 %v3002_v55, 0.0  ;;  %v3039_v38 = vsel %vm3027_vm0, %v3017_v4, 0.0 }
 0x393   :  { %3123 = vst.msk [vmem:[#allocation2 + $0x18] sm:$0xff] %vm3027_vm0, %v3014_v39  ;;  %v3033_v5 = vsel %vm3027_vm0, %v3014_v39, 0.0  ;;  %v3069_v54 = vmul.f32 %v3014_v39, %v3014_v39  ;;  %v3089_v2 = vsel %vm3027_vm0, %v3070_v36, 0.0  ;;  %v3091_v62 = vsel %vm3027_vm0, %v3071_v27, 0.0 }
 0x394   :  { %v3034_v22 = vadd.f32 %v3033_v5, %v3032_v14  ;;  %v3073_v29 = vmul.f32 %v3018_v51, %v3018_v51  ;;  %3127 = vst.msk [vmem:[#allocation2 + $0x38] sm:$0xff] %vm3027_vm0, %v3018_v51  ;;  %v3020_v13 = vmax.f32 %v3004_v34, 0.0  ;;  %v3021_v21 = vmax.f32 %v3005_v59, 0.0 }
 0x395   :  { %v3087_v33 = vsel %vm3027_vm0, %v3069_v54, 0.0  ;;  %v3006_v30 = vadd.f32 %v11451_v41, %v11429_v24  ;;  %v3093_v52 = vsel %vm3027_vm0, %v3072_v25, 0.0  ;;  %v3041_v26 = vsel %vm3027_vm0, %v3018_v51, 0.0 }
 0x396   :  { %v3088_v32 = vadd.f32 %v3087_v33, %v3086_v17  ;;  %v3036_v44 = vadd.f32 %v3035_v15, %v3034_v22  ;;  %v3074_v35 = vmul.f32 %v3019_v7, %v3019_v7  ;;  %3129 = vst.msk [vmem:[#allocation2 + $0x48] sm:$0xff] %vm3027_vm0, %v3020_v13  ;;  %v3095_v10 = vsel %vm3027_vm0, %v3073_v29, 0.0  ;;  %3130 = vst.msk [vmem:[#allocation2 + $0x50] sm:$0xff] %vm3027_vm0, %v3021_v21 }
 0x397   :  { %v3043_v28 = vsel %vm3027_vm0, %v3019_v7, 0.0  ;;  %v3075_v40 = vmul.f32 %v3020_v13, %v3020_v13  ;;  %v3022_v61 = vmax.f32 %v3006_v30, 0.0  ;;  %v3007_v24 = vadd.f32 %v11451_v41, %v11430_v1 }
 0x398   :  { %v3090_v46 = vadd.f32 %v3089_v2, %v3088_v32  ;;  %v3038_v9 = vadd.f32 %v3037_v49, %v3036_v44  ;;  %v3076_v47 = vmul.f32 %v3021_v21, %v3021_v21  ;;  %v3008_v12 = vadd.f32 %v11451_v41, %v11431_v37 }
 0x399   :  { %v3097_v43 = vsel %vm3027_vm0, %v3074_v35, 0.0  ;;  %v3045_v50 = vsel %vm3027_vm0, %v3020_v13, 0.0  ;;  %3131 = vst.msk [vmem:[#allocation2 + $0x58] sm:$0xff] %vm3027_vm0, %v3022_v61  ;;  %v3023_v39 = vmax.f32 %v3007_v24, 0.0  ;;  %v3009_v20 = vadd.f32 %v11451_v41, %v11432_v42 }
 0x39a   :  { %v3092_v56 = vadd.f32 %v3091_v62, %v3090_v46  ;;  %v3040_v6 = vadd.f32 %v3039_v38, %v3038_v9  ;;  %v3024_v4 = vmax.f32 %v3008_v12, 0.0  ;;  %v3099_v1 = vsel %vm3027_vm0, %v3075_v40, 0.0 }
 0x39b   :  { %v3047_v53 = vsel %vm3027_vm0, %v3021_v21, 0.0  ;;  %v3077_v57 = vmul.f32 %v3022_v61, %v3022_v61  ;;  %3132 = vst.msk [vmem:[#allocation2 + $0x60] sm:$0xff] %vm3027_vm0, %v3023_v39  ;;  %v3010_v37 = vadd.f32 %v11451_v41, %v11433_v16  ;;  %v3101_v58 = vsel %vm3027_vm0, %v3076_v47, 0.0 }
 0x39c   :  { %v3094_v45 = vadd.f32 %v3093_v52, %v3092_v56  ;;  %v3042_v31 = vadd.f32 %v3041_v26, %v3040_v6  ;;  %3133 = vst.msk [vmem:[#allocation2 + $0x68] sm:$0xff] %vm3027_vm0, %v3024_v4  ;;  %v3049_v63 = vsel %vm3027_vm0, %v3022_v61, 0.0  ;;  %v3078_v55 = vmul.f32 %v3023_v39, %v3023_v39 }
 0x39d   :  { %v3025_v42 = vmax.f32 %v3009_v20, 0.0  ;;  %v3026_v23 = vmax.f32 %v3010_v37, 0.0  ;;  %v3103_v54 = vsel %vm3027_vm0, %v3077_v57, 0.0  ;;  %v3051_v0 = vsel %vm3027_vm0, %v3023_v39, 0.0 }
 0x39e   :  { %v3096_v8 = vadd.f32 %v3095_v10, %v3094_v45  ;;  %v3044_v19 = vadd.f32 %v3043_v28, %v3042_v31  ;;  %v3079_v14 = vmul.f32 %v3024_v4, %v3024_v4  ;;  %v3105_v3 = vsel %vm3027_vm0, %v3078_v55, 0.0 }
 0x39f   :  { %3134 = vst.msk [vmem:[#allocation2 + $0x70] sm:$0xff] %vm3027_vm0, %v3025_v42  ;;  %3135 = vst.msk [vmem:[#allocation2 + $0x78] sm:$0xff] %vm3027_vm0, %v3026_v23  ;;  %v3053_v36 = vsel %vm3027_vm0, %v3024_v4, 0.0  ;;  %v3080_v33 = vmul.f32 %v3025_v42, %v3025_v42  ;;  %v3055_v22 = vsel %vm3027_vm0, %v3025_v42, 0.0  ;;  %v3081_v2 = vmul.f32 %v3026_v23, %v3026_v23 }
 0x3a0   :  { %v3098_v11 = vadd.f32 %v3097_v43, %v3096_v8  ;;  %v3046_v48 = vadd.f32 %v3045_v50, %v3044_v19  ;;  %v3107_v17 = vsel %vm3027_vm0, %v3079_v14, 0.0  ;;  %v3057_v18 = vsel %vm3027_vm0, %v3026_v23, 0.0 }
 0x3a1   :  { %v3109_v51 = vsel %vm3027_vm0, %v3080_v33, 0.0  ;;  %v3111_v44 = vsel %vm3027_vm0, %v3081_v2, 0.0  ;;  %v10092_v10 = vmov 0.0   ;;  %v10094_v28 = vmov 0.0  }
 0x3a2   :  { %v3100_v60 = vadd.f32 %v3099_v1, %v3098_v11  ;;  %v3048_v5 = vadd.f32 %v3047_v53, %v3046_v48  ;;  %v10096_v40 = vmov 0.0   ;;  %v10098_v61 = vmov 0.0  }
 0x3a3   :  { %v10100_v24 = vmov 0.0   ;;  %v10102_v45 = vmov 0.0   ;;  %v10104_v31 = vmov 0.0   ;;  %v10106_v47 = vmov 0.0  }
 0x3a4   :  { %v3102_v16 = vadd.f32 %v3101_v58, %v3100_v60  ;;  %v3050_v41 = vadd.f32 %v3049_v63, %v3048_v5  ;;  %v10108_v12 = vmov 0.0   ;;  %v10110_v43 = vmov 0.0  }
 0x3a5   :  { %v10112_v50 = vmov 0.0   ;;  %v10114_v39 = vmov 0.0   ;;  %v10116_v8 = vmov 0.0   ;;  %v10118_v19 = vmov 0.0  }
 0x3a6   :  { %v3104_v15 = vadd.f32 %v3103_v54, %v3102_v16  ;;  %v3052_v27 = vadd.f32 %v3051_v0, %v3050_v41  ;;  %v10120_v4 = vmov 0.0   ;;  %v10122_v20 = vmov 0.0  }
 0x3a8   :  { %v3106_v49 = vadd.f32 %v3105_v3, %v3104_v15  ;;  %v3054_v25 = vadd.f32 %v3053_v36, %v3052_v27 }
 0x3aa   :  { %v3108_v34 = vadd.f32 %v3107_v17, %v3106_v49  ;;  %v3056_v32 = vadd.f32 %v3055_v22, %v3054_v25 }
 0x3ac   :  { %v3110_v38 = vadd.f32 %v3109_v51, %v3108_v34  ;;  %v3058_v59 = vadd.f32 %v3057_v18, %v3056_v32 }
 0x3ae   :  { %v3059_v62 = vrot.slane %v3058_v59, 4  ;;  %v3112_v29 = vadd.f32 %v3111_v44, %v3110_v38 }
 0x3b0   :  { %v3060_v7 = vadd.f32 %v3059_v62, %v3058_v59  ;;  %v3113_v13 = vrot.slane %v3112_v29, 4 }
 0x3b2   :  { %v3061_v46 = vrot.slane %v3060_v7, 2  ;;  %v3114_v9 = vadd.f32 %v3113_v13, %v3112_v29 }
 0x3b4   :  { %v3062_v21 = vadd.f32 %v3061_v46, %v3060_v7  ;;  %v3115_v30 = vrot.slane %v3114_v9, 2 }
 0x3b6   :  { %v3063_v52 = vrot.slane %v3062_v21, 1  ;;  %v3116_v26 = vadd.f32 %v3115_v30, %v3114_v9 }
 0x3b8   :  { %v10088_v35 = vadd.f32 %v3063_v52, %v3062_v21  ;;  %v3117_v56 = vrot.slane %v3116_v26, 1 }
 0x3ba   :  { %v10090_v6 = vadd.f32 %v3117_v56, %v3116_v26 }
 0x3bb LB: > { %s6409_s25 = sshll.u32 %s8298_s24, 7  ;;  %s6287_s29 = sshll.u32 %s8298_s24, 1  ;;  %s8298_s24 = sphi %s10124_s24, %s3141_s24   ;;  %v8294_v20 = vphi %v10122_v20, %v11478_v20   ;;  %v8290_v4 = vphi %v10120_v4, %v11477_v4   ;;  %v8286_v19 = vphi %v10118_v19, %v11476_v19   ;;  %v8282_v8 = vphi %v10116_v8, %v11475_v8   ;;  %v8278_v39 = vphi %v10114_v39, %v11474_v39   ;;  %v8274_v50 = vphi %v10112_v50, %v11473_v50   ;;  %v8270_v43 = vphi %v10110_v43, %v11472_v43   ;;  %v8266_v12 = vphi %v10108_v12, %v11471_v12   ;;  %v8262_v47 = vphi %v10106_v47, %v11470_v47   ;;  %v8258_v31 = vphi %v10104_v31, %v11469_v31   ;;  %v8254_v45 = vphi %v10102_v45, %v11468_v45   ;;  %v8250_v24 = vphi %v10100_v24, %v11467_v24   ;;  %v8246_v61 = vphi %v10098_v61, %v11466_v61   ;;  %v8242_v40 = vphi %v10096_v40, %v11465_v40   ;;  %v8238_v28 = vphi %v10094_v28, %v11464_v28   ;;  %v8234_v10 = vphi %v10092_v10, %v11463_v10  }
 0x3bc   : > { %s10181_s28 = scalar_lea.vmem %s11272_s3, %s6409_s25  ;;  %s10195_s30 = scalar_lea.vmem [#allocation3], %s6287_s29 }
 0x3bd   : > { %v7804_v1 = vld [vmem:[%s10181_s28 + $0x40] sm:$0xff]   ;;  %v7806_v57 = vld [vmem:[%s10181_s28 + $0x48] sm:$0xff]   ;;  %v7808_v11 = vld [vmem:[%s10181_s28 + $0x50] sm:$0xff]   ;;  %s3141_s24 = sadd.s32 1, %s8298_s24  }
 0x3be   : > { %v7805_v53 = vld [vmem:[%s10181_s28] sm:$0xff]   ;;  %6482 = vmatprep.subr.bf16.mxu0 %v7804_v1  ;;  %6936 = vmatprep.subr.bf16.mxu1 %v7804_v1  ;;  %v7807_v37 = vld [vmem:[%s10181_s28 + $0x8] sm:$0xff]   ;;  %v7809_v48 = vld [vmem:[%s10181_s28 + $0x10] sm:$0xff]   ;;  %p10271_p1 = scmp.ge.s32.totalorder %s3141_s24, 32  }
 0x3bf   : > { %6483 = vmatpush3.bf16.msra.mxu0 %v7805_v53  ;;  %6944 = vmatpush3.bf16.msra.mxu1 %v7805_v53  ;;  %v7810_v58 = vld [vmem:[%s10181_s28 + $0x58] sm:$0xff]   ;;  %v7812_v55 = vld [vmem:[%s10181_s28 + $0x60] sm:$0xff]   ;;  %v7814_v23 = vld [vmem:[%s10181_s28 + $0x68] sm:$0xff]  }
 0x3c0   : > { %6484 = vmatprep.subr.bf16.mxu0 %v7806_v57  ;;  %6937 = vmatprep.subr.bf16.mxu1 %v7806_v57  ;;  %v7811_v63 = vld [vmem:[%s10181_s28 + $0x18] sm:$0xff]   ;;  %v7813_v42 = vld [vmem:[%s10181_s28 + $0x20] sm:$0xff]   ;;  %v6306_v5 = vld [vmem:[%s10195_s30 + $0xc9] sm:$0xff] }
 0x3c1   : > { %v6305_v60 = vld [vmem:[%s10195_s30 + $0xc1] sm:$0xff]  ;;  %v6314_v14 = vld [vmem:[%s10195_s30 + $0x109] sm:$0xff]  ;;  %v7818_v33 = vld [vmem:[%s10181_s28 + $0x78] sm:$0xff]  }
 0x3c2   : > { %v6313_v54 = vld [vmem:[%s10195_s30 + $0x101] sm:$0xff]  ;;  %v3196_v0 = vpack.c.bf16 %v6306_v5, %v6305_v60  ;;  %v7816_v3 = vld [vmem:[%s10181_s28 + $0x70] sm:$0xff]   ;;  %v7819_v15 = vld [vmem:[%s10181_s28 + $0x38] sm:$0xff]  }
 0x3c3   : > { %6485 = vmatpush3.bf16.msra.mxu0 %v7807_v37  ;;  %6945 = vmatpush3.bf16.msra.mxu1 %v7807_v37  ;;  %v3204_v16 = vpack.c.bf16 %v6314_v14, %v6313_v54  ;;  %v7815_v41 = vld [vmem:[%s10181_s28 + $0x28] sm:$0xff]   ;;  %v7817_v36 = vld [vmem:[%s10181_s28 + $0x30] sm:$0xff]   ;;  %v6288_v27 = vld [vmem:[%s10195_s30 + $0xc0] sm:$0xff] }
 0x3c4   : > { %6486 = vmatprep.subr.bf16.mxu0 %v7808_v11  ;;  %6938 = vmatprep.subr.bf16.mxu1 %v7808_v11  ;;  %v6289_v17 = vld [vmem:[%s10195_s30 + $0xc8] sm:$0xff]  ;;  %v6296_v22 = vld [vmem:[%s10195_s30 + $0x100] sm:$0xff]  ;;  %v6307_v49 = vld [vmem:[%s10195_s30 + $0xd1] sm:$0xff] }
 0x3c5   : > { %3374 = vmatprep.mubr.bf16.mxu0 %v3196_v0  ;;  %3406 = vmatprep.mubr.bf16.mxu1 %v3204_v16  ;;  %v6297_v2 = vld [vmem:[%s10195_s30 + $0x108] sm:$0xff]  ;;  %v6308_v25 = vld [vmem:[%s10195_s30 + $0xd9] sm:$0xff]  ;;  %v6315_v51 = vld [vmem:[%s10195_s30 + $0x111] sm:$0xff]  ;;  %v3195_v34 = vpack.c.bf16 %v6289_v17, %v6288_v27 }
 0x3c6   : > { %v6316_v18 = vld [vmem:[%s10195_s30 + $0x119] sm:$0xff]  ;;  %v3203_v32 = vpack.c.bf16 %v6297_v2, %v6296_v22  ;;  %v3198_v44 = vpack.c.bf16 %v6308_v25, %v6307_v49  ;;  %v6290_v59 = vld [vmem:[%s10195_s30 + $0xd0] sm:$0xff]  ;;  %v6309_v13 = vld [vmem:[%s10195_s30 + $0xe1] sm:$0xff] }
 0x3c7   : > { %6487 = vmatpush3.bf16.msra.mxu0 %v7809_v48  ;;  %6946 = vmatpush3.bf16.msra.mxu1 %v7809_v48  ;;  %v3206_v38 = vpack.c.bf16 %v6316_v18, %v6315_v51  ;;  %v6291_v62 = vld [vmem:[%s10195_s30 + $0xd8] sm:$0xff]  ;;  %v6298_v29 = vld [vmem:[%s10195_s30 + $0x110] sm:$0xff]  ;;  %v6317_v9 = vld [vmem:[%s10195_s30 + $0x121] sm:$0xff] }
 0x3c8   : > { %6488 = vmatprep.subr.bf16.mxu0 %v7810_v58  ;;  %6939 = vmatprep.subr.bf16.mxu1 %v7810_v58  ;;  %v6299_v7 = vld [vmem:[%s10195_s30 + $0x118] sm:$0xff]  ;;  %v6310_v46 = vld [vmem:[%s10195_s30 + $0xe9] sm:$0xff]  ;;  %v3197_v30 = vpack.c.bf16 %v6291_v62, %v6290_v59  ;;  %v6292_v1 = vld [vmem:[%s10195_s30 + $0xe0] sm:$0xff] }
 0x3c9   : > { %v6318_v21 = vld [vmem:[%s10195_s30 + $0x129] sm:$0xff]  ;;  %v3205_v52 = vpack.c.bf16 %v6299_v7, %v6298_v29  ;;  %v3200_v26 = vpack.c.bf16 %v6310_v46, %v6309_v13  ;;  %v6300_v57 = vld [vmem:[%s10195_s30 + $0x120] sm:$0xff]  ;;  %v6311_v11 = vld [vmem:[%s10195_s30 + $0xf1] sm:$0xff] }
 0x3ca   : > { %v3208_v56 = vpack.c.bf16 %v6318_v21, %v6317_v9  ;;  %v6293_v53 = vld [vmem:[%s10195_s30 + $0xe8] sm:$0xff]  ;;  %v6312_v48 = vld [vmem:[%s10195_s30 + $0xf9] sm:$0xff]  ;;  %v6319_v58 = vld [vmem:[%s10195_s30 + $0x131] sm:$0xff] }
 0x3cb   : > { %6489 = vmatpush3.bf16.msra.mxu0 %v7811_v63  ;;  %6947 = vmatpush3.bf16.msra.mxu1 %v7811_v63  ;;  %v6301_v37 = vld [vmem:[%s10195_s30 + $0x128] sm:$0xff]  ;;  %v6320_v63 = vld [vmem:[%s10195_s30 + $0x139] sm:$0xff]  ;;  %v6294_v5 = vld [vmem:[%s10195_s30 + $0xf0] sm:$0xff] }
 0x3cc   : > { %6490 = vmatprep.subr.bf16.mxu0 %v7812_v55  ;;  %6940 = vmatprep.subr.bf16.mxu1 %v7812_v55  ;;  %v3199_v55 = vpack.c.bf16 %v6293_v53, %v6292_v1  ;;  %v3210_v60 = vpack.c.bf16 %v6320_v63, %v6319_v58  ;;  %v6295_v54 = vld [vmem:[%s10195_s30 + $0xf8] sm:$0xff]  ;;  %v6302_v0 = vld [vmem:[%s10195_s30 + $0x130] sm:$0xff] }
 0x3cd   : > { %v6303_v14 = vld [vmem:[%s10195_s30 + $0x138] sm:$0xff]  ;;  %v3201_v16 = vpack.c.bf16 %v6295_v54, %v6294_v5 }
 0x3cf   : > { %6491 = vmatpush3.bf16.msra.mxu0 %v7813_v42  ;;  %6948 = vmatpush3.bf16.msra.mxu1 %v7813_v42  ;;  %v3207_v42 = vpack.c.bf16 %v6301_v37, %v6300_v57 }
 0x3d0   : > { %6492 = vmatprep.subr.bf16.mxu0 %v7814_v23  ;;  %6941 = vmatprep.subr.bf16.mxu1 %v7814_v23  ;;  %v3202_v23 = vpack.c.bf16 %v6312_v48, %v6311_v11 }
 0x3d3   : > { %6493 = vmatpush3.bf16.msra.mxu0 %v7815_v41  ;;  %6949 = vmatpush3.bf16.msra.mxu1 %v7815_v41  ;;  %v3209_v41 = vpack.c.bf16 %v6303_v14, %v6302_v0 }
 0x3d4   : > { %6494 = vmatprep.subr.bf16.mxu0 %v7816_v3  ;;  %6942 = vmatprep.subr.bf16.mxu1 %v7816_v3 }
 0x3d7   : > { %6495 = vmatpush3.bf16.msra.mxu0 %v7817_v36  ;;  %6950 = vmatpush3.bf16.msra.mxu1 %v7817_v36 }
 0x3d8   : > { %6496 = vmatprep.subr.bf16.mxu0 %v7818_v33  ;;  %6943 = vmatprep.subr.bf16.mxu1 %v7818_v33 }
 0x3db   : > { %6497 = vmatpush3.bf16.msra.mxu0 %v7819_v15  ;;  %6951 = vmatpush3.bf16.msra.mxu1 %v7819_v15 }
 0x3de   : > { %3375 = vmatmul.mubr.bf16.vlgmr.msra.gmra.mrb[0].mxu0 %v3195_v34  ;;  %3407 = vmatmul.mubr.bf16.vlgmr.msra.gmra.mrb[0].mxu1 %v3203_v32 }
 0x3df   : > { %3382 = vmatprep.mubr.bf16.mxu0 %v3198_v44  ;;  %3414 = vmatprep.mubr.bf16.mxu1 %v3206_v38 }
 0x3e6   : > { %3383 = vmatmul.mubr.bf16.gmra.mrb[4].mxu0 %v3197_v30  ;;  %3415 = vmatmul.mubr.bf16.gmra.mrb[4].mxu1 %v3205_v52 }
 0x3e7   : > { %3390 = vmatprep.mubr.bf16.mxu0 %v3200_v26  ;;  %3422 = vmatprep.mubr.bf16.mxu1 %v3208_v56 }
 0x3ee   : > { %3391 = vmatmul.mubr.bf16.gmra.mrb[8].mxu0 %v3199_v55  ;;  %3423 = vmatmul.mubr.bf16.gmra.mrb[8].mxu1 %v3207_v42 }
 0x3ef   : > { %3398 = vmatprep.mubr.bf16.mxu0 %v3202_v23  ;;  %3430 = vmatprep.mubr.bf16.mxu1 %v3210_v60 }
 0x3f6   : > { %3399 = vmatmul.mubr.bf16.gmra.mrb[12].mxu0 %v3201_v16  ;;  %3431 = vmatmul.mubr.bf16.gmra.mrb[12].mxu1 %v3209_v41 }
 0x4b1   : > { %v6498_v3 = vpop.f32.mrb[0].mxu0  ;;  %v6522_v36 = vpop.f32.mrb[0].mxu1 }
 0x4b2   : > { %v6499_v33 = vpop.f32.mrb[1].mxu0  ;;  %v6523_v15 = vpop.f32.mrb[1].mxu1 }
 0x4b3   : > { %v6500_v27 = vadd.f32 %v6499_v33, %v6498_v3  ;;  %v6524_v17 = vadd.f32 %v6523_v15, %v6522_v36  ;;  %v6501_v22 = vpop.f32.mrb[2].mxu0  ;;  %v6525_v2 = vpop.f32.mrb[2].mxu1 }
 0x4b4   : > { %v6502_v49 = vpop.f32.mrb[3].mxu0  ;;  %v6526_v25 = vpop.f32.mrb[3].mxu1 }
 0x4b5   : > { %v10235_v20 = vadd.f32 %v8294_v20, %v6500_v27   ;;  %v10238_v47 = vadd.f32 %v8262_v47, %v6524_v17   ;;  %v6503_v34 = vadd.f32 %v6502_v49, %v6501_v22  ;;  %v6527_v32 = vadd.f32 %v6526_v25, %v6525_v2  ;;  %v11479_v2 = vld [vmem:[#allocation7_spill] sm:$0xff] (%p10271_p1) }
 0x4b7   : > { %v11452_v51 = vmov %v10235_v20  ;;  %v11453_v18 = vmov %v10238_v47  ;;  %v10241_v4 = vadd.f32 %v8290_v4, %v6503_v34   ;;  %v10244_v31 = vadd.f32 %v8258_v31, %v6527_v32  }
 0x4b8   :  { %v3455_v49 = vadd.f32 (%p10271_p1), %v11479_v2, %v11452_v51 }
 0x4b9   : > { %v11454_v44 = vmov %v10241_v4  ;;  %v11455_v38 = vmov %v10244_v31  ;;  %v6504_v59 = vpop.f32.mrb[4].mxu0  ;;  %v6528_v62 = vpop.f32.mrb[4].mxu1 }
 0x4ba   : > { %v6505_v29 = vpop.f32.mrb[5].mxu0  ;;  %v6529_v7 = vpop.f32.mrb[5].mxu1  ;;  %v3456_v25 = vadd.f32 (%p10271_p1), %v11479_v2, %v11454_v44 }
 0x4bb   : > { %v6506_v13 = vadd.f32 %v6505_v29, %v6504_v59  ;;  %v6530_v46 = vadd.f32 %v6529_v7, %v6528_v62  ;;  %v6507_v9 = vpop.f32.mrb[6].mxu0  ;;  %v6531_v21 = vpop.f32.mrb[6].mxu1  ;;  %v11480_v59 = vmov (%p10271_p1), 0.0  }
 0x4bc   : > { %v6508_v20 = vpop.f32.mrb[7].mxu0  ;;  %v6532_v30 = vpop.f32.mrb[7].mxu1  ;;  %3677 = vst [vmem:[#allocation3 + $0x5f] sm:$0xff] (%p10271_p1), %v11480_v59  ;;  %3678 = vst [vmem:[#allocation3 + $0x67] sm:$0xff] (%p10271_p1), %v11480_v59 }
 0x4bd   : > { %v3441_v52 = vadd.f32 %v8286_v19, %v6506_v13   ;;  %v10248_v45 = vadd.f32 %v8254_v45, %v6530_v46   ;;  %v6509_v47 = vadd.f32 %v6508_v20, %v6507_v9  ;;  %v6533_v4 = vadd.f32 %v6532_v30, %v6531_v21  ;;  %3679 = vst [vmem:[#allocation3 + $0x6f] sm:$0xff] (%p10271_p1), %v11480_v59 }
 0x4be   : > { %v11478_v20 = vmov %v11452_v51  ;;  %3680 = vst [vmem:[#allocation3 + $0x77] sm:$0xff] (%p10271_p1), %v11480_v59  ;;  %3745 = vst [vmem:[#allocation3 + $0x11f] sm:$0xff] (%p10271_p1), %v11480_v59  ;;  %v3472_v51 = vmax.f32 (%p10271_p1), %v3456_v25, 0.0 }
 0x4bf   : > { %v11456_v26 = vmov %v10248_v45  ;;  %v3442_v56 = vadd.f32 %v8282_v8, %v6509_v47   ;;  %v10252_v24 = vadd.f32 %v8250_v24, %v6533_v4   ;;  %v11470_v47 = vmov %v11453_v18  ;;  %3746 = vst [vmem:[#allocation3 + $0x127] sm:$0xff] (%p10271_p1), %v11480_v59  ;;  %3747 = vst [vmem:[#allocation3 + $0x12f] sm:$0xff] (%p10271_p1), %v11480_v59 }
 0x4c0   : > { %v11477_v4 = vmov %v11454_v44  ;;  %v3457_v34 = vadd.f32 (%p10271_p1), %v11479_v2, %v3441_v52  ;;  %3748 = vst [vmem:[#allocation3 + $0x137] sm:$0xff] (%p10271_p1), %v11480_v59  ;;  %v3488_v20 = vsel (%p10271_p1), %vm3027_vm0, %v3472_v51, 0.0  ;;  %v3526_v30 = vmul.f32 (%p10271_p1), %v3472_v51, %v3472_v51  ;;  %3580 = vst.msk [vmem:[#allocation2 + $0x88] sm:$0xff] (%p10271_p1), %vm3027_vm0, %v3472_v51 }
 0x4c1   : > { %v11457_v1 = vmov %v10252_v24  ;;  %v6510_v31 = vpop.f32.mrb[8].mxu0  ;;  %v6534_v53 = vpop.f32.mrb[8].mxu1  ;;  %v3458_v32 = vadd.f32 (%p10271_p1), %v11479_v2, %v3442_v56 }
 0x4c2   : > { %v6511_v57 = vpop.f32.mrb[9].mxu0  ;;  %v6535_v37 = vpop.f32.mrb[9].mxu1  ;;  %v3473_v44 = vmax.f32 (%p10271_p1), %v3457_v34, 0.0 }
 0x4c3   : > { %v6512_v11 = vadd.f32 %v6511_v57, %v6510_v31  ;;  %v6536_v48 = vadd.f32 %v6535_v37, %v6534_v53  ;;  %v6513_v58 = vpop.f32.mrb[10].mxu0  ;;  %v6537_v63 = vpop.f32.mrb[10].mxu1  ;;  %v11469_v31 = vmov %v11455_v38  ;;  %v3474_v62 = vmax.f32 (%p10271_p1), %v3458_v32, 0.0 }
 0x4c4   : > { %v6514_v55 = vpop.f32.mrb[11].mxu0  ;;  %v6538_v19 = vpop.f32.mrb[11].mxu1  ;;  %3581 = vst.msk [vmem:[#allocation2 + $0x90] sm:$0xff] (%p10271_p1), %vm3027_vm0, %v3473_v44  ;;  %v3490_v47 = vsel (%p10271_p1), %vm3027_vm0, %v3473_v44, 0.0  ;;  %v3527_v4 = vmul.f32 (%p10271_p1), %v3473_v44, %v3473_v44  ;;  %v3542_v31 = vsel (%p10271_p1), %vm3027_vm0, %v3526_v30, 0.0 }
 0x4c5   : > { %v3443_v42 = vadd.f32 %v8278_v39, %v6512_v11   ;;  %v10256_v61 = vadd.f32 %v8246_v61, %v6536_v48   ;;  %v6515_v45 = vadd.f32 %v6514_v55, %v6513_v58  ;;  %v6539_v8 = vadd.f32 %v6538_v19, %v6537_v63  ;;  %3582 = vst.msk [vmem:[#allocation2 + $0x98] sm:$0xff] (%p10271_p1), %vm3027_vm0, %v3474_v62 }
 0x4c6   : > { %v11476_v19 = vmov %v3441_v52  ;;  %v3492_v53 = vsel (%p10271_p1), %vm3027_vm0, %v3474_v62, 0.0  ;;  %v3528_v57 = vmul.f32 (%p10271_p1), %v3474_v62, %v3474_v62  ;;  %v3544_v48 = vsel (%p10271_p1), %vm3027_vm0, %v3527_v4, 0.0 }
 0x4c7   : > { %v11458_v23 = vmov %v10256_v61  ;;  %v3444_v60 = vadd.f32 %v8274_v50, %v6515_v45   ;;  %v10260_v40 = vadd.f32 %v8242_v40, %v6539_v8   ;;  %v11468_v45 = vmov %v11456_v26 }
 0x4c8   : > { %v11475_v8 = vmov %v3442_v56  ;;  %v3546_v63 = vsel (%p10271_p1), %vm3027_vm0, %v3528_v57, 0.0 }
 0x4c9   : > { %v11459_v5 = vmov %v10260_v40  ;;  %v6516_v24 = vpop.f32.mrb[12].mxu0  ;;  %v6540_v54 = vpop.f32.mrb[12].mxu1 }
 0x4ca   : > { %v6517_v0 = vpop.f32.mrb[13].mxu0  ;;  %v6541_v14 = vpop.f32.mrb[13].mxu1  ;;  %v11465_v40 = vmov %v11459_v5 }
 0x4cb   : > { %v6518_v16 = vadd.f32 %v6517_v0, %v6516_v24  ;;  %v6542_v41 = vadd.f32 %v6541_v14, %v6540_v54  ;;  %v6519_v3 = vpop.f32.mrb[14].mxu0  ;;  %v6543_v36 = vpop.f32.mrb[14].mxu1  ;;  %v11467_v24 = vmov %v11457_v1  ;;  %v10365_v54 = vld [vmem:[%s11275_s6 + $0x1] sm:$0x1] (%p10271_p1) }
 0x4cc   : > { %v6520_v33 = vpop.f32.mrb[15].mxu0  ;;  %v6544_v39 = vpop.f32.mrb[15].mxu1  ;;  %3140 = sbr.rel (!%p10271_p1) target bundleno = 955 (0x3bb), region = 250  ;;  %v10360_v24 = vld [vmem:[%s11275_s6] ss:$0 sm:$0xff] (%p10271_p1) }
 0x4cd   : > { %v3445_v15 = vadd.f32 %v8270_v43, %v6518_v16   ;;  %v10264_v28 = vadd.f32 %v8238_v28, %v6542_v41   ;;  %v6521_v61 = vadd.f32 %v6520_v33, %v6519_v3  ;;  %v6545_v50 = vadd.f32 %v6544_v39, %v6543_v36  ;;  %v10375_v3 = vld [vmem:[%s11275_s6 + $0x2] sm:$0x1] (%p10271_p1)  ;;  %s10524_s6 = smov (%p10271_p1), 0  }
 0x4ce   : > { %v11474_v39 = vmov %v3443_v42  ;;  %v3463_v41 = vadd.f32 (%p10271_p1), %v11479_v2, %v11453_v18  ;;  %v3466_v18 = vadd.f32 (%p10271_p1), %v11479_v2, %v11457_v1 }
 0x4cf   : > { %v11460_v27 = vmov %v10264_v28  ;;  %v3446_v17 = vadd.f32 %v8266_v12, %v6521_v61   ;;  %v10268_v10 = vadd.f32 %v8234_v10, %v6545_v50   ;;  %v11466_v61 = vmov %v11458_v23 }
 0x4d0   : > { %v11464_v28 = vmov %v11460_v27  ;;  %v11472_v43 = vmov %v3445_v15  ;;  %v11473_v50 = vmov %v3444_v60  ;;  %v3461_v40 = vadd.f32 (%p10271_p1), %v11479_v2, %v3445_v15 }
 0x4d1   : > { %v11461_v22 = vmov %v10268_v10  ;;  %v11471_v12 = vmov %v3446_v17  ;;  %v3460_v28 = vadd.f32 (%p10271_p1), %v11479_v2, %v3444_v60  ;;  %v3471_v43 = vmax.f32 (%p10271_p1), %v3455_v49, 0.0 }
 0x4d2   : > { %v11463_v10 = vmov %v11461_v22  ;;  %v3462_v12 = vadd.f32 (%p10271_p1), %v11479_v2, %v3446_v17  ;;  %v3477_v13 = vmax.f32 (%p10271_p1), %v3461_v40, 0.0  ;;  %v3464_v15 = vadd.f32 (%p10271_p1), %v11479_v2, %v11455_v38 }
 0x4d3   :  { %v3459_v10 = vadd.f32 %v11479_v2, %v3443_v42  ;;  %v3476_v7 = vmax.f32 %v3460_v28, 0.0  ;;  %v3487_v9 = vsel %vm3027_vm0, %v3471_v43, 0.0  ;;  %v3525_v21 = vmul.f32 %v3471_v43, %v3471_v43  ;;  %3579 = vst.msk [vmem:[#allocation2 + $0x80] sm:$0xff] %vm3027_vm0, %v3471_v43 }
 0x4d4   :  { %v3478_v46 = vmax.f32 %v3462_v12, 0.0  ;;  %v3489_v52 = vadd.f32 %v3488_v20, %v3487_v9  ;;  %3585 = vst.msk [vmem:[#allocation2 + $0xb0] sm:$0xff] %vm3027_vm0, %v3477_v13  ;;  %v3531_v60 = vmul.f32 %v3477_v13, %v3477_v13  ;;  %v3498_v16 = vsel %vm3027_vm0, %v3477_v13, 0.0 }
 0x4d5   :  { %v3475_v29 = vmax.f32 %v3459_v10, 0.0  ;;  %3584 = vst.msk [vmem:[#allocation2 + $0xa8] sm:$0xff] %vm3027_vm0, %v3476_v7  ;;  %v3541_v56 = vsel %vm3027_vm0, %v3525_v21, 0.0  ;;  %v3530_v19 = vmul.f32 %v3476_v7, %v3476_v7  ;;  %v3496_v8 = vsel %vm3027_vm0, %v3476_v7, 0.0 }
 0x4d6   :  { %3586 = vst.msk [vmem:[#allocation2 + $0xb8] sm:$0xff] %vm3027_vm0, %v3478_v46  ;;  %v3543_v37 = vadd.f32 %v3542_v31, %v3541_v56  ;;  %v3491_v11 = vadd.f32 %v3490_v47, %v3489_v52  ;;  %v3500_v39 = vsel %vm3027_vm0, %v3478_v46, 0.0  ;;  %v3532_v61 = vmul.f32 %v3478_v46, %v3478_v46 }
 0x4d7   :  { %3583 = vst.msk [vmem:[#allocation2 + $0xa0] sm:$0xff] %vm3027_vm0, %v3475_v29  ;;  %v3529_v58 = vmul.f32 %v3475_v29, %v3475_v29  ;;  %v3494_v55 = vsel %vm3027_vm0, %v3475_v29, 0.0  ;;  %v3550_v14 = vsel %vm3027_vm0, %v3530_v19, 0.0  ;;  %v3479_v50 = vmax.f32 %v3463_v41, 0.0 }
 0x4d8   :  { %v3545_v42 = vadd.f32 %v3544_v48, %v3543_v37  ;;  %v3493_v45 = vadd.f32 %v3492_v53, %v3491_v11  ;;  %v3465_v17 = vadd.f32 %v11479_v2, %v11456_v26  ;;  %v3552_v34 = vsel %vm3027_vm0, %v3531_v60, 0.0 }
 0x4d9   :  { %v3548_v0 = vsel %vm3027_vm0, %v3529_v58, 0.0  ;;  %v3480_v32 = vmax.f32 %v3464_v15, 0.0  ;;  %v3533_v59 = vmul.f32 %v3479_v50, %v3479_v50  ;;  %3587 = vst.msk [vmem:[#allocation2 + $0xc0] sm:$0xff] %vm3027_vm0, %v3479_v50  ;;  %v3482_v28 = vmax.f32 %v3466_v18, 0.0 }
 0x4da   :  { %v3547_v36 = vadd.f32 %v3546_v63, %v3545_v42  ;;  %v3495_v33 = vadd.f32 %v3494_v55, %v3493_v45  ;;  %v3481_v10 = vmax.f32 %v3465_v17, 0.0  ;;  %v3467_v38 = vadd.f32 %v11479_v2, %v11458_v23 }
 0x4db   :  { %3588 = vst.msk [vmem:[#allocation2 + $0xc8] sm:$0xff] %vm3027_vm0, %v3480_v32  ;;  %v3554_v26 = vsel %vm3027_vm0, %v3532_v61, 0.0  ;;  %v3502_v1 = vsel %vm3027_vm0, %v3479_v50, 0.0  ;;  %v3534_v43 = vmul.f32 %v3480_v32, %v3480_v32  ;;  %3590 = vst.msk [vmem:[#allocation2 + $0xd8] sm:$0xff] %vm3027_vm0, %v3482_v28  ;;  %v3556_v62 = vsel %vm3027_vm0, %v3533_v59, 0.0 }
 0x4dc   :  { %v3549_v49 = vadd.f32 %v3548_v0, %v3547_v36  ;;  %v3497_v25 = vadd.f32 %v3496_v8, %v3495_v33  ;;  %3589 = vst.msk [vmem:[#allocation2 + $0xd0] sm:$0xff] %vm3027_vm0, %v3481_v10  ;;  %v3504_v29 = vsel %vm3027_vm0, %v3480_v32, 0.0  ;;  %v3535_v23 = vmul.f32 %v3481_v10, %v3481_v10 }
 0x4dd   :  { %v3483_v7 = vmax.f32 %v3467_v38, 0.0  ;;  %v3468_v13 = vadd.f32 %v11479_v2, %v11459_v5  ;;  %v3469_v46 = vadd.f32 %v11479_v2, %v11460_v27  ;;  %v3506_v20 = vsel %vm3027_vm0, %v3481_v10, 0.0 }
 0x4de   :  { %v3551_v40 = vadd.f32 %v3550_v14, %v3549_v49  ;;  %v3499_v12 = vadd.f32 %v3498_v16, %v3497_v25  ;;  %v3470_v30 = vadd.f32 %v11479_v2, %v11461_v22  ;;  %v3558_v52 = vsel %vm3027_vm0, %v3534_v43, 0.0 }
 0x4df   :  { %v3536_v47 = vmul.f32 %v3482_v28, %v3482_v28  ;;  %3591 = vst.msk [vmem:[#allocation2 + $0xe0] sm:$0xff] %vm3027_vm0, %v3483_v7  ;;  %v3484_v4 = vmax.f32 %v3468_v13, 0.0  ;;  %v3485_v56 = vmax.f32 %v3469_v46, 0.0  ;;  %v3560_v57 = vsel %vm3027_vm0, %v3535_v23, 0.0 }
 0x4e0   :  { %v3553_v51 = vadd.f32 %v3552_v34, %v3551_v40  ;;  %v3501_v44 = vadd.f32 %v3500_v39, %v3499_v12  ;;  %v3486_v5 = vmax.f32 %v3470_v30, 0.0  ;;  %v3508_v27 = vsel %vm3027_vm0, %v3482_v28, 0.0  ;;  %v3605_v30 = vld [vmem:[#allocation2] ss:$2 sm:$0xff] }
 0x4e1   :  { %v3537_v37 = vmul.f32 %v3483_v7, %v3483_v7  ;;  %3592 = vst.msk [vmem:[#allocation2 + $0xe8] sm:$0xff] %vm3027_vm0, %v3484_v4  ;;  %3593 = vst.msk [vmem:[#allocation2 + $0xf0] sm:$0xff] %vm3027_vm0, %v3485_v56  ;;  %v3562_v11 = vsel %vm3027_vm0, %v3536_v47, 0.0  ;;  %v3510_v48 = vsel %vm3027_vm0, %v3483_v7, 0.0  ;;  %v3538_v58 = vmul.f32 %v3484_v4, %v3484_v4  ;;  %v3606_v47 = vld [vmem:[#allocation2 + $0x10] ss:$2 sm:$0xff] }
 0x4e2   :  { %v3555_v9 = vadd.f32 %v3554_v26, %v3553_v51  ;;  %v3503_v21 = vadd.f32 %v3502_v1, %v3501_v44  ;;  %3594 = vst.msk [vmem:[#allocation2 + $0xf8] sm:$0xff] %vm3027_vm0, %v3486_v5  ;;  %v3512_v42 = vsel %vm3027_vm0, %v3484_v4, 0.0  ;;  %v3539_v45 = vmul.f32 %v3485_v56, %v3485_v56  ;;  %v3638_v4 = vld [vmem:[#allocation2 + $0x11] ss:$2 sm:$0xff] }
 0x4e3   :  { %v3564_v19 = vsel %vm3027_vm0, %v3537_v37, 0.0  ;;  %v3566_v0 = vsel %vm3027_vm0, %v3538_v58, 0.0  ;;  %v3514_v14 = vsel %vm3027_vm0, %v3485_v56, 0.0  ;;  %v3540_v16 = vmul.f32 %v3486_v5, %v3486_v5  ;;  %v3607_v56 = vld [vmem:[#allocation2 + $0x20] ss:$2 sm:$0xff] }
 0x4e4   :  { %v3557_v31 = vadd.f32 %v3556_v62, %v3555_v9  ;;  %v3505_v53 = vadd.f32 %v3504_v29, %v3503_v21  ;;  %v3568_v33 = vsel %vm3027_vm0, %v3539_v45, 0.0  ;;  %v3516_v39 = vsel %vm3027_vm0, %v3486_v5, 0.0  ;;  %v11481_v21 = vld [vmem:[#allocation8_spill] sm:$0xff] }
 0x4e5   :  { %v3570_v50 = vsel %vm3027_vm0, %v3540_v16, 0.0  ;;  %v3608_v5 = vld [vmem:[#allocation2 + $0x30] ss:$2 sm:$0xff]  ;;  %v3641_v37 = vld [vmem:[#allocation2 + $0x41] ss:$2 sm:$0xff] }
 0x4e6   :  { %v3559_v22 = vadd.f32 %v3558_v52, %v3557_v31  ;;  %v3507_v2 = vadd.f32 %v3506_v20, %v3505_v53  ;;  %v3637_v52 = vld [vmem:[#allocation2 + $0x1] ss:$2 sm:$0xff] }
 0x4e8   :  { %v3561_v63 = vadd.f32 %v3560_v57, %v3559_v22  ;;  %v3509_v55 = vadd.f32 %v3508_v27, %v3507_v2  ;;  %v3640_v57 = vld [vmem:[#allocation2 + $0x31] ss:$2 sm:$0xff]  ;;  %v3609_v27 = vld [vmem:[#allocation2 + $0x40] ss:$2 sm:$0xff]  ;;  %v3610_v22 = vld [vmem:[#allocation2 + $0x50] ss:$2 sm:$0xff] }
 0x4e9   :  { %v11483_v2 = vld [vmem:[#allocation9_spill] sm:$0xff] }
 0x4ea   :  { %v3563_v8 = vadd.f32 %v3562_v11, %v3561_v63  ;;  %v3511_v60 = vadd.f32 %v3510_v48, %v3509_v55  ;;  %v3642_v55 = vld [vmem:[#allocation2 + $0x51] ss:$2 sm:$0xff] }
 0x4ec   :  { %v3565_v41 = vadd.f32 %v3564_v19, %v3563_v8  ;;  %v3513_v36 = vadd.f32 %v3512_v42, %v3511_v60  ;;  %v3611_v19 = vld [vmem:[#allocation2 + $0x60] ss:$2 sm:$0xff]  ;;  %v3643_v42 = vld [vmem:[#allocation2 + $0x61] ss:$2 sm:$0xff] }
 0x4ee   :  { %v3567_v15 = vadd.f32 %v3566_v0, %v3565_v41  ;;  %v3515_v61 = vadd.f32 %v3514_v14, %v3513_v36 }
 0x4f0   :  { %v3569_v17 = vadd.f32 %v3568_v33, %v3567_v15  ;;  %v3517_v18 = vadd.f32 %v3516_v39, %v3515_v61 }
 0x4f2   :  { %v3518_v49 = vrot.slane %v3517_v18, 4  ;;  %v3571_v25 = vadd.f32 %v3570_v50, %v3569_v17 }
 0x4f4   :  { %v3519_v34 = vadd.f32 %v3518_v49, %v3517_v18  ;;  %v3572_v32 = vrot.slane %v3571_v25, 4 }
 0x4f6   :  { %v3520_v59 = vrot.slane %v3519_v34, 2  ;;  %v3573_v10 = vadd.f32 %v3572_v32, %v3571_v25 }
 0x4f8   :  { %v3521_v28 = vadd.f32 %v3520_v59, %v3519_v34  ;;  %v3574_v38 = vrot.slane %v3573_v10, 2 }
 0x4fa   :  { %v3522_v40 = vrot.slane %v3521_v28, 1  ;;  %v3575_v12 = vadd.f32 %v3574_v38, %v3573_v10  ;;  %v3612_v10 = vld [vmem:[#allocation2 + $0x70] ss:$2 sm:$0xff] }
 0x4fc   :  { %v3523_v26 = vadd.f32 %v3522_v40, %v3521_v28  ;;  %v3576_v1 = vrot.slane %v3575_v12, 1 }
 0x4fe   :  { %v3524_v43 = vadd.f32 %v3523_v26, %v10088_v35  ;;  %v3577_v51 = vadd.f32 %v3576_v1, %v3575_v12  ;;  %v11482_v35 = vld [vmem:[#allocation24_spill] sm:$0xff] }
 0x4ff   :  { %v3644_v26 = vld [vmem:[#allocation2 + $0x71] ss:$2 sm:$0xff]  ;;  %v3681_v1 = vld [vmem:[#allocation2 + $0x80] ss:$2 sm:$0xff] }
 0x500   :  { %v3578_v44 = vadd.f32 %v3577_v51, %v10090_v6  ;;  %v3595_v62 = vmul.f32 0.00390625, %v3524_v43  ;;  %v3639_v6 = vld [vmem:[#allocation2 + $0x21] ss:$2 sm:$0xff] }
 0x501   :  { %v3705_v43 = vld [vmem:[#allocation2 + $0x81] ss:$2 sm:$0xff] }
 0x502   :  { %v3596_v29 = vmul.f32 0.00390625, %v3578_v44  ;;  %v3597_v23 = vmul.f32 %v3595_v62, %v3595_v62 }
 0x504   :  { %v3598_v7 = vsub.f32 %v3596_v29, %v3597_v23  ;;  %v3682_v23 = vld [vmem:[#allocation2 + $0x90] ss:$2 sm:$0xff] }
 0x506   :  { %v3599_v13 = vmax.f32 %v3598_v7, 0.0  ;;  %v3706_v7 = vld [vmem:[#allocation2 + $0x91] ss:$2 sm:$0xff] }
 0x508   :  { %v3600_v46 = vadd.f32 0.001, %v3599_v13 }
 0x50a   :  { %7820 = vrsqrt.f32 %v3600_v46 }
 0x514   :  { %v7821_v9 = vpop.eup %7820 }
 0x515   :  { %v3602_v20 = vmul.f32 %v7821_v9, %v11481_v21 }
 0x517   :  { %v3603_v31 = vmul.f32 %v3602_v20, %v3595_v62  ;;  %v10422_v53 = vrot.slane %v3602_v20, %v11482_v35  ;;  %v3683_v20 = vld [vmem:[#allocation2 + $0xa0] ss:$2 sm:$0xff] }
 0x519   :  { %v3604_v11 = vsub.f32 %v11483_v2, %v3603_v31  ;;  %v3617_v48 = vmul.f32 %v10422_v53, %v3605_v30  ;;  %v3645_v58 = vmul.f32 %v3637_v52, %v10422_v53  ;;  %v3618_v63 = vmul.f32 %v10422_v53, %v3606_v47  ;;  %v3684_v31 = vld [vmem:[#allocation2 + $0xb0] ss:$2 sm:$0xff] }
 0x51a   :  { %v3646_v45 = vmul.f32 %v3638_v4, %v10422_v53  ;;  %v3619_v8 = vmul.f32 %v10422_v53, %v3607_v56  ;;  %v3647_v60 = vmul.f32 %v3639_v6, %v10422_v53  ;;  %v3620_v0 = vmul.f32 %v10422_v53, %v3608_v5  ;;  %v3707_v56 = vld [vmem:[#allocation2 + $0xa1] ss:$2 sm:$0xff] }
 0x51b   :  { %v10433_v14 = vrot.slane %v3604_v11, %v11482_v35  ;;  %v3648_v16 = vmul.f32 %v3640_v57, %v10422_v53  ;;  %v3621_v41 = vmul.f32 %v10422_v53, %v3609_v27  ;;  %v3649_v36 = vmul.f32 %v3641_v37, %v10422_v53  ;;  %v3708_v27 = vld [vmem:[#allocation2 + $0xb1] ss:$2 sm:$0xff] }
 0x51c   :  { %v3622_v33 = vmul.f32 %v10422_v53, %v3610_v22  ;;  %v3650_v39 = vmul.f32 %v3642_v55, %v10422_v53  ;;  %v3623_v15 = vmul.f32 %v10422_v53, %v3611_v19  ;;  %v3651_v61 = vmul.f32 %v3643_v42, %v10422_v53  ;;  %v3709_v42 = vld [vmem:[#allocation2 + $0xc1] ss:$2 sm:$0xff] }
 0x51d   :  { %v3629_v50 = vadd.f32 %v10433_v14, %v3617_v48  ;;  %v3653_v17 = vadd.f32 %v3645_v58, %v10433_v14  ;;  %v3630_v18 = vadd.f32 %v10433_v14, %v3618_v63  ;;  %v3654_v49 = vadd.f32 %v3646_v45, %v10433_v14  ;;  %v3685_v48 = vld [vmem:[#allocation2 + $0xc0] ss:$2 sm:$0xff]  ;;  %v3686_v45 = vld [vmem:[#allocation2 + $0xd0] ss:$2 sm:$0xff] }
 0x51e   :  { %v3631_v25 = vadd.f32 %v10433_v14, %v3619_v8  ;;  %v3655_v34 = vadd.f32 %v3647_v60, %v10433_v14  ;;  %v3632_v32 = vadd.f32 %v10433_v14, %v3620_v0  ;;  %v3656_v59 = vadd.f32 %v3648_v16, %v10433_v14  ;;  %v3710_v8 = vld [vmem:[#allocation2 + $0xd1] ss:$2 sm:$0xff] }
 0x51f   :  { %v3661_v28 = vmax.f32 %v3629_v50, %v3653_v17  ;;  %v3662_v38 = vmax.f32 %v3630_v18, %v3654_v49  ;;  %v3633_v40 = vadd.f32 %v10433_v14, %v3621_v41  ;;  %v3657_v12 = vadd.f32 %v3649_v36, %v10433_v14  ;;  %v3687_v36 = vld [vmem:[#allocation2 + $0xe0] ss:$2 sm:$0xff] }
 0x520   :  { %v3663_v51 = vmax.f32 %v3631_v25, %v3655_v34  ;;  %v3664_v44 = vmax.f32 %v3632_v32, %v3656_v59  ;;  %v3634_v62 = vadd.f32 %v10433_v14, %v3622_v33  ;;  %v3658_v29 = vadd.f32 %v3650_v39, %v10433_v14  ;;  %v3711_v33 = vld [vmem:[#allocation2 + $0xe1] ss:$2 sm:$0xff]  ;;  %v3688_v34 = vld [vmem:[#allocation2 + $0xf0] ss:$2 sm:$0xff]  ;;  %v3712_v32 = vld [vmem:[#allocation2 + $0xf1] ss:$2 sm:$0xff] }
 0x521   :  { %3669 = vst.msk [vmem:[#allocation3 + $0x1f] sm:$0xff] %vm3027_vm0, %v3661_v28  ;;  %3670 = vst.msk [vmem:[#allocation3 + $0x27] sm:$0xff] %vm3027_vm0, %v3662_v38  ;;  %v3665_v13 = vmax.f32 %v3633_v40, %v3657_v12  ;;  %v3635_v46 = vadd.f32 %v10433_v14, %v3623_v15  ;;  %v3659_v9 = vadd.f32 %v3651_v61, %v10433_v14 }
 0x522   :  { %v3624_v21 = vmul.f32 %v10422_v53, %v3612_v10  ;;  %3671 = vst.msk [vmem:[#allocation3 + $0x2f] sm:$0xff] %vm3027_vm0, %v3663_v51  ;;  %3672 = vst.msk [vmem:[#allocation3 + $0x37] sm:$0xff] %vm3027_vm0, %v3664_v44  ;;  %v3666_v30 = vmax.f32 %v3634_v62, %v3658_v29  ;;  %v3652_v52 = vmul.f32 %v3644_v26, %v10422_v53 }
 0x523   :  { %v3689_v47 = vmul.f32 %v3681_v1, %v10422_v53  ;;  %v3713_v4 = vmul.f32 %v3705_v43, %v10422_v53  ;;  %3673 = vst.msk [vmem:[#allocation3 + $0x3f] sm:$0xff] %vm3027_vm0, %v3665_v13  ;;  %v3667_v35 = vmax.f32 %v3635_v46, %v3659_v9  ;;  %v3690_v5 = vmul.f32 %v3682_v23, %v10422_v53 }
 0x524   :  { %v3636_v6 = vadd.f32 %v10433_v14, %v3624_v21  ;;  %v3714_v57 = vmul.f32 %v3706_v7, %v10422_v53  ;;  %3674 = vst.msk [vmem:[#allocation3 + $0x47] sm:$0xff] %vm3027_vm0, %v3666_v30  ;;  %v3660_v37 = vadd.f32 %v3652_v52, %v10433_v14  ;;  %v3691_v11 = vmul.f32 %v3683_v20, %v10422_v53 }
 0x525   :  { %v3697_v22 = vadd.f32 %v3689_v47, %v10433_v14  ;;  %v3721_v2 = vadd.f32 %v3713_v4, %v10433_v14  ;;  %3675 = vst.msk [vmem:[#allocation3 + $0x4f] sm:$0xff] %vm3027_vm0, %v3667_v35  ;;  %v3698_v58 = vadd.f32 %v3690_v5, %v10433_v14  ;;  %v3715_v55 = vmul.f32 %v3707_v56, %v10422_v53 }
 0x526   :  { %v3722_v63 = vadd.f32 %v3714_v57, %v10433_v14  ;;  %v3692_v19 = vmul.f32 %v3684_v31, %v10422_v53  ;;  %v3668_v60 = vmax.f32 %v3636_v6, %v3660_v37  ;;  %v3699_v16 = vadd.f32 %v3691_v11, %v10433_v14 }
 0x527   :  { %v3729_v0 = vmax.f32 %v3697_v22, %v3721_v2  ;;  %v3716_v41 = vmul.f32 %v3708_v27, %v10422_v53  ;;  %v3723_v15 = vadd.f32 %v3715_v55, %v10433_v14  ;;  %v3693_v50 = vmul.f32 %v3685_v48, %v10422_v53 }
 0x528   :  { %v3730_v39 = vmax.f32 %v3698_v58, %v3722_v63  ;;  %v3700_v61 = vadd.f32 %v3692_v19, %v10433_v14  ;;  %3676 = vst.msk [vmem:[#allocation3 + $0x57] sm:$0xff] %vm3027_vm0, %v3668_v60  ;;  %v3717_v18 = vmul.f32 %v3709_v42, %v10422_v53  ;;  %v3694_v49 = vmul.f32 %v3686_v45, %v10422_v53 }
 0x529   :  { %3737 = vst.msk [vmem:[#allocation3 + $0xdf] sm:$0xff] %vm3027_vm0, %v3729_v0  ;;  %v3724_v17 = vadd.f32 %v3716_v41, %v10433_v14  ;;  %v3718_v25 = vmul.f32 %v3710_v8, %v10422_v53  ;;  %v3731_v59 = vmax.f32 %v3699_v16, %v3723_v15  ;;  %v3701_v10 = vadd.f32 %v3693_v50, %v10433_v14 }
 0x52a   :  { %3738 = vst.msk [vmem:[#allocation3 + $0xe7] sm:$0xff] %vm3027_vm0, %v3730_v39  ;;  %v3695_v28 = vmul.f32 %v3687_v36, %v10422_v53  ;;  %v3719_v38 = vmul.f32 %v3711_v33, %v10422_v53  ;;  %v3725_v12 = vadd.f32 %v3717_v18, %v10433_v14  ;;  %v3702_v26 = vadd.f32 %v3694_v49, %v10433_v14 }
 0x52b   :  { %v3732_v40 = vmax.f32 %v3700_v61, %v3724_v17  ;;  %v3726_v1 = vadd.f32 %v3718_v25, %v10433_v14  ;;  %3739 = vst.msk [vmem:[#allocation3 + $0xef] sm:$0xff] %vm3027_vm0, %v3731_v59  ;;  %v3696_v44 = vmul.f32 %v3688_v34, %v10422_v53  ;;  %v3720_v62 = vmul.f32 %v3712_v32, %v10422_v53 }
 0x52c   :  { %v3703_v43 = vadd.f32 %v3695_v28, %v10433_v14  ;;  %v3727_v51 = vadd.f32 %v3719_v38, %v10433_v14  ;;  %v3733_v29 = vmax.f32 %v3701_v10, %v3725_v12  ;;  %v10508_v21 = vmov 0.0  }
 0x52d   :  { %3740 = vst.msk [vmem:[#allocation3 + $0xf7] sm:$0xff] %vm3027_vm0, %v3732_v40  ;;  %v3734_v23 = vmax.f32 %v3702_v26, %v3726_v1  ;;  %v3704_v13 = vadd.f32 %v3696_v44, %v10433_v14  ;;  %v3728_v46 = vadd.f32 %v3720_v62, %v10433_v14  ;;  %v10510_v53 = vmov 0.0  }
 0x52e   :  { %v3735_v7 = vmax.f32 %v3703_v43, %v3727_v51  ;;  %3741 = vst.msk [vmem:[#allocation3 + $0xff] sm:$0xff] %vm3027_vm0, %v3733_v29  ;;  %v10512_v20 = vmov 0.0   ;;  %v10514_v30 = vmov 0.0   ;;  %v10516_v52 = vmov 0.0  }
 0x52f   :  { %3742 = vst.msk [vmem:[#allocation3 + $0x107] sm:$0xff] %vm3027_vm0, %v3734_v23  ;;  %v3736_v9 = vmax.f32 %v3704_v13, %v3728_v46  ;;  %v10518_v14 = vmov 0.0   ;;  %v10520_v47 = vmov 0.0   ;;  %v10522_v4 = vmov 0.0  }
 0x530   :  { %3743 = vst.msk [vmem:[#allocation3 + $0x10f] sm:$0xff] %vm3027_vm0, %v3735_v7 }
 0x531   :  { %3744 = vst.msk [vmem:[#allocation3 + $0x117] sm:$0xff] %vm3027_vm0, %v3736_v9 }
 0x532 LB: > { %s6410_s19 = sshll.u32 %s8334_s6, 3  ;;  %s3766_s23 = scalar_lea.vmem [#allocation3], %s8334_s6  ;;  %s8334_s6 = sphi %s10524_s6, %s3757_s6   ;;  %v8330_v4 = vphi %v10522_v4, %v11491_v4   ;;  %v8326_v47 = vphi %v10520_v47, %v11490_v47   ;;  %v8322_v14 = vphi %v10518_v14, %v11489_v14   ;;  %v8318_v52 = vphi %v10516_v52, %v11488_v52   ;;  %v8314_v30 = vphi %v10514_v30, %v11487_v30   ;;  %v8310_v20 = vphi %v10512_v20, %v11486_v20   ;;  %v8306_v53 = vphi %v10510_v53, %v11485_v53   ;;  %v8302_v21 = vphi %v10508_v21, %v11484_v21  }
 0x533   : > { %s3781_s22 = scalar_lea.vmem %s11274_s5, %s6410_s19  ;;  %s3757_s6 = sadd.s32 1, %s8334_s6  }
 0x534   : > { %v7822_v6 = vld [vmem:[%s3781_s22] sm:$0xff]   ;;  %p3754_p2 = scmp.ge.s32.totalorder %s3757_s6, 64  }
 0x535   : > { %6608 = vmatprep.subr.bf16.mxu0 %v7822_v6  ;;  %6952 = vmatprep.subr.bf16.mxu1 %v7822_v6  ;;  %s10617_s0 = smov (%p3754_p2), 0  }
 0x536   : > { %6609 = vmatpush3.bf16.msra.mxu0 %v7822_v6  ;;  %6953 = vmatpush3.bf16.msra.mxu1 %v7822_v6 }
 0x538   : > { %v3767_v56 = vld [vmem:[%s3766_s23] sm:$0xff]  ;;  %v3768_v31 = vld [vmem:[%s3766_s23 + $0x8] sm:$0xff]  ;;  %v3769_v27 = vld [vmem:[%s3766_s23 + $0x10] sm:$0xff] }
 0x539   : > { %v3771_v35 = vld [vmem:[%s3766_s23 + $0x20] sm:$0xff]  ;;  %v3775_v5 = vpack.c.bf16 %v3768_v31, %v3767_v56  ;;  %v3772_v57 = vld [vmem:[%s3766_s23 + $0x28] sm:$0xff]  ;;  %v3770_v37 = vld [vmem:[%s3766_s23 + $0x18] sm:$0xff] }
 0x53a   : > { %v3777_v22 = vpack.c.bf16 %v3772_v57, %v3771_v35  ;;  %v3776_v2 = vpack.c.bf16 %v3770_v37, %v3769_v27  ;;  %v3773_v11 = vld [vmem:[%s3766_s23 + $0x30] sm:$0xff]  ;;  %v3774_v48 = vld [vmem:[%s3766_s23 + $0x38] sm:$0xff] }
 0x53b   : > { %v3778_v58 = vpack.c.bf16 %v3774_v48, %v3773_v11  ;;  %6610 = vmatprep.mubr.msk.bf16.mxu0 %vm3027_vm0, %v3775_v5 }
 0x53c   : > { %6614 = vmatprep.mubr.msk.bf16.mxu1 %vm3027_vm0, %v3777_v22  ;;  %6611 = vmatmul.mubr.msk.bf16.vlgmr.msra.gmra.mrb[0].mxu0 %vm3027_vm0, %v3776_v2 }
 0x53d   : > { %6615 = vmatmul.mubr.msk.bf16.vlgmr.msra.gmra.mrb[0].mxu1 %vm3027_vm0, %v3778_v58 }
 0x60f   : > { %v6612_v63 = vpop.f32.mrb[0].mxu0 }
 0x610   : > { %v6616_v55 = vpop.f32.mrb[0].mxu1  ;;  %v3869_v19 = vadd.f32 %v8322_v14, %v6612_v63   ;;  %v3836_v45 = vpop.f32.mrb[1].mxu0  ;;  %3756 = sbr.rel (!%p3754_p2) target bundleno = 1330 (0x532), region = 261 }
 0x611   : > { %v3873_v42 = vadd.f32 %v8306_v53, %v6616_v55   ;;  %v3852_v8 = vpop.f32.mrb[1].mxu1  ;;  %v3867_v60 = vadd.f32 %v8330_v4, %v3836_v45   ;;  %v6613_v16 = vpop.f32.mrb[2].mxu0 }
 0x612   : > { %v3871_v0 = vadd.f32 %v8314_v30, %v3852_v8   ;;  %v6617_v41 = vpop.f32.mrb[2].mxu1  ;;  %v3870_v36 = vadd.f32 %v8318_v52, %v6613_v16   ;;  %v3839_v39 = vpop.f32.mrb[3].mxu0  ;;  %v11489_v14 = vmov %v3869_v19  ;;  %v3881_v49 = vadd.f32 (%p3754_p2), %v10360_v24, %v3869_v19 }
 0x613   : > { %v3874_v33 = vadd.f32 %v8302_v21, %v6617_v41   ;;  %v3855_v15 = vpop.f32.mrb[3].mxu1  ;;  %v3868_v61 = vadd.f32 %v8326_v47, %v3839_v39   ;;  %v11485_v53 = vmov %v3873_v42  ;;  %v11491_v4 = vmov %v3867_v60 }
 0x614   : > { %v3872_v50 = vadd.f32 %v8310_v20, %v3855_v15   ;;  %v11487_v30 = vmov %v3871_v0  ;;  %v11488_v52 = vmov %v3870_v36  ;;  %v3879_v17 = vadd.f32 (%p3754_p2), %v10360_v24, %v3867_v60 }
 0x615   : > { %v11484_v21 = vmov %v3874_v33  ;;  %v11490_v47 = vmov %v3868_v61  ;;  %v3880_v18 = vadd.f32 (%p3754_p2), %v10360_v24, %v3868_v61  ;;  %v3882_v25 = vadd.f32 (%p3754_p2), %v10360_v24, %v3870_v36 }
 0x616   : > { %v11486_v20 = vmov %v3872_v50  ;;  %v3883_v34 = vadd.f32 (%p3754_p2), %v10360_v24, %v3871_v0  ;;  %v3884_v32 = vadd.f32 (%p3754_p2), %v10360_v24, %v3872_v50  ;;  %v3885_v59 = vadd.f32 (%p3754_p2), %v10360_v24, %v3873_v42 }
 0x617   :  { %v3886_v10 = vadd.f32 %v10360_v24, %v3874_v33  ;;  %v3887_v28 = vmax.f32 %v3879_v17, 0.0  ;;  %v3888_v38 = vmax.f32 %v3880_v18, 0.0  ;;  %v3889_v40 = vmax.f32 %v3881_v49, 0.0 }
 0x618   :  { %v3890_v12 = vmax.f32 %v3882_v25, 0.0  ;;  %v3891_v26 = vmax.f32 %v3883_v34, 0.0  ;;  %v3892_v1 = vmax.f32 %v3884_v32, 0.0  ;;  %v3893_v43 = vmax.f32 %v3885_v59, 0.0 }
 0x619   :  { %v3894_v51 = vmax.f32 %v3886_v10, 0.0  ;;  %v3895_v44 = vsel %vm3027_vm0, %v3887_v28, 0.0  ;;  %v3917_v62 = vmul.f32 %v3887_v28, %v3887_v28  ;;  %3947 = vst.msk [vmem:[#allocation2] sm:$0xff] %vm3027_vm0, %v3887_v28  ;;  %v3896_v29 = vsel %vm3027_vm0, %v3888_v38, 0.0  ;;  %3948 = vst.msk [vmem:[#allocation2 + $0x8] sm:$0xff] %vm3027_vm0, %v3888_v38 }
 0x61a   :  { %v3918_v23 = vmul.f32 %v3888_v38, %v3888_v38  ;;  %3949 = vst.msk [vmem:[#allocation2 + $0x10] sm:$0xff] %vm3027_vm0, %v3889_v40  ;;  %3950 = vst.msk [vmem:[#allocation2 + $0x18] sm:$0xff] %vm3027_vm0, %v3890_v12  ;;  %v3897_v7 = vadd.f32 %v3896_v29, %v3895_v44  ;;  %v3898_v13 = vsel %vm3027_vm0, %v3889_v40, 0.0  ;;  %v3919_v46 = vmul.f32 %v3889_v40, %v3889_v40 }
 0x61b   :  { %3951 = vst.msk [vmem:[#allocation2 + $0x20] sm:$0xff] %vm3027_vm0, %v3891_v26  ;;  %3952 = vst.msk [vmem:[#allocation2 + $0x28] sm:$0xff] %vm3027_vm0, %v3892_v1  ;;  %v3925_v9 = vsel %vm3027_vm0, %v3917_v62, 0.0  ;;  %v3900_v53 = vsel %vm3027_vm0, %v3890_v12, 0.0  ;;  %v3920_v20 = vmul.f32 %v3890_v12, %v3890_v12  ;;  %v3921_v47 = vmul.f32 %v3891_v26, %v3891_v26 }
 0x61c   :  { %3953 = vst.msk [vmem:[#allocation2 + $0x30] sm:$0xff] %vm3027_vm0, %v3893_v43  ;;  %3954 = vst.msk [vmem:[#allocation2 + $0x38] sm:$0xff] %vm3027_vm0, %v3894_v51  ;;  %v3926_v21 = vsel %vm3027_vm0, %v3918_v23, 0.0  ;;  %v3899_v52 = vadd.f32 %v3898_v13, %v3897_v7  ;;  %v3928_v14 = vsel %vm3027_vm0, %v3919_v46, 0.0  ;;  %v3902_v56 = vsel %vm3027_vm0, %v3891_v26, 0.0 }
 0x61d   :  { %v3927_v30 = vadd.f32 %v3926_v21, %v3925_v9  ;;  %v3930_v4 = vsel %vm3027_vm0, %v3920_v20, 0.0  ;;  %v3922_v31 = vmul.f32 %v3892_v1, %v3892_v1  ;;  %v3932_v5 = vsel %vm3027_vm0, %v3921_v47, 0.0 }
 0x61e   :  { %v3901_v6 = vadd.f32 %v3900_v53, %v3899_v52  ;;  %v3904_v57 = vsel %vm3027_vm0, %v3892_v1, 0.0  ;;  %v3923_v27 = vmul.f32 %v3893_v43, %v3893_v43  ;;  %v3906_v11 = vsel %vm3027_vm0, %v3893_v43, 0.0 }
 0x61f   :  { %v3929_v35 = vadd.f32 %v3928_v14, %v3927_v30  ;;  %v3934_v2 = vsel %vm3027_vm0, %v3922_v31, 0.0  ;;  %v3924_v48 = vmul.f32 %v3894_v51, %v3894_v51  ;;  %v3908_v19 = vsel %vm3027_vm0, %v3894_v51, 0.0 }
 0x620   :  { %v3903_v22 = vadd.f32 %v3902_v56, %v3901_v6  ;;  %v3936_v55 = vsel %vm3027_vm0, %v3923_v27, 0.0  ;;  %v10601_v32 = vmov 0.0   ;;  %v10603_v59 = vmov 0.0  }
 0x621   :  { %v3931_v37 = vadd.f32 %v3930_v4, %v3929_v35  ;;  %v3938_v8 = vsel %vm3027_vm0, %v3924_v48, 0.0  ;;  %v10605_v10 = vmov 0.0   ;;  %v10607_v28 = vmov 0.0  }
 0x622   :  { %v3905_v63 = vadd.f32 %v3904_v57, %v3903_v22  ;;  %v10609_v38 = vmov 0.0   ;;  %v10611_v40 = vmov 0.0   ;;  %v10613_v12 = vmov 0.0  }
 0x623   :  { %v3933_v58 = vadd.f32 %v3932_v5, %v3931_v37  ;;  %v10615_v26 = vmov 0.0  }
 0x624   :  { %v3907_v45 = vadd.f32 %v3906_v11, %v3905_v63 }
 0x625   :  { %v3935_v42 = vadd.f32 %v3934_v2, %v3933_v58 }
 0x626   :  { %v3909_v0 = vadd.f32 %v3908_v19, %v3907_v45 }
 0x627   :  { %v3937_v60 = vadd.f32 %v3936_v55, %v3935_v42 }
 0x628   :  { %v3910_v16 = vrot.slane %v3909_v0, 4 }
 0x629   :  { %v3939_v41 = vadd.f32 %v3938_v8, %v3937_v60 }
 0x62a   :  { %v3911_v36 = vadd.f32 %v3910_v16, %v3909_v0 }
 0x62b   :  { %v3940_v33 = vrot.slane %v3939_v41, 4 }
 0x62c   :  { %v3912_v39 = vrot.slane %v3911_v36, 2 }
 0x62d   :  { %v3941_v15 = vadd.f32 %v3940_v33, %v3939_v41 }
 0x62e   :  { %v3913_v61 = vadd.f32 %v3912_v39, %v3911_v36 }
 0x62f   :  { %v3942_v50 = vrot.slane %v3941_v15, 2 }
 0x630   :  { %v3914_v17 = vrot.slane %v3913_v61, 1 }
 0x631   :  { %v3943_v18 = vadd.f32 %v3942_v50, %v3941_v15 }
 0x632   :  { %v10597_v49 = vadd.f32 %v3914_v17, %v3913_v61 }
 0x633   :  { %v3944_v25 = vrot.slane %v3943_v18, 1 }
 0x635   :  { %v10599_v34 = vadd.f32 %v3944_v25, %v3943_v18 }
 0x636 LB: > { %s6411_s24 = sshll.u32 %s8370_s0, 3  ;;  %s5828_s28 = scalar_lea.vmem [#allocation3], %s8370_s0  ;;  %s8370_s0 = sphi %s10617_s0, %s3960_s0   ;;  %v8366_v26 = vphi %v10615_v26, %v11499_v26   ;;  %v8362_v12 = vphi %v10613_v12, %v11498_v12   ;;  %v8358_v40 = vphi %v10611_v40, %v11497_v40   ;;  %v8354_v38 = vphi %v10609_v38, %v11496_v38   ;;  %v8350_v28 = vphi %v10607_v28, %v11495_v28   ;;  %v8346_v10 = vphi %v10605_v10, %v11494_v10   ;;  %v8342_v59 = vphi %v10603_v59, %v11493_v59   ;;  %v8338_v32 = vphi %v10601_v32, %v11492_v32  }
 0x637   : > { %s3985_s27 = scalar_lea.vmem %s11274_s5, %s6411_s24  ;;  %v6347_v1 = vld [vmem:[%s5828_s28 + $0xc0] sm:$0xff]  ;;  %v6348_v43 = vld [vmem:[%s5828_s28 + $0xc8] sm:$0xff]  ;;  %v6349_v23 = vld [vmem:[%s5828_s28 + $0xd0] sm:$0xff]  ;;  %s3960_s0 = sadd.s32 1, %s8370_s0  }
 0x638   : > { %v6351_v51 = vld [vmem:[%s5828_s28 + $0xe0] sm:$0xff]  ;;  %v3979_v62 = vpack.c.bf16 %v6348_v43, %v6347_v1  ;;  %v6352_v29 = vld [vmem:[%s5828_s28 + $0xe8] sm:$0xff]  ;;  %v6350_v7 = vld [vmem:[%s5828_s28 + $0xd8] sm:$0xff]  ;;  %p3957_p3 = scmp.ge.s32.totalorder %s3960_s0, 64  }
 0x639   : > { %v7823_v44 = vld [vmem:[%s3985_s27] sm:$0xff]   ;;  %v3981_v13 = vpack.c.bf16 %v6352_v29, %v6351_v51  ;;  %v3980_v46 = vpack.c.bf16 %v6350_v7, %v6349_v23  ;;  %v6353_v9 = vld [vmem:[%s5828_s28 + $0xf0] sm:$0xff]  ;;  %v6354_v21 = vld [vmem:[%s5828_s28 + $0xf8] sm:$0xff]  ;;  %v11500_v55 = vmov (%p3957_p3), 0.0  }
 0x63a   : > { %6618 = vmatprep.subr.bf16.mxu0 %v7823_v44  ;;  %6954 = vmatprep.subr.bf16.mxu1 %v7823_v44  ;;  %v3982_v53 = vpack.c.bf16 %v6354_v21, %v6353_v9  ;;  %4205 = vst [vmem:[#allocation3 + $0x3f] sm:$0xff] (%p3957_p3), %v11500_v55  ;;  %4206 = vst [vmem:[#allocation3 + $0x47] sm:$0xff] (%p3957_p3), %v11500_v55  ;;  %v10688_v25 = vld [vmem:[%s11277_s8 + $0x1] sm:$0x1] (%p3957_p3) }
 0x63b   : > { %6619 = vmatpush3.bf16.msra.mxu0 %v7823_v44  ;;  %6955 = vmatpush3.bf16.msra.mxu1 %v7823_v44  ;;  %4207 = vst [vmem:[#allocation3 + $0x4f] sm:$0xff] (%p3957_p3), %v11500_v55  ;;  %4208 = vst [vmem:[#allocation3 + $0x57] sm:$0xff] (%p3957_p3), %v11500_v55 }
 0x63c   : > { %6620 = vmatprep.mubr.msk.bf16.mxu0 %vm3027_vm0, %v3979_v62  ;;  %6624 = vmatprep.mubr.msk.bf16.mxu1 %vm3027_vm0, %v3981_v13  ;;  %4241 = vst [vmem:[#allocation3 + $0xff] sm:$0xff] (%p3957_p3), %v11500_v55  ;;  %4242 = vst [vmem:[#allocation3 + $0x107] sm:$0xff] (%p3957_p3), %v11500_v55 }
 0x63d   :  { %4243 = vst [vmem:[#allocation3 + $0x10f] sm:$0xff] (%p3957_p3), %v11500_v55  ;;  %4244 = vst [vmem:[#allocation3 + $0x117] sm:$0xff] (%p3957_p3), %v11500_v55 }
 0x63e   : > { %6621 = vmatmul.mubr.msk.bf16.vlgmr.msra.gmra.mrb[0].mxu0 %vm3027_vm0, %v3980_v46  ;;  %6625 = vmatmul.mubr.msk.bf16.vlgmr.msra.gmra.mrb[0].mxu1 %vm3027_vm0, %v3982_v53 }
 0x711   : > { %v6622_v20 = vpop.f32.mrb[0].mxu0  ;;  %v6626_v30 = vpop.f32.mrb[0].mxu1  ;;  %3959 = sbr.rel (!%p3957_p3) target bundleno = 1590 (0x636), region = 272 }
 0x712   : > { %v4073_v52 = vadd.f32 %v8358_v40, %v6622_v20   ;;  %v4077_v14 = vadd.f32 %v8342_v59, %v6626_v30   ;;  %v4040_v47 = vpop.f32.mrb[1].mxu0  ;;  %v4056_v4 = vpop.f32.mrb[1].mxu1 }
 0x713   : > { %v4071_v56 = vadd.f32 %v8366_v26, %v4040_v47   ;;  %v4075_v31 = vadd.f32 %v8350_v28, %v4056_v4   ;;  %v6623_v35 = vpop.f32.mrb[2].mxu0  ;;  %v6627_v6 = vpop.f32.mrb[2].mxu1 }
 0x714   : > { %v4074_v5 = vadd.f32 %v8354_v38, %v6623_v35   ;;  %v4078_v57 = vadd.f32 %v8338_v32, %v6627_v6   ;;  %v4043_v27 = vpop.f32.mrb[3].mxu0  ;;  %v4059_v37 = vpop.f32.mrb[3].mxu1  ;;  %v11493_v59 = vmov %v4077_v14  ;;  %v11497_v40 = vmov %v4073_v52 }
 0x715   : > { %v4072_v22 = vadd.f32 %v8362_v12, %v4043_v27   ;;  %v4076_v2 = vadd.f32 %v8346_v10, %v4059_v37   ;;  %v11495_v28 = vmov %v4075_v31  ;;  %v11499_v26 = vmov %v4071_v56 }
 0x716   : > { %v11492_v32 = vmov %v4078_v57  ;;  %v11496_v38 = vmov %v4074_v5  ;;  %v4079_v11 = vadd.f32 (%p3957_p3), %v10360_v24, %v4071_v56  ;;  %v4081_v58 = vadd.f32 (%p3957_p3), %v10360_v24, %v4073_v52  ;;  %v10698_v28 = vld [vmem:[%s11277_s8 + $0x2] sm:$0x1] (%p3957_p3) }
 0x717   : > { %v11494_v10 = vmov %v4076_v2  ;;  %v11498_v12 = vmov %v4072_v22  ;;  %v4080_v48 = vadd.f32 (%p3957_p3), %v10360_v24, %v4072_v22  ;;  %v4082_v63 = vadd.f32 (%p3957_p3), %v10360_v24, %v4074_v5 }
 0x718   :  { %v4083_v19 = vadd.f32 %v10360_v24, %v4075_v31  ;;  %v4084_v42 = vadd.f32 %v10360_v24, %v4076_v2  ;;  %v4085_v45 = vadd.f32 %v10360_v24, %v4077_v14  ;;  %v4086_v8 = vadd.f32 %v10360_v24, %v4078_v57  ;;  %v10683_v24 = vld [vmem:[%s11277_s8] ss:$0 sm:$0xff]  ;;  %s10727_s8 = smov 0  }
 0x719   :  { %v4087_v60 = vmax.f32 %v4079_v11, 0.0  ;;  %v4088_v0 = vmax.f32 %v4080_v48, 0.0  ;;  %v4089_v16 = vmax.f32 %v4081_v58, 0.0  ;;  %v4090_v41 = vmax.f32 %v4082_v63, 0.0 }
 0x71a   :  { %v4091_v36 = vmax.f32 %v4083_v19, 0.0  ;;  %v4092_v33 = vmax.f32 %v4084_v42, 0.0  ;;  %v4093_v39 = vmax.f32 %v4085_v45, 0.0  ;;  %v4094_v15 = vmax.f32 %v4086_v8, 0.0 }
 0x71b   :  { %v4095_v61 = vsel %vm3027_vm0, %v4087_v60, 0.0  ;;  %v4117_v50 = vmul.f32 %v4087_v60, %v4087_v60  ;;  %4147 = vst.msk [vmem:[#allocation2 + $0x40] sm:$0xff] %vm3027_vm0, %v4087_v60  ;;  %v4096_v17 = vsel %vm3027_vm0, %v4088_v0, 0.0  ;;  %v4118_v18 = vmul.f32 %v4088_v0, %v4088_v0  ;;  %4148 = vst.msk [vmem:[#allocation2 + $0x48] sm:$0xff] %vm3027_vm0, %v4088_v0 }
 0x71c   :  { %4149 = vst.msk [vmem:[#allocation2 + $0x50] sm:$0xff] %vm3027_vm0, %v4089_v16  ;;  %4150 = vst.msk [vmem:[#allocation2 + $0x58] sm:$0xff] %vm3027_vm0, %v4090_v41  ;;  %v4097_v32 = vadd.f32 %v4096_v17, %v4095_v61  ;;  %v4098_v59 = vsel %vm3027_vm0, %v4089_v16, 0.0  ;;  %v4119_v10 = vmul.f32 %v4089_v16, %v4089_v16  ;;  %v4100_v12 = vsel %vm3027_vm0, %v4090_v41, 0.0 }
 0x71d   :  { %4151 = vst.msk [vmem:[#allocation2 + $0x60] sm:$0xff] %vm3027_vm0, %v4091_v36  ;;  %4152 = vst.msk [vmem:[#allocation2 + $0x68] sm:$0xff] %vm3027_vm0, %v4092_v33  ;;  %v4125_v38 = vsel %vm3027_vm0, %v4117_v50, 0.0  ;;  %v4126_v40 = vsel %vm3027_vm0, %v4118_v18, 0.0  ;;  %v4120_v26 = vmul.f32 %v4090_v41, %v4090_v41  ;;  %v4121_v44 = vmul.f32 %v4091_v36, %v4091_v36  ;;  %v4165_v18 = vld [vmem:[#allocation2] ss:$2 sm:$0xff] }
 0x71e   :  { %4153 = vst.msk [vmem:[#allocation2 + $0x70] sm:$0xff] %vm3027_vm0, %v4093_v39  ;;  %4154 = vst.msk [vmem:[#allocation2 + $0x78] sm:$0xff] %vm3027_vm0, %v4094_v15  ;;  %v4127_v1 = vadd.f32 %v4126_v40, %v4125_v38  ;;  %v4099_v43 = vadd.f32 %v4098_v59, %v4097_v32  ;;  %v4128_v51 = vsel %vm3027_vm0, %v4119_v10, 0.0  ;;  %v4102_v29 = vsel %vm3027_vm0, %v4091_v36, 0.0  ;;  %v4185_v32 = vld [vmem:[#allocation2 + $0x1] ss:$2 sm:$0xff] }
 0x71f   :  { %v4130_v62 = vsel %vm3027_vm0, %v4120_v26, 0.0  ;;  %v4122_v23 = vmul.f32 %v4092_v33, %v4092_v33  ;;  %v4132_v46 = vsel %vm3027_vm0, %v4121_v44, 0.0  ;;  %v4104_v9 = vsel %vm3027_vm0, %v4092_v33, 0.0  ;;  %v4166_v59 = vld [vmem:[#allocation2 + $0x10] ss:$2 sm:$0xff] }
 0x720   :  { %v4129_v7 = vadd.f32 %v4128_v51, %v4127_v1  ;;  %v4101_v13 = vadd.f32 %v4100_v12, %v4099_v43  ;;  %v4123_v21 = vmul.f32 %v4093_v39, %v4093_v39  ;;  %v4106_v52 = vsel %vm3027_vm0, %v4093_v39, 0.0  ;;  %v4186_v10 = vld [vmem:[#allocation2 + $0x11] ss:$2 sm:$0xff]  ;;  %v4167_v38 = vld [vmem:[#allocation2 + $0x20] ss:$2 sm:$0xff] }
 0x721   :  { %v4134_v30 = vsel %vm3027_vm0, %v4122_v23, 0.0  ;;  %v4124_v14 = vmul.f32 %v4094_v15, %v4094_v15  ;;  %v4108_v31 = vsel %vm3027_vm0, %v4094_v15, 0.0  ;;  %v4187_v26 = vld [vmem:[#allocation2 + $0x21] ss:$2 sm:$0xff]  ;;  %v4188_v1 = vld [vmem:[#allocation2 + $0x31] ss:$2 sm:$0xff] }
 0x722   :  { %v4131_v53 = vadd.f32 %v4130_v62, %v4129_v7  ;;  %v4103_v20 = vadd.f32 %v4102_v29, %v4101_v13  ;;  %v4136_v56 = vsel %vm3027_vm0, %v4123_v21, 0.0  ;;  %v4209_v43 = vld [vmem:[#allocation2 + $0x40] ss:$2 sm:$0xff]  ;;  %v4221_v51 = vld [vmem:[#allocation2 + $0x41] ss:$2 sm:$0xff] }
 0x723   :  { %v4138_v5 = vsel %vm3027_vm0, %v4124_v14, 0.0  ;;  %v4210_v44 = vld [vmem:[#allocation2 + $0x50] ss:$2 sm:$0xff] }
 0x724   :  { %v4133_v47 = vadd.f32 %v4132_v46, %v4131_v53  ;;  %v4105_v4 = vadd.f32 %v4104_v9, %v4103_v20  ;;  %v4211_v13 = vld [vmem:[#allocation2 + $0x60] ss:$2 sm:$0xff]  ;;  %v4223_v46 = vld [vmem:[#allocation2 + $0x61] ss:$2 sm:$0xff] }
 0x726   :  { %v4135_v35 = vadd.f32 %v4134_v30, %v4133_v47  ;;  %v4107_v6 = vadd.f32 %v4106_v52, %v4105_v4 }
 0x728   :  { %v4137_v57 = vadd.f32 %v4136_v56, %v4135_v35  ;;  %v4109_v27 = vadd.f32 %v4108_v31, %v4107_v6 }
 0x72a   :  { %v4110_v37 = vrot.slane %v4109_v27, 4  ;;  %v4139_v22 = vadd.f32 %v4138_v5, %v4137_v57 }
 0x72c   :  { %v4111_v2 = vadd.f32 %v4110_v37, %v4109_v27  ;;  %v4140_v11 = vrot.slane %v4139_v22, 4 }
 0x72e   :  { %v4112_v48 = vrot.slane %v4111_v2, 2  ;;  %v4141_v58 = vadd.f32 %v4140_v11, %v4139_v22  ;;  %v4212_v11 = vld [vmem:[#allocation2 + $0x70] ss:$2 sm:$0xff] }
 0x730   :  { %v4113_v63 = vadd.f32 %v4112_v48, %v4111_v2  ;;  %v4142_v55 = vrot.slane %v4141_v58, 2 }
 0x732   :  { %v4114_v19 = vrot.slane %v4113_v63, 1  ;;  %v4143_v42 = vadd.f32 %v4142_v55, %v4141_v58 }
 0x734   :  { %v4115_v45 = vadd.f32 %v4114_v19, %v4113_v63  ;;  %v4144_v8 = vrot.slane %v4143_v42, 1  ;;  %v4224_v19 = vld [vmem:[#allocation2 + $0x71] ss:$2 sm:$0xff] }
 0x736   :  { %v4116_v60 = vadd.f32 %v4115_v45, %v10597_v49  ;;  %v4145_v0 = vadd.f32 %v4144_v8, %v4143_v42  ;;  %v11501_v49 = vld [vmem:[#allocation24_spill] sm:$0xff] }
 0x738   :  { %v4146_v16 = vadd.f32 %v4145_v0, %v10599_v34  ;;  %v4155_v41 = vmul.f32 0.0078125, %v4116_v60  ;;  %v4168_v34 = vld [vmem:[#allocation2 + $0x30] ss:$2 sm:$0xff] }
 0x73a   :  { %v4156_v36 = vmul.f32 0.0078125, %v4146_v16  ;;  %v4157_v33 = vmul.f32 %v4155_v41, %v4155_v41 }
 0x73c   :  { %v4158_v39 = vsub.f32 %v4156_v36, %v4157_v33 }
 0x73e   :  { %v4159_v15 = vmax.f32 %v4158_v39, 0.0 }
 0x740   :  { %v4160_v61 = vadd.f32 0.001, %v4159_v15 }
 0x742   :  { %7824 = vrsqrt.f32 %v4160_v61 }
 0x74c   :  { %v7825_v50 = vpop.eup %7824 }
 0x74d   :  { %v4162_v17 = vmul.f32 %v7825_v50, %v10365_v54  ;;  %v4222_v54 = vld [vmem:[#allocation2 + $0x51] ss:$2 sm:$0xff] }
 0x74f   :  { %v4163_v40 = vmul.f32 %v4162_v17, %v4155_v41  ;;  %v4172_v12 = vrot.slane %v4162_v17, %v11501_v49 }
 0x751   :  { %v4164_v62 = vsub.f32 %v10375_v3, %v4163_v40  ;;  %v4173_v29 = vmul.f32 %v4172_v12, %v4165_v18  ;;  %v4189_v23 = vmul.f32 %v4185_v32, %v4172_v12  ;;  %v4174_v7 = vmul.f32 %v4172_v12, %v4166_v59 }
 0x752   :  { %v4190_v9 = vmul.f32 %v4186_v10, %v4172_v12  ;;  %v4175_v21 = vmul.f32 %v4172_v12, %v4167_v38  ;;  %v4191_v53 = vmul.f32 %v4187_v26, %v4172_v12  ;;  %v4176_v20 = vmul.f32 %v4172_v12, %v4168_v34 }
 0x753   :  { %v4180_v30 = vrot.slane %v4164_v62, %v11501_v49  ;;  %v4192_v52 = vmul.f32 %v4188_v1, %v4172_v12  ;;  %v4213_v14 = vmul.f32 %v4209_v43, %v4172_v12  ;;  %v4225_v47 = vmul.f32 %v4221_v51, %v4172_v12 }
 0x754   :  { %v4214_v4 = vmul.f32 %v4210_v44, %v4172_v12  ;;  %v4226_v56 = vmul.f32 %v4222_v54, %v4172_v12  ;;  %v4215_v31 = vmul.f32 %v4211_v13, %v4172_v12  ;;  %v4227_v35 = vmul.f32 %v4223_v46, %v4172_v12 }
 0x755   :  { %v4181_v3 = vadd.f32 %v4180_v30, %v4173_v29  ;;  %v4193_v6 = vadd.f32 %v4189_v23, %v4180_v30  ;;  %v4182_v5 = vadd.f32 %v4180_v30, %v4174_v7  ;;  %v4194_v57 = vadd.f32 %v4190_v9, %v4180_v30 }
 0x756   :  { %v4183_v27 = vadd.f32 %v4180_v30, %v4175_v21  ;;  %v4195_v37 = vadd.f32 %v4191_v53, %v4180_v30  ;;  %v4184_v22 = vadd.f32 %v4180_v30, %v4176_v20  ;;  %v4196_v2 = vadd.f32 %v4192_v52, %v4180_v30 }
 0x757   :  { %v4197_v48 = vmax.f32 %v4181_v3, %v4193_v6  ;;  %v4198_v58 = vmax.f32 %v4182_v5, %v4194_v57  ;;  %v4217_v63 = vadd.f32 %v4213_v14, %v4180_v30  ;;  %v4229_v55 = vadd.f32 %v4225_v47, %v4180_v30 }
 0x758   :  { %v4199_v42 = vmax.f32 %v4183_v27, %v4195_v37  ;;  %v4200_v45 = vmax.f32 %v4184_v22, %v4196_v2  ;;  %v4218_v8 = vadd.f32 %v4214_v4, %v4180_v30  ;;  %v4230_v60 = vadd.f32 %v4226_v56, %v4180_v30 }
 0x759   :  { %4201 = vst.msk [vmem:[#allocation3 + $0x1f] sm:$0xff] %vm3027_vm0, %v4197_v48  ;;  %4202 = vst.msk [vmem:[#allocation3 + $0x27] sm:$0xff] %vm3027_vm0, %v4198_v58  ;;  %v4233_v0 = vmax.f32 %v4217_v63, %v4229_v55  ;;  %v4219_v16 = vadd.f32 %v4215_v31, %v4180_v30  ;;  %v4231_v41 = vadd.f32 %v4227_v35, %v4180_v30  ;;  %v8372_v18 = vmov 0.0  }
 0x75a   :  { %v4216_v36 = vmul.f32 %v4212_v11, %v4172_v12  ;;  %4203 = vst.msk [vmem:[#allocation3 + $0x2f] sm:$0xff] %vm3027_vm0, %v4199_v42  ;;  %4204 = vst.msk [vmem:[#allocation3 + $0x37] sm:$0xff] %vm3027_vm0, %v4200_v45  ;;  %v4234_v33 = vmax.f32 %v4218_v8, %v4230_v60  ;;  %v4228_v39 = vmul.f32 %v4224_v19, %v4172_v12  ;;  %v8376_v32 = vmov 0.0  }
 0x75b   :  { %4237 = vst.msk [vmem:[#allocation3 + $0xdf] sm:$0xff] %vm3027_vm0, %v4233_v0  ;;  %v4235_v15 = vmax.f32 %v4219_v16, %v4231_v41  ;;  %v8380_v59 = vmov 0.0   ;;  %v8384_v10 = vmov 0.0  }
 0x75c   :  { %v4220_v61 = vadd.f32 %v4216_v36, %v4180_v30  ;;  %4238 = vst.msk [vmem:[#allocation3 + $0xe7] sm:$0xff] %vm3027_vm0, %v4234_v33  ;;  %v4232_v50 = vadd.f32 %v4228_v39, %v4180_v30 }
 0x75d   :  { %4239 = vst.msk [vmem:[#allocation3 + $0xef] sm:$0xff] %vm3027_vm0, %v4235_v15 }
 0x75e   :  { %v4236_v17 = vmax.f32 %v4220_v61, %v4232_v50 }
 0x760   :  { %4240 = vst.msk [vmem:[#allocation3 + $0xf7] sm:$0xff] %vm3027_vm0, %v4236_v17 }
 0x761 LB: > { %s6412_s17 = sshll.u32 %s8390_s8, 3  ;;  %s4258_s6 = scalar_lea.vmem [#allocation3], %s8390_s8  ;;  %s8390_s8 = sphi %s10727_s8, %s4253_s8   ;;  %v8386_v10 = vphi %v8384_v10, %v8385_v10   ;;  %v8382_v59 = vphi %v8380_v59, %v8381_v59   ;;  %v8378_v32 = vphi %v8376_v32, %v8377_v32   ;;  %v8374_v18 = vphi %v8372_v18, %v8373_v18  }
 0x762   : > { %s4267_s1 = scalar_lea.vmem %s11276_s7, %s6412_s17  ;;  %s4253_s8 = sadd.s32 1, %s8390_s8  }
 0x763   : > { %v7826_v12 = vld [vmem:[%s4267_s1] sm:$0xff]   ;;  %p4250_p4 = scmp.ge.s32.totalorder %s4253_s8, 64  }
 0x764   : > { %6628 = vmatprep.subr.bf16.mxu0 %v7826_v12  ;;  %v8392_v15 = vmov (%p4250_p4), 0.0   ;;  %v8396_v61 = vmov (%p4250_p4), 0.0   ;;  %v8400_v50 = vmov (%p4250_p4), 0.0   ;;  %v8404_v17 = vmov (%p4250_p4), 0.0   ;;  %s10762_s19 = smov (%p4250_p4), 0  }
 0x765   : > { %6629 = vmatpush3.bf16.msra.mxu0 %v7826_v12 }
 0x767   : > { %v4259_v38 = vld [vmem:[%s4258_s6] sm:$0xff]  ;;  %v4260_v40 = vld [vmem:[%s4258_s6 + $0x8] sm:$0xff]  ;;  %v4261_v49 = vld [vmem:[%s4258_s6 + $0x10] sm:$0xff] }
 0x768   : > { %v4263_v26 = vpack.c.bf16 %v4260_v40, %v4259_v38  ;;  %v4262_v34 = vld [vmem:[%s4258_s6 + $0x18] sm:$0xff] }
 0x769   : > { %v4264_v1 = vpack.c.bf16 %v4262_v34, %v4261_v49 }
 0x76a   : > { %6630 = vmatprep.mubr.msk.bf16.mxu0 %vm3027_vm0, %v4263_v26 }
 0x76b   : > { %6631 = vmatmul.mubr.msk.bf16.vlgmr.msra.gmra.mrb[0].mxu0 %vm3027_vm0, %v4264_v1 }
 0x83e   : > { %v6632_v43 = vpop.f32.mrb[0].mxu0  ;;  %4252 = sbr.rel (!%p4250_p4) target bundleno = 1889 (0x761), region = 283 }
 0x83f   : > { %v4333_v51 = vadd.f32 %v8378_v32, %v6632_v43   ;;  %v4316_v44 = vpop.f32.mrb[1].mxu0 }
 0x840   : > { %v4331_v62 = vadd.f32 %v8386_v10, %v4316_v44   ;;  %v6633_v29 = vpop.f32.mrb[2].mxu0 }
 0x841   : > { %v4334_v23 = vadd.f32 %v8374_v18, %v6633_v29   ;;  %v4319_v7 = vpop.f32.mrb[3].mxu0  ;;  %v8377_v32 = vmov %v4333_v51   ;;  %v4341_v9 = vadd.f32 (%p4250_p4), %v10683_v24, %v4333_v51 }
 0x842   : > { %v4332_v54 = vadd.f32 %v8382_v59, %v4319_v7   ;;  %v8385_v10 = vmov %v4331_v62   ;;  %v4339_v13 = vadd.f32 (%p4250_p4), %v10683_v24, %v4331_v62 }
 0x843   : > { %v8373_v18 = vmov %v4334_v23   ;;  %v4342_v21 = vadd.f32 (%p4250_p4), %v10683_v24, %v4334_v23  ;;  %v4345_v30 = vmax.f32 (%p4250_p4), %v4341_v9, 0.0 }
 0x844   : > { %v8381_v59 = vmov %v4332_v54   ;;  %v4340_v46 = vadd.f32 (%p4250_p4), %v10683_v24, %v4332_v54  ;;  %v4343_v53 = vmax.f32 (%p4250_p4), %v4339_v13, 0.0 }
 0x845   :  { %v4346_v52 = vmax.f32 %v4342_v21, 0.0  ;;  %4381 = vst.msk [vmem:[#allocation2 + $0x10] sm:$0xff] %vm3027_vm0, %v4345_v30  ;;  %v4350_v35 = vsel %vm3027_vm0, %v4345_v30, 0.0  ;;  %v4363_v3 = vmul.f32 %v4345_v30, %v4345_v30 }
 0x846   :  { %v4344_v20 = vmax.f32 %v4340_v46, 0.0  ;;  %v4347_v14 = vsel %vm3027_vm0, %v4343_v53, 0.0  ;;  %v4361_v47 = vmul.f32 %v4343_v53, %v4343_v53  ;;  %4379 = vst.msk [vmem:[#allocation2] sm:$0xff] %vm3027_vm0, %v4343_v53 }
 0x847   :  { %4382 = vst.msk [vmem:[#allocation2 + $0x18] sm:$0xff] %vm3027_vm0, %v4346_v52  ;;  %v4352_v57 = vsel %vm3027_vm0, %v4346_v52, 0.0  ;;  %v4364_v27 = vmul.f32 %v4346_v52, %v4346_v52  ;;  %v4368_v2 = vsel %vm3027_vm0, %v4363_v3, 0.0 }
 0x848   :  { %v4348_v4 = vsel %vm3027_vm0, %v4344_v20, 0.0  ;;  %v4362_v56 = vmul.f32 %v4344_v20, %v4344_v20  ;;  %4380 = vst.msk [vmem:[#allocation2 + $0x8] sm:$0xff] %vm3027_vm0, %v4344_v20  ;;  %v4365_v6 = vsel %vm3027_vm0, %v4361_v47, 0.0 }
 0x849   :  { %v4349_v31 = vadd.f32 %v4348_v4, %v4347_v14  ;;  %v4370_v11 = vsel %vm3027_vm0, %v4364_v27, 0.0 }
 0x84a   :  { %v4366_v5 = vsel %vm3027_vm0, %v4362_v56, 0.0 }
 0x84b   :  { %v4367_v37 = vadd.f32 %v4366_v5, %v4365_v6  ;;  %v4351_v22 = vadd.f32 %v4350_v35, %v4349_v31 }
 0x84d   :  { %v4369_v48 = vadd.f32 %v4368_v2, %v4367_v37  ;;  %v4353_v58 = vadd.f32 %v4352_v57, %v4351_v22 }
 0x84f   :  { %v4354_v63 = vrot.slane %v4353_v58, 4  ;;  %v4371_v55 = vadd.f32 %v4370_v11, %v4369_v48 }
 0x851   :  { %v4355_v19 = vadd.f32 %v4354_v63, %v4353_v58  ;;  %v4372_v42 = vrot.slane %v4371_v55, 4 }
 0x853   :  { %v4356_v45 = vrot.slane %v4355_v19, 2  ;;  %v4373_v8 = vadd.f32 %v4372_v42, %v4371_v55 }
 0x855   :  { %v4357_v60 = vadd.f32 %v4356_v45, %v4355_v19  ;;  %v4374_v0 = vrot.slane %v4373_v8, 2 }
 0x857   :  { %v4358_v16 = vrot.slane %v4357_v60, 1  ;;  %v4375_v41 = vadd.f32 %v4374_v0, %v4373_v8 }
 0x859   :  { %v10758_v36 = vadd.f32 %v4358_v16, %v4357_v60  ;;  %v4376_v33 = vrot.slane %v4375_v41, 1 }
 0x85b   :  { %v10760_v39 = vadd.f32 %v4376_v33, %v4375_v41 }
 0x85c LB: > { %s6413_s20 = sshll.u32 %s8410_s19, 3  ;;  %s5835_s0 = scalar_lea.vmem [#allocation3], %s8410_s19  ;;  %s8410_s19 = sphi %s10762_s19, %s4388_s19   ;;  %v8406_v17 = vphi %v8404_v17, %v8405_v17   ;;  %v8402_v50 = vphi %v8400_v50, %v8401_v50   ;;  %v8398_v61 = vphi %v8396_v61, %v8397_v61   ;;  %v8394_v15 = vphi %v8392_v15, %v8393_v15  }
 0x85d   : > { %s4403_s23 = scalar_lea.vmem %s11276_s7, %s6413_s20  ;;  %v6368_v18 = vld [vmem:[%s5835_s0 + $0xc0] sm:$0xff]  ;;  %v6369_v32 = vld [vmem:[%s5835_s0 + $0xc8] sm:$0xff]  ;;  %v6370_v59 = vld [vmem:[%s5835_s0 + $0xd0] sm:$0xff]  ;;  %s4388_s19 = sadd.s32 1, %s8410_s19  }
 0x85e   : > { %v7827_v10 = vld [vmem:[%s4403_s23] sm:$0xff]   ;;  %v4399_v38 = vpack.c.bf16 %v6369_v32, %v6368_v18  ;;  %v6371_v40 = vld [vmem:[%s5835_s0 + $0xd8] sm:$0xff]  ;;  %p4385_p5 = scmp.ge.s32.totalorder %s4388_s19, 64  }
 0x85f   : > { %6634 = vmatprep.subr.bf16.mxu0 %v7827_v10  ;;  %v4400_v49 = vpack.c.bf16 %v6371_v40, %v6370_v59  ;;  %v11502_v13 = vmov (%p4385_p5), 0.0   ;;  %v10797_v46 = vld [vmem:[%s11279_s10 + $0x1] sm:$0x1] (%p4385_p5)  ;;  %v10802_v30 = vld [vmem:[%s11279_s10 + $0x2] sm:$0x1] (%p4385_p5) }
 0x860   : > { %6636 = vmatprep.mubr.msk.bf16.mxu0 %vm3027_vm0, %v4399_v38  ;;  %6635 = vmatpush3.bf16.msra.mxu0 %v7827_v10  ;;  %4549 = vst [vmem:[#allocation3 + $0x2f] sm:$0xff] (%p4385_p5), %v11502_v13  ;;  %4550 = vst [vmem:[#allocation3 + $0x37] sm:$0xff] (%p4385_p5), %v11502_v13 }
 0x861   :  { %4551 = vst [vmem:[#allocation3 + $0x3f] sm:$0xff] (%p4385_p5), %v11502_v13  ;;  %4552 = vst [vmem:[#allocation3 + $0x47] sm:$0xff] (%p4385_p5), %v11502_v13 }
 0x862   :  { %4569 = vst [vmem:[#allocation3 + $0xef] sm:$0xff] (%p4385_p5), %v11502_v13  ;;  %4570 = vst [vmem:[#allocation3 + $0xf7] sm:$0xff] (%p4385_p5), %v11502_v13 }
 0x863   : > { %6637 = vmatmul.mubr.msk.bf16.vlgmr.msra.gmra.mrb[0].mxu0 %vm3027_vm0, %v4400_v49  ;;  %4571 = vst [vmem:[#allocation3 + $0xff] sm:$0xff] (%p4385_p5), %v11502_v13  ;;  %4572 = vst [vmem:[#allocation3 + $0x107] sm:$0xff] (%p4385_p5), %v11502_v13 }
 0x936   : > { %v6638_v12 = vpop.f32.mrb[0].mxu0  ;;  %4387 = sbr.rel (!%p4385_p5) target bundleno = 2140 (0x85c), region = 294 }
 0x937   : > { %v4469_v26 = vadd.f32 %v8398_v61, %v6638_v12   ;;  %v4452_v34 = vpop.f32.mrb[1].mxu0  ;;  %v4525_v12 = vld [vmem:[#allocation2] ss:$2 sm:$0xff] (%p4385_p5) }
 0x938   : > { %v4467_v1 = vadd.f32 %v8406_v17, %v4452_v34   ;;  %v6639_v43 = vpop.f32.mrb[2].mxu0  ;;  %v4526_v34 = vld [vmem:[#allocation2 + $0x10] ss:$2 sm:$0xff] (%p4385_p5) }
 0x939   : > { %v4470_v51 = vadd.f32 %v8394_v15, %v6639_v43   ;;  %v4455_v44 = vpop.f32.mrb[3].mxu0  ;;  %v8397_v61 = vmov %v4469_v26   ;;  %v4473_v7 = vadd.f32 (%p4385_p5), %v10683_v24, %v4469_v26  ;;  %v4539_v26 = vld [vmem:[#allocation2 + $0x1] ss:$2 sm:$0xff] (%p4385_p5) }
 0x93a   : > { %v4468_v62 = vadd.f32 %v8402_v50, %v4455_v44   ;;  %v8405_v17 = vmov %v4467_v1   ;;  %v4471_v29 = vadd.f32 (%p4385_p5), %v10683_v24, %v4467_v1  ;;  %v4540_v1 = vld [vmem:[#allocation2 + $0x11] ss:$2 sm:$0xff] (%p4385_p5) }
 0x93b   : > { %v8393_v15 = vmov %v4470_v51   ;;  %v4474_v54 = vadd.f32 (%p4385_p5), %v10683_v24, %v4470_v51  ;;  %v4477_v53 = vmax.f32 (%p4385_p5), %v4473_v7, 0.0  ;;  %v11503_v51 = vld [vmem:[#allocation24_spill] sm:$0xff] (%p4385_p5) }
 0x93c   : > { %v8401_v50 = vmov %v4468_v62   ;;  %v4472_v23 = vadd.f32 (%p4385_p5), %v10683_v24, %v4468_v62  ;;  %v10792_v24 = vld [vmem:[%s11279_s10] ss:$0 sm:$0xff] (%p4385_p5)  ;;  %v4475_v9 = vmax.f32 (%p4385_p5), %v4471_v29, 0.0  ;;  %s10826_s10 = smov (%p4385_p5), 0  }
 0x93d   :  { %v4478_v20 = vmax.f32 %v4474_v54, 0.0  ;;  %4513 = vst.msk [vmem:[#allocation2 + $0x30] sm:$0xff] %vm3027_vm0, %v4477_v53  ;;  %v4482_v31 = vsel %vm3027_vm0, %v4477_v53, 0.0  ;;  %v4495_v35 = vmul.f32 %v4477_v53, %v4477_v53 }
 0x93e   :  { %v4476_v21 = vmax.f32 %v4472_v23, 0.0  ;;  %v4479_v52 = vsel %vm3027_vm0, %v4475_v9, 0.0  ;;  %v4493_v14 = vmul.f32 %v4475_v9, %v4475_v9  ;;  %4511 = vst.msk [vmem:[#allocation2 + $0x20] sm:$0xff] %vm3027_vm0, %v4475_v9 }
 0x93f   :  { %4514 = vst.msk [vmem:[#allocation2 + $0x38] sm:$0xff] %vm3027_vm0, %v4478_v20  ;;  %v4484_v5 = vsel %vm3027_vm0, %v4478_v20, 0.0  ;;  %v4496_v57 = vmul.f32 %v4478_v20, %v4478_v20  ;;  %v4500_v22 = vsel %vm3027_vm0, %v4495_v35, 0.0 }
 0x940   :  { %v4480_v47 = vsel %vm3027_vm0, %v4476_v21, 0.0  ;;  %v4494_v4 = vmul.f32 %v4476_v21, %v4476_v21  ;;  %4512 = vst.msk [vmem:[#allocation2 + $0x28] sm:$0xff] %vm3027_vm0, %v4476_v21  ;;  %v4497_v3 = vsel %vm3027_vm0, %v4493_v14, 0.0 }
 0x941   :  { %v4481_v56 = vadd.f32 %v4480_v47, %v4479_v52  ;;  %v4502_v2 = vsel %vm3027_vm0, %v4496_v57, 0.0 }
 0x942   :  { %v4498_v6 = vsel %vm3027_vm0, %v4494_v4, 0.0 }
 0x943   :  { %v4499_v27 = vadd.f32 %v4498_v6, %v4497_v3  ;;  %v4483_v37 = vadd.f32 %v4482_v31, %v4481_v56 }
 0x945   :  { %v4501_v11 = vadd.f32 %v4500_v22, %v4499_v27  ;;  %v4485_v48 = vadd.f32 %v4484_v5, %v4483_v37  ;;  %v8412_v37 = vmov 0.0   ;;  %v8416_v22 = vmov 0.0  }
 0x946   :  { %v4560_v29 = vld [vmem:[#allocation2 + $0x31] ss:$2 sm:$0xff] }
 0x947   :  { %v4486_v58 = vrot.slane %v4485_v48, 4  ;;  %v4503_v63 = vadd.f32 %v4502_v2, %v4501_v11  ;;  %v4553_v44 = vld [vmem:[#allocation2 + $0x20] ss:$2 sm:$0xff]  ;;  %v4559_v62 = vld [vmem:[#allocation2 + $0x21] ss:$2 sm:$0xff] }
 0x949   :  { %v4487_v55 = vadd.f32 %v4486_v58, %v4485_v48  ;;  %v4504_v19 = vrot.slane %v4503_v63, 4 }
 0x94b   :  { %v4488_v42 = vrot.slane %v4487_v55, 2  ;;  %v4505_v45 = vadd.f32 %v4504_v19, %v4503_v63 }
 0x94d   :  { %v4489_v8 = vadd.f32 %v4488_v42, %v4487_v55  ;;  %v4506_v60 = vrot.slane %v4505_v45, 2 }
 0x94f   :  { %v4490_v0 = vrot.slane %v4489_v8, 1  ;;  %v4507_v16 = vadd.f32 %v4506_v60, %v4505_v45 }
 0x951   :  { %v4491_v41 = vadd.f32 %v4490_v0, %v4489_v8  ;;  %v4508_v33 = vrot.slane %v4507_v16, 1 }
 0x953   :  { %v4492_v15 = vadd.f32 %v4491_v41, %v10758_v36  ;;  %v4509_v61 = vadd.f32 %v4508_v33, %v4507_v16 }
 0x955   :  { %v4510_v50 = vadd.f32 %v4509_v61, %v10760_v39  ;;  %v4515_v17 = vmul.f32 0.015625, %v4492_v15  ;;  %v4554_v39 = vld [vmem:[#allocation2 + $0x30] ss:$2 sm:$0xff] }
 0x957   :  { %v4516_v18 = vmul.f32 0.015625, %v4510_v50  ;;  %v4517_v32 = vmul.f32 %v4515_v17, %v4515_v17 }
 0x959   :  { %v4518_v59 = vsub.f32 %v4516_v18, %v4517_v32 }
 0x95b   :  { %v4519_v10 = vmax.f32 %v4518_v59, 0.0 }
 0x95d   :  { %v4520_v38 = vadd.f32 0.001, %v4519_v10 }
 0x95f   :  { %7828 = vrsqrt.f32 %v4520_v38 }
 0x969   :  { %v7829_v40 = vpop.eup %7828 }
 0x96a   :  { %v4522_v49 = vmul.f32 %v7829_v40, %v10688_v25 }
 0x96c   :  { %v4523_v43 = vmul.f32 %v4522_v49, %v4515_v17  ;;  %v4530_v36 = vrot.slane %v4522_v49, %v11503_v51 }
 0x96e   :  { %v4524_v23 = vsub.f32 %v10698_v28, %v4523_v43  ;;  %v4531_v7 = vmul.f32 %v4530_v36, %v4525_v12  ;;  %v4541_v54 = vmul.f32 %v4539_v26, %v4530_v36  ;;  %v4532_v13 = vmul.f32 %v4530_v36, %v4526_v34 }
 0x96f   :  { %v4542_v9 = vmul.f32 %v4540_v1, %v4530_v36  ;;  %v4555_v21 = vmul.f32 %v4553_v44, %v4530_v36  ;;  %v4561_v53 = vmul.f32 %v4559_v62, %v4530_v36  ;;  %v4556_v25 = vmul.f32 %v4554_v39, %v4530_v36 }
 0x970   :  { %v4536_v20 = vrot.slane %v4524_v23, %v11503_v51  ;;  %v4562_v52 = vmul.f32 %v4560_v29, %v4530_v36 }
 0x972   :  { %v4537_v14 = vadd.f32 %v4536_v20, %v4531_v7  ;;  %v4543_v47 = vadd.f32 %v4541_v54, %v4536_v20  ;;  %v4538_v4 = vadd.f32 %v4536_v20, %v4532_v13  ;;  %v4544_v56 = vadd.f32 %v4542_v9, %v4536_v20 }
 0x973   :  { %v4557_v31 = vadd.f32 %v4555_v21, %v4536_v20  ;;  %v4563_v35 = vadd.f32 %v4561_v53, %v4536_v20  ;;  %v4558_v3 = vadd.f32 %v4556_v25, %v4536_v20  ;;  %v4564_v6 = vadd.f32 %v4562_v52, %v4536_v20 }
 0x974   :  { %v4545_v5 = vmax.f32 %v4537_v14, %v4543_v47  ;;  %v4546_v28 = vmax.f32 %v4538_v4, %v4544_v56 }
 0x975   :  { %v4565_v57 = vmax.f32 %v4557_v31, %v4563_v35  ;;  %v4566_v27 = vmax.f32 %v4558_v3, %v4564_v6 }
 0x976   :  { %4547 = vst.msk [vmem:[#allocation3 + $0x1f] sm:$0xff] %vm3027_vm0, %v4545_v5  ;;  %4548 = vst.msk [vmem:[#allocation3 + $0x27] sm:$0xff] %vm3027_vm0, %v4546_v28 }
 0x977   :  { %4567 = vst.msk [vmem:[#allocation3 + $0xdf] sm:$0xff] %vm3027_vm0, %v4565_v57  ;;  %4568 = vst.msk [vmem:[#allocation3 + $0xe7] sm:$0xff] %vm3027_vm0, %v4566_v27 }
 0x978 LB: > { %v8454_v2 = vmov 0.0   ;;  %vm8455_vm1 = vmmov 0   ;;  %s6414_s5 = sshll.u32 %s8422_s10, 3  ;;  %s4584_s3 = scalar_lea.vmem [#allocation3], %s8422_s10  ;;  %s8422_s10 = sphi %s10826_s10, %s4581_s10   ;;  %v8418_v22 = vphi %v8416_v22, %v8417_v22   ;;  %v8414_v37 = vphi %v8412_v37, %v8413_v37  }
 0x979   : > { %6640 = vmatprep.subr.bf16.mxu0 %v8454_v2  ;;  %6642 = vmatprep.mubr.msk.bf16.mxu0 %vm8455_vm1, %v8454_v2  ;;  %s4590_s4 = scalar_lea.vmem %s11278_s9, %s6414_s5  ;;  %s4581_s10 = sadd.s32 1, %s8422_s10  }
 0x97a   : > { %v7830_v58 = vld [vmem:[%s4590_s4] sm:$0xff]   ;;  %p4578_p6 = scmp.ge.s32.totalorder %s4581_s10, 64  }
 0x97b   : > { %6641 = vmatpush3.bf16.msra.mxu0 %v7830_v58  ;;  %vm4653_vm2 = vcmask (%p4578_p6), 261120   ;;  %v8424_v39 = vmov (%p4578_p6), 0.0   ;;  %v8428_v29 = vmov (%p4578_p6), 0.0   ;;  %s10847_s16 = smov (%p4578_p6), 0  }
 0x97e   : > { %v4585_v11 = vld [vmem:[%s4584_s3] sm:$0xff]  ;;  %v4586_v48 = vld [vmem:[%s4584_s3 + $0x8] sm:$0xff] }
 0x97f   : > { %v4587_v63 = vpack.c.bf16 %v4586_v48, %v4585_v11 }
 0x981   : > { %6643 = vmatmul.mubr.msk.bf16.vlgmr.msra.gmra.mrb[0].mxu0 %vm3027_vm0, %v4587_v63 }
 0xa53   :  { %4580 = sbr.rel (!%p4578_p6) target bundleno = 2424 (0x978), region = 305 }
 0xa54   : > { %v4636_v55 = vpop.f32.mrb[0].mxu0 }
 0xa55   : > { %v4643_v19 = vadd.f32 %v8418_v22, %v4636_v55   ;;  %v6644_v42 = vpop.f32.mrb[1].mxu0 }
 0xa56   : > { %v4639_v45 = vpop.f32.mrb[2].mxu0 }
 0xa57   : > { %v4644_v8 = vadd.f32 %v8414_v37, %v4639_v45   ;;  %v6645_v60 = vpop.f32.mrb[3].mxu0  ;;  %v8417_v22 = vmov %v4643_v19   ;;  %v4649_v0 = vadd.f32 (%p4578_p6), %v10792_v24, %v4643_v19 }
 0xa59   : > { %v8413_v37 = vmov %v4644_v8   ;;  %v4650_v16 = vadd.f32 (%p4578_p6), %v10792_v24, %v4644_v8  ;;  %v4651_v41 = vmax.f32 (%p4578_p6), %v4649_v0, 0.0 }
 0xa5b   :  { %v4652_v33 = vmax.f32 %v4650_v16, 0.0  ;;  %v4654_v15 = vsel %vm4653_vm2, %v4651_v41, 0.0  ;;  %v4664_v61 = vmul.f32 %v4651_v41, %v4651_v41  ;;  %4676 = vst.msk [vmem:[#allocation2] sm:$0xff] %vm4653_vm2, %v4651_v41 }
 0xa5d   :  { %v4655_v50 = vsel %vm4653_vm2, %v4652_v33, 0.0  ;;  %v4665_v17 = vmul.f32 %v4652_v33, %v4652_v33  ;;  %4677 = vst.msk [vmem:[#allocation2 + $0x8] sm:$0xff] %vm4653_vm2, %v4652_v33  ;;  %v4666_v32 = vsel %vm4653_vm2, %v4664_v61, 0.0 }
 0xa5e   :  { %v4656_v18 = vadd.f32 %v4655_v50, %v4654_v15 }
 0xa5f   :  { %v4667_v59 = vsel %vm4653_vm2, %v4665_v17, 0.0 }
 0xa60   :  { %v4657_v10 = vrot.slane %v4656_v18, 4  ;;  %v4668_v38 = vadd.f32 %v4667_v59, %v4666_v32 }
 0xa62   :  { %v4658_v40 = vadd.f32 %v4657_v10, %v4656_v18  ;;  %v4669_v49 = vrot.slane %v4668_v38, 4 }
 0xa64   :  { %v4659_v12 = vrot.slane %v4658_v40, 2  ;;  %v4670_v26 = vadd.f32 %v4669_v49, %v4668_v38 }
 0xa66   :  { %v4660_v34 = vadd.f32 %v4659_v12, %v4658_v40  ;;  %v4671_v1 = vrot.slane %v4670_v26, 2 }
 0xa68   :  { %v4661_v43 = vrot.slane %v4660_v34, 1  ;;  %v4672_v51 = vadd.f32 %v4671_v1, %v4670_v26 }
 0xa6a   :  { %v10843_v36 = vadd.f32 %v4661_v43, %v4660_v34  ;;  %v4673_v44 = vrot.slane %v4672_v51, 1 }
 0xa6c   :  { %v10845_v62 = vadd.f32 %v4673_v44, %v4672_v51 }
 0xa6d LB: > { %v8456_v23 = vmov 0.0   ;;  %vm8457_vm3 = vmmov 0   ;;  %s6415_s8 = sshll.u32 %s8434_s16, 3  ;;  %s5842_s1 = scalar_lea.vmem [#allocation3], %s8434_s16  ;;  %s8434_s16 = sphi %s10847_s16, %s4683_s16   ;;  %v8430_v29 = vphi %v8428_v29, %v8429_v29   ;;  %v8426_v39 = vphi %v8424_v39, %v8425_v39  }
 0xa6e   : > { %6646 = vmatprep.subr.bf16.mxu0 %v8456_v23  ;;  %6648 = vmatprep.mubr.msk.bf16.mxu0 %vm8457_vm3, %v8456_v23  ;;  %s4693_s2 = scalar_lea.vmem %s11278_s9, %s6415_s8  ;;  %v6382_v7 = vld [vmem:[%s5842_s1 + $0xc0] sm:$0xff]  ;;  %v6383_v54 = vld [vmem:[%s5842_s1 + $0xc8] sm:$0xff]  ;;  %s4683_s16 = sadd.s32 1, %s8434_s16  }
 0xa6f   : > { %v7831_v13 = vld [vmem:[%s4693_s2] sm:$0xff]   ;;  %v4690_v9 = vpack.c.bf16 %v6383_v54, %v6382_v7  ;;  %p4680_p7 = scmp.ge.s32.totalorder %s4683_s16, 64  }
 0xa70   : > { %6647 = vmatpush3.bf16.msra.mxu0 %v7831_v13  ;;  %v11504_v56 = vmov (%p4680_p7), 0.0   ;;  %v10874_v31 = vld [vmem:[%s11281_s12 + $0x1] sm:$0x1] (%p4680_p7)  ;;  %v10879_v35 = vld [vmem:[%s11281_s12 + $0x2] sm:$0x1] (%p4680_p7)  ;;  %v11505_v34 = vld [vmem:[#allocation24_spill] sm:$0xff] (%p4680_p7) }
 0xa71   :  { %4802 = vst [vmem:[#allocation3 + $0x27] sm:$0xff] (%p4680_p7), %v11504_v56  ;;  %4803 = vst [vmem:[#allocation3 + $0x2f] sm:$0xff] (%p4680_p7), %v11504_v56  ;;  %v4786_v40 = vld [vmem:[#allocation2] ss:$2 sm:$0xff] (%p4680_p7)  ;;  %v4797_v49 = vld [vmem:[#allocation2 + $0x1] ss:$2 sm:$0xff] (%p4680_p7) }
 0xa72   :  { %4804 = vst [vmem:[#allocation3 + $0x37] sm:$0xff] (%p4680_p7), %v11504_v56  ;;  %4805 = vst [vmem:[#allocation3 + $0x3f] sm:$0xff] (%p4680_p7), %v11504_v56 }
 0xa73   : > { %6649 = vmatmul.mubr.msk.bf16.vlgmr.msra.gmra.mrb[0].mxu0 %vm3027_vm0, %v4690_v9  ;;  %4814 = vst [vmem:[#allocation3 + $0xe7] sm:$0xff] (%p4680_p7), %v11504_v56  ;;  %4815 = vst [vmem:[#allocation3 + $0xef] sm:$0xff] (%p4680_p7), %v11504_v56 }
 0xa74   :  { %4816 = vst [vmem:[#allocation3 + $0xf7] sm:$0xff] (%p4680_p7), %v11504_v56  ;;  %4817 = vst [vmem:[#allocation3 + $0xff] sm:$0xff] (%p4680_p7), %v11504_v56 }
 0xb45   :  { %4682 = sbr.rel (!%p4680_p7) target bundleno = 2669 (0xa6d), region = 316 }
 0xb46   : > { %v4739_v21 = vpop.f32.mrb[0].mxu0 }
 0xb47   : > { %v4746_v53 = vadd.f32 %v8430_v29, %v4739_v21   ;;  %v6650_v25 = vpop.f32.mrb[1].mxu0  ;;  %v8436_v21 = vmov (%p4680_p7), 0.0  }
 0xb48   : > { %v4742_v20 = vpop.f32.mrb[2].mxu0 }
 0xb49   : > { %v4747_v52 = vadd.f32 %v8426_v39, %v4742_v20   ;;  %v6651_v14 = vpop.f32.mrb[3].mxu0  ;;  %v8429_v29 = vmov %v4746_v53   ;;  %v4748_v47 = vadd.f32 (%p4680_p7), %v10792_v24, %v4746_v53 }
 0xb4b   : > { %v8425_v39 = vmov %v4747_v52   ;;  %v4749_v4 = vadd.f32 (%p4680_p7), %v10792_v24, %v4747_v52  ;;  %v10869_v24 = vld [vmem:[%s11281_s12] ss:$0 sm:$0xff] (%p4680_p7)  ;;  %v4750_v3 = vmax.f32 (%p4680_p7), %v4748_v47, 0.0  ;;  %s8440_s12 = smov (%p4680_p7), 0  }
 0xb4d   :  { %v4751_v6 = vmax.f32 %v4749_v4, 0.0  ;;  %v4752_v5 = vsel %vm4653_vm2, %v4750_v3, 0.0  ;;  %v4762_v28 = vmul.f32 %v4750_v3, %v4750_v3  ;;  %4774 = vst.msk [vmem:[#allocation2 + $0x10] sm:$0xff] %vm4653_vm2, %v4750_v3 }
 0xb4f   :  { %v4753_v57 = vsel %vm4653_vm2, %v4751_v6, 0.0  ;;  %v4763_v27 = vmul.f32 %v4751_v6, %v4751_v6  ;;  %4775 = vst.msk [vmem:[#allocation2 + $0x18] sm:$0xff] %vm4653_vm2, %v4751_v6  ;;  %v4764_v22 = vsel %vm4653_vm2, %v4762_v28, 0.0 }
 0xb50   :  { %v4754_v37 = vadd.f32 %v4753_v57, %v4752_v5 }
 0xb51   :  { %v4765_v2 = vsel %vm4653_vm2, %v4763_v27, 0.0 }
 0xb52   :  { %v4755_v11 = vrot.slane %v4754_v37, 4  ;;  %v4766_v48 = vadd.f32 %v4765_v2, %v4764_v22 }
 0xb54   :  { %v4756_v58 = vadd.f32 %v4755_v11, %v4754_v37  ;;  %v4767_v63 = vrot.slane %v4766_v48, 4 }
 0xb56   :  { %v4757_v55 = vrot.slane %v4756_v58, 2  ;;  %v4768_v19 = vadd.f32 %v4767_v63, %v4766_v48  ;;  %v4806_v12 = vld [vmem:[#allocation2 + $0x10] ss:$2 sm:$0xff]  ;;  %v4809_v43 = vld [vmem:[#allocation2 + $0x11] ss:$2 sm:$0xff] }
 0xb58   :  { %v4758_v42 = vadd.f32 %v4757_v55, %v4756_v58  ;;  %v4769_v45 = vrot.slane %v4768_v19, 2 }
 0xb5a   :  { %v4759_v8 = vrot.slane %v4758_v42, 1  ;;  %v4770_v60 = vadd.f32 %v4769_v45, %v4768_v19 }
 0xb5c   :  { %v4771_v0 = vrot.slane %v4770_v60, 1  ;;  %v4760_v16 = vadd.f32 %v4759_v8, %v4758_v42 }
 0xb5e   :  { %v4772_v41 = vadd.f32 %v4771_v0, %v4770_v60  ;;  %v4761_v33 = vadd.f32 %v4760_v16, %v10843_v36 }
 0xb60   :  { %v4773_v15 = vadd.f32 %v4772_v41, %v10845_v62  ;;  %v4776_v61 = vmul.f32 0.03125, %v4761_v33 }
 0xb62   :  { %v4777_v50 = vmul.f32 0.03125, %v4773_v15  ;;  %v4778_v17 = vmul.f32 %v4776_v61, %v4776_v61 }
 0xb64   :  { %v4779_v18 = vsub.f32 %v4777_v50, %v4778_v17 }
 0xb66   :  { %v4780_v32 = vmax.f32 %v4779_v18, 0.0 }
 0xb68   :  { %v4781_v59 = vadd.f32 0.001, %v4780_v32 }
 0xb6a   :  { %7832 = vrsqrt.f32 %v4781_v59 }
 0xb74   :  { %v7833_v10 = vpop.eup %7832 }
 0xb75   :  { %v4783_v38 = vmul.f32 %v7833_v10, %v10797_v46 }
 0xb77   :  { %v4784_v26 = vmul.f32 %v4783_v38, %v4776_v61  ;;  %v4790_v1 = vrot.slane %v4783_v38, %v11505_v34 }
 0xb79   :  { %v4785_v51 = vsub.f32 %v10802_v30, %v4784_v26  ;;  %v4791_v36 = vmul.f32 %v4790_v1, %v4786_v40  ;;  %v4798_v44 = vmul.f32 %v4797_v49, %v4790_v1  ;;  %v4807_v62 = vmul.f32 %v4806_v12, %v4790_v1 }
 0xb7a   :  { %v4810_v39 = vmul.f32 %v4809_v43, %v4790_v1 }
 0xb7b   :  { %v4795_v29 = vrot.slane %v4785_v51, %v11505_v34 }
 0xb7d   :  { %v4796_v23 = vadd.f32 %v4795_v29, %v4791_v36  ;;  %v4799_v7 = vadd.f32 %v4798_v44, %v4795_v29  ;;  %v4808_v54 = vadd.f32 %v4807_v62, %v4795_v29  ;;  %v4811_v13 = vadd.f32 %v4810_v39, %v4795_v29 }
 0xb7f   :  { %v4800_v46 = vmax.f32 %v4796_v23, %v4799_v7  ;;  %v4812_v9 = vmax.f32 %v4808_v54, %v4811_v13 }
 0xb81   :  { %4801 = vst.msk [vmem:[#allocation3 + $0x1f] sm:$0xff] %vm4653_vm2, %v4800_v46  ;;  %4813 = vst.msk [vmem:[#allocation3 + $0xdf] sm:$0xff] %vm4653_vm2, %v4812_v9 }
 0xb82 LB: > { %v8458_v30 = vmov 0.0   ;;  %vm8459_vm4 = vmmov 0   ;;  %s6416_s23 = sshll.u32 %s8442_s12, 4  ;;  %s4828_s25 = scalar_lea.vmem [#allocation3], %s8442_s12  ;;  %s8442_s12 = sphi %s8440_s12, %s4826_s12   ;;  %v8438_v21 = vphi %v8436_v21, %v8437_v21  }
 0xb83   : > { %6652 = vmatprep.subr.bf16.mxu0 %v8458_v30  ;;  %6656 = vmatprep.mubr.msk.bf16.mxu0 %vm8459_vm4, %v8458_v30  ;;  %s4833_s24 = scalar_lea.vmem %s11280_s11, %s6416_s23  ;;  %s4826_s12 = sadd.s32 1, %s8442_s12  }
 0xb84   : > { %v7834_v53 = vld [vmem:[%s4833_s24] sm:$0xff]   ;;  %v7835_v25 = vld [vmem:[%s4833_s24 + $0x8] sm:$0xff]   ;;  %p4823_p8 = scmp.ge.s32.totalorder %s4826_s12, 64  }
 0xb85   : > { %6653 = vmatpush3.bf16.msra.mxu0 %v7834_v53  ;;  %vm4900_vm5 = vcmask (%p4823_p8), 523264   ;;  %v8444_v60 = vmov (%p4823_p8), 0.0   ;;  %s10907_s26 = smov (%p4823_p8), 0  }
 0xb86   : > { %6654 = vmatprep.subr.bf16.mxu0 %v8458_v30 }
 0xb88   : > { %v4829_v20 = vld [vmem:[%s4828_s25] sm:$0xff] }
 0xb89   : > { %v4830_v52 = vpack.c.bf16 %v4829_v20, %v4829_v20  ;;  %6655 = vmatpush3.bf16.msra.mxu0 %v7835_v25 }
 0xb8c   : > { %6657 = vmatmul.mubr.msk.bf16.vlgmr.msra.gmra.mrb[0].mxu0 %vm4653_vm2, %v4830_v52 }
 0xc5c   :  { %4825 = sbr.rel (!%p4823_p8) target bundleno = 2946 (0xb82), region = 327 }
 0xc5f   : > { %v4887_v14 = vpop.f32.mrb[0].mxu0 }
 0xc60   : > { %v4893_v47 = vadd.f32 %v8438_v21, %v4887_v14   ;;  %v6658_v4 = vpop.f32.mrb[1].mxu0 }
 0xc61   : > { %v4890_v56 = vpop.f32.mrb[2].mxu0 }
 0xc62   : > { %v6659_v3 = vpop.f32.mrb[3].mxu0  ;;  %v8437_v21 = vmov %v4893_v47   ;;  %v4898_v6 = vadd.f32 (%p4823_p8), %v10869_v24, %v4893_v47 }
 0xc64   :  { %v4899_v5 = vmax.f32 %v4898_v6, 0.0 }
 0xc66   :  { %v4901_v28 = vsel %vm4900_vm5, %v4899_v5, 0.0  ;;  %v4909_v57 = vmul.f32 %v4899_v5, %v4899_v5  ;;  %4918 = vst.msk [vmem:[#allocation2] sm:$0xff] %vm4900_vm5, %v4899_v5 }
 0xc67   :  { %v4902_v27 = vrot.slane %v4901_v28, 4 }
 0xc68   :  { %v4910_v37 = vsel %vm4900_vm5, %v4909_v57, 0.0 }
 0xc69   :  { %v4903_v22 = vadd.f32 %v4902_v27, %v4901_v28  ;;  %v4911_v2 = vrot.slane %v4910_v37, 4 }
 0xc6b   :  { %v4904_v11 = vrot.slane %v4903_v22, 2  ;;  %v4912_v48 = vadd.f32 %v4911_v2, %v4910_v37 }
 0xc6d   :  { %v4905_v58 = vadd.f32 %v4904_v11, %v4903_v22  ;;  %v4913_v63 = vrot.slane %v4912_v48, 2 }
 0xc6f   :  { %v4906_v55 = vrot.slane %v4905_v58, 1  ;;  %v4914_v19 = vadd.f32 %v4913_v63, %v4912_v48 }
 0xc71   :  { %v10903_v42 = vadd.f32 %v4906_v55, %v4905_v58  ;;  %v4915_v45 = vrot.slane %v4914_v19, 1 }
 0xc73   :  { %v10905_v8 = vadd.f32 %v4915_v45, %v4914_v19 }
 0xc74 LB: > { %v8460_v0 = vmov 0.0   ;;  %vm8461_vm6 = vmmov 0   ;;  %s6417_s27 = sshll.u32 %s8450_s26, 4  ;;  %s5849_s29 = scalar_lea.vmem [#allocation3], %s8450_s26  ;;  %s8450_s26 = sphi %s10907_s26, %s4924_s26   ;;  %v8446_v60 = vphi %v8444_v60, %v8445_v60  }
 0xc75   : > { %6660 = vmatprep.subr.bf16.mxu0 %v8460_v0  ;;  %6664 = vmatprep.mubr.msk.bf16.mxu0 %vm8461_vm6, %v8460_v0  ;;  %s4932_s5 = scalar_lea.vmem %s11280_s11, %s6417_s27  ;;  %v6394_v33 = vld [vmem:[%s5849_s29 + $0xc0] sm:$0xff]  ;;  %s4924_s26 = sadd.s32 1, %s8450_s26  }
 0xc76   : > { %v7836_v16 = vld [vmem:[%s4932_s5] sm:$0xff]   ;;  %v7837_v41 = vld [vmem:[%s4932_s5 + $0x8] sm:$0xff]   ;;  %v4929_v15 = vpack.c.bf16 %v6394_v33, %v6394_v33  ;;  %p4921_p9 = scmp.ge.s32.totalorder %s4924_s26, 64  }
 0xc77   : > { %6661 = vmatpush3.bf16.msra.mxu0 %v7836_v16  ;;  %v5053_v59 = vld [vmem:[%s11282_s13 + $0x8] sm:$0xff] (%p4921_p9)  ;;  %v5056_v10 = vld [vmem:[%s11282_s13 + $0x20] sm:$0xff] (%p4921_p9)  ;;  %v11506_v40 = vmov (%p4921_p9), 0.0   ;;  %v8462_v26 = vmov (%p4921_p9), 0.0|0.0   ;;  %v5055_v34 = vld [vmem:[%s11282_s13 + $0x18] sm:$0xff] (%p4921_p9)  ;;  %vm8463_vm7 = vmmov (%p4921_p9), 0  }
 0xc78   : > { %6662 = vmatprep.subr.bf16.mxu0 %v8460_v0  ;;  %v5052_v38 = vld [vmem:[%s11282_s13] sm:$0xff] (%p4921_p9)  ;;  %v6744_v12 = vpack.c.bf16 (%p4921_p9), %v5056_v10, %v5053_v59  ;;  %6760 = vmatprep.subr.bf16.mxu1 (%p4921_p9), %v8462_v26  ;;  %v5054_v1 = vld [vmem:[%s11282_s13 + $0x10] sm:$0xff] (%p4921_p9)  ;;  %v5057_v43 = vld [vmem:[%s11282_s13 + $0x28] sm:$0xff] (%p4921_p9)  ;;  %vm5038_vm8 = vcmask (%p4921_p9), 519168  }
 0xc79   :  { %6684 = vmatprep.mubr.msk.f32.mxu1 (%p4921_p9), %vm8463_vm7, %v11506_v40  ;;  %v6761_v51 = vpack.c.bf16 (%p4921_p9), %v5057_v43, %v5054_v1  ;;  %v5059_v36 = vld [vmem:[%s11282_s13 + $0x38] sm:$0xff] (%p4921_p9)  ;;  %v5062_v44 = vld [vmem:[%s11282_s13 + $0x50] sm:$0xff] (%p4921_p9)  ;;  %v5061_v23 = vld [vmem:[%s11282_s13 + $0x48] sm:$0xff] (%p4921_p9) }
 0xc7a   :  { %v5058_v62 = vld [vmem:[%s11282_s13 + $0x30] sm:$0xff] (%p4921_p9)  ;;  %v6748_v29 = vpack.c.bf16 (%p4921_p9), %v5062_v44, %v5059_v36  ;;  %v5060_v7 = vld [vmem:[%s11282_s13 + $0x40] sm:$0xff] (%p4921_p9)  ;;  %v5063_v54 = vld [vmem:[%s11282_s13 + $0x58] sm:$0xff] (%p4921_p9) }
 0xc7b   : > { %6663 = vmatpush3.bf16.msra.mxu0 %v7837_v41  ;;  %6762 = vmatpush3.bf16.msra.mxu1 (%p4921_p9), %v6761_v51  ;;  %v6750_v13 = vpack.c.bf16 (%p4921_p9), %v5061_v23, %v5058_v62  ;;  %v6764_v46 = vpack.c.bf16 (%p4921_p9), %v5063_v54, %v5060_v7  ;;  %v5065_v9 = vld [vmem:[%s11282_s13 + $0x68] sm:$0xff] (%p4921_p9)  ;;  %v5068_v21 = vld [vmem:[%s11282_s13 + $0x80] sm:$0xff] (%p4921_p9)  ;;  %v5067_v52 = vld [vmem:[%s11282_s13 + $0x78] sm:$0xff] (%p4921_p9) }
 0xc7c   :  { %6745 = vmatprep.subr.bf16.mxu0 (%p4921_p9), %v6744_v12  ;;  %v5064_v30 = vld [vmem:[%s11282_s13 + $0x60] sm:$0xff] (%p4921_p9)  ;;  %6763 = vmatprep.subr.bf16.mxu1 (%p4921_p9), %v8462_v26  ;;  %v6752_v20 = vpack.c.bf16 (%p4921_p9), %v5068_v21, %v5065_v9  ;;  %v5066_v14 = vld [vmem:[%s11282_s13 + $0x70] sm:$0xff] (%p4921_p9)  ;;  %v5069_v47 = vld [vmem:[%s11282_s13 + $0x88] sm:$0xff] (%p4921_p9) }
 0xc7d   :  { %v5071_v56 = vld [vmem:[%s11282_s13 + $0x98] sm:$0xff] (%p4921_p9)  ;;  %v5074_v3 = vld [vmem:[%s11282_s13 + $0xb0] sm:$0xff] (%p4921_p9)  ;;  %v6754_v57 = vpack.c.bf16 (%p4921_p9), %v5067_v52, %v5064_v30  ;;  %v6767_v27 = vpack.c.bf16 (%p4921_p9), %v5069_v47, %v5066_v14  ;;  %v5073_v2 = vld [vmem:[%s11282_s13 + $0xa8] sm:$0xff] (%p4921_p9) }
 0xc7e   : > { %6665 = vmatmul.mubr.msk.bf16.vlgmr.msra.gmra.mrb[0].mxu0 %vm4653_vm2, %v4929_v15  ;;  %v5070_v37 = vld [vmem:[%s11282_s13 + $0x90] sm:$0xff] (%p4921_p9)  ;;  %v6756_v22 = vpack.c.bf16 (%p4921_p9), %v5074_v3, %v5071_v56  ;;  %v5072_v11 = vld [vmem:[%s11282_s13 + $0xa0] sm:$0xff] (%p4921_p9)  ;;  %v5075_v48 = vld [vmem:[%s11282_s13 + $0xb8] sm:$0xff] (%p4921_p9) }
 0xc7f   :  { %5143 = vmatprep.mubr.f32.mxu0 (%p4921_p9), %v11506_v40  ;;  %6765 = vmatpush3.bf16.msra.mxu1 (%p4921_p9), %v6764_v46  ;;  %v5241_v55 = vld [vmem:[%s11282_s13 + $0xc8] sm:$0xff] (%p4921_p9)  ;;  %v5244_v19 = vld [vmem:[%s11282_s13 + $0xe0] sm:$0xff] (%p4921_p9)  ;;  %v6758_v0 = vpack.c.bf16 (%p4921_p9), %v5073_v2, %v5070_v37  ;;  %v6770_v16 = vpack.c.bf16 (%p4921_p9), %v5075_v48, %v5072_v11  ;;  %v5247_v14 = vld [vmem:[%s11282_s13 + $0xf8] sm:$0xff] (%p4921_p9) }
 0xc80   :  { %6766 = vmatprep.subr.bf16.mxu1 (%p4921_p9), %v8462_v26  ;;  %v6772_v41 = vpack.c.bf16 (%p4921_p9), %v5244_v19, %v5241_v55  ;;  %v5034_v51 = vld [vmem:[#allocation2 + $0x1] ss:$2 sm:$0xf] (%p4921_p9)  ;;  %v11507_v62 = vld [vmem:[#allocation24_spill] sm:$0xff] (%p4921_p9) }
 0xc81   :  { %v5245_v52 = vld [vmem:[%s11282_s13 + $0xe8] sm:$0xff] (%p4921_p9)  ;;  %v5250_v47 = vld [vmem:[%s11282_s13 + $0x110] sm:$0xff] (%p4921_p9)  ;;  %v5252_v48 = vld [vmem:[%s11282_s13 + $0x120] sm:$0xff] (%p4921_p9) }
 0xc82   :  { %v5246_v3 = vld [vmem:[%s11282_s13 + $0xf0] sm:$0xff] (%p4921_p9)  ;;  %v5253_v37 = vld [vmem:[%s11282_s13 + $0x128] sm:$0xff] (%p4921_p9) }
 0xc83   :  { %6768 = vmatpush3.bf16.msra.mxu1 (%p4921_p9), %v6767_v27  ;;  %v5254_v55 = vld [vmem:[%s11282_s13 + $0x130] sm:$0xff] (%p4921_p9)  ;;  %v5257_v19 = vld [vmem:[%s11282_s13 + $0x148] sm:$0xff] (%p4921_p9) }
 0xc84   :  { %6769 = vmatprep.subr.bf16.mxu1 (%p4921_p9), %v8462_v26 }
 0xc87   :  { %6771 = vmatpush3.bf16.msra.mxu1 (%p4921_p9), %v6770_v16  ;;  %v6795_v16 = vpack.c.bf16 (%p4921_p9), %v5257_v19, %v5254_v55  ;;  %v5592_v19 = vld [vmem:[%s11282_s13 + $0x270] sm:$0xff] (%p4921_p9) }
 0xc88   :  { %6788 = vmatprep.subr.bf16.mxu1 (%p4921_p9), %v8462_v26 }
 0xd4e   :  { %4923 = sbr.rel (!%p4921_p9) target bundleno = 3188 (0xc74), region = 338 }
 0xd51   : > { %v4986_v61 = vpop.f32.mrb[0].mxu0 }
 0xd52   : > { %v4992_v50 = vadd.f32 %v8446_v60, %v4986_v61   ;;  %v6666_v17 = vpop.f32.mrb[1].mxu0 }
 0xd53   : > { %v4989_v18 = vpop.f32.mrb[2].mxu0 }
 0xd54   : > { %v6667_v32 = vpop.f32.mrb[3].mxu0  ;;  %v8445_v60 = vmov %v4992_v50   ;;  %v4993_v49 = vadd.f32 (%p4921_p9), %v10869_v24, %v4992_v50  ;;  %v6746_v24 = vpack.c.bf16 (%p4921_p9), %v5055_v34, %v5052_v38 }
 0xd56   :  { %v4994_v39 = vmax.f32 %v4993_v49, 0.0  ;;  %6747 = vmatpush1.bf16.msra.mxu0 %v6746_v24  ;;  %v5023_v24 = vld [vmem:[#allocation2] ss:$2 sm:$0xf] }
 0xd57   :  { %6749 = vmatprep.subr.bf16.mxu0 %v6748_v29 }
 0xd58   :  { %v4995_v53 = vsel %vm4900_vm5, %v4994_v39, 0.0  ;;  %v5003_v25 = vmul.f32 %v4994_v39, %v4994_v39  ;;  %5012 = vst.msk [vmem:[#allocation2 + $0x8] sm:$0xff] %vm4900_vm5, %v4994_v39 }
 0xd59   :  { %v4996_v4 = vrot.slane %v4995_v53, 4 }
 0xd5a   :  { %v5004_v6 = vsel %vm4900_vm5, %v5003_v25, 0.0  ;;  %6751 = vmatpush1.bf16.msra.mxu0 %v6750_v13  ;;  %v5240_v25 = vld [vmem:[%s11282_s13 + $0xc0] sm:$0xff] }
 0xd5b   :  { %v4997_v5 = vadd.f32 %v4996_v4, %v4995_v53  ;;  %v5005_v28 = vrot.slane %v5004_v6, 4  ;;  %6753 = vmatprep.subr.bf16.mxu0 %v6752_v20  ;;  %v5242_v20 = vld [vmem:[%s11282_s13 + $0xd0] sm:$0xff] }
 0xd5c   :  { %v6789_v56 = vpack.c.bf16 %v5245_v52, %v5242_v20  ;;  %v5431_v52 = vld [vmem:[%s11282_s13 + $0x210] sm:$0xff] }
 0xd5d   :  { %v4998_v58 = vrot.slane %v4997_v5, 2  ;;  %v5006_v63 = vadd.f32 %v5005_v28, %v5004_v6  ;;  %v6776_v6 = vpack.c.bf16 %v5250_v47, %v5247_v14  ;;  %v5248_v28 = vld [vmem:[%s11282_s13 + $0x100] sm:$0xff]  ;;  %v5434_v47 = vld [vmem:[%s11282_s13 + $0x228] sm:$0xff] }
 0xd5e   :  { %6755 = vmatpush1.bf16.msra.mxu0 %v6754_v57  ;;  %v5251_v57 = vld [vmem:[%s11282_s13 + $0x118] sm:$0xff] }
 0xd5f   :  { %v4999_v45 = vadd.f32 %v4998_v58, %v4997_v5  ;;  %v5007_v60 = vrot.slane %v5006_v63, 2  ;;  %6757 = vmatprep.subr.bf16.mxu0 %v6756_v22  ;;  %v5041_v36 = vld [vmem:[#allocation2 + $0x8] ss:$2 sm:$0xf]  ;;  %v5256_v22 = vld [vmem:[%s11282_s13 + $0x140] sm:$0xff]  ;;  %v6792_v11 = vpack.c.bf16 %v5251_v57, %v5248_v28 }
 0xd60   :  { %v5249_v5 = vld [vmem:[%s11282_s13 + $0x108] sm:$0xff]  ;;  %v6780_v58 = vpack.c.bf16 %v5256_v22, %v5253_v37  ;;  %v5586_v57 = vld [vmem:[%s11282_s13 + $0x240] sm:$0xff]  ;;  %v5589_v37 = vld [vmem:[%s11282_s13 + $0x258] sm:$0xff] }
 0xd61   :  { %v5000_v33 = vrot.slane %v4999_v45, 1  ;;  %v5008_v15 = vadd.f32 %v5007_v60, %v5006_v63  ;;  %v6778_v2 = vpack.c.bf16 %v5249_v5, %v5246_v3  ;;  %v5255_v63 = vld [vmem:[%s11282_s13 + $0x138] sm:$0xff]  ;;  %v5262_v60 = vld [vmem:[%s11282_s13 + $0x170] sm:$0xff]  ;;  %v5587_v3 = vld [vmem:[%s11282_s13 + $0x248] sm:$0xff]  ;;  %v6814_v5 = vpack.c.bf16 %v5434_v47, %v5431_v52 }
 0xd62   :  { %6759 = vmatpush1.bf16.msra.mxu0 %v6758_v0  ;;  %v6782_v0 = vpack.c.bf16 %v5255_v63, %v5252_v48  ;;  %v5588_v22 = vld [vmem:[%s11282_s13 + $0x250] sm:$0xff]  ;;  %v6830_v63 = vpack.c.bf16 %v5589_v37, %v5586_v57 }
 0xd63   :  { %v5001_v61 = vadd.f32 %v5000_v33, %v4999_v45  ;;  %v5009_v50 = vrot.slane %v5008_v15, 1  ;;  %6773 = vmatprep.subr.bf16.mxu0 %v6772_v41  ;;  %v5259_v45 = vld [vmem:[%s11282_s13 + $0x158] sm:$0xff]  ;;  %v5258_v41 = vld [vmem:[%s11282_s13 + $0x150] sm:$0xff] }
 0xd64   :  { %v6784_v33 = vpack.c.bf16 %v5262_v60, %v5259_v45  ;;  %v5596_v48 = vld [vmem:[%s11282_s13 + $0x290] sm:$0xff]  ;;  %v5595_v60 = vld [vmem:[%s11282_s13 + $0x288] sm:$0xff] }
 0xd65   :  { %v5002_v17 = vadd.f32 %v5001_v61, %v10903_v42  ;;  %v5010_v18 = vadd.f32 %v5009_v50, %v5008_v15  ;;  %v5045_v42 = vld [vmem:[#allocation2 + $0x9] ss:$2 sm:$0xf]  ;;  %v5260_v61 = vld [vmem:[%s11282_s13 + $0x160] sm:$0xff]  ;;  %v5263_v50 = vld [vmem:[%s11282_s13 + $0x178] sm:$0xff] }
 0xd66   :  { %v5261_v15 = vld [vmem:[%s11282_s13 + $0x168] sm:$0xff] }
 0xd67   :  { %v5011_v32 = vadd.f32 %v5010_v18, %v10905_v8  ;;  %v5013_v59 = vmul.f32 0.0625, %v5002_v17  ;;  %v5414_v17 = vld [vmem:[%s11282_s13 + $0x188] sm:$0xff]  ;;  %v5417_v18 = vld [vmem:[%s11282_s13 + $0x1a0] sm:$0xff] }
 0xd69   :  { %v5014_v10 = vmul.f32 0.0625, %v5011_v32  ;;  %v5015_v38 = vmul.f32 %v5013_v59, %v5013_v59  ;;  %v6786_v32 = vpack.c.bf16 %v5261_v15, %v5258_v41  ;;  %v5599_v41 = vld [vmem:[%s11282_s13 + $0x2a8] sm:$0xff]  ;;  %v6834_v15 = vpack.c.bf16 %v5595_v60, %v5592_v19 }
 0xd6b   :  { %v5016_v49 = vsub.f32 %v5014_v10, %v5015_v38  ;;  %v5413_v10 = vld [vmem:[%s11282_s13 + $0x180] sm:$0xff]  ;;  %v6800_v38 = vpack.c.bf16 %v5417_v18, %v5414_v17  ;;  %v5601_v18 = vld [vmem:[%s11282_s13 + $0x2b8] sm:$0xff] }
 0xd6d   :  { %v5017_v12 = vmax.f32 %v5016_v49, 0.0  ;;  %v5416_v49 = vld [vmem:[%s11282_s13 + $0x198] sm:$0xff] }
 0xd6f   :  { %v5018_v34 = vadd.f32 0.001, %v5017_v12  ;;  %v5415_v12 = vld [vmem:[%s11282_s13 + $0x190] sm:$0xff] }
 0xd71   :  { %7838 = vrsqrt.f32 %v5018_v34  ;;  %v5418_v34 = vld [vmem:[%s11282_s13 + $0x1a8] sm:$0xff] }
 0xd7b   :  { %v7839_v1 = vpop.eup %7838 }
 0xd7c   :  { %v5020_v43 = vmul.f32 %v7839_v1, %v10874_v31  ;;  %v5420_v1 = vld [vmem:[%s11282_s13 + $0x1b8] sm:$0xff] }
 0xd7e   :  { %v5021_v44 = vmul.f32 %v5020_v43, %v5013_v59  ;;  %v5027_v39 = vrot.slane %v5020_v43, %v11507_v62  ;;  %v6798_v59 = vpack.c.bf16 %v5263_v50, %v5260_v61  ;;  %v5423_v43 = vld [vmem:[%s11282_s13 + $0x1d0] sm:$0xff]  ;;  %v5598_v50 = vld [vmem:[%s11282_s13 + $0x2a0] sm:$0xff] }
 0xd80   :  { %v5022_v29 = vsub.f32 %v10879_v35, %v5021_v44  ;;  %v5028_v8 = vmul.f32 %v5027_v39, %v5023_v24  ;;  %v5035_v23 = vmul.f32 %v5034_v51, %v5027_v39  ;;  %v5042_v7 = vmul.f32 %v5041_v36, %v5027_v39  ;;  %v5243_v35 = vld [vmem:[%s11282_s13 + $0xd8] sm:$0xff]  ;;  %v5419_v44 = vld [vmem:[%s11282_s13 + $0x1b0] sm:$0xff] }
 0xd81   :  { %v5046_v54 = vmul.f32 %v5045_v42, %v5027_v39  ;;  %v6774_v4 = vpack.c.bf16 %v5243_v35, %v5240_v25  ;;  %v6802_v51 = vpack.c.bf16 %v5416_v49, %v5413_v10  ;;  %v6817_v36 = vpack.c.bf16 %v5418_v34, %v5415_v12  ;;  %v5422_v42 = vld [vmem:[%s11282_s13 + $0x1c8] sm:$0xff]  ;;  %v5435_v25 = vld [vmem:[%s11282_s13 + $0x230] sm:$0xff]  ;;  %v5605_v10 = vld [vmem:[%s11282_s13 + $0x2d8] sm:$0xff] }
 0xd82   :  { %v5032_v13 = vrot.slane %v5022_v29, %v11507_v62  ;;  %v6804_v39 = vpack.c.bf16 %v5423_v43, %v5420_v1  ;;  %v5421_v29 = vld [vmem:[%s11282_s13 + $0x1c0] sm:$0xff]  ;;  %v6838_v49 = vpack.c.bf16 %v5601_v18, %v5598_v50  ;;  %v5604_v34 = vld [vmem:[%s11282_s13 + $0x2d0] sm:$0xff]  ;;  %v5607_v43 = vld [vmem:[%s11282_s13 + $0x2e8] sm:$0xff] }
 0xd84   :  { %v5033_v46 = vadd.f32 %v5032_v13, %v5028_v8  ;;  %v5036_v9 = vadd.f32 %v5035_v23, %v5032_v13  ;;  %v5043_v21 = vadd.f32 %v5042_v7, %v5032_v13  ;;  %v5047_v30 = vadd.f32 %v5046_v54, %v5032_v13  ;;  %v5424_v8 = vld [vmem:[%s11282_s13 + $0x1d8] sm:$0xff]  ;;  %v5426_v23 = vld [vmem:[%s11282_s13 + $0x1e8] sm:$0xff]  ;;  %v5429_v7 = vld [vmem:[%s11282_s13 + $0x200] sm:$0xff] }
 0xd85   :  { %v6806_v54 = vpack.c.bf16 %v5422_v42, %v5419_v44  ;;  %v6820_v13 = vpack.c.bf16 %v5424_v8, %v5421_v29  ;;  %v5050_v29 = vld [vmem:[%s11283_s14] sm:$0x7] }
 0xd86   :  { %v5037_v31 = vmax.f32 %v5033_v46, %v5036_v9  ;;  %v5048_v53 = vmax.f32 %v5043_v21, %v5047_v30  ;;  %v5425_v46 = vld [vmem:[%s11282_s13 + $0x1e0] sm:$0xff]  ;;  %v6808_v9 = vpack.c.bf16 %v5429_v7, %v5426_v23  ;;  %v5428_v21 = vld [vmem:[%s11282_s13 + $0x1f8] sm:$0xff]  ;;  %v5427_v30 = vld [vmem:[%s11282_s13 + $0x1f0] sm:$0xff]  ;;  %v5224_v23 = vrot.slane %v5050_v29, %v11507_v62 }
 0xd87   :  { %v6810_v35 = vpack.c.bf16 %v5428_v21, %v5425_v46 }
 0xd88   :  { %5039 = vst.msk [vmem:[#allocation2 + $0x10] sm:$0xf] %vm5038_vm8, %v5037_v31  ;;  %5049 = vst.msk [vmem:[#allocation2 + $0x14] sm:$0xf] %vm5038_vm8, %v5048_v53  ;;  %v5430_v31 = vld [vmem:[%s11282_s13 + $0x208] sm:$0xff]  ;;  %v5432_v53 = vld [vmem:[%s11282_s13 + $0x218] sm:$0xff] }
 0xd89   :  { %v6823_v20 = vpack.c.bf16 %v5430_v31, %v5427_v30  ;;  %v6812_v14 = vpack.c.bf16 %v5435_v25, %v5432_v53 }
 0xd8f   :  { %v5051_v27 = vld [vmem:[#allocation2 + $0x10] ss:$4 sm:$0x3]  ;;  %v5239_v24 = vld [vmem:[#allocation2 + $0x11] ss:$4 sm:$0x3] }
 0xd90   :  { %6400 = vmatmul.mubr.msk.f32.vlgmr.msra.gmra.mrb[0].mxu0 %vm4900_vm5, %v5051_v27  ;;  %6685 = vmatmul.mubr.msk.f32.vlgmr.msra.gmra.mrb[0].mxu1 %vm4900_vm5, %v5051_v27  ;;  %v5585_v44 = vld [vmem:[#allocation2 + $0x13] ss:$4 sm:$0x3] }
 0xd91   :  { %6775 = vmatpush1.bf16.msra.mxu0 %v6774_v4  ;;  %6790 = vmatpush3.bf16.msra.mxu1 %v6789_v56  ;;  %v5433_v4 = vld [vmem:[%s11282_s13 + $0x220] sm:$0xff]  ;;  %v5436_v56 = vld [vmem:[%s11282_s13 + $0x238] sm:$0xff] }
 0xd92   :  { %6777 = vmatprep.subr.bf16.mxu0 %v6776_v6  ;;  %6791 = vmatprep.subr.bf16.mxu1 %v8462_v26  ;;  %v5590_v6 = vld [vmem:[%s11282_s13 + $0x260] sm:$0xff]  ;;  %v6826_v28 = vpack.c.bf16 %v5436_v56, %v5433_v4 }
 0xd93   :  { %5331 = vmatprep.mubr.f32.mxu0 %v11506_v40  ;;  %6703 = vmatprep.mubr.msk.f32.mxu1 %vm8463_vm7, %v11506_v40  ;;  %v6828_v27 = vpack.c.bf16 %v5590_v6, %v5587_v3 }
 0xd95   :  { %6779 = vmatpush1.bf16.msra.mxu0 %v6778_v2  ;;  %6793 = vmatpush3.bf16.msra.mxu1 %v6792_v11  ;;  %v5591_v2 = vld [vmem:[%s11282_s13 + $0x268] sm:$0xff]  ;;  %v5593_v11 = vld [vmem:[%s11282_s13 + $0x278] sm:$0xff] }
 0xd96   :  { %6781 = vmatprep.subr.bf16.mxu0 %v6780_v58  ;;  %6794 = vmatprep.subr.bf16.mxu1 %v8462_v26  ;;  %v5412_v58 = vld [vmem:[#allocation2 + $0x12] ss:$4 sm:$0x3]  ;;  %v6845_v55 = vpack.c.bf16 %v5591_v2, %v5588_v22  ;;  %v6832_v45 = vpack.c.bf16 %v5596_v48, %v5593_v11 }
 0xd99   :  { %6783 = vmatpush1.bf16.msra.mxu0 %v6782_v0  ;;  %6796 = vmatpush3.bf16.msra.mxu1 %v6795_v16  ;;  %v5594_v0 = vld [vmem:[%s11282_s13 + $0x280] sm:$0xff]  ;;  %v5597_v16 = vld [vmem:[%s11282_s13 + $0x298] sm:$0xff] }
 0xd9a   :  { %6785 = vmatprep.subr.bf16.mxu0 %v6784_v33  ;;  %6797 = vmatprep.subr.bf16.mxu1 %v8462_v26  ;;  %v5602_v33 = vld [vmem:[%s11282_s13 + $0x2c0] sm:$0xff]  ;;  %v6848_v61 = vpack.c.bf16 %v5597_v16, %v5594_v0 }
 0xd9b   :  { %v6836_v17 = vpack.c.bf16 %v5602_v33, %v5599_v41 }
 0xd9d   :  { %6787 = vmatpush1.bf16.msra.mxu0 %v6786_v32  ;;  %6799 = vmatpush3.bf16.msra.mxu1 %v6798_v59  ;;  %v5600_v32 = vld [vmem:[%s11282_s13 + $0x2b0] sm:$0xff]  ;;  %v5603_v59 = vld [vmem:[%s11282_s13 + $0x2c8] sm:$0xff] }
 0xd9e   :  { %6801 = vmatprep.subr.bf16.mxu0 %v6800_v38  ;;  %6816 = vmatprep.subr.bf16.mxu1 %v8462_v26  ;;  %v5608_v38 = vld [vmem:[%s11282_s13 + $0x2f0] sm:$0xff]  ;;  %v6851_v12 = vpack.c.bf16 %v5603_v59, %v5600_v32 }
 0xd9f   :  { %v6840_v1 = vpack.c.bf16 %v5608_v38, %v5605_v10 }
 0xda0   :  { %6402 = vmatmul.mubr.msk.f32.vlgmr.msra.gmra.mrb[0].mxu0 %vm4900_vm5, %v5239_v24  ;;  %6704 = vmatmul.mubr.msk.f32.vlgmr.msra.gmra.mrb[0].mxu1 %vm4900_vm5, %v5239_v24  ;;  %v5609_v24 = vld [vmem:[%s11282_s13 + $0x2f8] sm:$0xff] }
 0xda1   :  { %6803 = vmatpush1.bf16.msra.mxu0 %v6802_v51  ;;  %6818 = vmatpush3.bf16.msra.mxu1 %v6817_v36  ;;  %v6842_v51 = vpack.c.bf16 %v5607_v43, %v5604_v34 }
 0xda2   :  { %6805 = vmatprep.subr.bf16.mxu0 %v6804_v39  ;;  %6819 = vmatprep.subr.bf16.mxu1 %v8462_v26  ;;  %v11508_v39 = vld [vmem:[#allocation17_spill] sm:$0xff] }
 0xda3   :  { %5504 = vmatprep.mubr.f32.mxu0 %v11506_v40  ;;  %6722 = vmatprep.mubr.msk.f32.mxu1 %vm8463_vm7, %v11506_v40  ;;  %v5231_v42 = vsub.s32 2, %v11508_v39  ;;  %v5227_v8 = vsub.s32 1, %v11508_v39 }
 0xda5   :  { %6807 = vmatpush1.bf16.msra.mxu0 %v6806_v54  ;;  %6821 = vmatpush3.bf16.msra.mxu1 %v6820_v13  ;;  %v5232_v7 = vrot.slane %v5050_v29, %v5231_v42  ;;  %v5228_v54 = vrot.slane %v5050_v29, %v5227_v8 }
 0xda6   :  { %6809 = vmatprep.subr.bf16.mxu0 %v6808_v9  ;;  %6822 = vmatprep.subr.bf16.mxu1 %v8462_v26 }
 0xda9   :  { %6811 = vmatpush1.bf16.msra.mxu0 %v6810_v35  ;;  %6824 = vmatpush3.bf16.msra.mxu1 %v6823_v20 }
 0xdaa   :  { %6813 = vmatprep.subr.bf16.mxu0 %v6812_v14  ;;  %6825 = vmatprep.subr.bf16.mxu1 %v8462_v26 }
 0xdad   :  { %6815 = vmatpush1.bf16.msra.mxu0 %v6814_v5  ;;  %6827 = vmatpush3.bf16.msra.mxu1 %v6826_v28  ;;  %v8464_v5 = vmov 1983009808  }
 0xdae   :  { %6829 = vmatprep.subr.bf16.mxu0 %v6828_v27  ;;  %6844 = vmatprep.subr.bf16.mxu1 %v8462_v26  ;;  %v5780_v28 = vunpack.c.l.s4 %v8464_v5 }
 0xdb0   :  { %6404 = vmatmul.mubr.msk.f32.vlgmr.msra.gmra.mrb[0].mxu0 %vm4900_vm5, %v5412_v58  ;;  %6723 = vmatmul.mubr.msk.f32.vlgmr.msra.gmra.mrb[0].mxu1 %vm4900_vm5, %v5412_v58  ;;  %v5781_v57 = vunpack.c.0.s8 %v5780_v28 }
 0xdb1   :  { %6831 = vmatpush1.bf16.msra.mxu0 %v6830_v63  ;;  %6846 = vmatpush3.bf16.msra.mxu1 %v6845_v55 }
 0xdb2   :  { %6833 = vmatprep.subr.bf16.mxu0 %v6832_v45  ;;  %6847 = vmatprep.subr.bf16.mxu1 %v8462_v26  ;;  %v5784_v22 = vsub.s32 %v5781_v57, %v11508_v39 }
 0xdb3   :  { %5677 = vmatprep.mubr.f32.mxu0 %v11506_v40  ;;  %6741 = vmatprep.mubr.msk.f32.mxu1 %vm8463_vm7, %v11506_v40  ;;  %v5606_v40 = vld [vmem:[%s11282_s13 + $0x2e0] sm:$0xff]  ;;  %s8465_s13 = smov [#allocation4]  }
 0xdb4   :  { %v6854_v36 = vpack.c.bf16 %v5609_v24, %v5606_v40  ;;  %s5802_s14 = sshll.u32 %s8465_s13, 4  ;;  %s5803_s14 = int_to_ptr.vmem [resolvable:$true] %s5802_s14 }
 0xdb5   :  { %6835 = vmatpush1.bf16.msra.mxu0 %v6834_v15  ;;  %6849 = vmatpush3.bf16.msra.mxu1 %v6848_v61  ;;  %s7852_s5 = scalar_lea.vmem %s5803_s14, 96  ;;  %p7857_p11 = scmp.lt.s32.totalorder %s5803_s14, %s5803_s14 }
 0xdb6   :  { %6837 = vmatprep.subr.bf16.mxu0 %v6836_v17  ;;  %6850 = vmatprep.subr.bf16.mxu1 %v8462_v26  ;;  %p7853_p10 = scmp.ne.s32.totalorder %s5803_s14, %s7852_s5  ;;  %p7858_p12 = scmp.lt.s32.totalorder %s7852_s5, %s7852_s5 }
 0xdb8   :  { %p7859_p13 = por %p7858_p12, %p7857_p11 }
 0xdb9   :  { %6839 = vmatpush1.bf16.msra.mxu0 %v6838_v49  ;;  %6852 = vmatpush3.bf16.msra.mxu1 %v6851_v12 }
 0xdba   :  { %6841 = vmatprep.subr.bf16.mxu0 %v6840_v1  ;;  %6853 = vmatprep.subr.bf16.mxu1 %v8462_v26  ;;  %p7860_p0 = pnand %p7859_p13, %p7853_p10 }
 0xdbd   :  { %6843 = vmatpush1.bf16.msra.mxu0 %v6842_v51  ;;  %6855 = vmatpush3.bf16.msra.mxu1 %v6854_v36 }
 0xdc0   :  { %6406 = vmatmul.mubr.msk.f32.vlgmr.msra.gmra.mrb[0].mxu0 %vm4900_vm5, %v5585_v44  ;;  %6742 = vmatmul.mubr.msk.f32.vlgmr.msra.gmra.mrb[0].mxu1 %vm4900_vm5, %v5585_v44 }
 0xe93   :  { %v5679_v26 = vpop.f32.mrb[0].mxu0  ;;  %v5750_v13 = vpop.f32.mrb[0].mxu1 }
 0xe94   :  { %v6956_v46 = vadd.f32 %v5679_v26, %v5224_v23  ;;  %v6958_v9 = vadd.f32 %v5750_v13, %v5232_v7  ;;  %v5681_v21 = vpop.f32.mrb[1].mxu0  ;;  %v6743_v30 = vpop.f32.mrb[1].mxu1 }
 0xe95   :  { %v6957_v31 = vadd.f32 %v5681_v21, %v5228_v54 }
 0xe96   :  { %v5757_v53 = vsub.f32 0.0, %v6956_v46  ;;  %v5759_v25 = vsub.f32 0.0, %v6958_v9 }
 0xe97   :  { %v5758_v35 = vsub.f32 0.0, %v6957_v31 }
 0xe98   :  { %v5760_v20 = vmul.f32 1.442695, %v5757_v53  ;;  %v5764_v52 = vmul.f32 1.442695, %v5759_v25 }
 0xe99   :  { %v5762_v14 = vmul.f32 1.442695, %v5758_v35 }
 0xe9a   :  { %7840 = vpow2.f32 %v5760_v20 }
 0xe9b   :  { %7842 = vpow2.f32 %v5764_v52 }
 0xe9c   :  { %7844 = vpow2.f32 %v5762_v14 }
 0xea4   :  { %v7841_v47 = vpop.eup %7840 }
 0xea5   :  { %v7843_v62 = vpop.eup %7842  ;;  %v5766_v4 = vadd.f32 1.0, %v7841_v47 }
 0xea6   :  { %v7845_v56 = vpop.eup %7844  ;;  %v5768_v3 = vadd.f32 1.0, %v7843_v62 }
 0xea7   :  { %7846 = vrcp.f32 %v5766_v4  ;;  %v5767_v6 = vadd.f32 1.0, %v7845_v56 }
 0xea8   :  { %7848 = vrcp.f32 %v5768_v3 }
 0xea9   :  { %7850 = vrcp.f32 %v5767_v6 }
 0xeb1   :  { %v7847_v27 = vpop.eup %7846 }
 0xeb2   :  { %v7849_v37 = vpop.eup %7848 }
 0xeb3   :  { %v7851_v2 = vpop.eup %7850  ;;  %v5792_v58 = vrot.slane %v7849_v37, %v5784_v22 }
 0xeb4   :  { %v5778_v11 = vcombine.low %v7847_v27, %v7851_v2 }
 0xeb6   :  { %v5785_v48 = vrot.slane %v5778_v11, %v5784_v22 }
 0xeb8   :  { %v5793_v63 = vcombine.low %v5785_v48, %v5792_v58 }
 0xeba   :  { %5795 = vst [vmem:[#allocation4] sm:$0x3f] %v5793_v63 }
 0xebb   :  { %7863 = shalt.err (!%p7860_p0)
}
 0xebc   :  { %s7864_s4 = scalar_lea.hbm %s11284_s15, 96 }
 0xebd   :  { %p7865_p1 = scmp.ne.s32.totalorder %s11284_s15, %s7864_s4  ;;  %p7868_p2 = scmp.lt.u32.totalorder %s7864_s4, %s11284_s15 }
 0xebf   :  { %p7870_p3 = pnand %p7868_p2, %p7865_p1 }
 0xec1   :  { %7873 = shalt.err (!%p7870_p3)
}
 0xec2   :  { %5805 = dma.vmem_to_hbm [thread:$0]  %s5803_s14, 96, %s11284_s15, [#allocation5]  }
 0xec3   :  { %8162 = dma.done.wait [#allocation5], 96  }
 0xec4   :  { %8163 = vsyncadd [#allocation5], 4294967200 }
 0xec5   :  { %5809 = vsyncpa [#allocation5], 1 }

</bundles_post_ra>
